<compile_context>
chip_gen: v5e
topology: v5e:2x2
jax: 0.10.0
libtpu: 0.0.40
codegen_flags: <defaults>
</compile_context>

<pallas_src>
import functools

import jax
import jax.numpy as jnp
from jax.experimental import pallas as pl
from jax.experimental.pallas import tpu as pltpu


def _round_up(x, m):
    return (x + m - 1) // m * m


def _pick_row_tile(m_total, target=512):
    """Largest multiple-of-8 divisor of m_total that is <= target.

    Falls back to m_total (full extent is always a legal block size)."""
    best = m_total
    t = 8
    while t <= min(m_total, target):
        if m_total % t == 0:
            best = t
        t += 8
    return best


# --------------------------- fused 3x3 conv kernel ---------------------------

def _conv3x3_kernel(x_ref, w_ref, b_ref, *rest,
                    tm, wp, cout, apply_relu, has_residual):
    """One row-tile of a 'same' 3x3 convolution on a flattened padded image.

    x_ref : (1, R, Cin)      bf16  whole padded image of this batch element,
                                   rows flattened as h*(W+2)+w (+ zero tail)
    w_ref : (9, Cin, Cout)   bf16  tap-major weights
    b_ref : (1, Cout)        f32
    res   : (1, tm, Cout)    f32   optional fused residual
    o_ref : (1, tm, Cout)          output row tile
    """
    if has_residual:
        res_ref, o_ref = rest
    else:
        (o_ref,) = rest

    halo = 2 * wp + 2                              # max tap offset
    o0 = pl.multiple_of(pl.program_id(1) * tm, 8)  # aligned dynamic start
    # One aligned dynamic load of the tile + halo; taps are static slices.
    xw = x_ref[0, pl.ds(o0, tm + halo), :]         # (tm + halo, Cin) bf16

    acc = jnp.zeros((tm, cout), jnp.float32)
    for dy in range(3):
        for dx in range(3):
            off = dy * wp + dx
            acc = acc + jnp.dot(xw[off:off + tm, :], w_ref[dy * 3 + dx],
                                preferred_element_type=jnp.float32)

    y = acc + b_ref[...]                           # f32 epilogue
    if apply_relu:
        y = jnp.maximum(y, 0.0)
    if has_residual:
        y = y + res_ref[0]
    o_ref[0] = y.astype(o_ref.dtype)


def conv3x3_nhwc(x, w, b, *, apply_relu, residual=None,
                 out_dtype=jnp.float32, row_tile_target=512):
    """'same' 3x3 conv, stride 1, NHWC activations, torch-layout weights.

    x        : [B, H, W, Cin]   (any float dtype; cast to bf16 for the MXU)
    w        : [Cout, Cin, 3, 3] (torch OIHW layout)
    b        : [Cout]
    residual : optional [B, H, W, Cout], added after the activation (fused)
    returns  : [B, H, W, Cout] in out_dtype
    """
    B, H, W, Cin = x.shape
    Cout = w.shape[0]
    Wp = W + 2                      # padded width
    M = H * Wp                      # flattened output rows we compute
    halo = 2 * Wp + 2
    R = _round_up(M + halo, 8)      # rows of the flattened padded input

    # zero-pad spatially, cast once to bf16, flatten rows (+ zero tail rows)
    xp = jnp.pad(x.astype(jnp.bfloat16), ((0, 0), (1, 1), (1, 1), (0, 0)))
    xf = xp.reshape(B, (H + 2) * Wp, Cin)
    xf = jnp.pad(xf, ((0, 0), (0, R - (H + 2) * Wp), (0, 0)))

    wm = jnp.transpose(w, (2, 3, 1, 0)).reshape(9, Cin, Cout).astype(jnp.bfloat16)
    bm = b.astype(jnp.float32).reshape(1, Cout)

    tm = _pick_row_tile(M, row_tile_target)
    has_res = residual is not None

    in_specs = [
        pl.BlockSpec((1, R, Cin), lambda bb, rr: (bb, 0, 0)),     # whole image
        pl.BlockSpec((9, Cin, Cout), lambda bb, rr: (0, 0, 0)),   # whole weight
        pl.BlockSpec((1, Cout), lambda bb, rr: (0, 0)),           # bias
    ]
    args = [xf, wm, bm]
    if has_res:
        # residual in the same flattened padded-width layout (junk cols = 0)
        resf = jnp.pad(residual.astype(jnp.float32),
                       ((0, 0), (0, 0), (0, 2), (0, 0))).reshape(B, M, Cout)
        in_specs.append(pl.BlockSpec((1, tm, Cout), lambda bb, rr: (bb, rr, 0)))
        args.append(resf)

    kernel = functools.partial(_conv3x3_kernel, tm=tm, wp=Wp, cout=Cout,
                               apply_relu=apply_relu, has_residual=has_res)
    y = pl.pallas_call(
        kernel,
        out_shape=jax.ShapeDtypeStruct((B, M, Cout), out_dtype),
        grid_spec=pltpu.PrefetchScalarGridSpec(
            num_scalar_prefetch=0,
            grid=(B, M // tm),
            in_specs=in_specs,
            out_specs=pl.BlockSpec((1, tm, Cout), lambda bb, rr: (bb, rr, 0)),
        ),
        compiler_params=pltpu.CompilerParams(
            dimension_semantics=("parallel", "parallel")),
    )(*args)

    # drop the two discarded pad columns per row, restore NHWC
    return y.reshape(B, H, Wp, Cout)[:, :, :W, :]


# ------------------------------ module forward -------------------------------

def upsample2x_nhwc(x):
    # TODO(synk): nearest-neighbour 2x upsample is pure data movement and is
    # left to XLA (jnp.repeat); it could be fused into the conv input gather.
    return jnp.repeat(jnp.repeat(x, 2, axis=1), 2, axis=2)


def res_block_up(params, x_nchw):
    """Forward pass of ResBlockUp (NCHW in / NCHW out, like PyTorch)."""
    x = jnp.transpose(x_nchw, (0, 2, 3, 1))                         # NHWC once
    # shortcut: conv (no activation) -> nearest 2x upsample
    sc = conv3x3_nhwc(x, params["wsc"], params["bsc"],
                      apply_relu=False, out_dtype=jnp.float32)
    sc = upsample2x_nhwc(sc)
    # main path: upsample -> conv1+relu -> conv2+relu (+ shortcut, fused)
    h = upsample2x_nhwc(x)
    h = conv3x3_nhwc(h, params["w1"], params["b1"],
                     apply_relu=True, out_dtype=jnp.bfloat16)
    out = conv3x3_nhwc(h, params["w2"], params["b2"],
                       apply_relu=True, residual=sc, out_dtype=jnp.float32)
    return jnp.transpose(out, (0, 3, 1, 2))                         # back NCHW


# ---------------------------- pure-JAX reference ------------------------------

def res_block_up_ref(params, x):
    def conv(x, w, b):
        y = jax.lax.conv_general_dilated(
            x.astype(jnp.float32), w.astype(jnp.float32),
            window_strides=(1, 1), padding=((1, 1), (1, 1)),
            dimension_numbers=("NCHW", "OIHW", "NCHW"),
            precision=jax.lax.Precision.HIGHEST)
        return y + b.reshape(1, -1, 1, 1)

    def up(x):
        return jnp.repeat(jnp.repeat(x, 2, axis=2), 2, axis=3)

    sc = up(conv(x, params["wsc"], params["bsc"]))
    h = up(x)
    h = jnp.maximum(conv(h, params["w1"], params["b1"]), 0.0)
    h = jnp.maximum(conv(h, params["w2"], params["b2"]), 0.0)
    return h + sc


# ------------------------------ parameter init --------------------------------

def _conv_init(key, cout, cin, k=3):
    kw_, kb_ = jax.random.split(key)
    bound = 1.0 / (cin * k * k) ** 0.5       # torch Conv2d default-style bound
    w = jax.random.uniform(kw_, (cout, cin, k, k), jnp.float32, -bound, bound)
    b = jax.random.uniform(kb_, (cout,), jnp.float32, -bound, bound)
    return w, b


def init_params(key, in_dim, hidden_dim1):
    keys = jax.random.split(key, 3)
    p = {}
    p["wsc"], p["bsc"] = _conv_init(keys[0], hidden_dim1, in_dim, 3)
    p["w1"], p["b1"] = _conv_init(keys[1], hidden_dim1, in_dim, 3)
    p["w2"], p["b2"] = _conv_init(keys[2], hidden_dim1, hidden_dim1, 3)
    return p


# ----------------------------------- main --------------------------------------

if __name__ == "__main__":
    key = jax.random.PRNGKey(0)
    B, in_dim, hidden_dim1, H, W = 2, 64, 128, 16, 16

    pkey, xkey = jax.random.split(key)
    params = init_params(pkey, in_dim, hidden_dim1)
    x = jax.random.normal(xkey, (B, in_dim, H, W), jnp.float32)

    fwd = jax.jit(res_block_up)
    out = jax.block_until_ready(fwd(params, x))
    assert out.shape == (B, hidden_dim1, 2 * H, 2 * W), out.shape
    assert bool(jnp.all(jnp.isfinite(out)))

    # correctness check against the f32 XLA reference (bf16 MXU operands =>
    # ~0.5% relative error budget; accumulation/epilogue stay in f32)
    ref = res_block_up_ref(params, x)
    max_err = float(jnp.max(jnp.abs(out - ref)))
    scale = max(float(jnp.max(jnp.abs(ref))), 1.0)
    assert max_err <= 3e-2 * scale, (max_err, scale)

    print("KERNEL_OK")
</pallas_src>

<mosaic_0001>
module attributes {stable_mosaic.version = 11 : i64} {
  func.func @_conv3x3_kernel(%arg0: i32, %arg1: i32, %arg2: memref<1x328x64xbf16, #tpu.memory_space<vmem>>, %arg3: memref<9x64x128xbf16, #tpu.memory_space<vmem>>, %arg4: memref<1x128xf32, #tpu.memory_space<vmem>>, %arg5: memref<1x288x128xf32, #tpu.memory_space<vmem>>) attributes {dimension_semantics = [#tpu.dimension_semantics<parallel>, #tpu.dimension_semantics<parallel>], iteration_bounds = array<i64: 2, 1>, scalar_prefetch = 0 : i64, scratch_operands = 0 : i64, tpu.core_type = #tpu.core_type<tc>, window_params = [{transform_indices = @transform_0, window_bounds = array<i64: 1, 328, 64>}, {pipeline_mode = #tpu.pipeline_mode<synchronous>, transform_indices = @transform_1, window_bounds = array<i64: 9, 64, 128>}, {pipeline_mode = #tpu.pipeline_mode<synchronous>, transform_indices = @transform_2, window_bounds = array<i64: 1, 128>}, {transform_indices = @transform_3, window_bounds = array<i64: 1, 288, 128>}]} {
    %c288_i32 = arith.constant 288 : i32
    %0 = arith.muli %arg1, %c288_i32 : i32
    %1 = tpu.assume_multiple %0, 8 : i32
    %c0 = arith.constant 0 : index
    %2 = arith.index_cast %1 : i32 to index
    %c0_0 = arith.constant 0 : index
    %3 = vector.load %arg2[%c0, %2, %c0_0] : memref<1x328x64xbf16, #tpu.memory_space<vmem>>, vector<1x326x64xbf16>
    %4 = vector.shape_cast %3 : vector<1x326x64xbf16> to vector<326x64xbf16>
    %cst = arith.constant 0.000000e+00 : f32
    %5 = vector.broadcast %cst : f32 to vector<288x128xf32>
    %6 = vector.extract_strided_slice %4 {offsets = [0, 0], sizes = [288, 64], strides = [1, 1]} : vector<326x64xbf16> to vector<288x64xbf16>
    %c0_1 = arith.constant 0 : index
    %c0_2 = arith.constant 0 : index
    %c0_3 = arith.constant 0 : index
    %7 = vector.load %arg3[%c0_1, %c0_2, %c0_3] : memref<9x64x128xbf16, #tpu.memory_space<vmem>>, vector<1x64x128xbf16>
    %8 = vector.shape_cast %7 : vector<1x64x128xbf16> to vector<64x128xbf16>
    %cst_4 = arith.constant dense<0.000000e+00> : vector<288x128xf32>
    %9 = tpu.matmul %6, %8, %cst_4 {dimension_numbers = #tpu.dot_dimension_numbers<[1], [0], [0], [1], [0, 0, 1, 1], [], []>} : vector<288x64xbf16>, vector<64x128xbf16>, vector<288x128xf32> -> vector<288x128xf32>
    %10 = arith.addf %5, %9 : vector<288x128xf32>
    %11 = vector.extract_strided_slice %4 {offsets = [1, 0], sizes = [288, 64], strides = [1, 1]} : vector<326x64xbf16> to vector<288x64xbf16>
    %c1 = arith.constant 1 : index
    %c0_5 = arith.constant 0 : index
    %c0_6 = arith.constant 0 : index
    %12 = vector.load %arg3[%c1, %c0_5, %c0_6] : memref<9x64x128xbf16, #tpu.memory_space<vmem>>, vector<1x64x128xbf16>
    %13 = vector.shape_cast %12 : vector<1x64x128xbf16> to vector<64x128xbf16>
    %cst_7 = arith.constant dense<0.000000e+00> : vector<288x128xf32>
    %14 = tpu.matmul %11, %13, %cst_7 {dimension_numbers = #tpu.dot_dimension_numbers<[1], [0], [0], [1], [0, 0, 1, 1], [], []>} : vector<288x64xbf16>, vector<64x128xbf16>, vector<288x128xf32> -> vector<288x128xf32>
    %15 = arith.addf %10, %14 : vector<288x128xf32>
    %16 = vector.extract_strided_slice %4 {offsets = [2, 0], sizes = [288, 64], strides = [1, 1]} : vector<326x64xbf16> to vector<288x64xbf16>
    %c2 = arith.constant 2 : index
    %c0_8 = arith.constant 0 : index
    %c0_9 = arith.constant 0 : index
    %17 = vector.load %arg3[%c2, %c0_8, %c0_9] : memref<9x64x128xbf16, #tpu.memory_space<vmem>>, vector<1x64x128xbf16>
    %18 = vector.shape_cast %17 : vector<1x64x128xbf16> to vector<64x128xbf16>
    %cst_10 = arith.constant dense<0.000000e+00> : vector<288x128xf32>
    %19 = tpu.matmul %16, %18, %cst_10 {dimension_numbers = #tpu.dot_dimension_numbers<[1], [0], [0], [1], [0, 0, 1, 1], [], []>} : vector<288x64xbf16>, vector<64x128xbf16>, vector<288x128xf32> -> vector<288x128xf32>
    %20 = arith.addf %15, %19 : vector<288x128xf32>
    %21 = vector.extract_strided_slice %4 {offsets = [18, 0], sizes = [288, 64], strides = [1, 1]} : vector<326x64xbf16> to vector<288x64xbf16>
    %c3 = arith.constant 3 : index
    %c0_11 = arith.constant 0 : index
    %c0_12 = arith.constant 0 : index
    %22 = vector.load %arg3[%c3, %c0_11, %c0_12] : memref<9x64x128xbf16, #tpu.memory_space<vmem>>, vector<1x64x128xbf16>
    %23 = vector.shape_cast %22 : vector<1x64x128xbf16> to vector<64x128xbf16>
    %cst_13 = arith.constant dense<0.000000e+00> : vector<288x128xf32>
    %24 = tpu.matmul %21, %23, %cst_13 {dimension_numbers = #tpu.dot_dimension_numbers<[1], [0], [0], [1], [0, 0, 1, 1], [], []>} : vector<288x64xbf16>, vector<64x128xbf16>, vector<288x128xf32> -> vector<288x128xf32>
    %25 = arith.addf %20, %24 : vector<288x128xf32>
    %26 = vector.extract_strided_slice %4 {offsets = [19, 0], sizes = [288, 64], strides = [1, 1]} : vector<326x64xbf16> to vector<288x64xbf16>
    %c4 = arith.constant 4 : index
    %c0_14 = arith.constant 0 : index
    %c0_15 = arith.constant 0 : index
    %27 = vector.load %arg3[%c4, %c0_14, %c0_15] : memref<9x64x128xbf16, #tpu.memory_space<vmem>>, vector<1x64x128xbf16>
    %28 = vector.shape_cast %27 : vector<1x64x128xbf16> to vector<64x128xbf16>
    %cst_16 = arith.constant dense<0.000000e+00> : vector<288x128xf32>
    %29 = tpu.matmul %26, %28, %cst_16 {dimension_numbers = #tpu.dot_dimension_numbers<[1], [0], [0], [1], [0, 0, 1, 1], [], []>} : vector<288x64xbf16>, vector<64x128xbf16>, vector<288x128xf32> -> vector<288x128xf32>
    %30 = arith.addf %25, %29 : vector<288x128xf32>
    %31 = vector.extract_strided_slice %4 {offsets = [20, 0], sizes = [288, 64], strides = [1, 1]} : vector<326x64xbf16> to vector<288x64xbf16>
    %c5 = arith.constant 5 : index
    %c0_17 = arith.constant 0 : index
    %c0_18 = arith.constant 0 : index
    %32 = vector.load %arg3[%c5, %c0_17, %c0_18] : memref<9x64x128xbf16, #tpu.memory_space<vmem>>, vector<1x64x128xbf16>
    %33 = vector.shape_cast %32 : vector<1x64x128xbf16> to vector<64x128xbf16>
    %cst_19 = arith.constant dense<0.000000e+00> : vector<288x128xf32>
    %34 = tpu.matmul %31, %33, %cst_19 {dimension_numbers = #tpu.dot_dimension_numbers<[1], [0], [0], [1], [0, 0, 1, 1], [], []>} : vector<288x64xbf16>, vector<64x128xbf16>, vector<288x128xf32> -> vector<288x128xf32>
    %35 = arith.addf %30, %34 : vector<288x128xf32>
    %36 = vector.extract_strided_slice %4 {offsets = [36, 0], sizes = [288, 64], strides = [1, 1]} : vector<326x64xbf16> to vector<288x64xbf16>
    %c6 = arith.constant 6 : index
    %c0_20 = arith.constant 0 : index
    %c0_21 = arith.constant 0 : index
    %37 = vector.load %arg3[%c6, %c0_20, %c0_21] : memref<9x64x128xbf16, #tpu.memory_space<vmem>>, vector<1x64x128xbf16>
    %38 = vector.shape_cast %37 : vector<1x64x128xbf16> to vector<64x128xbf16>
    %cst_22 = arith.constant dense<0.000000e+00> : vector<288x128xf32>
    %39 = tpu.matmul %36, %38, %cst_22 {dimension_numbers = #tpu.dot_dimension_numbers<[1], [0], [0], [1], [0, 0, 1, 1], [], []>} : vector<288x64xbf16>, vector<64x128xbf16>, vector<288x128xf32> -> vector<288x128xf32>
    %40 = arith.addf %35, %39 : vector<288x128xf32>
    %41 = vector.extract_strided_slice %4 {offsets = [37, 0], sizes = [288, 64], strides = [1, 1]} : vector<326x64xbf16> to vector<288x64xbf16>
    %c7 = arith.constant 7 : index
    %c0_23 = arith.constant 0 : index
    %c0_24 = arith.constant 0 : index
    %42 = vector.load %arg3[%c7, %c0_23, %c0_24] : memref<9x64x128xbf16, #tpu.memory_space<vmem>>, vector<1x64x128xbf16>
    %43 = vector.shape_cast %42 : vector<1x64x128xbf16> to vector<64x128xbf16>
    %cst_25 = arith.constant dense<0.000000e+00> : vector<288x128xf32>
    %44 = tpu.matmul %41, %43, %cst_25 {dimension_numbers = #tpu.dot_dimension_numbers<[1], [0], [0], [1], [0, 0, 1, 1], [], []>} : vector<288x64xbf16>, vector<64x128xbf16>, vector<288x128xf32> -> vector<288x128xf32>
    %45 = arith.addf %40, %44 : vector<288x128xf32>
    %46 = vector.extract_strided_slice %4 {offsets = [38, 0], sizes = [288, 64], strides = [1, 1]} : vector<326x64xbf16> to vector<288x64xbf16>
    %c8 = arith.constant 8 : index
    %c0_26 = arith.constant 0 : index
    %c0_27 = arith.constant 0 : index
    %47 = vector.load %arg3[%c8, %c0_26, %c0_27] : memref<9x64x128xbf16, #tpu.memory_space<vmem>>, vector<1x64x128xbf16>
    %48 = vector.shape_cast %47 : vector<1x64x128xbf16> to vector<64x128xbf16>
    %cst_28 = arith.constant dense<0.000000e+00> : vector<288x128xf32>
    %49 = tpu.matmul %46, %48, %cst_28 {dimension_numbers = #tpu.dot_dimension_numbers<[1], [0], [0], [1], [0, 0, 1, 1], [], []>} : vector<288x64xbf16>, vector<64x128xbf16>, vector<288x128xf32> -> vector<288x128xf32>
    %50 = arith.addf %45, %49 : vector<288x128xf32>
    %c0_29 = arith.constant 0 : index
    %c0_30 = arith.constant 0 : index
    %51 = vector.load %arg4[%c0_29, %c0_30] : memref<1x128xf32, #tpu.memory_space<vmem>>, vector<1x128xf32>
    %52 = vector.broadcast %51 : vector<1x128xf32> to vector<288x128xf32>
    %53 = arith.addf %50, %52 : vector<288x128xf32>
    %c0_31 = arith.constant 0 : index
    %c0_32 = arith.constant 0 : index
    %c0_33 = arith.constant 0 : index
    %54 = vector.load %arg5[%c0_31, %c0_32, %c0_33] : memref<1x288x128xf32, #tpu.memory_space<vmem>>, vector<1x288x128xf32>
    %55 = vector.shape_cast %54 : vector<1x288x128xf32> to vector<288x128xf32>
    %56 = vector.shape_cast %53 : vector<288x128xf32> to vector<1x288x128xf32>
    tpu.vector_store %arg5[%c0_31, %c0_32, %c0_33], %56 {strides = array<i32>} : memref<1x288x128xf32, #tpu.memory_space<vmem>>, vector<1x288x128xf32>,
    return
  }
  func.func @transform_0(%arg0: i32, %arg1: i32) -> (i32, i32, i32) {
    %c0_i32 = arith.constant 0 : i32
    %c0_i32_0 = arith.constant 0 : i32
    %c0_i32_1 = arith.constant 0 : i32
    return %arg0, %c0_i32, %c0_i32_0 : i32, i32, i32
  }
  func.func @transform_1(%arg0: i32, %arg1: i32) -> (i32, i32, i32) {
    %c0_i32 = arith.constant 0 : i32
    %c0_i32_0 = arith.constant 0 : i32
    %c0_i32_1 = arith.constant 0 : i32
    %c0_i32_2 = arith.constant 0 : i32
    return %c0_i32, %c0_i32_0, %c0_i32_1 : i32, i32, i32
  }
  func.func @transform_2(%arg0: i32, %arg1: i32) -> (i32, i32) {
    %c0_i32 = arith.constant 0 : i32
    %c0_i32_0 = arith.constant 0 : i32
    %c0_i32_1 = arith.constant 0 : i32
    return %c0_i32, %c0_i32_0 : i32, i32
  }
  func.func @transform_3(%arg0: i32, %arg1: i32) -> (i32, i32, i32) {
    %c0_i32 = arith.constant 0 : i32
    %c0_i32_0 = arith.constant 0 : i32
    return %arg0, %arg1, %c0_i32 : i32, i32, i32
  }
}

module attributes {stable_mosaic.version = 11 : i64} {
  func.func @_conv3x3_kernel(%arg0: i32, %arg1: i32, %arg2: memref<1x1160x64xbf16, #tpu.memory_space<vmem>>, %arg3: memref<9x64x128xbf16, #tpu.memory_space<vmem>>, %arg4: memref<1x128xf32, #tpu.memory_space<vmem>>, %arg5: memref<1x272x128xbf16, #tpu.memory_space<vmem>>) attributes {dimension_semantics = [#tpu.dimension_semantics<parallel>, #tpu.dimension_semantics<parallel>], iteration_bounds = array<i64: 2, 4>, scalar_prefetch = 0 : i64, scratch_operands = 0 : i64, tpu.core_type = #tpu.core_type<tc>, window_params = [{transform_indices = @transform_0, window_bounds = array<i64: 1, 1160, 64>}, {pipeline_mode = #tpu.pipeline_mode<synchronous>, transform_indices = @transform_1, window_bounds = array<i64: 9, 64, 128>}, {pipeline_mode = #tpu.pipeline_mode<synchronous>, transform_indices = @transform_2, window_bounds = array<i64: 1, 128>}, {transform_indices = @transform_3, window_bounds = array<i64: 1, 272, 128>}]} {
    %c272_i32 = arith.constant 272 : i32
    %0 = arith.muli %arg1, %c272_i32 : i32
    %1 = tpu.assume_multiple %0, 8 : i32
    %c0 = arith.constant 0 : index
    %2 = arith.index_cast %1 : i32 to index
    %c0_0 = arith.constant 0 : index
    %3 = vector.load %arg2[%c0, %2, %c0_0] : memref<1x1160x64xbf16, #tpu.memory_space<vmem>>, vector<1x342x64xbf16>
    %4 = vector.shape_cast %3 : vector<1x342x64xbf16> to vector<342x64xbf16>
    %cst = arith.constant 0.000000e+00 : f32
    %5 = vector.broadcast %cst : f32 to vector<272x128xf32>
    %6 = vector.extract_strided_slice %4 {offsets = [0, 0], sizes = [272, 64], strides = [1, 1]} : vector<342x64xbf16> to vector<272x64xbf16>
    %c0_1 = arith.constant 0 : index
    %c0_2 = arith.constant 0 : index
    %c0_3 = arith.constant 0 : index
    %7 = vector.load %arg3[%c0_1, %c0_2, %c0_3] : memref<9x64x128xbf16, #tpu.memory_space<vmem>>, vector<1x64x128xbf16>
    %8 = vector.shape_cast %7 : vector<1x64x128xbf16> to vector<64x128xbf16>
    %cst_4 = arith.constant dense<0.000000e+00> : vector<272x128xf32>
    %9 = tpu.matmul %6, %8, %cst_4 {dimension_numbers = #tpu.dot_dimension_numbers<[1], [0], [0], [1], [0, 0, 1, 1], [], []>} : vector<272x64xbf16>, vector<64x128xbf16>, vector<272x128xf32> -> vector<272x128xf32>
    %10 = arith.addf %5, %9 : vector<272x128xf32>
    %11 = vector.extract_strided_slice %4 {offsets = [1, 0], sizes = [272, 64], strides = [1, 1]} : vector<342x64xbf16> to vector<272x64xbf16>
    %c1 = arith.constant 1 : index
    %c0_5 = arith.constant 0 : index
    %c0_6 = arith.constant 0 : index
    %12 = vector.load %arg3[%c1, %c0_5, %c0_6] : memref<9x64x128xbf16, #tpu.memory_space<vmem>>, vector<1x64x128xbf16>
    %13 = vector.shape_cast %12 : vector<1x64x128xbf16> to vector<64x128xbf16>
    %cst_7 = arith.constant dense<0.000000e+00> : vector<272x128xf32>
    %14 = tpu.matmul %11, %13, %cst_7 {dimension_numbers = #tpu.dot_dimension_numbers<[1], [0], [0], [1], [0, 0, 1, 1], [], []>} : vector<272x64xbf16>, vector<64x128xbf16>, vector<272x128xf32> -> vector<272x128xf32>
    %15 = arith.addf %10, %14 : vector<272x128xf32>
    %16 = vector.extract_strided_slice %4 {offsets = [2, 0], sizes = [272, 64], strides = [1, 1]} : vector<342x64xbf16> to vector<272x64xbf16>
    %c2 = arith.constant 2 : index
    %c0_8 = arith.constant 0 : index
    %c0_9 = arith.constant 0 : index
    %17 = vector.load %arg3[%c2, %c0_8, %c0_9] : memref<9x64x128xbf16, #tpu.memory_space<vmem>>, vector<1x64x128xbf16>
    %18 = vector.shape_cast %17 : vector<1x64x128xbf16> to vector<64x128xbf16>
    %cst_10 = arith.constant dense<0.000000e+00> : vector<272x128xf32>
    %19 = tpu.matmul %16, %18, %cst_10 {dimension_numbers = #tpu.dot_dimension_numbers<[1], [0], [0], [1], [0, 0, 1, 1], [], []>} : vector<272x64xbf16>, vector<64x128xbf16>, vector<272x128xf32> -> vector<272x128xf32>
    %20 = arith.addf %15, %19 : vector<272x128xf32>
    %21 = vector.extract_strided_slice %4 {offsets = [34, 0], sizes = [272, 64], strides = [1, 1]} : vector<342x64xbf16> to vector<272x64xbf16>
    %c3 = arith.constant 3 : index
    %c0_11 = arith.constant 0 : index
    %c0_12 = arith.constant 0 : index
    %22 = vector.load %arg3[%c3, %c0_11, %c0_12] : memref<9x64x128xbf16, #tpu.memory_space<vmem>>, vector<1x64x128xbf16>
    %23 = vector.shape_cast %22 : vector<1x64x128xbf16> to vector<64x128xbf16>
    %cst_13 = arith.constant dense<0.000000e+00> : vector<272x128xf32>
    %24 = tpu.matmul %21, %23, %cst_13 {dimension_numbers = #tpu.dot_dimension_numbers<[1], [0], [0], [1], [0, 0, 1, 1], [], []>} : vector<272x64xbf16>, vector<64x128xbf16>, vector<272x128xf32> -> vector<272x128xf32>
    %25 = arith.addf %20, %24 : vector<272x128xf32>
    %26 = vector.extract_strided_slice %4 {offsets = [35, 0], sizes = [272, 64], strides = [1, 1]} : vector<342x64xbf16> to vector<272x64xbf16>
    %c4 = arith.constant 4 : index
    %c0_14 = arith.constant 0 : index
    %c0_15 = arith.constant 0 : index
    %27 = vector.load %arg3[%c4, %c0_14, %c0_15] : memref<9x64x128xbf16, #tpu.memory_space<vmem>>, vector<1x64x128xbf16>
    %28 = vector.shape_cast %27 : vector<1x64x128xbf16> to vector<64x128xbf16>
    %cst_16 = arith.constant dense<0.000000e+00> : vector<272x128xf32>
    %29 = tpu.matmul %26, %28, %cst_16 {dimension_numbers = #tpu.dot_dimension_numbers<[1], [0], [0], [1], [0, 0, 1, 1], [], []>} : vector<272x64xbf16>, vector<64x128xbf16>, vector<272x128xf32> -> vector<272x128xf32>
    %30 = arith.addf %25, %29 : vector<272x128xf32>
    %31 = vector.extract_strided_slice %4 {offsets = [36, 0], sizes = [272, 64], strides = [1, 1]} : vector<342x64xbf16> to vector<272x64xbf16>
    %c5 = arith.constant 5 : index
    %c0_17 = arith.constant 0 : index
    %c0_18 = arith.constant 0 : index
    %32 = vector.load %arg3[%c5, %c0_17, %c0_18] : memref<9x64x128xbf16, #tpu.memory_space<vmem>>, vector<1x64x128xbf16>
    %33 = vector.shape_cast %32 : vector<1x64x128xbf16> to vector<64x128xbf16>
    %cst_19 = arith.constant dense<0.000000e+00> : vector<272x128xf32>
    %34 = tpu.matmul %31, %33, %cst_19 {dimension_numbers = #tpu.dot_dimension_numbers<[1], [0], [0], [1], [0, 0, 1, 1], [], []>} : vector<272x64xbf16>, vector<64x128xbf16>, vector<272x128xf32> -> vector<272x128xf32>
    %35 = arith.addf %30, %34 : vector<272x128xf32>
    %36 = vector.extract_strided_slice %4 {offsets = [68, 0], sizes = [272, 64], strides = [1, 1]} : vector<342x64xbf16> to vector<272x64xbf16>
    %c6 = arith.constant 6 : index
    %c0_20 = arith.constant 0 : index
    %c0_21 = arith.constant 0 : index
    %37 = vector.load %arg3[%c6, %c0_20, %c0_21] : memref<9x64x128xbf16, #tpu.memory_space<vmem>>, vector<1x64x128xbf16>
    %38 = vector.shape_cast %37 : vector<1x64x128xbf16> to vector<64x128xbf16>
    %cst_22 = arith.constant dense<0.000000e+00> : vector<272x128xf32>
    %39 = tpu.matmul %36, %38, %cst_22 {dimension_numbers = #tpu.dot_dimension_numbers<[1], [0], [0], [1], [0, 0, 1, 1], [], []>} : vector<272x64xbf16>, vector<64x128xbf16>, vector<272x128xf32> -> vector<272x128xf32>
    %40 = arith.addf %35, %39 : vector<272x128xf32>
    %41 = vector.extract_strided_slice %4 {offsets = [69, 0], sizes = [272, 64], strides = [1, 1]} : vector<342x64xbf16> to vector<272x64xbf16>
    %c7 = arith.constant 7 : index
    %c0_23 = arith.constant 0 : index
    %c0_24 = arith.constant 0 : index
    %42 = vector.load %arg3[%c7, %c0_23, %c0_24] : memref<9x64x128xbf16, #tpu.memory_space<vmem>>, vector<1x64x128xbf16>
    %43 = vector.shape_cast %42 : vector<1x64x128xbf16> to vector<64x128xbf16>
    %cst_25 = arith.constant dense<0.000000e+00> : vector<272x128xf32>
    %44 = tpu.matmul %41, %43, %cst_25 {dimension_numbers = #tpu.dot_dimension_numbers<[1], [0], [0], [1], [0, 0, 1, 1], [], []>} : vector<272x64xbf16>, vector<64x128xbf16>, vector<272x128xf32> -> vector<272x128xf32>
    %45 = arith.addf %40, %44 : vector<272x128xf32>
    %46 = vector.extract_strided_slice %4 {offsets = [70, 0], sizes = [272, 64], strides = [1, 1]} : vector<342x64xbf16> to vector<272x64xbf16>
    %c8 = arith.constant 8 : index
    %c0_26 = arith.constant 0 : index
    %c0_27 = arith.constant 0 : index
    %47 = vector.load %arg3[%c8, %c0_26, %c0_27] : memref<9x64x128xbf16, #tpu.memory_space<vmem>>, vector<1x64x128xbf16>
    %48 = vector.shape_cast %47 : vector<1x64x128xbf16> to vector<64x128xbf16>
    %cst_28 = arith.constant dense<0.000000e+00> : vector<272x128xf32>
    %49 = tpu.matmul %46, %48, %cst_28 {dimension_numbers = #tpu.dot_dimension_numbers<[1], [0], [0], [1], [0, 0, 1, 1], [], []>} : vector<272x64xbf16>, vector<64x128xbf16>, vector<272x128xf32> -> vector<272x128xf32>
    %50 = arith.addf %45, %49 : vector<272x128xf32>
    %c0_29 = arith.constant 0 : index
    %c0_30 = arith.constant 0 : index
    %51 = vector.load %arg4[%c0_29, %c0_30] : memref<1x128xf32, #tpu.memory_space<vmem>>, vector<1x128xf32>
    %52 = vector.broadcast %51 : vector<1x128xf32> to vector<272x128xf32>
    %53 = arith.addf %50, %52 : vector<272x128xf32>
    %cst_31 = arith.constant 0.000000e+00 : f32
    %54 = vector.broadcast %cst_31 : f32 to vector<272x128xf32>
    %55 = arith.maximumf %53, %54 : vector<272x128xf32>
    %56 = arith.truncf %55 : vector<272x128xf32> to vector<272x128xbf16>
    %c0_32 = arith.constant 0 : index
    %c0_33 = arith.constant 0 : index
    %c0_34 = arith.constant 0 : index
    %57 = vector.load %arg5[%c0_32, %c0_33, %c0_34] : memref<1x272x128xbf16, #tpu.memory_space<vmem>>, vector<1x272x128xbf16>
    %58 = vector.shape_cast %57 : vector<1x272x128xbf16> to vector<272x128xbf16>
    %59 = vector.shape_cast %56 : vector<272x128xbf16> to vector<1x272x128xbf16>
    tpu.vector_store %arg5[%c0_32, %c0_33, %c0_34], %59 {strides = array<i32>} : memref<1x272x128xbf16, #tpu.memory_space<vmem>>, vector<1x272x128xbf16>,
    return
  }
  func.func @transform_0(%arg0: i32, %arg1: i32) -> (i32, i32, i32) {
    %c0_i32 = arith.constant 0 : i32
    %c0_i32_0 = arith.constant 0 : i32
    %c0_i32_1 = arith.constant 0 : i32
    return %arg0, %c0_i32, %c0_i32_0 : i32, i32, i32
  }
  func.func @transform_1(%arg0: i32, %arg1: i32) -> (i32, i32, i32) {
    %c0_i32 = arith.constant 0 : i32
    %c0_i32_0 = arith.constant 0 : i32
    %c0_i32_1 = arith.constant 0 : i32
    %c0_i32_2 = arith.constant 0 : i32
    return %c0_i32, %c0_i32_0, %c0_i32_1 : i32, i32, i32
  }
  func.func @transform_2(%arg0: i32, %arg1: i32) -> (i32, i32) {
    %c0_i32 = arith.constant 0 : i32
    %c0_i32_0 = arith.constant 0 : i32
    %c0_i32_1 = arith.constant 0 : i32
    return %c0_i32, %c0_i32_0 : i32, i32
  }
  func.func @transform_3(%arg0: i32, %arg1: i32) -> (i32, i32, i32) {
    %c0_i32 = arith.constant 0 : i32
    %c0_i32_0 = arith.constant 0 : i32
    return %arg0, %arg1, %c0_i32 : i32, i32, i32
  }
}

module attributes {stable_mosaic.version = 11 : i64} {
  func.func @_conv3x3_kernel(%arg0: i32, %arg1: i32, %arg2: memref<1x1160x128xbf16, #tpu.memory_space<vmem>>, %arg3: memref<9x128x128xbf16, #tpu.memory_space<vmem>>, %arg4: memref<1x128xf32, #tpu.memory_space<vmem>>, %arg5: memref<1x272x128xf32, #tpu.memory_space<vmem>>, %arg6: memref<1x272x128xf32, #tpu.memory_space<vmem>>) attributes {dimension_semantics = [#tpu.dimension_semantics<parallel>, #tpu.dimension_semantics<parallel>], iteration_bounds = array<i64: 2, 4>, scalar_prefetch = 0 : i64, scratch_operands = 0 : i64, tpu.core_type = #tpu.core_type<tc>, window_params = [{transform_indices = @transform_0, window_bounds = array<i64: 1, 1160, 128>}, {pipeline_mode = #tpu.pipeline_mode<synchronous>, transform_indices = @transform_1, window_bounds = array<i64: 9, 128, 128>}, {pipeline_mode = #tpu.pipeline_mode<synchronous>, transform_indices = @transform_2, window_bounds = array<i64: 1, 128>}, {transform_indices = @transform_3, window_bounds = array<i64: 1, 272, 128>}, {transform_indices = @transform_4, window_bounds = array<i64: 1, 272, 128>}]} {
    %c272_i32 = arith.constant 272 : i32
    %0 = arith.muli %arg1, %c272_i32 : i32
    %1 = tpu.assume_multiple %0, 8 : i32
    %c0 = arith.constant 0 : index
    %2 = arith.index_cast %1 : i32 to index
    %c0_0 = arith.constant 0 : index
    %3 = vector.load %arg2[%c0, %2, %c0_0] : memref<1x1160x128xbf16, #tpu.memory_space<vmem>>, vector<1x342x128xbf16>
    %4 = vector.shape_cast %3 : vector<1x342x128xbf16> to vector<342x128xbf16>
    %cst = arith.constant 0.000000e+00 : f32
    %5 = vector.broadcast %cst : f32 to vector<272x128xf32>
    %6 = vector.extract_strided_slice %4 {offsets = [0, 0], sizes = [272, 128], strides = [1, 1]} : vector<342x128xbf16> to vector<272x128xbf16>
    %c0_1 = arith.constant 0 : index
    %c0_2 = arith.constant 0 : index
    %c0_3 = arith.constant 0 : index
    %7 = vector.load %arg3[%c0_1, %c0_2, %c0_3] : memref<9x128x128xbf16, #tpu.memory_space<vmem>>, vector<1x128x128xbf16>
    %8 = vector.shape_cast %7 : vector<1x128x128xbf16> to vector<128x128xbf16>
    %cst_4 = arith.constant dense<0.000000e+00> : vector<272x128xf32>
    %9 = tpu.matmul %6, %8, %cst_4 {dimension_numbers = #tpu.dot_dimension_numbers<[1], [0], [0], [1], [0, 0, 1, 1], [], []>} : vector<272x128xbf16>, vector<128x128xbf16>, vector<272x128xf32> -> vector<272x128xf32>
    %10 = arith.addf %5, %9 : vector<272x128xf32>
    %11 = vector.extract_strided_slice %4 {offsets = [1, 0], sizes = [272, 128], strides = [1, 1]} : vector<342x128xbf16> to vector<272x128xbf16>
    %c1 = arith.constant 1 : index
    %c0_5 = arith.constant 0 : index
    %c0_6 = arith.constant 0 : index
    %12 = vector.load %arg3[%c1, %c0_5, %c0_6] : memref<9x128x128xbf16, #tpu.memory_space<vmem>>, vector<1x128x128xbf16>
    %13 = vector.shape_cast %12 : vector<1x128x128xbf16> to vector<128x128xbf16>
    %cst_7 = arith.constant dense<0.000000e+00> : vector<272x128xf32>
    %14 = tpu.matmul %11, %13, %cst_7 {dimension_numbers = #tpu.dot_dimension_numbers<[1], [0], [0], [1], [0, 0, 1, 1], [], []>} : vector<272x128xbf16>, vector<128x128xbf16>, vector<272x128xf32> -> vector<272x128xf32>
    %15 = arith.addf %10, %14 : vector<272x128xf32>
    %16 = vector.extract_strided_slice %4 {offsets = [2, 0], sizes = [272, 128], strides = [1, 1]} : vector<342x128xbf16> to vector<272x128xbf16>
    %c2 = arith.constant 2 : index
    %c0_8 = arith.constant 0 : index
    %c0_9 = arith.constant 0 : index
    %17 = vector.load %arg3[%c2, %c0_8, %c0_9] : memref<9x128x128xbf16, #tpu.memory_space<vmem>>, vector<1x128x128xbf16>
    %18 = vector.shape_cast %17 : vector<1x128x128xbf16> to vector<128x128xbf16>
    %cst_10 = arith.constant dense<0.000000e+00> : vector<272x128xf32>
    %19 = tpu.matmul %16, %18, %cst_10 {dimension_numbers = #tpu.dot_dimension_numbers<[1], [0], [0], [1], [0, 0, 1, 1], [], []>} : vector<272x128xbf16>, vector<128x128xbf16>, vector<272x128xf32> -> vector<272x128xf32>
    %20 = arith.addf %15, %19 : vector<272x128xf32>
    %21 = vector.extract_strided_slice %4 {offsets = [34, 0], sizes = [272, 128], strides = [1, 1]} : vector<342x128xbf16> to vector<272x128xbf16>
    %c3 = arith.constant 3 : index
    %c0_11 = arith.constant 0 : index
    %c0_12 = arith.constant 0 : index
    %22 = vector.load %arg3[%c3, %c0_11, %c0_12] : memref<9x128x128xbf16, #tpu.memory_space<vmem>>, vector<1x128x128xbf16>
    %23 = vector.shape_cast %22 : vector<1x128x128xbf16> to vector<128x128xbf16>
    %cst_13 = arith.constant dense<0.000000e+00> : vector<272x128xf32>
    %24 = tpu.matmul %21, %23, %cst_13 {dimension_numbers = #tpu.dot_dimension_numbers<[1], [0], [0], [1], [0, 0, 1, 1], [], []>} : vector<272x128xbf16>, vector<128x128xbf16>, vector<272x128xf32> -> vector<272x128xf32>
    %25 = arith.addf %20, %24 : vector<272x128xf32>
    %26 = vector.extract_strided_slice %4 {offsets = [35, 0], sizes = [272, 128], strides = [1, 1]} : vector<342x128xbf16> to vector<272x128xbf16>
    %c4 = arith.constant 4 : index
    %c0_14 = arith.constant 0 : index
    %c0_15 = arith.constant 0 : index
    %27 = vector.load %arg3[%c4, %c0_14, %c0_15] : memref<9x128x128xbf16, #tpu.memory_space<vmem>>, vector<1x128x128xbf16>
    %28 = vector.shape_cast %27 : vector<1x128x128xbf16> to vector<128x128xbf16>
    %cst_16 = arith.constant dense<0.000000e+00> : vector<272x128xf32>
    %29 = tpu.matmul %26, %28, %cst_16 {dimension_numbers = #tpu.dot_dimension_numbers<[1], [0], [0], [1], [0, 0, 1, 1], [], []>} : vector<272x128xbf16>, vector<128x128xbf16>, vector<272x128xf32> -> vector<272x128xf32>
    %30 = arith.addf %25, %29 : vector<272x128xf32>
    %31 = vector.extract_strided_slice %4 {offsets = [36, 0], sizes = [272, 128], strides = [1, 1]} : vector<342x128xbf16> to vector<272x128xbf16>
    %c5 = arith.constant 5 : index
    %c0_17 = arith.constant 0 : index
    %c0_18 = arith.constant 0 : index
    %32 = vector.load %arg3[%c5, %c0_17, %c0_18] : memref<9x128x128xbf16, #tpu.memory_space<vmem>>, vector<1x128x128xbf16>
    %33 = vector.shape_cast %32 : vector<1x128x128xbf16> to vector<128x128xbf16>
    %cst_19 = arith.constant dense<0.000000e+00> : vector<272x128xf32>
    %34 = tpu.matmul %31, %33, %cst_19 {dimension_numbers = #tpu.dot_dimension_numbers<[1], [0], [0], [1], [0, 0, 1, 1], [], []>} : vector<272x128xbf16>, vector<128x128xbf16>, vector<272x128xf32> -> vector<272x128xf32>
    %35 = arith.addf %30, %34 : vector<272x128xf32>
    %36 = vector.extract_strided_slice %4 {offsets = [68, 0], sizes = [272, 128], strides = [1, 1]} : vector<342x128xbf16> to vector<272x128xbf16>
    %c6 = arith.constant 6 : index
    %c0_20 = arith.constant 0 : index
    %c0_21 = arith.constant 0 : index
    %37 = vector.load %arg3[%c6, %c0_20, %c0_21] : memref<9x128x128xbf16, #tpu.memory_space<vmem>>, vector<1x128x128xbf16>
    %38 = vector.shape_cast %37 : vector<1x128x128xbf16> to vector<128x128xbf16>
    %cst_22 = arith.constant dense<0.000000e+00> : vector<272x128xf32>
    %39 = tpu.matmul %36, %38, %cst_22 {dimension_numbers = #tpu.dot_dimension_numbers<[1], [0], [0], [1], [0, 0, 1, 1], [], []>} : vector<272x128xbf16>, vector<128x128xbf16>, vector<272x128xf32> -> vector<272x128xf32>
    %40 = arith.addf %35, %39 : vector<272x128xf32>
    %41 = vector.extract_strided_slice %4 {offsets = [69, 0], sizes = [272, 128], strides = [1, 1]} : vector<342x128xbf16> to vector<272x128xbf16>
    %c7 = arith.constant 7 : index
    %c0_23 = arith.constant 0 : index
    %c0_24 = arith.constant 0 : index
    %42 = vector.load %arg3[%c7, %c0_23, %c0_24] : memref<9x128x128xbf16, #tpu.memory_space<vmem>>, vector<1x128x128xbf16>
    %43 = vector.shape_cast %42 : vector<1x128x128xbf16> to vector<128x128xbf16>
    %cst_25 = arith.constant dense<0.000000e+00> : vector<272x128xf32>
    %44 = tpu.matmul %41, %43, %cst_25 {dimension_numbers = #tpu.dot_dimension_numbers<[1], [0], [0], [1], [0, 0, 1, 1], [], []>} : vector<272x128xbf16>, vector<128x128xbf16>, vector<272x128xf32> -> vector<272x128xf32>
    %45 = arith.addf %40, %44 : vector<272x128xf32>
    %46 = vector.extract_strided_slice %4 {offsets = [70, 0], sizes = [272, 128], strides = [1, 1]} : vector<342x128xbf16> to vector<272x128xbf16>
    %c8 = arith.constant 8 : index
    %c0_26 = arith.constant 0 : index
    %c0_27 = arith.constant 0 : index
    %47 = vector.load %arg3[%c8, %c0_26, %c0_27] : memref<9x128x128xbf16, #tpu.memory_space<vmem>>, vector<1x128x128xbf16>
    %48 = vector.shape_cast %47 : vector<1x128x128xbf16> to vector<128x128xbf16>
    %cst_28 = arith.constant dense<0.000000e+00> : vector<272x128xf32>
    %49 = tpu.matmul %46, %48, %cst_28 {dimension_numbers = #tpu.dot_dimension_numbers<[1], [0], [0], [1], [0, 0, 1, 1], [], []>} : vector<272x128xbf16>, vector<128x128xbf16>, vector<272x128xf32> -> vector<272x128xf32>
    %50 = arith.addf %45, %49 : vector<272x128xf32>
    %c0_29 = arith.constant 0 : index
    %c0_30 = arith.constant 0 : index
    %51 = vector.load %arg4[%c0_29, %c0_30] : memref<1x128xf32, #tpu.memory_space<vmem>>, vector<1x128xf32>
    %52 = vector.broadcast %51 : vector<1x128xf32> to vector<272x128xf32>
    %53 = arith.addf %50, %52 : vector<272x128xf32>
    %cst_31 = arith.constant 0.000000e+00 : f32
    %54 = vector.broadcast %cst_31 : f32 to vector<272x128xf32>
    %55 = arith.maximumf %53, %54 : vector<272x128xf32>
    %c0_32 = arith.constant 0 : index
    %c0_33 = arith.constant 0 : index
    %c0_34 = arith.constant 0 : index
    %56 = vector.load %arg5[%c0_32, %c0_33, %c0_34] : memref<1x272x128xf32, #tpu.memory_space<vmem>>, vector<1x272x128xf32>
    %57 = vector.shape_cast %56 : vector<1x272x128xf32> to vector<272x128xf32>
    %58 = arith.addf %55, %57 : vector<272x128xf32>
    %c0_35 = arith.constant 0 : index
    %c0_36 = arith.constant 0 : index
    %c0_37 = arith.constant 0 : index
    %59 = vector.load %arg6[%c0_35, %c0_36, %c0_37] : memref<1x272x128xf32, #tpu.memory_space<vmem>>, vector<1x272x128xf32>
    %60 = vector.shape_cast %59 : vector<1x272x128xf32> to vector<272x128xf32>
    %61 = vector.shape_cast %58 : vector<272x128xf32> to vector<1x272x128xf32>
    tpu.vector_store %arg6[%c0_35, %c0_36, %c0_37], %61 {strides = array<i32>} : memref<1x272x128xf32, #tpu.memory_space<vmem>>, vector<1x272x128xf32>,
    return
  }
  func.func @transform_0(%arg0: i32, %arg1: i32) -> (i32, i32, i32) {
    %c0_i32 = arith.constant 0 : i32
    %c0_i32_0 = arith.constant 0 : i32
    %c0_i32_1 = arith.constant 0 : i32
    return %arg0, %c0_i32, %c0_i32_0 : i32, i32, i32
  }
  func.func @transform_1(%arg0: i32, %arg1: i32) -> (i32, i32, i32) {
    %c0_i32 = arith.constant 0 : i32
    %c0_i32_0 = arith.constant 0 : i32
    %c0_i32_1 = arith.constant 0 : i32
    %c0_i32_2 = arith.constant 0 : i32
    return %c0_i32, %c0_i32_0, %c0_i32_1 : i32, i32, i32
  }
  func.func @transform_2(%arg0: i32, %arg1: i32) -> (i32, i32) {
    %c0_i32 = arith.constant 0 : i32
    %c0_i32_0 = arith.constant 0 : i32
    %c0_i32_1 = arith.constant 0 : i32
    return %c0_i32, %c0_i32_0 : i32, i32
  }
  func.func @transform_3(%arg0: i32, %arg1: i32) -> (i32, i32, i32) {
    %c0_i32 = arith.constant 0 : i32
    %c0_i32_0 = arith.constant 0 : i32
    return %arg0, %arg1, %c0_i32 : i32, i32, i32
  }
  func.func @transform_4(%arg0: i32, %arg1: i32) -> (i32, i32, i32) {
    %c0_i32 = arith.constant 0 : i32
    %c0_i32_0 = arith.constant 0 : i32
    return %arg0, %arg1, %c0_i32 : i32, i32, i32
  }
}

</mosaic_0001>

<bundles_post_ra>
// kernel: res_block_up.3
= control target key start
LH: loop header
LB: loop body
LE: loop exit
PB: predicated region body
PF: predicated region fallthrough
CT: control target
= control target key end

     0   :  { %s3376_s12 = smov 0   ;;  %s3378_s13 = smov 0   ;;  %s4513_s0 = inlined_call_operand.vmem [shape: bf16[2,328,64], index: 0, kind: input, shape index: {}]   ;;  %s4514_s1 = inlined_call_operand.vmem [shape: bf16[9,64,128], index: 1, kind: input, shape index: {}]   ;;  %s4515_s2 = inlined_call_operand.vmem [shape: f32[1,128], index: 2, kind: input, shape index: {}]   ;;  %s4516_s3 = inlined_call_operand.vmem [shape: f32[2,288,128], index: 3, kind: output, shape index: {}]  }
   0x1   :  { %s3380_s14 = smov 0  }
   0x2 LB: > { %s25_s15 = sadd.s32 1, %s3350_s13  ;;  %p2764_p0 = scmp.ge.s32.totalorder %s3354_s14, 1  ;;  %s3354_s14 = sphi %s3380_s14, %s13_s14   ;;  %s3350_s13 = sphi %s3378_s13, %s4653_s13   ;;  %s3346_s12 = sphi %s3376_s12, %s4652_s12  }
   0x3   : > { %p27_p1 = scmp.ge.s32.totalorder %s25_s15, 2  ;;  %p151_p2 = scmp.lt.s32.totalorder %s3354_s14, 3 }
   0x5   : > { %s4655_s15 = smov (%p27_p1, %s25_s15), 0  ;;  %p152_p3 = pnand %p2764_p0, %p151_p2 }
   0x7   : > { %155 = sbr.rel (%p152_p3) target bundleno = 817 (0x331), region = 32 }
   0xc   : > { %v3236_v0 = vld [vmem:[%s4514_s1 + $0x38] sm:$0xff]  ;;  %p179_p4 = scmp.lt.s32.totalorder %s3346_s12, 1  ;;  %v3235_v1 = vld [vmem:[%s4514_s1 + $0x30] sm:$0xff]  ;;  %v3234_v2 = vld [vmem:[%s4514_s1 + $0x28] sm:$0xff]  ;;  %vm351_vm0 = vsmask.f32 7424 }
   0xd   : > { %3275 = vmatpush.bf16.msra.mxu1 %v3236_v0  ;;  %3276 = vmatpush.bf16.msra.mxu2 %v3236_v0  ;;  %v3233_v13 = vld [vmem:[%s4514_s1 + $0x20] sm:$0xff]  ;;  %v3240_v21 = vld [vmem:[%s4514_s1 + $0x58] sm:$0xff]  ;;  %vm524_vm1 = vcmask 523264   ;;  %v3239_v35 = vld [vmem:[%s4514_s1 + $0x50] sm:$0xff]  ;;  %vm846_vm2 = vcmask 1046528   ;;  %vm1598_vm5 = vcmask 1045504  }
   0xe   : > { %s4657_s12 = smov (!%p179_p4, %s3346_s12), 1  ;;  %583 = vmatpush.bf16.msra.mxu0 %v3236_v0  ;;  %3277 = vmatpush.bf16.msra.mxu3 %v3236_v0  ;;  %v3232_v25 = vld [vmem:[%s4514_s1 + $0x18] sm:$0xff]  ;;  %v3231_v37 = vld [vmem:[%s4514_s1 + $0x10] sm:$0xff]  ;;  %v3238_v48 = vld [vmem:[%s4514_s1 + $0x48] sm:$0xff]  ;;  %vm1290_vm3 = vsmask.f32 6400 }
   0xf   : > { %s3287_s20 = smul.u32 164, %s4657_s12  ;;  %v3248_v26 = vld [vmem:[%s4514_s1 + $0x98] sm:$0xff]  ;;  %v3247_v38 = vld [vmem:[%s4514_s1 + $0x90] sm:$0xff]  ;;  %v3230_v49 = vld [vmem:[%s4514_s1 + $0x8] sm:$0xff]  ;;  %vm2042_vm4 = vsmask.f32 5376 }
  0x10   : > { %v3244_v44 = vld [vmem:[%s4514_s1 + $0x78] sm:$0xff]  ;;  %v3243_v51 = vld [vmem:[%s4514_s1 + $0x70] sm:$0xff]  ;;  %vm2350_vm6 = vcmask 1044480   ;;  %s3288_s26 = smul.u32 288, %s4657_s12 }
  0x11   : > { %3278 = vmatpush.bf16.msra.mxu1 %v3235_v1  ;;  %3279 = vmatpush.bf16.msra.mxu2 %v3235_v1  ;;  %s3409_s25 = scalar_lea.vmem %s4513_s0, %s3287_s20 }
  0x12   : > { %584 = vmatpush.bf16.msra.mxu0 %v3235_v1  ;;  %v3412_v3 = vld [vmem:[%s3409_s25 + $0x28] sm:$0xff]  ;;  %v3415_v4 = vld [vmem:[%s3409_s25 + $0x30] sm:$0xff]  ;;  %3280 = vmatpush.bf16.msra.mxu3 %v3235_v1  ;;  %v3421_v6 = vld [vmem:[%s3409_s25 + $0x58] sm:$0xff]  ;;  %s4291_s4 = scalar_lea.vmem %s4516_s3, %s3288_s26 }
  0x13   : > { %v3418_v5 = vld [vmem:[%s3409_s25 + $0x50] sm:$0xff]  ;;  %v3424_v7 = vld [vmem:[%s3409_s25] sm:$0xff]  ;;  %v3427_v8 = vld [vmem:[%s3409_s25 + $0x8] sm:$0xff]  ;;  %v3430_v9 = vshll.u32 %v3412_v3, 16  ;;  %v3433_v10 = vshrl.u32 %v3412_v3, 16  ;;  %v3436_v11 = vshll.u32 %v3415_v4, 16 }
  0x14   : > { %v3439_v12 = vshll.u32 %v3418_v5, 16  ;;  %v3445_v14 = vshrl.u32 %v3418_v5, 16  ;;  %v3448_v15 = vshll.u32 %v3421_v6, 16  ;;  %v353_v16 = vshrl.u32 %v3424_v7, 16  ;;  %v3475_v30 = vld [vmem:[%s3409_s25 + $0x78] sm:$0xff]  ;;  %v3478_v31 = vld [vmem:[%s3409_s25 + $0x80] sm:$0xff] }
  0x15   : > { %4545 = vst [vmem:[#allocation2_spill] sm:$0xff] %v3430_v9  ;;  %3281 = vmatpush.bf16.msra.mxu1 %v3234_v2  ;;  %3282 = vmatpush.bf16.msra.mxu2 %v3234_v2  ;;  %v355_v17 = vshll.u32 %v3424_v7, 16  ;;  %v394_v18 = vrot.slane %v3430_v9, 1  ;;  %v402_v19 = vrot.slane %v3436_v11, 1  ;;  %v4517_v22 = vshll.u32 %v3427_v8, 16  ;;  %v3505_v42 = vld [vmem:[%s3409_s25 + $0x38] sm:$0xff] }
  0x16   : > { %4546 = vst [vmem:[#allocation3_spill] sm:$0xff] %v3433_v10  ;;  %585 = vmatpush.bf16.msra.mxu0 %v3234_v2  ;;  %v434_v20 = vrot.slane %v3439_v12, 1  ;;  %3283 = vmatpush.bf16.msra.mxu3 %v3234_v2  ;;  %v442_v23 = vrot.slane %v3448_v15, 1  ;;  %v3495_v39 = vshll.u32 %v3475_v30, 16  ;;  %v3498_v40 = vshrl.u32 %v3475_v30, 16  ;;  %v3508_v43 = vld [vmem:[%s3409_s25 + $0x60] sm:$0xff] }
  0x17   : > { %4547 = vst [vmem:[#allocation4_spill] sm:$0xff] %v3436_v11  ;;  %v357_v24 = vrot.slane %v355_v17, 1  ;;  %v398_v27 = vor.u32 %v3433_v10, %v394_v18  ;;  %v362_v29 = vrot.slane %v4517_v22, 1  ;;  %v3501_v41 = vshll.u32 %v3478_v31, 16  ;;  %v3514_v45 = vld [vmem:[%s3409_s25 + $0x10] sm:$0xff]  ;;  %v3549_v59 = vld [vmem:[%s3409_s25 + $0x88] sm:$0xff] }
  0x18   : > { %4548 = vst [vmem:[#allocation5_spill] sm:$0xff] %v3439_v12  ;;  %v438_v28 = vor.u32 %v3445_v14, %v434_v20  ;;  %v4519_v46 = vrot.slane %v3495_v39, 1  ;;  %v3531_v52 = vshrl.u32 %v3415_v4, 16  ;;  %v3534_v53 = vshll.u32 %v3505_v42, 16  ;;  %v3556_v0 = vld [vmem:[%s3409_s25 + $0x48] sm:$0xff] }
  0x19   : > { %4549 = vst [vmem:[#allocation6_spill] sm:$0xff] %v3445_v14  ;;  %3284 = vmatpush.bf16.msra.mxu1 %v3233_v13  ;;  %3285 = vmatpush.bf16.msra.mxu2 %v3233_v13  ;;  %v358_v32 = vor.u32 %v357_v24, %v353_v16  ;;  %v403_v33 = vsel %vm351_vm0, %v398_v27, %v402_v19  ;;  %v482_v47 = vrot.slane %v3501_v41, 1  ;;  %v3537_v54 = vshrl.u32 %v3421_v6, 16  ;;  %v3576_v24 = vld [vmem:[%s3409_s25 + $0x40] sm:$0xff] }
  0x1a   : > { %586 = vmatpush.bf16.msra.mxu0 %v3233_v13  ;;  %v443_v34 = vsel %vm351_vm0, %v438_v28, %v442_v23  ;;  %3286 = vmatpush.bf16.msra.mxu3 %v3233_v13  ;;  %v478_v50 = vor.u32 %v3498_v40, %v4519_v46  ;;  %4550 = vst [vmem:[#allocation7_spill] sm:$0xff] %v3531_v52  ;;  %v3540_v55 = vshll.u32 %v3508_v43, 16  ;;  %v4518_v56 = vshrl.u32 %v3427_v8, 16  ;;  %v3584_v28 = vld [vmem:[%s3409_s25 + $0x90] sm:$0xff]  }
  0x1b   : > { %v363_v36 = vsel %vm351_vm0, %v358_v32, %v362_v29  ;;  %4551 = vst [vmem:[#allocation8_spill] sm:$0xff] %v3534_v53  ;;  %v3544_v57 = vshll.u32 %v3514_v45, 16  ;;  %v406_v60 = vor.u32 %v3531_v52, %v402_v19  ;;  %v410_v61 = vrot.slane %v3534_v53, 1  ;;  %v3246_v32 = vld [vmem:[%s4514_s1 + $0x88] sm:$0xff] }
  0x1c   : > { %2868 = vmatmul.msk.bf16.vlgmr.msra.gmra.mxu1 %vm524_vm1, %v403_v33  ;;  %2873 = vmatmul.msk.bf16.vlgmr.msra.gmra.mxu2 %vm524_vm1, %v443_v34  ;;  %v483_v58 = vsel %vm351_vm0, %v478_v50, %v482_v47  ;;  %v446_v62 = vor.u32 %v3537_v54, %v442_v23  ;;  %v450_v63 = vrot.slane %v3540_v55, 1  ;;  %v366_v1 = vor.u32 %v4518_v56, %v362_v29  ;;  %v3242_v33 = vld [vmem:[%s4514_s1 + $0x68] sm:$0xff]  ;;  %v3237_v34 = vld [vmem:[%s4514_s1 + $0x40] sm:$0xff] }
  0x1d   : > { %966 = vmatpush.bf16.msrb.mxu2 %v3240_v21  ;;  %742 = vmatpush.bf16.msrb.mxu1 %v3232_v25  ;;  %4552 = vst [vmem:[#allocation9_spill] sm:$0xff] %v3544_v57  ;;  %v370_v2 = vrot.slane %v3544_v57, 1  ;;  %v3562_v13 = vshrl.u32 %v3478_v31, 16  ;;  %v3565_v16 = vshll.u32 %v3549_v59, 16  ;;  %v411_v17 = vsel %vm351_vm0, %v406_v60, %v410_v61  ;;  %v3579_v25 = vld [vmem:[%s3409_s25 + $0x68] sm:$0xff] }
  0x1e   : > { %1458 = vmatpush.bf16.msrb.mxu0 %v3248_v26  ;;  %1150 = vmatpush.bf16.msrb.mxu3 %v3244_v44  ;;  %v451_v19 = vsel %vm351_vm0, %v446_v62, %v450_v63  ;;  %v3570_v21 = vshll.u32 %v3556_v0, 16  ;;  %v3616_v50 = vshll.u32 %v3579_v25, 16  ;;  %v3627_v60 = vshrl.u32 %v3514_v45, 16 }
  0x1f   : > { %2863 = vmatmul.msk.bf16.vlgmr.msra.gmra.mxu0 %vm524_vm1, %v363_v36  ;;  %2878 = vmatmul.msk.bf16.vlgmr.msra.gmra.mxu3 %vm524_vm1, %v483_v58  ;;  %4553 = vst [vmem:[#allocation10_spill] sm:$0xff] %v3565_v16  ;;  %v371_v23 = vsel %vm351_vm0, %v366_v1, %v370_v2  ;;  %v486_v26 = vor.u32 %v3562_v13, %v482_v47  ;;  %v490_v27 = vrot.slane %v3565_v16, 1  ;;  %v3601_v36 = vld [vmem:[%s3409_s25 + $0x18] sm:$0xff]  ;;  %v3267_v47 = vunpack.c.l.b16 %v3584_v28 }
  0x20   : > { %4554 = vst [vmem:[#allocation11_spill] sm:$0xff] %v3570_v21  ;;  %v426_v29 = vrot.slane %v3570_v21, 1  ;;  %v3630_v62 = vshll.u32 %v3601_v36, 16 }
  0x21   : > { %967 = vmatpush.bf16.msrb.mxu2 %v3239_v35  ;;  %743 = vmatpush.bf16.msrb.mxu1 %v3231_v37  ;;  %v3598_v35 = vshrl.u32 %v3556_v0, 16  ;;  %4556 = vst [vmem:[#allocation13_spill] sm:$0xff] %v3601_v36  ;;  %v491_v44 = vsel %vm351_vm0, %v486_v26, %v490_v27  ;;  %v458_v26 = vrot.slane %v3616_v50, 1 }
  0x22   : > { %1459 = vmatpush.bf16.msrb.mxu0 %v3247_v38  ;;  %1151 = vmatpush.bf16.msrb.mxu3 %v3243_v51  ;;  %v3605_v38 = vshrl.u32 %v3505_v42, 16  ;;  %v3619_v51 = vld [vmem:[%s3409_s25 + $0x20] sm:$0xff]  ;;  %4559 = vst [vmem:[#allocation16_spill] sm:$0xff] %v3630_v62 }
  0x23   : > { %4555 = vst [vmem:[#allocation12_spill] sm:$0xff] %v3598_v35  ;;  %v430_v37 = vor.u32 %v3598_v35, %v426_v29 }
  0x24   : > { %4557 = vst [vmem:[#allocation14_spill] sm:$0xff] %v3605_v38  ;;  %v414_v1 = vor.u32 %v3605_v38, %v410_v61 }
  0x25   : > { %968 = vmatpush.bf16.msrb.mxu2 %v3238_v48  ;;  %744 = vmatpush.bf16.msrb.mxu1 %v3230_v49  ;;  %v3610_v48 = vshll.u32 %v3576_v24, 16  ;;  %v3613_v49 = vshrl.u32 %v3508_v43, 16  ;;  %v3624_v58 = vsel %vm351_vm0, %v430_v37, %v434_v20  ;;  %v3640_v20 = vshll.u32 %v3619_v51, 16 }
  0x26   : > { %1460 = vmatpush.bf16.msrb.mxu0 %v3246_v32  ;;  %1152 = vmatpush.bf16.msrb.mxu3 %v3242_v33  ;;  %v374_v32 = vor.u32 %v3627_v60, %v370_v2  ;;  %v378_v33 = vrot.slane %v3630_v62, 1 }
  0x27   : > { %4558 = vst [vmem:[#allocation15_spill] sm:$0xff] %v3610_v48 }
  0x28   : > { %4561 = vst [vmem:[#allocation18_spill] sm:$0xff] %v3640_v20  ;;  %v379_v22 = vsel %vm351_vm0, %v374_v32, %v378_v33 }
  0x29   : > { %969 = vmatpush.bf16.msrb.mxu2 %v3237_v34  ;;  %v3645_v34 = vshrl.u32 %v3549_v59, 16 }
  0x2b   : > { %4562 = vst [vmem:[#allocation19_spill] sm:$0xff] %v3645_v34  ;;  %v494_v56 = vor.u32 %v3645_v34, %v490_v27  ;;  %v3245_v27 = vld [vmem:[%s4514_s1 + $0x80] sm:$0xff]  ;;  %v1294_v34 = vrot.slane %v3627_v60, 1 }
  0x2c   : > { %2869 = vmatmul.msk.bf16.gmra.mxu1 %vm524_vm1, %v411_v17  ;;  %2874 = vmatmul.msk.bf16.gmra.mxu2 %vm524_vm1, %v451_v19  ;;  %v3634_v17 = vpack.c.b16 %v3267_v47, %v3267_v47  ;;  %v418_v19 = vrot.slane %v3610_v48, 1  ;;  %v3652_v47 = vshrl.u32 %v3619_v51, 16 }
  0x2d   : > { %1461 = vmatpush.bf16.msrb.mxu0 %v3245_v27 }
  0x2e   : > { %4560 = vst [vmem:[#allocation17_spill] sm:$0xff] %v3634_v17  ;;  %v496_v61 = vshll.u32 %v3634_v17, 16  ;;  %v419_v37 = vsel %vm351_vm0, %v414_v1, %v418_v19  ;;  %v3229_v1 = vld [vmem:[%s4514_s1] sm:$0xff] }
  0x2f   : > { %2864 = vmatmul.msk.bf16.gmra.mxu0 %vm524_vm1, %v371_v23  ;;  %2879 = vmatmul.msk.bf16.gmra.mxu3 %vm524_vm1, %v491_v44  ;;  %v454_v23 = vor.u32 %v3613_v49, %v450_v63  ;;  %v386_v63 = vrot.slane %v3640_v20, 1  ;;  %4563 = vst [vmem:[#allocation20_spill] sm:$0xff] %v3652_v47 }
  0x30   : > { %v498_v46 = vrot.slane %v496_v61, 1  ;;  %745 = vmatpush.bf16.msrb.mxu1 %v3229_v1 }
  0x31   : > { %v459_v44 = vsel %vm351_vm0, %v454_v23, %v458_v26  ;;  %v390_v2 = vor.u32 %v3652_v47, %v386_v63  ;;  %v3664_v23 = vld [vmem:[%s3409_s25 + $0x70] sm:$0xff] }
  0x32   : > { %v499_v61 = vsel %vm351_vm0, %v494_v56, %v498_v46 }
  0x33   : > { %v395_v32 = vsel %vm351_vm0, %v390_v2, %v394_v18  ;;  %v3683_v18 = vshll.u32 %v3664_v23, 16  ;;  %v3686_v2 = vshrl.u32 %v3601_v36, 16 }
  0x35   : > { %v466_v46 = vrot.slane %v3683_v18, 1  ;;  %v382_v56 = vor.u32 %v3686_v2, %v378_v33  ;;  %v3252_v33 = vld [vmem:[%s4514_s1 + $0xb8] sm:$0xff] }
  0x36   : > { %1718 = vmatpush.bf16.msra.mxu1 %v3252_v33 }
  0x37   : > { %v387_v16 = vsel %vm351_vm0, %v382_v56, %v386_v63 }
  0x3c   : > { %2870 = vmatmul.msk.bf16.gmra.mxu1 %vm524_vm1, %v419_v37  ;;  %2875 = vmatmul.msk.bf16.gmra.mxu2 %vm524_vm1, %v459_v44  ;;  %v3241_v37 = vld [vmem:[%s4514_s1 + $0x60] sm:$0xff]  ;;  %v3680_v44 = vshrl.u32 %v3579_v25, 16 }
  0x3d   : > { %1153 = vmatpush.bf16.msrb.mxu3 %v3241_v37 }
  0x3e   : > { %v462_v37 = vor.u32 %v3680_v44, %v458_v26  ;;  %v3256_v26 = vld [vmem:[%s4514_s1 + $0xd8] sm:$0xff] }
  0x3f   : > { %2865 = vmatmul.msk.bf16.gmra.mxu0 %vm524_vm1, %v379_v22  ;;  %v3677_v22 = vshrl.u32 %v3576_v24, 16  ;;  %2880 = vmatmul.msk.bf16.gmra.mxu3 %vm524_vm1, %v499_v61  ;;  %v848_v61 = vrot.slane %v3427_v8, 1 }
  0x40   : > { %v467_v17 = vsel %vm351_vm0, %v462_v37, %v466_v46  ;;  %1902 = vmatpush.bf16.msra.mxu2 %v3256_v26  ;;  %v4565_v37 = vrot.slane %v3495_v39, 1 }
  0x41   : > { %4564 = vst [vmem:[#allocation21_spill] sm:$0xff] %v3677_v22  ;;  %v422_v1 = vor.u32 %v3677_v22, %v418_v19  ;;  %v850_v19 = vrot.slane %v3514_v45, 1 }
  0x43   : > { %v427_v27 = vsel %vm351_vm0, %v422_v1, %v426_v29  ;;  %v3260_v29 = vld [vmem:[%s4514_s1 + $0xf8] sm:$0xff]  ;;  %v851_v63 = vsel %vm846_vm2, %v848_v61, %v850_v19 }
  0x44   : > { %2210 = vmatpush.bf16.msra.mxu3 %v3260_v29  ;;  %v4566_v29 = vshrl.u32 %v3427_v8, 16 }
  0x46   : > { %v1291_v33 = vrot.slane %v4566_v29, 1  ;;  %v854_v29 = vrot.slane %v3619_v51, 1 }
  0x4c   : > { %2871 = vmatmul.msk.bf16.gmra.mxu1 %vm524_vm1, %v427_v27  ;;  %2876 = vmatmul.msk.bf16.gmra.mxu2 %vm524_vm1, %v467_v17  ;;  %v3264_v17 = vld [vmem:[%s4514_s1 + $0x118] sm:$0xff]  ;;  %v852_v27 = vrot.slane %v3601_v36, 1 }
  0x4d   : > { %2470 = vmatpush.bf16.msra.mxu0 %v3264_v17 }
  0x4e   : > { %v853_v26 = vsel %vm846_vm2, %v850_v19, %v852_v27 }
  0x4f   : > { %2866 = vmatmul.msk.bf16.gmra.mxu0 %vm524_vm1, %v387_v16  ;;  %v3715_v16 = vshrl.u32 %v3664_v23, 16  ;;  %2981 = vmatmul.msk.bf16.vlgmr.msrb.gmra.mxu3 %vm524_vm1, %v851_v63 }
  0x51   : > { %v470_v1 = vor.u32 %v3715_v16, %v466_v46  ;;  %v4567_v46 = vshll.u32 %v3427_v8, 16 }
  0x53   : > { %v475_v56 = vsel %vm351_vm0, %v470_v1, %v4565_v37  ;;  %v1292_v17 = vrot.slane %v4567_v46, 2  ;;  %v1295_v1 = vrot.slane %v3544_v57, 2  ;;  %v855_v46 = vsel %vm846_vm2, %v852_v27, %v854_v29 }
  0x54   : > { %v1298_v57 = vrot.slane %v3686_v2, 1 }
  0x55   : > { %v1293_v37 = vor.u32 %v1292_v17, %v1291_v33  ;;  %v1302_v17 = vrot.slane %v3652_v47, 1 }
  0x5c   : > { %2872 = vmatmul.msk.bf16.gmra.mxu1 %vm524_vm1, %v3624_v58  ;;  %2877 = vmatmul.msk.bf16.gmra.mxu2 %vm524_vm1, %v475_v56  ;;  %v847_v58 = vrot.slane %v3424_v7, 1  ;;  %v1296_v56 = vor.u32 %v1295_v1, %v1294_v34  ;;  %v1299_v34 = vrot.slane %v3630_v62, 2  ;;  %v1303_v1 = vrot.slane %v3640_v20, 2 }
  0x5e   : > { %v1297_v19 = vsel %vm1290_vm3, %v1293_v37, %v1296_v56  ;;  %v1306_v37 = vrot.slane %v3433_v10, 1  ;;  %v1326_v10 = vrot.slane %v3445_v14, 1 }
  0x5f   : > { %2867 = vmatmul.msk.bf16.gmra.mxu0 %vm524_vm1, %v395_v32  ;;  %2982 = vmatmul.msk.bf16.gmra.mxu3 %vm524_vm1, %v853_v26  ;;  %v849_v32 = vsel %vm846_vm2, %v847_v58, %v848_v61  ;;  %v1300_v61 = vor.u32 %v1299_v34, %v1298_v57  ;;  %v1304_v57 = vor.u32 %v1303_v1, %v1302_v17 }
  0x61   : > { %v1301_v33 = vsel %vm1290_vm3, %v1296_v56, %v1300_v61  ;;  %v1305_v58 = vsel %vm1290_vm3, %v1300_v61, %v1304_v57  ;;  %v1307_v56 = vrot.slane %v3430_v9, 2 }
  0x6c   : > { %2897 = vmatmul.msk.bf16.vlgmr.msrb.gmra.mxu1 %vm524_vm1, %v3424_v7  ;;  %2939 = vmatmul.msk.bf16.vlgmr.msrb.gmra.mxu2 %vm524_vm1, %v849_v32  ;;  %v856_v7 = vrot.slane %v3412_v3, 1  ;;  %v3255_v32 = vld [vmem:[%s4514_s1 + $0xd0] sm:$0xff] }
  0x6d   : > { %1903 = vmatpush.bf16.msra.mxu2 %v3255_v32 }
  0x6e   : > { %v857_v27 = vsel %vm846_vm2, %v854_v29, %v856_v7 }
  0x6f   : > { %3023 = vmatmul.msk.bf16.vlgmr.msrb.gmra.mxu0 %vm524_vm1, %v1297_v19  ;;  %2983 = vmatmul.msk.bf16.gmra.mxu3 %vm524_vm1, %v855_v46  ;;  %v3251_v19 = vld [vmem:[%s4514_s1 + $0xb0] sm:$0xff] }
  0x70   : > { %1719 = vmatpush.bf16.msra.mxu1 %v3251_v19 }
  0x7c   : > { %2898 = vmatmul.msk.bf16.gmra.mxu1 %vm524_vm1, %v3427_v8  ;;  %2940 = vmatmul.msk.bf16.gmra.mxu2 %vm524_vm1, %v851_v63  ;;  %v858_v8 = vrot.slane %v3415_v4, 1 }
  0x7e   : > { %v859_v63 = vsel %vm846_vm2, %v856_v7, %v858_v8  ;;  %v3263_v7 = vld [vmem:[%s4514_s1 + $0x110] sm:$0xff] }
  0x7f   : > { %3024 = vmatmul.msk.bf16.gmra.mxu0 %vm524_vm1, %v1301_v33  ;;  %2984 = vmatmul.msk.bf16.gmra.mxu3 %vm524_vm1, %v857_v27  ;;  %v860_v33 = vrot.slane %v3505_v42, 1 }
  0x80   : > { %2471 = vmatpush.bf16.msra.mxu0 %v3263_v7  ;;  %v862_v7 = vrot.slane %v3576_v24, 1 }
  0x81   : > { %v861_v1 = vsel %vm846_vm2, %v858_v8, %v860_v33 }
  0x8c   : > { %2899 = vmatmul.msk.bf16.gmra.mxu1 %vm524_vm1, %v3514_v45  ;;  %2941 = vmatmul.msk.bf16.gmra.mxu2 %vm524_vm1, %v853_v26  ;;  %v3259_v45 = vld [vmem:[%s4514_s1 + $0xf0] sm:$0xff]  ;;  %v1308_v26 = vor.u32 %v1307_v56, %v1306_v37  ;;  %v1310_v37 = vrot.slane %v3531_v52, 1 }
  0x8d   : > { %2211 = vmatpush.bf16.msra.mxu3 %v3259_v45 }
  0x8e   : > { %v1309_v61 = vsel %vm1290_vm3, %v1304_v57, %v1308_v26 }
  0x8f   : > { %3025 = vmatmul.msk.bf16.gmra.mxu0 %vm524_vm1, %v1305_v58  ;;  %2985 = vmatmul.msk.bf16.gmra.mxu3 %vm524_vm1, %v859_v63 }
  0x99   : > { %v3776_v29 = vpop.f32.mrf.mxu1 }
  0x9c   : > { %v3778_v34 = vpop.f32.mrf.mxu0  ;;  %2900 = vmatmul.msk.bf16.gmra.mxu1 %vm524_vm1, %v3601_v36  ;;  %2942 = vmatmul.msk.bf16.gmra.mxu2 %vm524_vm1, %v855_v46  ;;  %v1311_v46 = vrot.slane %v3436_v11, 2  ;;  %v3250_v36 = vld [vmem:[%s4514_s1 + $0xa8] sm:$0xff] }
  0x9d   : > { %1720 = vmatpush.bf16.msra.mxu1 %v3250_v36 }
  0x9e   : > { %v1312_v56 = vor.u32 %v1311_v46, %v1310_v37 }
  0x9f   : > { %3026 = vmatmul.msk.bf16.gmra.mxu0 %vm524_vm1, %v1309_v61  ;;  %v3789_v17 = vpop.f32.mrf.mxu2  ;;  %2986 = vmatmul.msk.bf16.gmra.mxu3 %vm524_vm1, %v861_v1 }
  0xa0   : > { %4568 = vst [vmem:[#allocation22_spill] sm:$0xff] %v3789_v17  ;;  %v1313_v8 = vsel %vm1290_vm3, %v1308_v26, %v1312_v56  ;;  %v1314_v26 = vrot.slane %v3605_v38, 1 }
  0xa1   : > { %v3792_v58 = vpop.f32.mrf.mxu1 }
  0xa2   : > { %v3799_v32 = vpop.f32.mrf.mxu3 }
  0xa3   : > { %4569 = vst [vmem:[#allocation23_spill] sm:$0xff] %v3799_v32  ;;  %v863_v32 = vsel %vm846_vm2, %v860_v33, %v862_v7 }
  0xa4   : > { %v3794_v57 = vpop.f32.mrf.mxu0 }
  0xa7   : > { %v3801_v45 = vpop.f32.mrf.mxu2 }
  0xa8   : > { %4570 = vst [vmem:[#allocation24_spill] sm:$0xff] %v3801_v45 }
  0xa9   : > { %v3803_v19 = vpop.f32.mrf.mxu1 }
  0xaa   : > { %v3813_v37 = vpop.f32.mrf.mxu3 }
  0xab   : > { %4571 = vst [vmem:[#allocation25_spill] sm:$0xff] %v3813_v37 }
  0xac   : > { %v3805_v61 = vpop.f32.mrf.mxu0  ;;  %2901 = vmatmul.msk.bf16.gmra.mxu1 %vm524_vm1, %v3619_v51  ;;  %2943 = vmatmul.msk.bf16.gmra.mxu2 %vm524_vm1, %v857_v27  ;;  %v1315_v51 = vrot.slane %v3534_v53, 2  ;;  %v864_v53 = vrot.slane %v3556_v0, 1 }
  0xae   : > { %v1316_v27 = vor.u32 %v1315_v51, %v1314_v26 }
  0xaf   : > { %3027 = vmatmul.msk.bf16.gmra.mxu0 %vm524_vm1, %v1313_v8  ;;  %v3815_v46 = vpop.f32.mrf.mxu2  ;;  %2987 = vmatmul.msk.bf16.gmra.mxu3 %vm524_vm1, %v863_v32 }
  0xb0   : > { %4572 = vst [vmem:[#allocation26_spill] sm:$0xff] %v3815_v46  ;;  %v1317_v33 = vsel %vm1290_vm3, %v1312_v56, %v1316_v27  ;;  %v1318_v56 = vrot.slane %v3677_v22, 1 }
  0xb1   : > { %v3818_v11 = vpop.f32.mrf.mxu1 }
  0xb2   : > { %v3825_v45 = vpop.f32.mrf.mxu3 }
  0xb3   : > { %4573 = vst [vmem:[#allocation27_spill] sm:$0xff] %v3825_v45  ;;  %v865_v45 = vsel %vm846_vm2, %v862_v7, %v864_v53 }
  0xb4   : > { %v3820_v52 = vpop.f32.mrf.mxu0 }
  0xb7   : > { %v3827_v8 = vpop.f32.mrf.mxu2 }
  0xb8   : > { %4574 = vst [vmem:[#allocation28_spill] sm:$0xff] %v3827_v8 }
  0xb9   : > { %v3829_v37 = vpop.f32.mrf.mxu1 }
  0xba   : > { %v3839_v26 = vpop.f32.mrf.mxu3 }
  0xbb   : > { %4575 = vst [vmem:[#allocation29_spill] sm:$0xff] %v3839_v26 }
  0xbc   : > { %v3831_v46 = vpop.f32.mrf.mxu0  ;;  %2902 = vmatmul.msk.bf16.gmra.mxu1 %vm524_vm1, %v3412_v3  ;;  %2944 = vmatmul.msk.bf16.gmra.mxu2 %vm524_vm1, %v859_v63  ;;  %v1319_v3 = vrot.slane %v3610_v48, 2  ;;  %v866_v48 = vrot.slane %v3418_v5, 1 }
  0xbe   : > { %v1320_v63 = vor.u32 %v1319_v3, %v1318_v56 }
  0xbf   : > { %3028 = vmatmul.msk.bf16.gmra.mxu0 %vm524_vm1, %v1317_v33  ;;  %v3841_v51 = vpop.f32.mrf.mxu2  ;;  %2988 = vmatmul.msk.bf16.gmra.mxu3 %vm524_vm1, %v865_v45 }
  0xc0   : > { %4576 = vst [vmem:[#allocation30_spill] sm:$0xff] %v3841_v51  ;;  %v1321_v7 = vsel %vm1290_vm3, %v1316_v27, %v1320_v63  ;;  %v1322_v27 = vrot.slane %v3598_v35, 1 }
  0xc1   : > { %v3844_v38 = vpop.f32.mrf.mxu1 }
  0xc2   : > { %v3851_v17 = vpop.f32.mrf.mxu3 }
  0xc3   : > { %4577 = vst [vmem:[#allocation31_spill] sm:$0xff] %v3851_v17  ;;  %v3870_v17 = vsel %vm846_vm2, %v864_v53, %v866_v48 }
  0xc4   : > { %v3846_v8 = vpop.f32.mrf.mxu0 }
  0xc7   : > { %v3853_v33 = vpop.f32.mrf.mxu2 }
  0xc8   : > { %4578 = vst [vmem:[#allocation32_spill] sm:$0xff] %v3853_v33 }
  0xc9   : > { %v3855_v26 = vpop.f32.mrf.mxu1 }
  0xca   : > { %4579 = vst [vmem:[#allocation33_spill] sm:$0xff] %v3855_v26  ;;  %v3865_v56 = vpop.f32.mrf.mxu3 }
  0xcb   : > { %4580 = vst [vmem:[#allocation34_spill] sm:$0xff] %v3865_v56 }
  0xcc   : > { %v3857_v51 = vpop.f32.mrf.mxu0  ;;  %2903 = vmatmul.msk.bf16.gmra.mxu1 %vm524_vm1, %v3415_v4  ;;  %2945 = vmatmul.msk.bf16.gmra.mxu2 %vm524_vm1, %v861_v1  ;;  %v1323_v4 = vrot.slane %v3570_v21, 2  ;;  %v868_v21 = vrot.slane %v3421_v6, 1 }
  0xce   : > { %v1324_v1 = vor.u32 %v1323_v4, %v1322_v27  ;;  %v3254_v27 = vld [vmem:[%s4514_s1 + $0xc8] sm:$0xff] }
  0xcf   : > { %3029 = vmatmul.msk.bf16.gmra.mxu0 %vm524_vm1, %v1321_v7  ;;  %v3867_v3 = vpop.f32.mrf.mxu2  ;;  %2989 = vmatmul.msk.bf16.gmra.mxu3 %vm524_vm1, %v3870_v17  ;;  %v3258_v4 = vld [vmem:[%s4514_s1 + $0xe8] sm:$0xff] }
  0xd0   : > { %4581 = vst [vmem:[#allocation35_spill] sm:$0xff] %v3867_v3  ;;  %v1325_v53 = vsel %vm1290_vm3, %v1320_v63, %v1324_v1  ;;  %1904 = vmatpush.bf16.msra.mxu2 %v3254_v27  ;;  %2212 = vmatpush.bf16.msra.mxu3 %v3258_v4  ;;  %v3262_v27 = vld [vmem:[%s4514_s1 + $0x108] sm:$0xff] }
  0xd1   : > { %v3872_v22 = vpop.f32.mrf.mxu1  ;;  %2472 = vmatpush.bf16.msra.mxu0 %v3262_v27 }
  0xd2   : > { %4582 = vst [vmem:[#allocation36_spill] sm:$0xff] %v3872_v22  ;;  %v1155_v7 = vpop.f32.mrf.mxu3  ;;  %v1330_v22 = vrot.slane %v3537_v54, 1 }
  0xd4   : > { %v3874_v33 = vpop.f32.mrf.mxu0 }
  0xd7   : > { %v3880_v9 = vpop.f32.mrf.mxu2 }
  0xd8   : > { %4583 = vst [vmem:[#allocation37_spill] sm:$0xff] %v3880_v9 }
  0xd9   : > { %v3882_v56 = vpop.f32.mrf.mxu1 }
  0xda   : > { %4584 = vst [vmem:[#allocation38_spill] sm:$0xff] %v3882_v56  ;;  %v1157_v35 = vpop.f32.mrf.mxu3  ;;  %v870_v56 = vrot.slane %v3508_v43, 1 }
  0xdc   : > { %v3884_v3 = vpop.f32.mrf.mxu0  ;;  %2904 = vmatmul.msk.bf16.gmra.mxu1 %vm524_vm1, %v3505_v42  ;;  %2946 = vmatmul.msk.bf16.gmra.mxu2 %vm524_vm1, %v863_v32  ;;  %v3901_v42 = vsel %vm846_vm2, %v866_v48, %v868_v21 }
  0xdf   : > { %3030 = vmatmul.msk.bf16.gmra.mxu0 %vm524_vm1, %v1325_v53  ;;  %v3898_v63 = vpop.f32.mrf.mxu2  ;;  %v1327_v53 = vrot.slane %v3439_v12, 2  ;;  %2990 = vmatmul.msk.bf16.gmra.mxu3 %vm524_vm1, %v3901_v42 }
  0xe0   : > { %4585 = vst [vmem:[#allocation39_spill] sm:$0xff] %v3898_v63 }
  0xe1   : > { %v3903_v32 = vpop.f32.mrf.mxu1  ;;  %v1328_v48 = vor.u32 %v1327_v53, %v1326_v10 }
  0xe2   : > { %4586 = vst [vmem:[#allocation40_spill] sm:$0xff] %v3903_v32  ;;  %v1160_v4 = vpop.f32.mrf.mxu3 }
  0xe3   : > { %v1329_v12 = vsel %vm1290_vm3, %v1324_v1, %v1328_v48 }
  0xe4   : > { %v3905_v9 = vpop.f32.mrf.mxu0 }
  0xe7   : > { %v3917_v63 = vpop.f32.mrf.mxu2 }
  0xe8   : > { %4587 = vst [vmem:[#allocation41_spill] sm:$0xff] %v3917_v63  ;;  %v3927_v63 = vsel %vm846_vm2, %v868_v21, %v870_v56 }
  0xe9   : > { %v747_v14 = vpop.f32.mrf.mxu1 }
  0xea   : > { %v748_v36 = vadd.f32 %v747_v14, %v3778_v34  ;;  %v1162_v27 = vpop.f32.mrf.mxu3 }
  0xec   : > { %v1463_v32 = vpop.f32.mrf.mxu0  ;;  %2905 = vmatmul.msk.bf16.gmra.mxu1 %vm524_vm1, %v3576_v24  ;;  %2947 = vmatmul.msk.bf16.gmra.mxu2 %vm524_vm1, %v865_v45  ;;  %v1331_v24 = vrot.slane %v3448_v15, 2 }
  0xee   : > { %v1332_v14 = vor.u32 %v1331_v24, %v1330_v22 }
  0xef   : > { %3031 = vmatmul.msk.bf16.gmra.mxu0 %vm524_vm1, %v1329_v12  ;;  %v971_v10 = vpop.f32.mrf.mxu2  ;;  %2991 = vmatmul.msk.bf16.gmra.mxu3 %vm524_vm1, %v3927_v63 }
  0xf0   : > { %v1061_v53 = vadd.f32 %v971_v10, %v748_v36 }
  0xf1   : > { %v749_v20 = vpop.f32.mrf.mxu1 }
  0xf2   : > { %v1245_v47 = vadd.f32 %v1155_v7, %v1061_v53  ;;  %v750_v12 = vadd.f32 %v749_v20, %v3794_v57  ;;  %v1165_v34 = vpop.f32.mrf.mxu3  ;;  %v1333_v7 = vsel %vm1290_vm3, %v1328_v48, %v1332_v14 }
  0xf4   : > { %v1465_v1 = vpop.f32.mrf.mxu0  ;;  %v3933_v45 = vadd.f32 %v1463_v32, %v1245_v47  ;;  %v872_v47 = vrot.slane %v3579_v25, 1 }
  0xf6   : > { %v3947_v53 = vsel %vm846_vm2, %v870_v56, %v872_v47 }
  0xf7   : > { %v973_v36 = vpop.f32.mrf.mxu2 }
  0xf8   : > { %v1062_v10 = vadd.f32 %v973_v36, %v750_v12  ;;  %v1334_v12 = vrot.slane %v3613_v49, 1 }
  0xf9   : > { %v752_v21 = vpop.f32.mrf.mxu1 }
  0xfa   : > { %v1246_v26 = vadd.f32 %v1157_v35, %v1062_v10  ;;  %v753_v20 = vadd.f32 %v752_v21, %v3805_v61  ;;  %v1167_v22 = vpop.f32.mrf.mxu3 }
  0xfc   : > { %v1468_v62 = vpop.f32.mrf.mxu0  ;;  %2906 = vmatmul.msk.bf16.gmra.mxu1 %vm524_vm1, %v3556_v0  ;;  %2948 = vmatmul.msk.bf16.gmra.mxu2 %vm524_vm1, %v3870_v17  ;;  %v3942_v32 = vadd.f32 %v1465_v1, %v1246_v26  ;;  %v1335_v17 = vrot.slane %v3540_v55, 2 }
  0xfe   : > { %v1336_v1 = vor.u32 %v1335_v17, %v1334_v12  ;;  %v1338_v17 = vrot.slane %v3680_v44, 1 }
  0xff   : > { %3032 = vmatmul.msk.bf16.gmra.mxu0 %vm524_vm1, %v1333_v7  ;;  %v976_v57 = vpop.f32.mrf.mxu2  ;;  %2992 = vmatmul.msk.bf16.gmra.mxu3 %vm524_vm1, %v3947_v53 }
 0x100   : > { %v1063_v35 = vadd.f32 %v976_v57, %v753_v20 }
 0x101   : > { %v754_v48 = vpop.f32.mrf.mxu1 }
 0x102   : > { %v1247_v24 = vadd.f32 %v1160_v4, %v1063_v35  ;;  %v755_v61 = vadd.f32 %v754_v48, %v3820_v52  ;;  %v1170_v36 = vpop.f32.mrf.mxu3  ;;  %v1337_v4 = vsel %vm1290_vm3, %v1332_v14, %v1336_v1 }
 0x104   : > { %v1470_v0 = vpop.f32.mrf.mxu0  ;;  %v3953_v26 = vadd.f32 %v1468_v62, %v1247_v24  ;;  %v874_v62 = vrot.slane %v3664_v23, 1 }
 0x106   : > { %v3967_v24 = vsel %vm846_vm2, %v872_v47, %v874_v62 }
 0x107   : > { %v978_v10 = vpop.f32.mrf.mxu2 }
 0x108   : > { %v1064_v21 = vadd.f32 %v978_v10, %v755_v61 }
 0x109   : > { %v757_v56 = vpop.f32.mrf.mxu1 }
 0x10a   : > { %v1248_v7 = vadd.f32 %v1162_v27, %v1064_v21  ;;  %v758_v52 = vadd.f32 %v757_v56, %v3831_v46  ;;  %v1172_v35 = vpop.f32.mrf.mxu3 }
 0x10c   : > { %v1473_v20 = vpop.f32.mrf.mxu0  ;;  %2907 = vmatmul.msk.bf16.gmra.mxu1 %vm524_vm1, %v3418_v5  ;;  %2949 = vmatmul.msk.bf16.gmra.mxu2 %vm524_vm1, %v3901_v42  ;;  %v3962_v57 = vadd.f32 %v1470_v0, %v1248_v7  ;;  %v1339_v42 = vrot.slane %v3616_v50, 2 }
 0x10e   : > { %v1340_v61 = vor.u32 %v1339_v42, %v1338_v17  ;;  %v1342_v17 = vrot.slane %v3715_v16, 1 }
 0x10f   : > { %3033 = vmatmul.msk.bf16.gmra.mxu0 %vm524_vm1, %v1337_v4  ;;  %v981_v48 = vpop.f32.mrf.mxu2  ;;  %2993 = vmatmul.msk.bf16.gmra.mxu3 %vm524_vm1, %v3967_v24 }
 0x110   : > { %v1065_v27 = vadd.f32 %v981_v48, %v758_v52 }
 0x111   : > { %v759_v14 = vpop.f32.mrf.mxu1 }
 0x112   : > { %v1249_v12 = vadd.f32 %v1165_v34, %v1065_v27  ;;  %v760_v46 = vadd.f32 %v759_v14, %v3846_v8  ;;  %v1175_v10 = vpop.f32.mrf.mxu3  ;;  %v1341_v34 = vsel %vm1290_vm3, %v1336_v1, %v1340_v61 }
 0x114   : > { %v1475_v5 = vpop.f32.mrf.mxu0  ;;  %v3973_v0 = vadd.f32 %v1473_v20, %v1249_v12  ;;  %v876_v20 = vrot.slane %v3475_v30, 1 }
 0x116   : > { %v3987_v14 = vsel %vm846_vm2, %v874_v62, %v876_v20 }
 0x117   : > { %v983_v21 = vpop.f32.mrf.mxu2 }
 0x118   : > { %v1066_v56 = vadd.f32 %v983_v21, %v760_v46 }
 0x119   : > { %v762_v47 = vpop.f32.mrf.mxu1 }
 0x11a   : > { %v1250_v7 = vadd.f32 %v1167_v22, %v1066_v56  ;;  %v763_v8 = vadd.f32 %v762_v47, %v3857_v51  ;;  %v1177_v48 = vpop.f32.mrf.mxu3  ;;  %v3257_v51 = vld [vmem:[%s4514_s1 + $0xe0] sm:$0xff] }
 0x11b   : > { %2213 = vmatpush.bf16.msra.mxu3 %v3257_v51 }
 0x11c   : > { %v1478_v4 = vpop.f32.mrf.mxu0  ;;  %2908 = vmatmul.msk.bf16.gmra.mxu1 %vm524_vm1, %v3421_v6  ;;  %2950 = vmatmul.msk.bf16.gmra.mxu2 %vm524_vm1, %v3927_v63  ;;  %v3982_v52 = vadd.f32 %v1475_v5, %v1250_v7  ;;  %v1343_v63 = vrot.slane %v3683_v18, 2  ;;  %v3253_v5 = vld [vmem:[%s4514_s1 + $0xc0] sm:$0xff] }
 0x11d   : > { %1905 = vmatpush.bf16.msra.mxu2 %v3253_v5 }
 0x11e   : > { %v1344_v42 = vor.u32 %v1343_v63, %v1342_v17  ;;  %v1346_v17 = vrot.slane %v3498_v40, 1  ;;  %v1347_v63 = vrot.slane %v3495_v39, 2 }
 0x11f   : > { %3034 = vmatmul.msk.bf16.gmra.mxu0 %vm524_vm1, %v1341_v34  ;;  %v986_v27 = vpop.f32.mrf.mxu2  ;;  %2994 = vmatmul.msk.bf16.gmra.mxu3 %vm524_vm1, %v3987_v14 }
 0x120   : > { %v1067_v22 = vadd.f32 %v986_v27, %v763_v8  ;;  %v1345_v8 = vsel %vm1290_vm3, %v1340_v61, %v1344_v42  ;;  %v3249_v27 = vld [vmem:[%s4514_s1 + $0xa0] sm:$0xff]  ;;  %v1348_v51 = vor.u32 %v1347_v63, %v1346_v17 }
 0x121   : > { %v764_v1 = vpop.f32.mrf.mxu1  ;;  %1721 = vmatpush.bf16.msra.mxu1 %v3249_v27 }
 0x122   : > { %v1251_v12 = vadd.f32 %v1170_v36, %v1067_v22  ;;  %v765_v36 = vadd.f32 %v764_v1, %v3874_v33  ;;  %v1180_v46 = vpop.f32.mrf.mxu3  ;;  %v878_v33 = vrot.slane %v3478_v31, 1 }
 0x124   : > { %v1480_v6 = vpop.f32.mrf.mxu0  ;;  %v3999_v62 = vadd.f32 %v1478_v4, %v1251_v12  ;;  %v4019_v12 = vsel %vm846_vm2, %v876_v20, %v878_v33 }
 0x127   : > { %v988_v21 = vpop.f32.mrf.mxu2 }
 0x128   : > { %v1068_v56 = vadd.f32 %v988_v21, %v765_v36 }
 0x129   : > { %v767_v47 = vpop.f32.mrf.mxu1 }
 0x12a   : > { %v1252_v7 = vadd.f32 %v1172_v35, %v1068_v56  ;;  %v3261_v35 = vld [vmem:[%s4514_s1 + $0x100] sm:$0xff]  ;;  %v768_v61 = vadd.f32 %v767_v47, %v3884_v3  ;;  %v1182_v22 = vpop.f32.mrf.mxu3 }
 0x12b   : > { %2473 = vmatpush.bf16.msra.mxu0 %v3261_v35 }
 0x12c   : > { %v1483_v34 = vpop.f32.mrf.mxu0  ;;  %2909 = vmatmul.msk.bf16.gmra.mxu1 %vm524_vm1, %v3508_v43  ;;  %2951 = vmatmul.msk.bf16.gmra.mxu2 %vm524_vm1, %v3947_v53  ;;  %v4011_v4 = vadd.f32 %v1480_v6, %v1252_v7 }
 0x12f   : > { %3035 = vmatmul.msk.bf16.gmra.mxu0 %vm524_vm1, %v1345_v8  ;;  %v991_v1 = vpop.f32.mrf.mxu2  ;;  %2995 = vmatmul.msk.bf16.gmra.mxu3 %vm524_vm1, %v4019_v12 }
 0x130   : > { %v1069_v43 = vadd.f32 %v991_v1, %v768_v61 }
 0x131   : > { %v769_v53 = vpop.f32.mrf.mxu1 }
 0x132   : > { %v1253_v31 = vadd.f32 %v1175_v10, %v1069_v43  ;;  %v770_v3 = vadd.f32 %v769_v53, %v3905_v9  ;;  %v1185_v36 = vpop.f32.mrf.mxu3  ;;  %v1349_v10 = vsel %vm1290_vm3, %v1344_v42, %v1348_v51 }
 0x134   : > { %v1485_v6 = vpop.f32.mrf.mxu0  ;;  %v4025_v5 = vadd.f32 %v1483_v34, %v1253_v31  ;;  %v4034_v34 = vrot.slane %v3549_v59, 1  ;;  %v1351_v59 = vrot.slane %v3501_v41, 2 }
 0x136   : > { %v4042_v42 = vsel %vm846_vm2, %v878_v33, %v4034_v34 }
 0x137   : > { %v993_v21 = vpop.f32.mrf.mxu2 }
 0x138   : > { %v1070_v56 = vadd.f32 %v993_v21, %v770_v3  ;;  %v1112_v21 = vrot.slane %v3584_v28, 1 }
 0x139   : > { %v772_v20 = vpop.f32.mrf.mxu1 }
 0x13a   : > { %v1254_v47 = vadd.f32 %v1177_v48, %v1070_v56  ;;  %v773_v9 = vadd.f32 %v772_v20, %v3776_v29  ;;  %v1187_v27 = vpop.f32.mrf.mxu3 }
 0x13c   : > { %v1488_v7 = vpop.f32.mrf.mxu0  ;;  %2910 = vmatmul.msk.bf16.gmra.mxu1 %vm524_vm1, %v3579_v25  ;;  %2952 = vmatmul.msk.bf16.gmra.mxu2 %vm524_vm1, %v3967_v24  ;;  %v4036_v8 = vadd.f32 %v1485_v6, %v1254_v47  ;;  %v1350_v24 = vrot.slane %v3562_v13, 1 }
 0x13e   : > { %v1352_v53 = vor.u32 %v1351_v59, %v1350_v24 }
 0x13f   : > { %3036 = vmatmul.msk.bf16.gmra.mxu0 %vm524_vm1, %v1349_v10  ;;  %v996_v48 = vpop.f32.mrf.mxu2  ;;  %2996 = vmatmul.msk.bf16.gmra.mxu3 %vm524_vm1, %v4042_v42  ;;  %v3274_v10 = vld [vmem:[%s3409_s25 + $0x98] sm:$0xff]  }
 0x140   : > { %v1071_v35 = vadd.f32 %v996_v48, %v773_v9  ;;  %v1353_v3 = vsel %vm1290_vm3, %v1348_v51, %v1352_v53  ;;  %v1113_v51 = vsel %vm846_vm2, %v4034_v34, %v1112_v21  ;;  %v4588_v48 = vld [vmem:[#allocation19_spill] sm:$0xff] }
 0x141   : > { %v774_v25 = vpop.f32.mrf.mxu1 }
 0x142   : > { %v1255_v61 = vadd.f32 %v1180_v46, %v1071_v35  ;;  %v775_v29 = vadd.f32 %v774_v25, %v3792_v58  ;;  %v1190_v31 = vpop.f32.mrf.mxu3  ;;  %v4589_v35 = vld [vmem:[#allocation10_spill] sm:$0xff] }
 0x143   : > { %v1355_v25 = vrot.slane %v4589_v35, 2 }
 0x144   : > { %v1490_v1 = vpop.f32.mrf.mxu0  ;;  %v4048_v43 = vadd.f32 %v1488_v7, %v1255_v61  ;;  %v3271_v61 = vunpack.c.l.b16 %v3274_v10 }
 0x147   : > { %v998_v6 = vpop.f32.mrf.mxu2 }
 0x148   : > { %v1072_v17 = vadd.f32 %v998_v6, %v775_v29 }
 0x149   : > { %v777_v33 = vpop.f32.mrf.mxu1 }
 0x14a   : > { %v1256_v63 = vadd.f32 %v1182_v22, %v1072_v17  ;;  %v778_v58 = vadd.f32 %v777_v33, %v3803_v19  ;;  %v1192_v20 = vpop.f32.mrf.mxu3  ;;  %v4070_v17 = vpack.c.b16 %v3271_v61, %v3271_v61 }
 0x14c   : > { %v1493_v46 = vpop.f32.mrf.mxu0  ;;  %2911 = vmatmul.msk.bf16.gmra.mxu1 %vm524_vm1, %v3664_v23  ;;  %2953 = vmatmul.msk.bf16.gmra.mxu2 %vm524_vm1, %v3987_v14  ;;  %v4057_v56 = vadd.f32 %v1490_v1, %v1256_v63  ;;  %v1354_v14 = vrot.slane %v4588_v48, 1 }
 0x14e   : > { %v1356_v24 = vor.u32 %v1355_v25, %v1354_v14 }
 0x14f   : > { %3037 = vmatmul.msk.bf16.gmra.mxu0 %vm524_vm1, %v1353_v3  ;;  %v1001_v47 = vpop.f32.mrf.mxu2  ;;  %2997 = vmatmul.msk.bf16.gmra.mxu3 %vm524_vm1, %v1113_v51 }
 0x150   : > { %v1073_v22 = vadd.f32 %v1001_v47, %v778_v58  ;;  %v1357_v3 = vsel %vm1290_vm3, %v1352_v53, %v1356_v24  ;;  %v4544_v47 = vshrl.u32 %v3584_v28, 16 }
 0x151   : > { %v779_v7 = vpop.f32.mrf.mxu1 }
 0x152   : > { %v1257_v23 = vadd.f32 %v1185_v36, %v1073_v22  ;;  %v780_v19 = vadd.f32 %v779_v7, %v3818_v11  ;;  %v1195_v59 = vpop.f32.mrf.mxu3 }
 0x154   : > { %v1495_v9 = vpop.f32.mrf.mxu0  ;;  %v4067_v1 = vadd.f32 %v1493_v46, %v1257_v23  ;;  %v1114_v46 = vrot.slane %v4070_v17, 1  ;;  %v1361_v23 = vrot.slane %v4544_v47, 1 }
 0x157   : > { %v1003_v29 = vpop.f32.mrf.mxu2 }
 0x158   : > { %v1074_v6 = vadd.f32 %v1003_v29, %v780_v19  ;;  %v4590_v29 = vld [vmem:[#allocation9_spill] sm:$0xff] }
 0x159   : > { %v782_v33 = vpop.f32.mrf.mxu1 }
 0x15a   : > { %v1258_v36 = vadd.f32 %v1187_v27, %v1074_v6  ;;  %v783_v58 = vadd.f32 %v782_v33, %v3829_v37  ;;  %v4543_v27 = vshll.u32 %v3584_v28, 16  ;;  %v1197_v22 = vpop.f32.mrf.mxu3  ;;  %v2044_v6 = vrot.slane %v4590_v29, 3 }
 0x15b   : > { %v2046_v33 = vrot.slane %v3686_v2, 2  ;;  %v4592_v2 = vld [vmem:[#allocation33_spill] sm:$0xff] }
 0x15c   : > { %v1498_v63 = vpop.f32.mrf.mxu0  ;;  %2912 = vmatmul.msk.bf16.gmra.mxu1 %vm524_vm1, %v3475_v30  ;;  %2954 = vmatmul.msk.bf16.gmra.mxu2 %vm524_vm1, %v4019_v12  ;;  %v4078_v11 = vadd.f32 %v1495_v9, %v1258_v36  ;;  %v1115_v30 = vsel %vm846_vm2, %v1112_v21, %v1114_v46  ;;  %v1364_v9 = vrot.slane %v4543_v27, 2  ;;  %v2043_v21 = vrot.slane %v3627_v60, 2  ;;  %v4591_v36 = vld [vmem:[#allocation16_spill] sm:$0xff] }
 0x15e   : > { %v1365_v25 = vor.u32 %v1364_v9, %v1361_v23 }
 0x15f   : > { %3038 = vmatmul.msk.bf16.gmra.mxu0 %vm524_vm1, %v1357_v3  ;;  %v1006_v53 = vpop.f32.mrf.mxu2  ;;  %2998 = vmatmul.msk.bf16.gmra.mxu3 %vm524_vm1, %v1115_v30  ;;  %v2047_v3 = vrot.slane %v4591_v36, 3  ;;  %v4594_v36 = vld [vmem:[#allocation36_spill] sm:$0xff] }
 0x160   : > { %v1075_v51 = vadd.f32 %v1006_v53, %v783_v58 }
 0x161   : > { %v784_v7 = vpop.f32.mrf.mxu1  ;;  %v2048_v60 = vor.u32 %v2047_v3, %v2046_v33 }
 0x162   : > { %v1259_v10 = vadd.f32 %v1190_v31, %v1075_v51  ;;  %v785_v14 = vadd.f32 %v784_v7, %v3844_v38  ;;  %v1200_v61 = vpop.f32.mrf.mxu3  ;;  %v4099_v51 = vld [vmem:[%s3409_s25 + $0x80] sm:$0xff]  ;;  %v2045_v38 = vor.u32 %v2044_v6, %v2043_v21  ;;  %v1368_v7 = vshrl.u32 %v4070_v17, 16  ;;  %v4593_v6 = vld [vmem:[#allocation17_spill] sm:$0xff] }
 0x163   : > { %v882_v33 = vrot.slane %v4593_v6, 1 }
 0x164   : > { %v1500_v12 = vpop.f32.mrf.mxu0  ;;  %v4090_v37 = vadd.f32 %v1498_v63, %v1259_v10  ;;  %v1366_v63 = vsel %vm1290_vm3, %v1356_v24, %v1365_v25  ;;  %v1371_v24 = vshll.u32 %v4070_v17, 16 }
 0x167   : > { %v1008_v19 = vpop.f32.mrf.mxu2 }
 0x168   : > { %v1076_v31 = vadd.f32 %v1008_v19, %v785_v14  ;;  %v2049_v14 = vsel %vm2042_vm4, %v2045_v38, %v2048_v60 }
 0x169   : > { %v787_v46 = vpop.f32.mrf.mxu1 }
 0x16a   : > { %v1260_v58 = vadd.f32 %v1192_v20, %v1076_v31  ;;  %v788_v20 = vadd.f32 %v787_v46, %v4592_v2  ;;  %v1202_v10 = vpop.f32.mrf.mxu3  ;;  %v1370_v31 = vrot.slane %v1368_v7, 1  ;;  %v883_v7 = vsel %vm846_vm2, %v4034_v34, %v882_v33 }
 0x16c   : > { %v1503_v53 = vpop.f32.mrf.mxu0  ;;  %2913 = vmatmul.msk.bf16.gmra.mxu1 %vm524_vm1, %v4099_v51  ;;  %2955 = vmatmul.msk.bf16.gmra.mxu2 %vm524_vm1, %v4042_v42  ;;  %v4105_v30 = vadd.f32 %v1500_v12, %v1260_v58  ;;  %v1373_v12 = vrot.slane %v1371_v24, 2 }
 0x16e   : > { %v1374_v46 = vor.u32 %v1373_v12, %v1370_v31  ;;  %v4598_v12 = vld [vmem:[#allocation38_spill] sm:$0xff] }
 0x16f   : > { %3039 = vmatmul.msk.bf16.gmra.mxu0 %vm524_vm1, %v1366_v63  ;;  %v1011_v23 = vpop.f32.mrf.mxu2  ;;  %3149 = vmatmul.msk.bf16.vlgmr.msra.gmra.mxu3 %vm524_vm1, %v2049_v14 }
 0x170   : > { %v1077_v9 = vadd.f32 %v1011_v23, %v788_v20  ;;  %v4595_v20 = vld [vmem:[#allocation20_spill] sm:$0xff]  ;;  %v4596_v23 = vld [vmem:[#allocation18_spill] sm:$0xff] }
 0x171   : > { %v789_v19 = vpop.f32.mrf.mxu1  ;;  %v2050_v38 = vrot.slane %v4595_v20, 2 }
 0x172   : > { %v1261_v42 = vadd.f32 %v1195_v59, %v1077_v9  ;;  %v790_v3 = vadd.f32 %v789_v19, %v4594_v36  ;;  %v1205_v58 = vpop.f32.mrf.mxu3  ;;  %v2051_v59 = vrot.slane %v4596_v23, 3  ;;  %v4600_v23 = vld [vmem:[#allocation13_spill] sm:$0xff] }
 0x174   : > { %v1505_v21 = vpop.f32.mrf.mxu0  ;;  %v4113_v29 = vadd.f32 %v1503_v53, %v1261_v42  ;;  %v1375_v53 = vsel %vm1290_vm3, %v1365_v25, %v1374_v46  ;;  %v4123_v42 = vld [vmem:[%s3409_s25 + $0x88] sm:$0xff]  ;;  %v2052_v19 = vor.u32 %v2051_v59, %v2050_v38  ;;  %v1602_v59 = vrot.slane %v4600_v23, 2 }
 0x176   : > { %v2053_v25 = vsel %vm2042_vm4, %v2048_v60, %v2052_v19 }
 0x177   : > { %v1013_v63 = vpop.f32.mrf.mxu2 }
 0x178   : > { %v1078_v2 = vadd.f32 %v1013_v63, %v790_v3 }
 0x179   : > { %v792_v9 = vpop.f32.mrf.mxu1 }
 0x17a   : > { %v1262_v24 = vadd.f32 %v1197_v22, %v1078_v2  ;;  %v793_v34 = vadd.f32 %v792_v9, %v4598_v12  ;;  %v1207_v22 = vpop.f32.mrf.mxu3  ;;  %v3316_v2 = vld [vmem:[%s3409_s25 + $0x8] sm:$0xff] }
 0x17b   : > { %v1599_v20 = vrot.slane %v3316_v2, 2 }
 0x17c   : > { %v1508_v14 = vpop.f32.mrf.mxu0  ;;  %2914 = vmatmul.msk.bf16.gmra.mxu1 %vm524_vm1, %v4123_v42  ;;  %2956 = vmatmul.msk.bf16.gmra.mxu2 %vm524_vm1, %v883_v7  ;;  %v4128_v31 = vadd.f32 %v1505_v21, %v1262_v24  ;;  %v3317_v21 = vld [vmem:[%s3409_s25 + $0x10] sm:$0xff] }
 0x17d   : > { %v1600_v38 = vrot.slane %v3317_v21, 2  ;;  %v4601_v7 = vld [vmem:[#allocation40_spill] sm:$0xff]  ;;  %v2351_v24 = vrot.slane %v3317_v21, 3 }
 0x17e   : > { %4597 = vst [vmem:[#allocation19_spill] sm:$0xff] %v4128_v31 }
 0x17f   : > { %3040 = vmatmul.msk.bf16.gmra.mxu0 %vm524_vm1, %v1375_v53  ;;  %v1016_v6 = vpop.f32.mrf.mxu2  ;;  %3150 = vmatmul.msk.bf16.gmra.mxu3 %vm524_vm1, %v2053_v25  ;;  %v2352_v53 = vrot.slane %v4600_v23, 3  ;;  %v1603_v2 = vsel %vm1598_vm5, %v1600_v38, %v1602_v59 }
 0x180   : > { %v1079_v33 = vadd.f32 %v1016_v6, %v793_v34  ;;  %v4602_v34 = vld [vmem:[#allocation3_spill] sm:$0xff] }
 0x181   : > { %v794_v36 = vpop.f32.mrf.mxu1  ;;  %v2054_v6 = vrot.slane %v4602_v34, 2 }
 0x182   : > { %v1263_v3 = vadd.f32 %v1200_v61, %v1079_v33  ;;  %v795_v9 = vadd.f32 %v794_v36, %v4601_v7  ;;  %v1210_v60 = vpop.f32.mrf.mxu3  ;;  %v2353_v36 = vsel %vm2350_vm6, %v2351_v24, %v2352_v53  ;;  %v4605_v7 = vld [vmem:[#allocation22_spill] sm:$0xff] }
 0x184   : > { %v1510_v46 = vpop.f32.mrf.mxu0  ;;  %v4134_v63 = vadd.f32 %v1508_v14, %v1263_v3  ;;  %v4603_v14 = vld [vmem:[#allocation2_spill] sm:$0xff]  ;;  %v1601_v3 = vsel %vm1598_vm5, %v1599_v20, %v1600_v38 }
 0x185   : > { %v2055_v33 = vrot.slane %v4603_v14, 3 }
 0x186   : > { %4599 = vst [vmem:[#allocation10_spill] sm:$0xff] %v4134_v63 }
 0x187   : > { %v1018_v12 = vpop.f32.mrf.mxu2  ;;  %v2056_v21 = vor.u32 %v2055_v33, %v2054_v6 }
 0x188   : > { %v1080_v61 = vadd.f32 %v1018_v12, %v795_v9 }
 0x189   : > { %v797_v25 = vpop.f32.mrf.mxu1 }
 0x18a   : > { %v1264_v27 = vadd.f32 %v1202_v10, %v1080_v61  ;;  %v798_v9 = vadd.f32 %v797_v25, %v4605_v7  ;;  %v1212_v12 = vpop.f32.mrf.mxu3  ;;  %v2057_v10 = vsel %vm2042_vm4, %v2052_v19, %v2056_v21  ;;  %v4608_v7 = vld [vmem:[#allocation7_spill] sm:$0xff] }
 0x18b   : > { %v2058_v63 = vrot.slane %v4608_v7, 2  ;;  %v3319_v7 = vld [vmem:[%s3409_s25 + $0x28] sm:$0xff] }
 0x18c   : > { %v1513_v47 = vpop.f32.mrf.mxu0  ;;  %3065 = vmatmul.msk.bf16.vlgmr.msra.gmra.mxu1 %vm524_vm1, %v1601_v3  ;;  %3107 = vmatmul.msk.bf16.vlgmr.msra.gmra.mxu2 %vm524_vm1, %v1603_v2  ;;  %v4148_v23 = vadd.f32 %v1510_v46, %v1264_v27  ;;  %v3318_v3 = vld [vmem:[%s3409_s25 + $0x20] sm:$0xff]  ;;  %v4607_v27 = vld [vmem:[#allocation24_spill] sm:$0xff] }
 0x18d   : > { %v1604_v6 = vrot.slane %v3318_v3, 2  ;;  %v2354_v33 = vrot.slane %v3318_v3, 3 }
 0x18e   : > { %4604 = vst [vmem:[#allocation9_spill] sm:$0xff] %v4148_v23 }
 0x18f   : > { %3191 = vmatmul.msk.bf16.vlgmr.msra.gmra.mxu0 %vm524_vm1, %v2353_v36  ;;  %v1021_v20 = vpop.f32.mrf.mxu2  ;;  %3151 = vmatmul.msk.bf16.gmra.mxu3 %vm524_vm1, %v2057_v10 }
 0x190   : > { %v1081_v34 = vadd.f32 %v1021_v20, %v798_v9  ;;  %v4609_v9 = vld [vmem:[#allocation4_spill] sm:$0xff] }
 0x191   : > { %v799_v38 = vpop.f32.mrf.mxu1  ;;  %v2059_v20 = vrot.slane %v4609_v9, 3 }
 0x192   : > { %v1265_v61 = vadd.f32 %v1205_v58, %v1081_v34  ;;  %v800_v46 = vadd.f32 %v799_v38, %v4607_v27  ;;  %v1215_v36 = vpop.f32.mrf.mxu3  ;;  %v1605_v58 = vsel %vm1598_vm5, %v1602_v59, %v1604_v6 }
 0x193   : > { %v2060_v10 = vor.u32 %v2059_v20, %v2058_v63  ;;  %v1606_v63 = vrot.slane %v3319_v7, 2  ;;  %v2356_v20 = vrot.slane %v3319_v7, 3 }
 0x194   : > { %v1515_v24 = vpop.f32.mrf.mxu0  ;;  %v4154_v14 = vadd.f32 %v1513_v47, %v1265_v61  ;;  %v2355_v47 = vsel %vm2350_vm6, %v2352_v53, %v2354_v33 }
 0x196   : > { %4606 = vst [vmem:[#allocation16_spill] sm:$0xff] %v4154_v14 }
 0x197   : > { %v1023_v23 = vpop.f32.mrf.mxu2 }
 0x198   : > { %v1082_v25 = vadd.f32 %v1023_v23, %v800_v46  ;;  %v4611_v23 = vld [vmem:[#allocation26_spill] sm:$0xff] }
 0x199   : > { %v802_v19 = vpop.f32.mrf.mxu1 }
 0x19a   : > { %v1266_v34 = vadd.f32 %v1207_v22, %v1082_v25  ;;  %v803_v61 = vadd.f32 %v802_v19, %v4611_v23  ;;  %v1217_v3 = vpop.f32.mrf.mxu3  ;;  %v2061_v22 = vsel %vm2042_vm4, %v2056_v21, %v2060_v10  ;;  %v4614_v23 = vld [vmem:[#allocation14_spill] sm:$0xff] }
 0x19c   : > { %v1518_v31 = vpop.f32.mrf.mxu0  ;;  %3066 = vmatmul.msk.bf16.gmra.mxu1 %vm524_vm1, %v1603_v2  ;;  %3108 = vmatmul.msk.bf16.gmra.mxu2 %vm524_vm1, %v1605_v58  ;;  %v4164_v38 = vadd.f32 %v1515_v24, %v1266_v34  ;;  %v4613_v24 = vld [vmem:[#allocation28_spill] sm:$0xff] }
 0x19e   : > { %4610 = vst [vmem:[#allocation33_spill] sm:$0xff] %v4164_v38  ;;  %v2062_v38 = vrot.slane %v4614_v23, 2  ;;  %v3320_v23 = vld [vmem:[%s3409_s25 + $0x30] sm:$0xff] }
 0x19f   : > { %3192 = vmatmul.msk.bf16.gmra.mxu0 %vm524_vm1, %v2355_v47  ;;  %v1026_v27 = vpop.f32.mrf.mxu2  ;;  %3152 = vmatmul.msk.bf16.gmra.mxu3 %vm524_vm1, %v2061_v22 }
 0x1a0   : > { %v1083_v46 = vadd.f32 %v1026_v27, %v803_v61  ;;  %v4615_v61 = vld [vmem:[#allocation8_spill] sm:$0xff] }
 0x1a1   : > { %v804_v59 = vpop.f32.mrf.mxu1  ;;  %v2063_v27 = vrot.slane %v4615_v61, 3 }
 0x1a2   : > { %v1267_v25 = vadd.f32 %v1210_v60, %v1083_v46  ;;  %v805_v9 = vadd.f32 %v804_v59, %v4613_v24  ;;  %v1220_v34 = vpop.f32.mrf.mxu3  ;;  %v1607_v60 = vsel %vm1598_vm5, %v1604_v6, %v1606_v63 }
 0x1a3   : > { %v2064_v22 = vor.u32 %v2063_v27, %v2062_v38  ;;  %v1608_v38 = vrot.slane %v3320_v23, 2  ;;  %v2358_v27 = vrot.slane %v3320_v23, 3 }
 0x1a4   : > { %v1520_v53 = vpop.f32.mrf.mxu0  ;;  %v4170_v2 = vadd.f32 %v1518_v31, %v1267_v25  ;;  %v2357_v31 = vsel %vm2350_vm6, %v2354_v33, %v2356_v20  ;;  %v4617_v25 = vld [vmem:[#allocation30_spill] sm:$0xff] }
 0x1a6   : > { %4612 = vst [vmem:[#allocation17_spill] sm:$0xff] %v4170_v2 }
 0x1a7   : > { %v1028_v47 = vpop.f32.mrf.mxu2 }
 0x1a8   : > { %v1084_v19 = vadd.f32 %v1028_v47, %v805_v9 }
 0x1a9   : > { %v807_v21 = vpop.f32.mrf.mxu1 }
 0x1aa   : > { %v1268_v46 = vadd.f32 %v1212_v12, %v1084_v19  ;;  %v808_v7 = vadd.f32 %v807_v21, %v4617_v25  ;;  %v1222_v24 = vpop.f32.mrf.mxu3  ;;  %v2065_v12 = vsel %vm2042_vm4, %v2060_v10, %v2064_v22  ;;  %v4620_v25 = vld [vmem:[#allocation21_spill] sm:$0xff] }
 0x1ac   : > { %v1523_v14 = vpop.f32.mrf.mxu0  ;;  %3067 = vmatmul.msk.bf16.gmra.mxu1 %vm524_vm1, %v1605_v58  ;;  %3109 = vmatmul.msk.bf16.gmra.mxu2 %vm524_vm1, %v1607_v60  ;;  %v4180_v59 = vadd.f32 %v1520_v53, %v1268_v46  ;;  %v4619_v53 = vld [vmem:[#allocation32_spill] sm:$0xff] }
 0x1ae   : > { %4616 = vst [vmem:[#allocation36_spill] sm:$0xff] %v4180_v59  ;;  %v2066_v59 = vrot.slane %v4620_v25, 2  ;;  %v3321_v25 = vld [vmem:[%s3409_s25 + $0x38] sm:$0xff] }
 0x1af   : > { %3193 = vmatmul.msk.bf16.gmra.mxu0 %vm524_vm1, %v2357_v31  ;;  %v1031_v9 = vpop.f32.mrf.mxu2  ;;  %3153 = vmatmul.msk.bf16.gmra.mxu3 %vm524_vm1, %v2065_v12 }
 0x1b0   : > { %v1085_v47 = vadd.f32 %v1031_v9, %v808_v7  ;;  %v4621_v7 = vld [vmem:[#allocation15_spill] sm:$0xff] }
 0x1b1   : > { %v809_v6 = vpop.f32.mrf.mxu1  ;;  %v2067_v9 = vrot.slane %v4621_v7, 3 }
 0x1b2   : > { %v1269_v19 = vadd.f32 %v1215_v36, %v1085_v47  ;;  %v810_v61 = vadd.f32 %v809_v6, %v4619_v53  ;;  %v1225_v46 = vpop.f32.mrf.mxu3  ;;  %v1609_v36 = vsel %vm1598_vm5, %v1606_v63, %v1608_v38 }
 0x1b3   : > { %v2068_v12 = vor.u32 %v2067_v9, %v2066_v59  ;;  %v1610_v59 = vrot.slane %v3321_v25, 2  ;;  %v2360_v9 = vrot.slane %v3321_v25, 3 }
 0x1b4   : > { %v1525_v33 = vpop.f32.mrf.mxu0  ;;  %v4186_v58 = vadd.f32 %v1523_v14, %v1269_v19  ;;  %v2359_v14 = vsel %vm2350_vm6, %v2356_v20, %v2358_v27  ;;  %v4623_v19 = vld [vmem:[#allocation35_spill] sm:$0xff] }
 0x1b6   : > { %4618 = vst [vmem:[#allocation20_spill] sm:$0xff] %v4186_v58 }
 0x1b7   : > { %v1033_v31 = vpop.f32.mrf.mxu2 }
 0x1b8   : > { %v1086_v21 = vadd.f32 %v1033_v31, %v810_v61 }
 0x1b9   : > { %v812_v10 = vpop.f32.mrf.mxu1 }
 0x1ba   : > { %v1270_v47 = vadd.f32 %v1217_v3, %v1086_v21  ;;  %v813_v23 = vadd.f32 %v812_v10, %v4623_v19  ;;  %v1227_v53 = vpop.f32.mrf.mxu3  ;;  %v2069_v3 = vsel %vm2042_vm4, %v2064_v22, %v2068_v12  ;;  %v4626_v19 = vld [vmem:[#allocation12_spill] sm:$0xff] }
 0x1bc   : > { %v1528_v2 = vpop.f32.mrf.mxu0  ;;  %3068 = vmatmul.msk.bf16.gmra.mxu1 %vm524_vm1, %v1607_v60  ;;  %3110 = vmatmul.msk.bf16.gmra.mxu2 %vm524_vm1, %v1609_v36  ;;  %v4196_v6 = vadd.f32 %v1525_v33, %v1270_v47  ;;  %v4625_v33 = vld [vmem:[#allocation37_spill] sm:$0xff] }
 0x1be   : > { %4622 = vst [vmem:[#allocation18_spill] sm:$0xff] %v4196_v6  ;;  %v2070_v6 = vrot.slane %v4626_v19, 2  ;;  %v3322_v19 = vld [vmem:[%s3409_s25 + $0x40] sm:$0xff] }
 0x1bf   : > { %3194 = vmatmul.msk.bf16.gmra.mxu0 %vm524_vm1, %v2359_v14  ;;  %v1036_v61 = vpop.f32.mrf.mxu2  ;;  %3154 = vmatmul.msk.bf16.gmra.mxu3 %vm524_vm1, %v2069_v3 }
 0x1c0   : > { %v1087_v31 = vadd.f32 %v1036_v61, %v813_v23  ;;  %v4627_v23 = vld [vmem:[#allocation11_spill] sm:$0xff] }
 0x1c1   : > { %v814_v63 = vpop.f32.mrf.mxu1  ;;  %v2071_v61 = vrot.slane %v4627_v23, 3 }
 0x1c2   : > { %v1271_v21 = vadd.f32 %v1220_v34, %v1087_v31  ;;  %v815_v7 = vadd.f32 %v814_v63, %v4625_v33  ;;  %v1230_v47 = vpop.f32.mrf.mxu3  ;;  %v1611_v34 = vsel %vm1598_vm5, %v1608_v38, %v1610_v59 }
 0x1c3   : > { %v2072_v3 = vor.u32 %v2071_v61, %v2070_v6  ;;  %v1612_v6 = vrot.slane %v3322_v19, 2  ;;  %v2362_v61 = vrot.slane %v3322_v19, 3 }
 0x1c4   : > { %v1530_v20 = vpop.f32.mrf.mxu0  ;;  %v4202_v60 = vadd.f32 %v1528_v2, %v1271_v21  ;;  %v2361_v2 = vsel %vm2350_vm6, %v2358_v27, %v2360_v9  ;;  %v4629_v21 = vld [vmem:[#allocation39_spill] sm:$0xff] }
 0x1c6   : > { %4624 = vst [vmem:[#allocation38_spill] sm:$0xff] %v4202_v60 }
 0x1c7   : > { %v1038_v14 = vpop.f32.mrf.mxu2 }
 0x1c8   : > { %v1088_v10 = vadd.f32 %v1038_v14, %v815_v7 }
 0x1c9   : > { %v817_v22 = vpop.f32.mrf.mxu1 }
 0x1ca   : > { %v1272_v31 = vadd.f32 %v1222_v24, %v1088_v10  ;;  %v818_v25 = vadd.f32 %v817_v22, %v4629_v21  ;;  %v1232_v33 = vpop.f32.mrf.mxu3  ;;  %v2073_v24 = vsel %vm2042_vm4, %v2068_v12, %v2072_v3  ;;  %v4631_v21 = vld [vmem:[#allocation6_spill] sm:$0xff] }
 0x1cc   : > { %v1533_v58 = vpop.f32.mrf.mxu0  ;;  %3069 = vmatmul.msk.bf16.gmra.mxu1 %vm524_vm1, %v1609_v36  ;;  %3111 = vmatmul.msk.bf16.gmra.mxu2 %vm524_vm1, %v1611_v34  ;;  %v4212_v63 = vadd.f32 %v1530_v20, %v1272_v31  ;;  %v4630_v20 = vld [vmem:[#allocation41_spill] sm:$0xff] }
 0x1ce   : > { %4628 = vst [vmem:[#allocation13_spill] sm:$0xff] %v4212_v63  ;;  %v2074_v63 = vrot.slane %v4631_v21, 2  ;;  %v3323_v21 = vld [vmem:[%s3409_s25 + $0x48] sm:$0xff] }
 0x1cf   : > { %3195 = vmatmul.msk.bf16.gmra.mxu0 %vm524_vm1, %v2361_v2  ;;  %v1041_v7 = vpop.f32.mrf.mxu2  ;;  %3155 = vmatmul.msk.bf16.gmra.mxu3 %vm524_vm1, %v2073_v24 }
 0x1d0   : > { %v1089_v14 = vadd.f32 %v1041_v7, %v818_v25  ;;  %v4632_v25 = vld [vmem:[#allocation5_spill] sm:$0xff] }
 0x1d1   : > { %v819_v38 = vpop.f32.mrf.mxu1  ;;  %v2075_v7 = vrot.slane %v4632_v25, 3 }
 0x1d2   : > { %v1273_v10 = vadd.f32 %v1225_v46, %v1089_v14  ;;  %v820_v23 = vadd.f32 %v819_v38, %v4630_v20  ;;  %v1235_v31 = vpop.f32.mrf.mxu3  ;;  %v1613_v46 = vsel %vm1598_vm5, %v1610_v59, %v1612_v6 }
 0x1d3   : > { %v2076_v24 = vor.u32 %v2075_v7, %v2074_v63  ;;  %v1614_v63 = vrot.slane %v3323_v21, 2  ;;  %v2364_v7 = vrot.slane %v3323_v21, 3 }
 0x1d4   : > { %v1535_v27 = vpop.f32.mrf.mxu0  ;;  %v4218_v36 = vadd.f32 %v1533_v58, %v1273_v10  ;;  %v2363_v58 = vsel %vm2350_vm6, %v2360_v9, %v2362_v61  ;;  %v4633_v10 = vld [vmem:[#allocation23_spill] sm:$0xff] }
 0x1d7   : > { %v1043_v2 = vpop.f32.mrf.mxu2 }
 0x1d8   : > { %v1090_v22 = vadd.f32 %v1043_v2, %v820_v23 }
 0x1d9   : > { %v822_v12 = vpop.f32.mrf.mxu1 }
 0x1da   : > { %v1274_v14 = vadd.f32 %v1227_v53, %v1090_v22  ;;  %v823_v19 = vadd.f32 %v822_v12, %v4633_v10  ;;  %v1237_v20 = vpop.f32.mrf.mxu3  ;;  %v2077_v53 = vsel %vm2042_vm4, %v2072_v3, %v2076_v24  ;;  %v2078_v10 = vrot.slane %v3537_v54, 2  ;;  %v4635_v54 = vld [vmem:[#allocation27_spill] sm:$0xff] }
 0x1dc   : > { %v1538_v60 = vpop.f32.mrf.mxu0  ;;  %3070 = vmatmul.msk.bf16.gmra.mxu1 %vm524_vm1, %v1611_v34  ;;  %3112 = vmatmul.msk.bf16.gmra.mxu2 %vm524_vm1, %v1613_v46  ;;  %v4228_v38 = vadd.f32 %v1535_v27, %v1274_v14  ;;  %v4634_v27 = vld [vmem:[#allocation25_spill] sm:$0xff] }
 0x1df   : > { %3196 = vmatmul.msk.bf16.gmra.mxu0 %vm524_vm1, %v2363_v58  ;;  %v1046_v23 = vpop.f32.mrf.mxu2  ;;  %3156 = vmatmul.msk.bf16.gmra.mxu3 %vm524_vm1, %v2077_v53 }
 0x1e0   : > { %v1091_v2 = vadd.f32 %v1046_v23, %v823_v19  ;;  %v2079_v19 = vrot.slane %v3448_v15, 3 }
 0x1e1   : > { %v824_v59 = vpop.f32.mrf.mxu1 }
 0x1e2   : > { %v1275_v22 = vadd.f32 %v1230_v47, %v1091_v2  ;;  %v825_v25 = vadd.f32 %v824_v59, %v4634_v27  ;;  %v1240_v14 = vpop.f32.mrf.mxu3  ;;  %v1615_v47 = vsel %vm1598_vm5, %v1612_v6, %v1614_v63  ;;  %v2080_v53 = vor.u32 %v2079_v19, %v2078_v10 }
 0x1e4   : > { %v1540_v9 = vpop.f32.mrf.mxu0  ;;  %v4234_v34 = vadd.f32 %v1538_v60, %v1275_v22  ;;  %v2365_v60 = vsel %vm2350_vm6, %v2362_v61, %v2364_v7 }
 0x1e7   : > { %v1048_v58 = vpop.f32.mrf.mxu2 }
 0x1e8   : > { %v1092_v12 = vadd.f32 %v1048_v58, %v825_v25  ;;  %v3324_v58 = vld [vmem:[%s3409_s25 + $0x50] sm:$0xff] }
 0x1e9   : > { %v827_v3 = vpop.f32.mrf.mxu1  ;;  %v2366_v19 = vrot.slane %v3324_v58, 3 }
 0x1ea   : > { %v1276_v23 = vadd.f32 %v1232_v33, %v1092_v12  ;;  %v828_v22 = vadd.f32 %v827_v3, %v4635_v54  ;;  %v1242_v15 = vpop.f32.mrf.mxu3  ;;  %v2081_v33 = vsel %vm2042_vm4, %v2076_v24, %v2080_v53  ;;  %v1616_v12 = vrot.slane %v3324_v58, 2 }
 0x1eb   : > { %v2082_v54 = vrot.slane %v3613_v49, 2  ;;  %v4637_v49 = vld [vmem:[#allocation31_spill] sm:$0xff] }
 0x1ec   : > { %v1543_v2 = vpop.f32.mrf.mxu0  ;;  %3071 = vmatmul.msk.bf16.gmra.mxu1 %vm524_vm1, %v1613_v46  ;;  %3113 = vmatmul.msk.bf16.gmra.mxu2 %vm524_vm1, %v1615_v47  ;;  %v4244_v59 = vadd.f32 %v1540_v9, %v1276_v23  ;;  %v4636_v9 = vld [vmem:[#allocation29_spill] sm:$0xff] }
 0x1ef   : > { %3197 = vmatmul.msk.bf16.gmra.mxu0 %vm524_vm1, %v2365_v60  ;;  %v1051_v21 = vpop.f32.mrf.mxu2  ;;  %3157 = vmatmul.msk.bf16.gmra.mxu3 %vm524_vm1, %v2081_v33 }
 0x1f0   : > { %v1093_v27 = vadd.f32 %v1051_v21, %v828_v22  ;;  %v2083_v22 = vrot.slane %v3540_v55, 3 }
 0x1f1   : > { %v829_v6 = vpop.f32.mrf.mxu1 }
 0x1f2   : > { %v1277_v25 = vadd.f32 %v1235_v31, %v1093_v27  ;;  %v830_v10 = vadd.f32 %v829_v6, %v4636_v9  ;;  %v2215_v23 = vpop.f32.mrf.mxu3  ;;  %v1617_v31 = vsel %vm1598_vm5, %v1614_v63, %v1616_v12  ;;  %v2084_v33 = vor.u32 %v2083_v22, %v2082_v54 }
 0x1f4   : > { %v1545_v61 = vpop.f32.mrf.mxu0  ;;  %v4250_v46 = vadd.f32 %v1543_v2, %v1277_v25  ;;  %v2367_v2 = vsel %vm2350_vm6, %v2364_v7, %v2366_v19 }
 0x1f7   : > { %v1053_v60 = vpop.f32.mrf.mxu2 }
 0x1f8   : > { %v1094_v3 = vadd.f32 %v1053_v60, %v830_v10  ;;  %v3325_v60 = vld [vmem:[%s3409_s25 + $0x58] sm:$0xff] }
 0x1f9   : > { %v832_v24 = vpop.f32.mrf.mxu1  ;;  %v2368_v22 = vrot.slane %v3325_v60, 3 }
 0x1fa   : > { %v1278_v21 = vadd.f32 %v1237_v20, %v1094_v3  ;;  %v833_v25 = vadd.f32 %v832_v24, %v4637_v49  ;;  %v2217_v55 = vpop.f32.mrf.mxu3  ;;  %v2085_v20 = vsel %vm2042_vm4, %v2080_v53, %v2084_v33  ;;  %v1618_v3 = vrot.slane %v3325_v60, 2 }
 0x1fb   : > { %v2086_v49 = vrot.slane %v3680_v44, 2 }
 0x1fc   : > { %v1548_v27 = vpop.f32.mrf.mxu0  ;;  %3072 = vmatmul.msk.bf16.gmra.mxu1 %vm524_vm1, %v1615_v47  ;;  %3114 = vmatmul.msk.bf16.gmra.mxu2 %vm524_vm1, %v1617_v31  ;;  %v4260_v6 = vadd.f32 %v1545_v61, %v1278_v21  ;;  %v4638_v61 = vld [vmem:[#allocation34_spill] sm:$0xff] }
 0x1ff   : > { %3198 = vmatmul.msk.bf16.gmra.mxu0 %vm524_vm1, %v2367_v2  ;;  %v1056_v58 = vpop.f32.mrf.mxu2  ;;  %3158 = vmatmul.msk.bf16.gmra.mxu3 %vm524_vm1, %v2085_v20 }
 0x200   : > { %v1095_v9 = vadd.f32 %v1056_v58, %v833_v25  ;;  %v2087_v25 = vrot.slane %v3616_v50, 3 }
 0x201   : > { %v834_v63 = vpop.f32.mrf.mxu1 }
 0x202   : > { %v1279_v10 = vadd.f32 %v1240_v14, %v1095_v9  ;;  %v835_v54 = vadd.f32 %v834_v63, %v4638_v61  ;;  %v2220_v21 = vpop.f32.mrf.mxu3  ;;  %v1619_v14 = vsel %vm1598_vm5, %v1616_v12, %v1618_v3  ;;  %v2088_v20 = vor.u32 %v2087_v25, %v2086_v49 }
 0x204   : > { %v1550_v7 = vpop.f32.mrf.mxu0  ;;  %v4266_v47 = vadd.f32 %v1548_v27, %v1279_v10  ;;  %v2369_v27 = vsel %vm2350_vm6, %v2366_v19, %v2368_v22 }
 0x207   : > { %v1058_v2 = vpop.f32.mrf.mxu2 }
 0x208   : > { %v1096_v24 = vadd.f32 %v1058_v2, %v835_v54 }
 0x209   : > { %v1723_v53 = vpop.f32.mrf.mxu1 }
 0x20a   : > { %v1280_v58 = vadd.f32 %v1242_v15, %v1096_v24  ;;  %v1813_v50 = vadd.f32 %v1723_v53, %v3933_v45  ;;  %v2222_v44 = vpop.f32.mrf.mxu3  ;;  %v2089_v15 = vsel %vm2042_vm4, %v2084_v33, %v2088_v20  ;;  %v3326_v45 = vld [vmem:[%s3409_s25 + $0x60] sm:$0xff]  ;;  %v2090_v53 = vrot.slane %v3715_v16, 2 }
 0x20b   : > { %v1620_v33 = vrot.slane %v3326_v45, 2  ;;  %v2370_v2 = vrot.slane %v3326_v45, 3  ;;  %v3327_v45 = vld [vmem:[%s3409_s25 + $0x68] sm:$0xff] }
 0x20c   : > { %v2475_v9 = vpop.f32.mrf.mxu0  ;;  %3073 = vmatmul.msk.bf16.gmra.mxu1 %vm524_vm1, %v1617_v31  ;;  %3115 = vmatmul.msk.bf16.gmra.mxu2 %vm524_vm1, %v1619_v14  ;;  %v4276_v63 = vadd.f32 %v1550_v7, %v1280_v58  ;;  %v4285_v31 = vld [vmem:[%s4515_s2] ss:$0 sm:$0xff]  ;;  %v2091_v58 = vrot.slane %v3683_v18, 3 }
 0x20f   : > { %3199 = vmatmul.msk.bf16.gmra.mxu0 %vm524_vm1, %v2369_v27  ;;  %v1907_v10 = vpop.f32.mrf.mxu2  ;;  %3159 = vmatmul.msk.bf16.gmra.mxu3 %vm524_vm1, %v2089_v15  ;;  %v1621_v27 = vsel %vm1598_vm5, %v1618_v3, %v1620_v33 }
 0x210   : > { %v1997_v60 = vadd.f32 %v1907_v10, %v1813_v50 }
 0x211   : > { %v1725_v12 = vpop.f32.mrf.mxu1 }
 0x212   : > { %v2305_v19 = vadd.f32 %v2215_v23, %v1997_v60  ;;  %v1814_v23 = vadd.f32 %v1725_v12, %v3942_v32  ;;  %v2225_v24 = vpop.f32.mrf.mxu3  ;;  %v2371_v60 = vsel %vm2350_vm6, %v2368_v22, %v2370_v2  ;;  %v2092_v32 = vor.u32 %v2091_v58, %v2090_v53 }
 0x214   : > { %v2477_v61 = vpop.f32.mrf.mxu0  ;;  %v2565_v7 = vadd.f32 %v2475_v9, %v2305_v19  ;;  %v2093_v3 = vsel %vm2042_vm4, %v2088_v20, %v2092_v32 }
 0x216   : > { %v2605_v54 = vadd.f32 %v4285_v31, %v2565_v7 }
 0x217   : > { %v1909_v49 = vpop.f32.mrf.mxu2 }
 0x218   : > { %2641 = vst [vmem:[%s4291_s4] sm:$0xff] %v2605_v54  ;;  %v1998_v25 = vadd.f32 %v1909_v49, %v1814_v23  ;;  %v1622_v54 = vrot.slane %v3327_v45, 2 }
 0x219   : > { %v1728_v9 = vpop.f32.mrf.mxu1 }
 0x21a   : > { %v2306_v50 = vadd.f32 %v2217_v55, %v1998_v25  ;;  %v1815_v18 = vadd.f32 %v1728_v9, %v3953_v26  ;;  %v2227_v12 = vpop.f32.mrf.mxu3  ;;  %v2372_v26 = vrot.slane %v3327_v45, 3  ;;  %v2094_v9 = vrot.slane %v3498_v40, 2 }
 0x21c   : > { %v2480_v10 = vpop.f32.mrf.mxu0  ;;  %v2566_v15 = vadd.f32 %v2477_v61, %v2306_v50  ;;  %3074 = vmatmul.msk.bf16.gmra.mxu1 %vm524_vm1, %v1619_v14  ;;  %3116 = vmatmul.msk.bf16.gmra.mxu2 %vm524_vm1, %v1621_v27  ;;  %v1623_v50 = vsel %vm1598_vm5, %v1620_v33, %v1622_v54 }
 0x21e   : > { %v2606_v16 = vadd.f32 %v4285_v31, %v2566_v15  ;;  %v2373_v15 = vsel %vm2350_vm6, %v2370_v2, %v2372_v26 }
 0x21f   : > { %3200 = vmatmul.msk.bf16.gmra.mxu0 %vm524_vm1, %v2371_v60  ;;  %v1912_v19 = vpop.f32.mrf.mxu2  ;;  %3160 = vmatmul.msk.bf16.gmra.mxu3 %vm524_vm1, %v2093_v3 }
 0x220   : > { %2642 = vst [vmem:[%s4291_s4 + $0x8] sm:$0xff] %v2606_v16  ;;  %v1999_v55 = vadd.f32 %v1912_v19, %v1815_v18 }
 0x221   : > { %v1730_v22 = vpop.f32.mrf.mxu1 }
 0x222   : > { %v2307_v61 = vadd.f32 %v2220_v21, %v1999_v55  ;;  %v1816_v49 = vadd.f32 %v1730_v22, %v3962_v57  ;;  %v2230_v25 = vpop.f32.mrf.mxu3  ;;  %v2095_v21 = vrot.slane %v3495_v39, 3  ;;  %v3328_v22 = vld [vmem:[%s3409_s25 + $0x70] sm:$0xff] }
 0x224   : > { %v2482_v14 = vpop.f32.mrf.mxu0  ;;  %v2567_v7 = vadd.f32 %v2480_v10, %v2307_v61  ;;  %v2096_v57 = vor.u32 %v2095_v21, %v2094_v9  ;;  %v1624_v61 = vrot.slane %v3328_v22, 2 }
 0x226   : > { %v2607_v23 = vadd.f32 %v4285_v31, %v2567_v7  ;;  %v2097_v33 = vsel %vm2042_vm4, %v2092_v32, %v2096_v57 }
 0x227   : > { %v1914_v53 = vpop.f32.mrf.mxu2 }
 0x228   : > { %2643 = vst [vmem:[%s4291_s4 + $0x10] sm:$0xff] %v2607_v23  ;;  %v2000_v58 = vadd.f32 %v1914_v53, %v1816_v49  ;;  %v2098_v53 = vrot.slane %v3562_v13, 2 }
 0x229   : > { %v1733_v20 = vpop.f32.mrf.mxu1 }
 0x22a   : > { %v2308_v10 = vadd.f32 %v2222_v44, %v2000_v58  ;;  %v1817_v39 = vadd.f32 %v1733_v20, %v3973_v0  ;;  %v2232_v18 = vpop.f32.mrf.mxu3  ;;  %v2374_v0 = vrot.slane %v3328_v22, 3  ;;  %v1625_v58 = vsel %vm1598_vm5, %v1622_v54, %v1624_v61 }
 0x22c   : > { %v2485_v60 = vpop.f32.mrf.mxu0  ;;  %v2568_v16 = vadd.f32 %v2482_v14, %v2308_v10  ;;  %3075 = vmatmul.msk.bf16.gmra.mxu1 %vm524_vm1, %v1621_v27  ;;  %3117 = vmatmul.msk.bf16.gmra.mxu2 %vm524_vm1, %v1623_v50  ;;  %v2375_v20 = vsel %vm2350_vm6, %v2372_v26, %v2374_v0 }
 0x22e   : > { %v2608_v40 = vadd.f32 %v4285_v31, %v2568_v16 }
 0x22f   : > { %3201 = vmatmul.msk.bf16.gmra.mxu0 %vm524_vm1, %v2373_v15  ;;  %v1917_v19 = vpop.f32.mrf.mxu2  ;;  %3161 = vmatmul.msk.bf16.gmra.mxu3 %vm524_vm1, %v2097_v33 }
 0x230   : > { %2644 = vst [vmem:[%s4291_s4 + $0x18] sm:$0xff] %v2608_v40  ;;  %v2001_v44 = vadd.f32 %v1917_v19, %v1817_v39  ;;  %v3329_v39 = vld [vmem:[%s3409_s25 + $0x78] sm:$0xff] }
 0x231   : > { %v1735_v2 = vpop.f32.mrf.mxu1  ;;  %v1626_v19 = vrot.slane %v3329_v39, 2 }
 0x232   : > { %v2309_v55 = vadd.f32 %v2225_v24, %v2001_v44  ;;  %v1818_v7 = vadd.f32 %v1735_v2, %v3982_v52  ;;  %v2235_v45 = vpop.f32.mrf.mxu3  ;;  %v2099_v24 = vrot.slane %v3501_v41, 3 }
 0x233   : > { %v1627_v22 = vsel %vm1598_vm5, %v1624_v61, %v1626_v19 }
 0x234   : > { %v2487_v27 = vpop.f32.mrf.mxu0  ;;  %v2569_v3 = vadd.f32 %v2485_v60, %v2309_v55  ;;  %v2100_v52 = vor.u32 %v2099_v24, %v2098_v53 }
 0x236   : > { %v2609_v14 = vadd.f32 %v4285_v31, %v2569_v3  ;;  %v2101_v54 = vsel %vm2042_vm4, %v2096_v57, %v2100_v52  ;;  %v2102_v3 = vrot.slane %v4588_v48, 2 }
 0x237   : > { %v1919_v23 = vpop.f32.mrf.mxu2 }
 0x238   : > { %2645 = vst [vmem:[%s4291_s4 + $0x20] sm:$0xff] %v2609_v14  ;;  %v2002_v49 = vadd.f32 %v1919_v23, %v1818_v7 }
 0x239   : > { %v1738_v32 = vpop.f32.mrf.mxu1 }
 0x23a   : > { %v2310_v9 = vadd.f32 %v2227_v12, %v2002_v49  ;;  %v1819_v41 = vadd.f32 %v1738_v32, %v3999_v62  ;;  %v2237_v60 = vpop.f32.mrf.mxu3  ;;  %v2376_v62 = vrot.slane %v3329_v39, 3 }
 0x23c   : > { %v2490_v21 = vpop.f32.mrf.mxu0  ;;  %v2570_v10 = vadd.f32 %v2487_v27, %v2310_v9  ;;  %3076 = vmatmul.msk.bf16.gmra.mxu1 %vm524_vm1, %v1623_v50  ;;  %3118 = vmatmul.msk.bf16.gmra.mxu2 %vm524_vm1, %v1625_v58  ;;  %v2377_v23 = vsel %vm2350_vm6, %v2374_v0, %v2376_v62 }
 0x23e   : > { %v2610_v13 = vadd.f32 %v4285_v31, %v2570_v10 }
 0x23f   : > { %3202 = vmatmul.msk.bf16.gmra.mxu0 %vm524_vm1, %v2375_v20  ;;  %v1922_v15 = vpop.f32.mrf.mxu2  ;;  %3162 = vmatmul.msk.bf16.gmra.mxu3 %vm524_vm1, %v2101_v54 }
 0x240   : > { %2646 = vst [vmem:[%s4291_s4 + $0x28] sm:$0xff] %v2610_v13  ;;  %v2003_v12 = vadd.f32 %v1922_v15, %v1819_v41 }
 0x241   : > { %v1740_v26 = vpop.f32.mrf.mxu1 }
 0x242   : > { %v2311_v16 = vadd.f32 %v2230_v25, %v2003_v12  ;;  %v1820_v33 = vadd.f32 %v1740_v26, %v4011_v4  ;;  %v2240_v2 = vpop.f32.mrf.mxu3  ;;  %v2103_v25 = vrot.slane %v4589_v35, 3 }
 0x244   : > { %v2492_v50 = vpop.f32.mrf.mxu0  ;;  %v2571_v40 = vadd.f32 %v2490_v21, %v2311_v16  ;;  %v2104_v4 = vor.u32 %v2103_v25, %v2102_v3  ;;  %v1628_v21 = vrot.slane %v4099_v51, 2 }
 0x246   : > { %v2611_v44 = vadd.f32 %v4285_v31, %v2571_v40  ;;  %v2105_v61 = vsel %vm2042_vm4, %v2100_v52, %v2104_v4  ;;  %v4639_v52 = vshrl.u32 %v3584_v28, 16  ;;  %v1629_v16 = vsel %vm1598_vm5, %v1626_v19, %v1628_v21 }
 0x247   : > { %v1924_v55 = vpop.f32.mrf.mxu2 }
 0x248   : > { %2647 = vst [vmem:[%s4291_s4 + $0x30] sm:$0xff] %v2611_v44  ;;  %v2004_v27 = vadd.f32 %v1924_v55, %v1820_v33  ;;  %v2106_v12 = vrot.slane %v4639_v52, 2 }
 0x249   : > { %v1743_v57 = vpop.f32.mrf.mxu1 }
 0x24a   : > { %v2312_v14 = vadd.f32 %v2232_v18, %v2004_v27  ;;  %v1821_v53 = vadd.f32 %v1743_v57, %v4025_v5  ;;  %v2242_v35 = vpop.f32.mrf.mxu3  ;;  %v2378_v5 = vrot.slane %v4099_v51, 3  ;;  %v4379_v57 = vld [vmem:[%s3409_s25 + $0x98] sm:$0xff]  }
 0x24c   : > { %v2495_v7 = vpop.f32.mrf.mxu0  ;;  %v2572_v49 = vadd.f32 %v2492_v50, %v2312_v14  ;;  %3077 = vmatmul.msk.bf16.gmra.mxu1 %vm524_vm1, %v1625_v58  ;;  %3119 = vmatmul.msk.bf16.gmra.mxu2 %vm524_vm1, %v1627_v22  ;;  %v1630_v14 = vrot.slane %v4123_v42, 2 }
 0x24e   : > { %v2612_v48 = vadd.f32 %v4285_v31, %v2572_v49  ;;  %v2380_v49 = vrot.slane %v4123_v42, 3 }
 0x24f   : > { %3203 = vmatmul.msk.bf16.gmra.mxu0 %vm524_vm1, %v2377_v23  ;;  %v1927_v24 = vpop.f32.mrf.mxu2  ;;  %3163 = vmatmul.msk.bf16.gmra.mxu3 %vm524_vm1, %v2105_v61  ;;  %v1631_v61 = vsel %vm1598_vm5, %v1628_v21, %v1630_v14 }
 0x250   : > { %2648 = vst [vmem:[%s4291_s4 + $0x38] sm:$0xff] %v2612_v48  ;;  %v2005_v18 = vadd.f32 %v1927_v24, %v1821_v53 }
 0x251   : > { %v1745_v0 = vpop.f32.mrf.mxu1 }
 0x252   : > { %v2313_v32 = vadd.f32 %v2235_v45, %v2005_v18  ;;  %v1822_v10 = vadd.f32 %v1745_v0, %v4036_v8  ;;  %v2245_v13 = vpop.f32.mrf.mxu3  ;;  %v4640_v45 = vshll.u32 %v3584_v28, 16  ;;  %v2379_v8 = vsel %vm2350_vm6, %v2376_v62, %v2378_v5 }
 0x254   : > { %v2497_v9 = vpop.f32.mrf.mxu0  ;;  %v2573_v58 = vadd.f32 %v2495_v7, %v2313_v32  ;;  %v2107_v54 = vrot.slane %v4640_v45, 3 }
 0x256   : > { %v2613_v20 = vadd.f32 %v4285_v31, %v2573_v58  ;;  %v2108_v51 = vor.u32 %v2107_v54, %v2106_v12  ;;  %v240_v58 = vld [vmem:[%s3409_s25 + $0xa0] sm:$0x7] }
 0x257   : > { %v1929_v41 = vpop.f32.mrf.mxu2  ;;  %v1861_v42 = vunpack.c.l.b16 %v240_v58 }
 0x258   : > { %2649 = vst [vmem:[%s4291_s4 + $0x40] sm:$0xff] %v2613_v20  ;;  %v2006_v15 = vadd.f32 %v1929_v41, %v1822_v10  ;;  %v2109_v62 = vsel %vm2042_vm4, %v2104_v4, %v2108_v51 }
 0x259   : > { %v1748_v26 = vpop.f32.mrf.mxu1  ;;  %v4398_v52 = vpack.c.b16 %v1861_v42, %v1861_v42 }
 0x25a   : > { %v2314_v50 = vadd.f32 %v2237_v60, %v2006_v15  ;;  %v1823_v44 = vadd.f32 %v1748_v26, %v4048_v43  ;;  %v4373_v33 = vpop.f32.mrf.mxu3  ;;  %v2114_v43 = vshll.u32 %v4379_v57, 16 }
 0x25c   : > { %v2500_v40 = vpop.f32.mrf.mxu0  ;;  %v2574_v39 = vadd.f32 %v2497_v9, %v2314_v50  ;;  %3078 = vmatmul.msk.bf16.gmra.mxu1 %vm524_vm1, %v1627_v22  ;;  %3120 = vmatmul.msk.bf16.gmra.mxu2 %vm524_vm1, %v1629_v16  ;;  %v2111_v22 = vshrl.u32 %v4379_v57, 16  ;;  %v2116_v24 = vrot.slane %v2114_v43, 3  ;;  %v2381_v9 = vsel %vm2350_vm6, %v2378_v5, %v2380_v49 }
 0x25d   : > { %v2123_v50 = vshll.u32 %v4398_v52, 16 }
 0x25e   : > { %v2614_v28 = vadd.f32 %v4285_v31, %v2574_v39  ;;  %v2113_v53 = vrot.slane %v2111_v22, 2 }
 0x25f   : > { %3204 = vmatmul.msk.bf16.gmra.mxu0 %vm524_vm1, %v2379_v8  ;;  %v1932_v19 = vpop.f32.mrf.mxu2  ;;  %3164 = vmatmul.msk.bf16.gmra.mxu3 %vm524_vm1, %v2109_v62 }
 0x260   : > { %2650 = vst [vmem:[%s4291_s4 + $0x48] sm:$0xff] %v2614_v28  ;;  %v2007_v60 = vadd.f32 %v1932_v19, %v1823_v44 }
 0x261   : > { %v1750_v55 = vpop.f32.mrf.mxu1 }
 0x262   : > { %v2315_v27 = vadd.f32 %v2240_v2, %v2007_v60  ;;  %v1824_v23 = vadd.f32 %v1750_v55, %v4057_v56  ;;  %v2250_v2 = vpop.f32.mrf.mxu3  ;;  %v2117_v56 = vor.u32 %v2116_v24, %v2113_v53  ;;  %v2125_v60 = vrot.slane %v2123_v50, 3 }
 0x264   : > { %v2502_v3 = vpop.f32.mrf.mxu0  ;;  %v2575_v25 = vadd.f32 %v2500_v40, %v2315_v27  ;;  %v2118_v5 = vsel %vm2042_vm4, %v2108_v51, %v2117_v56 }
 0x266   : > { %v2615_v7 = vadd.f32 %v4285_v31, %v2575_v25 }
 0x267   : > { %v1934_v4 = vpop.f32.mrf.mxu2 }
 0x268   : > { %2651 = vst [vmem:[%s4291_s4 + $0x50] sm:$0xff] %v2615_v7  ;;  %v2008_v48 = vadd.f32 %v1934_v4, %v1824_v23 }
 0x269   : > { %v1753_v18 = vpop.f32.mrf.mxu1 }
 0x26a   : > { %v2316_v0 = vadd.f32 %v2242_v35, %v2008_v48  ;;  %v1825_v41 = vadd.f32 %v1753_v18, %v4067_v1  ;;  %v2252_v21 = vpop.f32.mrf.mxu3  ;;  %v3331_v1 = vld [vmem:[%s3409_s25 + $0x90] sm:$0xff]   ;;  %v1864_v18 = vrot.slane %v4379_v57, 2 }
 0x26b   : > { %v4404_v40 = vrot.slane %v3331_v1, 2  ;;  %v2382_v51 = vrot.slane %v3331_v1, 3  ;;  %v4641_v1 = vld [vmem:[#allocation19_spill] sm:$0xff] }
 0x26c   : > { %v2505_v32 = vpop.f32.mrf.mxu0  ;;  %v2576_v20 = vadd.f32 %v2502_v3, %v2316_v0  ;;  %3079 = vmatmul.msk.bf16.gmra.mxu1 %vm524_vm1, %v1629_v16  ;;  %3121 = vmatmul.msk.bf16.gmra.mxu2 %vm524_vm1, %v1631_v61  ;;  %v2120_v16 = vshrl.u32 %v4398_v52, 16 }
 0x26d   : > { %v1633_v55 = vsel %vm1598_vm5, %v1630_v14, %v4404_v40  ;;  %v2383_v25 = vsel %vm2350_vm6, %v2380_v49, %v2382_v51 }
 0x26e   : > { %v2616_v10 = vadd.f32 %v4285_v31, %v2576_v20  ;;  %v2122_v19 = vrot.slane %v2120_v16, 2  ;;  %v1866_v16 = vrot.slane %v4398_v52, 2 }
 0x26f   : > { %3205 = vmatmul.msk.bf16.gmra.mxu0 %vm524_vm1, %v2381_v9  ;;  %v1937_v35 = vpop.f32.mrf.mxu2  ;;  %3165 = vmatmul.msk.bf16.gmra.mxu3 %vm524_vm1, %v2118_v5 }
 0x270   : > { %2652 = vst [vmem:[%s4291_s4 + $0x58] sm:$0xff] %v2616_v10  ;;  %v2009_v15 = vadd.f32 %v1937_v35, %v1825_v41 }
 0x271   : > { %v1755_v12 = vpop.f32.mrf.mxu1 }
 0x272   : > { %v2317_v45 = vadd.f32 %v2245_v13, %v2009_v15  ;;  %v1826_v39 = vadd.f32 %v1755_v12, %v4078_v11  ;;  %v2255_v28 = vpop.f32.mrf.mxu3  ;;  %v2126_v11 = vor.u32 %v2125_v60, %v2122_v19  ;;  %v1867_v19 = vsel %vm1598_vm5, %v1864_v18, %v1866_v16 }
 0x274   : > { %v2507_v54 = vpop.f32.mrf.mxu0  ;;  %v2577_v26 = vadd.f32 %v2505_v32, %v2317_v45  ;;  %v2127_v4 = vsel %vm2042_vm4, %v2117_v56, %v2126_v11 }
 0x276   : > { %v2617_v8 = vadd.f32 %v4285_v31, %v2577_v26  ;;  %v1634_v26 = vrot.slane %v4070_v17, 2 }
 0x277   : > { %v1939_v44 = vpop.f32.mrf.mxu2 }
 0x278   : > { %2653 = vst [vmem:[%s4291_s4 + $0x60] sm:$0xff] %v2617_v8  ;;  %v2010_v13 = vadd.f32 %v1939_v44, %v1826_v39  ;;  %v2386_v39 = vrot.slane %v4398_v52, 3 }
 0x279   : > { %v1758_v62 = vpop.f32.mrf.mxu1 }
 0x27a   : > { %v2318_v27 = vadd.f32 %v4373_v33, %v2010_v13  ;;  %v1827_v7 = vadd.f32 %v1758_v62, %v4090_v37  ;;  %v2257_v23 = vpop.f32.mrf.mxu3  ;;  %v2384_v37 = vrot.slane %v4379_v57, 3 }
 0x27c   : > { %v2510_v3 = vpop.f32.mrf.mxu0  ;;  %v2578_v22 = vadd.f32 %v2507_v54, %v2318_v27  ;;  %3080 = vmatmul.msk.bf16.gmra.mxu1 %vm524_vm1, %v1631_v61  ;;  %3122 = vmatmul.msk.bf16.gmra.mxu2 %vm524_vm1, %v1633_v55  ;;  %v2385_v10 = vsel %vm2350_vm6, %v2382_v51, %v2384_v37  ;;  %v2387_v62 = vsel %vm2350_vm6, %v2384_v37, %v2386_v39  ;;  %v4642_v27 = vld [vmem:[#allocation10_spill] sm:$0xff] }
 0x27e   : > { %v2618_v43 = vadd.f32 %v4285_v31, %v2578_v22 }
 0x27f   : > { %3206 = vmatmul.msk.bf16.gmra.mxu0 %vm524_vm1, %v2383_v25  ;;  %v1942_v14 = vpop.f32.mrf.mxu2  ;;  %3166 = vmatmul.msk.bf16.gmra.mxu3 %vm524_vm1, %v2127_v4 }
 0x280   : > { %2654 = vst [vmem:[%s4291_s4 + $0x68] sm:$0xff] %v2618_v43  ;;  %v2011_v33 = vadd.f32 %v1942_v14, %v1827_v7 }
 0x281   : > { %v1760_v49 = vpop.f32.mrf.mxu1 }
 0x282   : > { %v2319_v48 = vadd.f32 %v2250_v2, %v2011_v33  ;;  %v1828_v0 = vadd.f32 %v1760_v49, %v4105_v30  ;;  %v2260_v32 = vpop.f32.mrf.mxu3  ;;  %v1865_v2 = vsel %vm1598_vm5, %v4404_v40, %v1864_v18  ;;  %v4643_v33 = vld [vmem:[#allocation9_spill] sm:$0xff] }
 0x284   : > { %v2512_v53 = vpop.f32.mrf.mxu0  ;;  %v2579_v24 = vadd.f32 %v2510_v3, %v2319_v48 }
 0x286   : > { %v2619_v61 = vadd.f32 %v4285_v31, %v2579_v24 }
 0x287   : > { %v1944_v9 = vpop.f32.mrf.mxu2 }
 0x288   : > { %2655 = vst [vmem:[%s4291_s4 + $0x70] sm:$0xff] %v2619_v61  ;;  %v2012_v58 = vadd.f32 %v1944_v9, %v1828_v0  ;;  %v4644_v9 = vld [vmem:[#allocation16_spill] sm:$0xff] }
 0x289   : > { %v1763_v20 = vpop.f32.mrf.mxu1 }
 0x28a   : > { %v2320_v56 = vadd.f32 %v2252_v21, %v2012_v58  ;;  %v1829_v57 = vadd.f32 %v1763_v20, %v4113_v29  ;;  %v2262_v35 = vpop.f32.mrf.mxu3 }
 0x28c   : > { %v2515_v42 = vpop.f32.mrf.mxu0  ;;  %v2580_v41 = vadd.f32 %v2512_v53, %v2320_v56  ;;  %3081 = vmatmul.msk.bf16.gmra.mxu1 %vm524_vm1, %v1633_v55  ;;  %3123 = vmatmul.msk.bf16.gmra.mxu2 %vm524_vm1, %v1865_v2 }
 0x28e   : > { %v2620_v30 = vadd.f32 %v4285_v31, %v2580_v41 }
 0x28f   : > { %3207 = vmatmul.msk.bf16.gmra.mxu0 %vm524_vm1, %v2385_v10  ;;  %v1947_v15 = vpop.f32.mrf.mxu2 }
 0x290   : > { %2656 = vst [vmem:[%s4291_s4 + $0x78] sm:$0xff] %v2620_v30  ;;  %v2013_v5 = vadd.f32 %v1947_v15, %v1829_v57  ;;  %v4645_v57 = vld [vmem:[#allocation33_spill] sm:$0xff] }
 0x291   : > { %v1765_v21 = vpop.f32.mrf.mxu1 }
 0x292   : > { %v2321_v12 = vadd.f32 %v2255_v28, %v2013_v5  ;;  %v1830_v8 = vadd.f32 %v1765_v21, %v4641_v1  ;;  %v2265_v29 = vpop.f32.mrf.mxu3  ;;  %v1635_v28 = vsel %vm1598_vm5, %v4404_v40, %v1634_v26 }
 0x294   : > { %v2517_v45 = vpop.f32.mrf.mxu0  ;;  %v2581_v54 = vadd.f32 %v2515_v42, %v2321_v12 }
 0x296   : > { %v2621_v50 = vadd.f32 %v4285_v31, %v2581_v54 }
 0x297   : > { %v1949_v51 = vpop.f32.mrf.mxu2 }
 0x298   : > { %2657 = vst [vmem:[%s4291_s4 + $0x80] sm:$0xff] %v2621_v50  ;;  %v2014_v44 = vadd.f32 %v1949_v51, %v1830_v8  ;;  %v4646_v50 = vld [vmem:[#allocation17_spill] sm:$0xff] }
 0x299   : > { %v1768_v13 = vpop.f32.mrf.mxu1 }
 0x29a   : > { %v2322_v17 = vadd.f32 %v2257_v23, %v2014_v44  ;;  %v1831_v3 = vadd.f32 %v1768_v13, %v4642_v27  ;;  %v2267_v25 = vpop.f32.mrf.mxu3 }
 0x29c   : > { %v2520_v60 = vpop.f32.mrf.mxu0  ;;  %v2582_v55 = vadd.f32 %v2517_v45, %v2322_v17  ;;  %3082 = vmatmul.msk.bf16.gmra.mxu1 %vm524_vm1, %v1635_v28  ;;  %3124 = vmatmul.msk.bf16.gmra.mxu2 %vm524_vm1, %v1867_v19  ;;  %v4647_v17 = vld [vmem:[#allocation36_spill] sm:$0xff] }
 0x29e   : > { %v2622_v52 = vadd.f32 %v4285_v31, %v2582_v55 }
 0x29f   : > { %3208 = vmatmul.msk.bf16.gmra.mxu0 %vm524_vm1, %v2387_v62  ;;  %v1952_v40 = vpop.f32.mrf.mxu2 }
 0x2a0   : > { %2658 = vst [vmem:[%s4291_s4 + $0x88] sm:$0xff] %v2622_v52  ;;  %v2015_v22 = vadd.f32 %v1952_v40, %v1831_v3 }
 0x2a1   : > { %v1770_v11 = vpop.f32.mrf.mxu1 }
 0x2a2   : > { %v2323_v43 = vadd.f32 %v2260_v32, %v2015_v22  ;;  %v1832_v4 = vadd.f32 %v1770_v11, %v4643_v33  ;;  %v2270_v48 = vpop.f32.mrf.mxu3  ;;  %v4648_v22 = vld [vmem:[#allocation20_spill] sm:$0xff] }
 0x2a4   : > { %v2522_v7 = vpop.f32.mrf.mxu0  ;;  %v2583_v23 = vadd.f32 %v2520_v60, %v2323_v43 }
 0x2a6   : > { %v2623_v14 = vadd.f32 %v4285_v31, %v2583_v23 }
 0x2a7   : > { %v1954_v49 = vpop.f32.mrf.mxu2 }
 0x2a8   : > { %2659 = vst [vmem:[%s4291_s4 + $0x90] sm:$0xff] %v2623_v14  ;;  %v2016_v53 = vadd.f32 %v1954_v49, %v1832_v4 }
 0x2a9   : > { %v1773_v24 = vpop.f32.mrf.mxu1 }
 0x2aa   : > { %v2324_v18 = vadd.f32 %v2262_v35, %v2016_v53  ;;  %v1833_v32 = vadd.f32 %v1773_v24, %v4644_v9  ;;  %v2272_v56 = vpop.f32.mrf.mxu3  ;;  %v4649_v53 = vld [vmem:[#allocation18_spill] sm:$0xff] }
 0x2ac   : > { %v2525_v61 = vpop.f32.mrf.mxu0  ;;  %v2584_v0 = vadd.f32 %v2522_v7, %v2324_v18 }
 0x2ae   : > { %v2624_v37 = vadd.f32 %v4285_v31, %v2584_v0 }
 0x2af   : > { %v1957_v58 = vpop.f32.mrf.mxu2 }
 0x2b0   : > { %2660 = vst [vmem:[%s4291_s4 + $0x98] sm:$0xff] %v2624_v37  ;;  %v2017_v20 = vadd.f32 %v1957_v58, %v1833_v32 }
 0x2b1   : > { %v1775_v2 = vpop.f32.mrf.mxu1 }
 0x2b2   : > { %v2325_v42 = vadd.f32 %v2265_v29, %v2017_v20  ;;  %v1834_v35 = vadd.f32 %v1775_v2, %v4645_v57  ;;  %v2275_v54 = vpop.f32.mrf.mxu3  ;;  %v4650_v2 = vld [vmem:[#allocation38_spill] sm:$0xff] }
 0x2b4   : > { %v2527_v10 = vpop.f32.mrf.mxu0  ;;  %v2585_v41 = vadd.f32 %v2525_v61, %v2325_v42 }
 0x2b6   : > { %v2625_v30 = vadd.f32 %v4285_v31, %v2585_v41 }
 0x2b7   : > { %v1959_v15 = vpop.f32.mrf.mxu2 }
 0x2b8   : > { %2661 = vst [vmem:[%s4291_s4 + $0xa0] sm:$0xff] %v2625_v30  ;;  %v2018_v5 = vadd.f32 %v1959_v15, %v1834_v35 }
 0x2b9   : > { %v1778_v21 = vpop.f32.mrf.mxu1 }
 0x2ba   : > { %v2326_v12 = vadd.f32 %v2267_v25, %v2018_v5  ;;  %v1835_v1 = vadd.f32 %v1778_v21, %v4646_v50  ;;  %v2277_v28 = vpop.f32.mrf.mxu3  ;;  %v4651_v21 = vld [vmem:[#allocation13_spill] sm:$0xff] }
 0x2bc   : > { %v2530_v45 = vpop.f32.mrf.mxu0  ;;  %v2586_v26 = vadd.f32 %v2527_v10, %v2326_v12 }
 0x2be   : > { %v2626_v16 = vadd.f32 %v4285_v31, %v2586_v26 }
 0x2bf   : > { %v1962_v8 = vpop.f32.mrf.mxu2 }
 0x2c0   : > { %2662 = vst [vmem:[%s4291_s4 + $0xa8] sm:$0xff] %v2626_v16  ;;  %v2019_v39 = vadd.f32 %v1962_v8, %v1835_v1 }
 0x2c1   : > { %v1780_v29 = vpop.f32.mrf.mxu1 }
 0x2c2   : > { %v2327_v51 = vadd.f32 %v2270_v48, %v2019_v39  ;;  %v1836_v60 = vadd.f32 %v1780_v29, %v4647_v17  ;;  %v2280_v7 = vpop.f32.mrf.mxu3 }
 0x2c4   : > { %v2532_v44 = vpop.f32.mrf.mxu0  ;;  %v2587_v13 = vadd.f32 %v2530_v45, %v2327_v51 }
 0x2c6   : > { %v2627_v19 = vadd.f32 %v4285_v31, %v2587_v13 }
 0x2c7   : > { %v1964_v62 = vpop.f32.mrf.mxu2 }
 0x2c8   : > { %2663 = vst [vmem:[%s4291_s4 + $0xb0] sm:$0xff] %v2627_v19  ;;  %v2020_v55 = vadd.f32 %v1964_v62, %v1836_v60 }
 0x2c9   : > { %v1783_v52 = vpop.f32.mrf.mxu1 }
 0x2ca   : > { %v2328_v27 = vadd.f32 %v2272_v56, %v2020_v55  ;;  %v1837_v11 = vadd.f32 %v1783_v52, %v4648_v22  ;;  %v2282_v37 = vpop.f32.mrf.mxu3 }
 0x2cc   : > { %v2535_v3 = vpop.f32.mrf.mxu0  ;;  %v2588_v25 = vadd.f32 %v2532_v44, %v2328_v27 }
 0x2ce   : > { %v2628_v40 = vadd.f32 %v4285_v31, %v2588_v25 }
 0x2cf   : > { %v1967_v43 = vpop.f32.mrf.mxu2 }
 0x2d0   : > { %2664 = vst [vmem:[%s4291_s4 + $0xb8] sm:$0xff] %v2628_v40  ;;  %v2021_v23 = vadd.f32 %v1967_v43, %v1837_v11 }
 0x2d1   : > { %v1785_v14 = vpop.f32.mrf.mxu1 }
 0x2d2   : > { %v2329_v33 = vadd.f32 %v2275_v54, %v2021_v23  ;;  %v1838_v24 = vadd.f32 %v1785_v14, %v4649_v53  ;;  %v2285_v35 = vpop.f32.mrf.mxu3 }
 0x2d4   : > { %v2537_v4 = vpop.f32.mrf.mxu0  ;;  %v2589_v49 = vadd.f32 %v2535_v3, %v2329_v33 }
 0x2d6   : > { %v2629_v48 = vadd.f32 %v4285_v31, %v2589_v49 }
 0x2d7   : > { %v1969_v18 = vpop.f32.mrf.mxu2 }
 0x2d8   : > { %2665 = vst [vmem:[%s4291_s4 + $0xc0] sm:$0xff] %v2629_v48  ;;  %v2022_v61 = vadd.f32 %v1969_v18, %v1838_v24 }
 0x2d9   : > { %v1788_v0 = vpop.f32.mrf.mxu1 }
 0x2da   : > { %v2330_v9 = vadd.f32 %v2277_v28, %v2022_v61  ;;  %v1839_v56 = vadd.f32 %v1788_v0, %v4650_v2  ;;  %v2287_v8 = vpop.f32.mrf.mxu3 }
 0x2dc   : > { %v2540_v32 = vpop.f32.mrf.mxu0  ;;  %v2590_v58 = vadd.f32 %v2537_v4, %v2330_v9 }
 0x2de   : > { %v2630_v20 = vadd.f32 %v4285_v31, %v2590_v58 }
 0x2df   : > { %v1972_v42 = vpop.f32.mrf.mxu2 }
 0x2e0   : > { %2666 = vst [vmem:[%s4291_s4 + $0xc8] sm:$0xff] %v2630_v20  ;;  %v2023_v10 = vadd.f32 %v1972_v42, %v1839_v56 }
 0x2e1   : > { %v1790_v41 = vpop.f32.mrf.mxu1 }
 0x2e2   : > { %v2331_v30 = vadd.f32 %v2280_v7, %v2023_v10  ;;  %v1840_v12 = vadd.f32 %v1790_v41, %v4651_v21  ;;  %v2290_v52 = vpop.f32.mrf.mxu3 }
 0x2e4   : > { %v2542_v57 = vpop.f32.mrf.mxu0  ;;  %v2591_v15 = vadd.f32 %v2540_v32, %v2331_v30 }
 0x2e6   : > { %v2631_v5 = vadd.f32 %v4285_v31, %v2591_v15 }
 0x2e7   : > { %v1974_v45 = vpop.f32.mrf.mxu2 }
 0x2e8   : > { %2667 = vst [vmem:[%s4291_s4 + $0xd0] sm:$0xff] %v2631_v5  ;;  %v2024_v54 = vadd.f32 %v1974_v45, %v1840_v12 }
 0x2e9   : > { %v1793_v26 = vpop.f32.mrf.mxu1 }
 0x2ea   : > { %v2332_v16 = vadd.f32 %v2282_v37, %v2024_v54  ;;  %v1841_v29 = vadd.f32 %v1793_v26, %v4218_v36  ;;  %v2292_v14 = vpop.f32.mrf.mxu3 }
 0x2ec   : > { %v2545_v50 = vpop.f32.mrf.mxu0  ;;  %v2592_v1 = vadd.f32 %v2542_v57, %v2332_v16 }
 0x2ee   : > { %v2632_v39 = vadd.f32 %v4285_v31, %v2592_v1 }
 0x2ef   : > { %v1977_v51 = vpop.f32.mrf.mxu2 }
 0x2f0   : > { %2668 = vst [vmem:[%s4291_s4 + $0xd8] sm:$0xff] %v2632_v39  ;;  %v2025_v44 = vadd.f32 %v1977_v51, %v1841_v29 }
 0x2f1   : > { %v1795_v13 = vpop.f32.mrf.mxu1 }
 0x2f2   : > { %v2333_v28 = vadd.f32 %v2285_v35, %v2025_v44  ;;  %v1842_v62 = vadd.f32 %v1795_v13, %v4228_v38  ;;  %v2295_v0 = vpop.f32.mrf.mxu3 }
 0x2f4   : > { %v2547_v19 = vpop.f32.mrf.mxu0  ;;  %v2593_v17 = vadd.f32 %v2545_v50, %v2333_v28 }
 0x2f6   : > { %v2633_v60 = vadd.f32 %v4285_v31, %v2593_v17 }
 0x2f7   : > { %v1979_v55 = vpop.f32.mrf.mxu2 }
 0x2f8   : > { %2669 = vst [vmem:[%s4291_s4 + $0xe0] sm:$0xff] %v2633_v60  ;;  %v2026_v27 = vadd.f32 %v1979_v55, %v1842_v62 }
 0x2f9   : > { %v1798_v3 = vpop.f32.mrf.mxu1 }
 0x2fa   : > { %v2334_v25 = vadd.f32 %v2287_v8, %v2026_v27  ;;  %v1843_v11 = vadd.f32 %v1798_v3, %v4234_v34  ;;  %v2297_v42 = vpop.f32.mrf.mxu3 }
 0x2fc   : > { %v2550_v36 = vpop.f32.mrf.mxu0  ;;  %v2594_v40 = vadd.f32 %v2547_v19, %v2334_v25 }
 0x2fe   : > { %v2634_v22 = vadd.f32 %v4285_v31, %v2594_v40 }
 0x2ff   : > { %v1982_v43 = vpop.f32.mrf.mxu2 }
 0x300   : > { %2670 = vst [vmem:[%s4291_s4 + $0xe8] sm:$0xff] %v2634_v22  ;;  %v2027_v7 = vadd.f32 %v1982_v43, %v1843_v11 }
 0x301   : > { %v1800_v23 = vpop.f32.mrf.mxu1 }
 0x302   : > { %v2335_v33 = vadd.f32 %v2290_v52, %v2027_v7  ;;  %v1844_v48 = vadd.f32 %v1800_v23, %v4244_v59  ;;  %v2300_v45 = vpop.f32.mrf.mxu3 }
 0x304   : > { %v2552_v38 = vpop.f32.mrf.mxu0  ;;  %v2595_v4 = vadd.f32 %v2550_v36, %v2335_v33 }
 0x306   : > { %v2635_v49 = vadd.f32 %v4285_v31, %v2595_v4 }
 0x307   : > { %v1984_v53 = vpop.f32.mrf.mxu2 }
 0x308   : > { %2671 = vst [vmem:[%s4291_s4 + $0xf0] sm:$0xff] %v2635_v49  ;;  %v2028_v24 = vadd.f32 %v1984_v53, %v1844_v48 }
 0x309   : > { %v1803_v18 = vpop.f32.mrf.mxu1 }
 0x30a   : > { %v2336_v61 = vadd.f32 %v2292_v14, %v2028_v24  ;;  %v1845_v32 = vadd.f32 %v1803_v18, %v4250_v46  ;;  %v2302_v44 = vpop.f32.mrf.mxu3 }
 0x30c   : > { %v2596_v34 = vadd.f32 %v2552_v38, %v2336_v61  ;;  %v2555_v37 = vpop.f32.mrf.mxu0 }
 0x30e   : > { %v2636_v9 = vadd.f32 %v4285_v31, %v2596_v34 }
 0x30f   : > { %v1987_v58 = vpop.f32.mrf.mxu2 }
 0x310   : > { %2672 = vst [vmem:[%s4291_s4 + $0xf8] sm:$0xff] %v2636_v9  ;;  %v2029_v20 = vadd.f32 %v1987_v58, %v1845_v32 }
 0x311   : > { %v1805_v2 = vpop.f32.mrf.mxu1 }
 0x312   : > { %v2337_v56 = vadd.f32 %v2295_v0, %v2029_v20  ;;  %v1846_v41 = vadd.f32 %v1805_v2, %v4260_v6 }
 0x314   : > { %v2597_v59 = vadd.f32 %v2555_v37, %v2337_v56  ;;  %v2557_v30 = vpop.f32.mrf.mxu0 }
 0x316   : > { %v2637_v10 = vadd.f32 %v4285_v31, %v2597_v59 }
 0x317   : > { %v1989_v57 = vpop.f32.mrf.mxu2 }
 0x318   : > { %2673 = vst [vmem:[%s4291_s4 + $0x100] sm:$0xff] %v2637_v10  ;;  %v2030_v35 = vadd.f32 %v1989_v57, %v1846_v41 }
 0x319   : > { %v1808_v15 = vpop.f32.mrf.mxu1 }
 0x31a   : > { %v2338_v5 = vadd.f32 %v2297_v42, %v2030_v35  ;;  %v1847_v12 = vadd.f32 %v1808_v15, %v4266_v47 }
 0x31c   : > { %v2598_v46 = vadd.f32 %v2557_v30, %v2338_v5  ;;  %v2560_v16 = vpop.f32.mrf.mxu0 }
 0x31e   : > { %v2638_v21 = vadd.f32 %v4285_v31, %v2598_v46 }
 0x31f   : > { %v1992_v54 = vpop.f32.mrf.mxu2 }
 0x320   : > { %2674 = vst [vmem:[%s4291_s4 + $0x108] sm:$0xff] %v2638_v21  ;;  %v2031_v26 = vadd.f32 %v1992_v54, %v1847_v12 }
 0x321   : > { %v1810_v6 = vpop.f32.mrf.mxu1 }
 0x322   : > { %v2339_v50 = vadd.f32 %v2300_v45, %v2031_v26  ;;  %v1848_v39 = vadd.f32 %v1810_v6, %v4276_v63 }
 0x324   : > { %v2599_v1 = vadd.f32 %v2560_v16, %v2339_v50  ;;  %v2562_v28 = vpop.f32.mrf.mxu0 }
 0x326   : > { %v2639_v8 = vadd.f32 %v4285_v31, %v2599_v1 }
 0x327   : > { %v1994_v29 = vpop.f32.mrf.mxu2 }
 0x328   : > { %2675 = vst [vmem:[%s4291_s4 + $0x110] sm:$0xff] %v2639_v8  ;;  %v2032_v51 = vadd.f32 %v1994_v29, %v1848_v39 }
 0x32a   : > { %v2340_v13 = vadd.f32 %v2302_v44, %v2032_v51 }
 0x32c   : > { %v2600_v47 = vadd.f32 %v2562_v28, %v2340_v13 }
 0x32e   : > { %v2640_v19 = vadd.f32 %v4285_v31, %v2600_v47 }
 0x330   : > { %2676 = vst [vmem:[%s4291_s4 + $0x118] sm:$0xff] %v2640_v19 }
 0x331 PF: > { %s13_s14 = sadd.s32 1, %s3354_s14   ;;  %s4652_s12 = smov %s3350_s13 }
 0x332   : > { %p10_p5 = scmp.ge.s32.totalorder %s13_s14, 4   ;;  %s4653_s13 = smov %s4655_s15 }
 0x334   :  { %12 = sbr.rel (!%p10_p5) target bundleno = 2 (0x2), region = 71 }

// kernel: res_block_up.4
= control target key start
LH: loop header
LB: loop body
LE: loop exit
PB: predicated region body
PF: predicated region fallthrough
CT: control target
= control target key end

     0   :  { %s3497_s12 = smov 0   ;;  %s3499_s13 = smov 0   ;;  %s4808_s0 = inlined_call_operand.vmem [shape: bf16[2,1160,64], index: 0, kind: input, shape index: {}]   ;;  %s4809_s1 = inlined_call_operand.vmem [shape: bf16[9,64,128], index: 1, kind: input, shape index: {}]   ;;  %s4810_s2 = inlined_call_operand.vmem [shape: f32[1,128], index: 2, kind: input, shape index: {}]   ;;  %s4811_s3 = inlined_call_operand.vmem [shape: bf16[2,1088,128], index: 3, kind: output, shape index: {}]  }
   0x1   :  { %s3501_s14 = smov 0   ;;  %s3503_s15 = smov 0  }
   0x2   :  { %s3505_s16 = smov 0  }
   0x3 LB: > { %s22_s17 = sadd.s32 1, %s3467_s14  ;;  %s25_s18 = sadd.s32 1, %s3471_s15  ;;  %s3475_s16 = sphi %s3505_s16, %s13_s16   ;;  %s3471_s15 = sphi %s3503_s15, %s4925_s15   ;;  %s3467_s14 = sphi %s3501_s14, %s4924_s14   ;;  %s3463_s13 = sphi %s3499_s13, %s4923_s13   ;;  %s3459_s12 = sphi %s3497_s12, %s4922_s12  }
   0x4   : > { %p23_p0 = scmp.ge.s32.totalorder %s22_s17, 4  ;;  %p2757_p1 = scmp.ge.s32.totalorder %s3475_s16, 1 }
   0x5   : > { %p151_p2 = scmp.lt.s32.totalorder %s3475_s16, 9 }
   0x6   : > { %s4927_s17 = smov (%p23_p0, %s22_s17), 0  ;;  %s4929_s18 = smov (!%p23_p0, %s25_s18), %s3471_s15 }
   0x7   : > { %p152_p3 = pnand %p2757_p1, %p151_p2  ;;  %p27_p4 = scmp.ge.s32.totalorder %s4929_s18, 2 }
   0x9   : > { %s4931_s18 = smov (%p27_p4, %s4929_s18), 0  ;;  %155 = sbr.rel (%p152_p3) target bundleno = 791 (0x317), region = 32 }
   0xe   : > { %v3226_v0 = vld [vmem:[%s4809_s1 + $0x38] sm:$0xff]  ;;  %p179_p5 = scmp.lt.s32.totalorder %s3463_s13, 1  ;;  %s195_s21 = smul.u32 272, %s3459_s12  ;;  %v3225_v1 = vld [vmem:[%s4809_s1 + $0x30] sm:$0xff]  ;;  %v3224_v2 = vld [vmem:[%s4809_s1 + $0x28] sm:$0xff]  ;;  %vm513_vm1 = vcmask 523264  }
   0xf   : > { %3366 = vmatpush.bf16.msra.mxu1 %v3226_v0  ;;  %3367 = vmatpush.bf16.msra.mxu2 %v3226_v0  ;;  %v3223_v9 = vld [vmem:[%s4809_s1 + $0x20] sm:$0xff]  ;;  %v3230_v16 = vld [vmem:[%s4809_s1 + $0x58] sm:$0xff]  ;;  %vm348_vm0 = vsmask.f32 7424  ;;  %v3229_v31 = vld [vmem:[%s4809_s1 + $0x50] sm:$0xff]  ;;  %vm820_vm2 = vcmask 1046528  }
  0x10   : > { %s4933_s13 = smov (!%p179_p5, %s3463_s13), 1  ;;  %569 = vmatpush.bf16.msra.mxu0 %v3226_v0  ;;  %s196_s24 = sshra.s32 %s195_s21, 3  ;;  %3368 = vmatpush.bf16.msra.mxu3 %v3226_v0  ;;  %v3222_v23 = vld [vmem:[%s4809_s1 + $0x18] sm:$0xff]  ;;  %v3221_v34 = vld [vmem:[%s4809_s1 + $0x10] sm:$0xff]  ;;  %v3228_v42 = vld [vmem:[%s4809_s1 + $0x48] sm:$0xff]  ;;  %vm1554_vm5 = vcmask 1045504  }
  0x11   : > { %s3378_s25 = smul.u32 580, %s4933_s13  ;;  %s2760_s26 = sshll.u32 %s196_s24, 2  ;;  %v3238_v24 = vld [vmem:[%s4809_s1 + $0x98] sm:$0xff]  ;;  %v3237_v35 = vld [vmem:[%s4809_s1 + $0x90] sm:$0xff]  ;;  %v3220_v43 = vld [vmem:[%s4809_s1 + $0x8] sm:$0xff]  ;;  %vm2288_vm6 = vcmask 1044480  }
  0x12   : > { %vm1255_vm3 = vsmask.f32 6400  ;;  %vm1989_vm4 = vsmask.f32 5376  ;;  %s184_s22 = smul.u32 34, %s3459_s12 }
  0x13   : > { %3369 = vmatpush.bf16.msra.mxu1 %v3225_v1  ;;  %3370 = vmatpush.bf16.msra.mxu2 %v3225_v1  ;;  %s183_s4 = scalar_lea.vmem %s4808_s0, %s3378_s25  ;;  %s3379_s12 = smul.u32 136, %s4933_s13 }
  0x14   : > { %570 = vmatpush.bf16.msra.mxu0 %v3225_v1  ;;  %s3545_s5 = scalar_lea.vmem %s183_s4, %s2760_s26  ;;  %3371 = vmatpush.bf16.msra.mxu3 %v3225_v1  ;;  %p187_p6 = scmp.lt.s32.totalorder %s184_s22, 135 }
  0x15   : > { %v3548_v3 = vld [vmem:[%s3545_s5 + $0x28] sm:$0xff]  ;;  %v3551_v4 = vld [vmem:[%s3545_s5 + $0x30] sm:$0xff]  ;;  %v3557_v6 = vld [vmem:[%s3545_s5 + $0x58] sm:$0xff] }
  0x16   : > { %v3554_v5 = vld [vmem:[%s3545_s5 + $0x50] sm:$0xff]  ;;  %v3560_v7 = vld [vmem:[%s3545_s5] sm:$0xff]  ;;  %v3563_v8 = vld [vmem:[%s3545_s5 + $0x8] sm:$0xff]  ;;  %v3569_v10 = vshll.u32 %v3548_v3, 16  ;;  %v3572_v11 = vshrl.u32 %v3548_v3, 16  ;;  %v3575_v12 = vshll.u32 %v3551_v4, 16 }
  0x17   : > { %3372 = vmatpush.bf16.msra.mxu1 %v3224_v2  ;;  %3373 = vmatpush.bf16.msra.mxu2 %v3224_v2  ;;  %v3578_v13 = vshll.u32 %v3554_v5, 16  ;;  %v3581_v14 = vshrl.u32 %v3554_v5, 16  ;;  %v3584_v15 = vshll.u32 %v3557_v6, 16  ;;  %v350_v17 = vshrl.u32 %v3560_v7, 16  ;;  %v3623_v37 = vld [vmem:[%s3545_s5 + $0x38] sm:$0xff]  ;;  %v3627_v38 = vld [vmem:[%s3545_s5 + $0x60] sm:$0xff] }
  0x18   : > { %4836 = vst [vmem:[#allocation2_spill] sm:$0xff] %v3575_v12  ;;  %571 = vmatpush.bf16.msra.mxu0 %v3224_v2  ;;  %v352_v18 = vshll.u32 %v3560_v7, 16  ;;  %3374 = vmatpush.bf16.msra.mxu3 %v3224_v2  ;;  %v391_v19 = vrot.slane %v3569_v10, 1  ;;  %v399_v20 = vrot.slane %v3575_v12, 1  ;;  %v357_v22 = vshll.u32 %v3563_v8, 16  ;;  %v3630_v39 = vld [vmem:[%s3545_s5 + $0x78] sm:$0xff] }
  0x19   : > { %4837 = vst [vmem:[#allocation3_spill] sm:$0xff] %v3578_v13  ;;  %v431_v21 = vrot.slane %v3578_v13, 1  ;;  %v439_v25 = vrot.slane %v3584_v15, 1  ;;  %v3633_v40 = vld [vmem:[%s3545_s5 + $0x80] sm:$0xff]  ;;  %v3636_v41 = vld [vmem:[%s3545_s5 + $0x10] sm:$0xff]  ;;  %v3645_v44 = vshrl.u32 %v3551_v4, 16 }
  0x1a   : > { %4838 = vst [vmem:[#allocation4_spill] sm:$0xff] %v3581_v14  ;;  %v354_v26 = vrot.slane %v352_v18, 1  ;;  %v395_v27 = vor.u32 %v3572_v11, %v391_v19  ;;  %v359_v29 = vrot.slane %v357_v22, 1  ;;  %v3648_v45 = vshll.u32 %v3623_v37, 16  ;;  %v3677_v60 = vld [vmem:[%s3545_s5 + $0x48] sm:$0xff]  ;;  %v3234_v22 = vld [vmem:[%s4809_s1 + $0x78] sm:$0xff] }
  0x1b   : > { %4839 = vst [vmem:[#allocation5_spill] sm:$0xff] %v3584_v15  ;;  %3375 = vmatpush.bf16.msra.mxu1 %v3223_v9  ;;  %3376 = vmatpush.bf16.msra.mxu2 %v3223_v9  ;;  %v435_v28 = vor.u32 %v3581_v14, %v431_v21  ;;  %v3651_v46 = vshll.u32 %v3630_v39, 16  ;;  %v3654_v47 = vshrl.u32 %v3557_v6, 16  ;;  %v3657_v48 = vshll.u32 %v3627_v38, 16  ;;  %v3699_v18 = vld [vmem:[%s3545_s5 + $0x68] sm:$0xff]  ;;  %s4935_s22 = smov (!%p187_p6, %s184_s22), 135 }
  0x1c   : > { %572 = vmatpush.bf16.msra.mxu0 %v3223_v9  ;;  %v355_v30 = vor.u32 %v354_v26, %v350_v17  ;;  %v400_v32 = vsel %vm348_vm0, %v395_v27, %v399_v20  ;;  %3377 = vmatpush.bf16.msra.mxu3 %v3223_v9  ;;  %4840 = vst [vmem:[#allocation6_spill] sm:$0xff] %v3645_v44  ;;  %v3660_v49 = vshrl.u32 %v3630_v39, 16  ;;  %v3663_v50 = vshll.u32 %v3633_v40, 16  ;;  %v3695_v17 = vld [vmem:[%s3545_s5 + $0x88] sm:$0xff]   ;;  %v3716_v27 = vld [vmem:[%s3545_s5 + $0x18] sm:$0xff]  ;;  %s190_s13 = sadd.s32 %s3379_s12, %s4935_s22 }
  0x1d   : > { %v440_v33 = vsel %vm348_vm0, %v435_v28, %v439_v25  ;;  %4841 = vst [vmem:[#allocation7_spill] sm:$0xff] %v3648_v45  ;;  %v361_v51 = vshrl.u32 %v3563_v8, 16  ;;  %v4813_v52 = vshll.u32 %v3636_v41, 16  ;;  %v471_v53 = vrot.slane %v3651_v46, 1  ;;  %v3227_v28 = vld [vmem:[%s4809_s1 + $0x40] sm:$0xff]  ;;  %s2759_s25 = sshll.u32 %s190_s13, 2 }
  0x1e   : > { %2858 = vmatmul.msk.bf16.vlgmr.msra.gmra.mxu1 %vm513_vm1, %v400_v32  ;;  %2863 = vmatmul.msk.bf16.vlgmr.msra.gmra.mxu2 %vm513_vm1, %v440_v33  ;;  %v360_v36 = vsel %vm348_vm0, %v355_v30, %v359_v29  ;;  %4842 = vst [vmem:[#allocation8_spill] sm:$0xff] %v3654_v47  ;;  %v479_v54 = vrot.slane %v3663_v50, 1  ;;  %v403_v56 = vor.u32 %v3645_v44, %v399_v20  ;;  %v407_v57 = vrot.slane %v3648_v45, 1  ;;  %v3233_v30 = vld [vmem:[%s4809_s1 + $0x70] sm:$0xff]  ;;  %s4576_s28 = scalar_lea.vmem %s4811_s3, %s2759_s25 }
  0x1f   : > { %935 = vmatpush.bf16.msrb.mxu2 %v3230_v16  ;;  %721 = vmatpush.bf16.msrb.mxu1 %v3222_v23  ;;  %4843 = vst [vmem:[#allocation9_spill] sm:$0xff] %v3657_v48  ;;  %v475_v55 = vor.u32 %v3660_v49, %v471_v53  ;;  %v443_v58 = vor.u32 %v3654_v47, %v439_v25  ;;  %v447_v59 = vrot.slane %v3657_v48, 1  ;;  %v367_v62 = vrot.slane %v4813_v52, 1  ;;  %v3692_v16 = vld [vmem:[%s3545_s5 + $0x40] sm:$0xff]  ;;  %v3236_v23 = vld [vmem:[%s4809_s1 + $0x88] sm:$0xff] }
  0x20   : > { %1421 = vmatpush.bf16.msrb.mxu0 %v3238_v24  ;;  %v363_v61 = vor.u32 %v361_v51, %v359_v29  ;;  %v408_v0 = vsel %vm348_vm0, %v403_v56, %v407_v57  ;;  %v3686_v2 = vshll.u32 %v3677_v60, 16  ;;  %v3257_v24 = vunpack.c.l.b16 %v3695_v17  ;;  %4846 = vst [vmem:[#allocation12_spill] sm:$0xff] %v3716_v27  ;;  %1122 = vmatpush.bf16.msrb.mxu3 %v3234_v22 }
  0x21   : > { %2853 = vmatmul.msk.bf16.vlgmr.msra.gmra.mxu0 %vm513_vm1, %v360_v36  ;;  %v480_v63 = vsel %vm348_vm0, %v475_v55, %v479_v54  ;;  %v448_v1 = vsel %vm348_vm0, %v443_v58, %v447_v59  ;;  %v3710_v25 = vshrl.u32 %v3633_v40, 16  ;;  %v3713_v26 = vshrl.u32 %v3677_v60, 16  ;;  %v3742_v36 = vld [vmem:[%s3545_s5 + $0x20] sm:$0xff] }
  0x22   : > { %2868 = vmatmul.msk.bf16.vlgmr.msra.gmra.mxu3 %vm513_vm1, %v480_v63  ;;  %4844 = vst [vmem:[#allocation10_spill] sm:$0xff] %v3686_v2  ;;  %v368_v9 = vsel %vm348_vm0, %v363_v61, %v367_v62  ;;  %v423_v20 = vrot.slane %v3686_v2, 1  ;;  %v3721_v29 = vpack.c.b16 %v3257_v24, %v3257_v24  ;;  %v3730_v32 = vshrl.u32 %v3623_v37, 16 }
  0x23   : > { %936 = vmatpush.bf16.msrb.mxu2 %v3229_v31  ;;  %722 = vmatpush.bf16.msrb.mxu1 %v3221_v34  ;;  %4845 = vst [vmem:[#allocation11_spill] sm:$0xff] %v3713_v26  ;;  %v3733_v33 = vshll.u32 %v3692_v16, 16  ;;  %v3736_v34 = vshrl.u32 %v3627_v38, 16  ;;  %v369_v55 = vshrl.u32 %v3636_v41, 16  ;;  %v4812_v56 = vshll.u32 %v3716_v27, 16 }
  0x24   : > { %1422 = vmatpush.bf16.msrb.mxu0 %v3237_v35  ;;  %4847 = vst [vmem:[#allocation13_spill] sm:$0xff] %v3721_v29  ;;  %v427_v31 = vor.u32 %v3713_v26, %v423_v20  ;;  %v3739_v35 = vshll.u32 %v3699_v18, 16  ;;  %1123 = vmatpush.bf16.msrb.mxu3 %v3233_v30  ;;  %v411_v61 = vor.u32 %v3730_v32, %v407_v57  ;;  %v3770_v24 = vshrl.u32 %v3742_v36, 16 }
  0x25   : > { %4848 = vst [vmem:[#allocation14_spill] sm:$0xff] %v3730_v32  ;;  %v415_v63 = vrot.slane %v3733_v33, 1  ;;  %v375_v22 = vrot.slane %v4812_v56, 1 }
  0x26   : > { %4849 = vst [vmem:[#allocation15_spill] sm:$0xff] %v3733_v33  ;;  %v3749_v51 = vsel %vm348_vm0, %v427_v31, %v431_v21  ;;  %v3781_v31 = vld [vmem:[%s3545_s5 + $0x70] sm:$0xff] }
  0x27   : > { %937 = vmatpush.bf16.msrb.mxu2 %v3228_v42  ;;  %723 = vmatpush.bf16.msrb.mxu1 %v3220_v43  ;;  %4850 = vst [vmem:[#allocation16_spill] sm:$0xff] %v3736_v34  ;;  %v483_v42 = vor.u32 %v3710_v25, %v479_v54  ;;  %v485_v43 = vshll.u32 %v3721_v29, 16  ;;  %v455_v54 = vrot.slane %v3739_v35, 1  ;;  %v416_v57 = vsel %vm348_vm0, %v411_v61, %v415_v63  ;;  %v3231_v61 = vld [vmem:[%s4809_s1 + $0x60] sm:$0xff] }
  0x28   : > { %1423 = vmatpush.bf16.msrb.mxu0 %v3236_v23  ;;  %4851 = vst [vmem:[#allocation17_spill] sm:$0xff] %v3742_v36  ;;  %v1295_v29 = vrot.slane %v3736_v34, 1 }
  0x29   : > { %v487_v58 = vrot.slane %v485_v43, 1  ;;  %v3232_v43 = vld [vmem:[%s4809_s1 + $0x68] sm:$0xff] }
  0x2a   : > { %1124 = vmatpush.bf16.msrb.mxu3 %v3232_v43 }
  0x2b   : > { %938 = vmatpush.bf16.msrb.mxu2 %v3227_v28  ;;  %v488_v21 = vsel %vm348_vm0, %v483_v42, %v487_v58  ;;  %v3235_v58 = vld [vmem:[%s4809_s1 + $0x80] sm:$0xff] }
  0x2c   : > { %1424 = vmatpush.bf16.msrb.mxu0 %v3235_v58 }
  0x2e   : > { %2859 = vmatmul.msk.bf16.gmra.mxu1 %vm513_vm1, %v408_v0  ;;  %2864 = vmatmul.msk.bf16.gmra.mxu2 %vm513_vm1, %v448_v1  ;;  %v451_v0 = vor.u32 %v3736_v34, %v447_v59  ;;  %v3758_v1 = vshll.u32 %v3742_v36, 16 }
  0x2f   : > { %1125 = vmatpush.bf16.msrb.mxu3 %v3231_v61 }
  0x30   : > { %v456_v59 = vsel %vm348_vm0, %v451_v0, %v455_v54  ;;  %v383_v23 = vrot.slane %v3758_v1, 1  ;;  %v824_v0 = vrot.slane %v3636_v41, 1 }
  0x31   : > { %2854 = vmatmul.msk.bf16.gmra.mxu0 %vm513_vm1, %v368_v9  ;;  %v371_v9 = vor.u32 %v369_v55, %v367_v62  ;;  %v3219_v62 = vld [vmem:[%s4809_s1] sm:$0xff] }
  0x32   : > { %2869 = vmatmul.msk.bf16.gmra.mxu3 %vm513_vm1, %v488_v21  ;;  %v387_v30 = vor.u32 %v3770_v24, %v383_v23  ;;  %724 = vmatpush.bf16.msrb.mxu1 %v3219_v62  ;;  %v826_v21 = vrot.slane %v3716_v27, 1 }
  0x33   : > { %v376_v28 = vsel %vm348_vm0, %v371_v9, %v375_v22  ;;  %v3801_v9 = vshrl.u32 %v3699_v18, 16 }
  0x34   : > { %v392_v42 = vsel %vm348_vm0, %v387_v30, %v391_v19  ;;  %v3798_v19 = vshrl.u32 %v3692_v16, 16 }
  0x35   : > { %v459_v62 = vor.u32 %v3801_v9, %v455_v54  ;;  %v3250_v54 = vld [vmem:[%s4809_s1 + $0xf8] sm:$0xff] }
  0x36   : > { %4852 = vst [vmem:[#allocation18_spill] sm:$0xff] %v3798_v19  ;;  %v419_v30 = vor.u32 %v3798_v19, %v415_v63  ;;  %v3246_v63 = vld [vmem:[%s4809_s1 + $0xd8] sm:$0xff]  ;;  %2155 = vmatpush.bf16.msra.mxu3 %v3250_v54  ;;  %v4854_v54 = vshll.u32 %v3716_v27, 16 }
  0x37   : > { %1856 = vmatpush.bf16.msra.mxu2 %v3246_v63 }
  0x38   : > { %v424_v56 = vsel %vm348_vm0, %v419_v30, %v423_v20  ;;  %v3242_v20 = vld [vmem:[%s4809_s1 + $0xb8] sm:$0xff] }
  0x39   : > { %1669 = vmatpush.bf16.msra.mxu1 %v3242_v20  ;;  %v1260_v20 = vrot.slane %v4854_v54, 2  ;;  %v1267_v54 = vrot.slane %v3572_v11, 1 }
  0x3e   : > { %2860 = vmatmul.msk.bf16.gmra.mxu1 %vm513_vm1, %v416_v57  ;;  %2865 = vmatmul.msk.bf16.gmra.mxu2 %vm513_vm1, %v456_v59  ;;  %v3804_v57 = vshll.u32 %v3781_v31, 16  ;;  %v377_v59 = vshrl.u32 %v3716_v27, 16 }
  0x40   : > { %v463_v43 = vrot.slane %v3804_v57, 1  ;;  %v379_v58 = vor.u32 %v377_v59, %v375_v22  ;;  %v3837_v22 = vshrl.u32 %v3781_v31, 16  ;;  %v1259_v63 = vrot.slane %v377_v59, 1 }
  0x41   : > { %2855 = vmatmul.msk.bf16.gmra.mxu0 %vm513_vm1, %v376_v28  ;;  %v3808_v28 = vsel %vm820_vm2, %v824_v0, %v826_v21 }
  0x42   : > { %2972 = vmatmul.msk.bf16.vlgmr.msrb.gmra.mxu3 %vm513_vm1, %v3808_v28  ;;  %v464_v52 = vsel %vm348_vm0, %v459_v62, %v463_v43  ;;  %v384_v61 = vsel %vm348_vm0, %v379_v58, %v383_v23  ;;  %v467_v30 = vor.u32 %v3837_v22, %v463_v43  ;;  %v830_v58 = vrot.slane %v3548_v3, 1 }
  0x43   : > { %v4853_v43 = vshll.u32 %v3636_v41, 16 }
  0x44   : > { %v472_v62 = vsel %vm348_vm0, %v467_v30, %v471_v53  ;;  %v1261_v30 = vor.u32 %v1260_v20, %v1259_v63  ;;  %v834_v20 = vrot.slane %v3623_v37, 1 }
  0x4e   : > { %2861 = vmatmul.msk.bf16.gmra.mxu1 %vm513_vm1, %v424_v56  ;;  %2866 = vmatmul.msk.bf16.gmra.mxu2 %vm513_vm1, %v464_v52  ;;  %v3254_v56 = vld [vmem:[%s4809_s1 + $0x118] sm:$0xff]  ;;  %v828_v52 = vrot.slane %v3742_v36, 1 }
  0x4f   : > { %2403 = vmatpush.bf16.msra.mxu0 %v3254_v56  ;;  %v822_v56 = vrot.slane %v3563_v8, 1 }
  0x50   : > { %v3840_v23 = vsel %vm820_vm2, %v826_v21, %v828_v52  ;;  %v1256_v21 = vrot.slane %v369_v55, 1  ;;  %v3860_v53 = vsel %vm820_vm2, %v828_v52, %v830_v58  ;;  %v832_v52 = vrot.slane %v3551_v4, 1 }
  0x51   : > { %2856 = vmatmul.msk.bf16.gmra.mxu0 %vm513_vm1, %v384_v61  ;;  %v1257_v61 = vrot.slane %v4853_v43, 2  ;;  %v825_v63 = vsel %vm820_vm2, %v822_v56, %v824_v0 }
  0x52   : > { %2973 = vmatmul.msk.bf16.gmra.mxu3 %vm513_vm1, %v3840_v23  ;;  %v3876_v43 = vsel %vm820_vm2, %v830_v58, %v832_v52  ;;  %v1268_v58 = vrot.slane %v3569_v10, 2 }
  0x5e   : > { %2862 = vmatmul.msk.bf16.gmra.mxu1 %vm513_vm1, %v3749_v51  ;;  %2867 = vmatmul.msk.bf16.gmra.mxu2 %vm513_vm1, %v472_v62  ;;  %v821_v51 = vrot.slane %v3560_v7, 1  ;;  %v1263_v62 = vrot.slane %v3770_v24, 1 }
  0x60   : > { %v823_v55 = vsel %vm820_vm2, %v821_v51, %v822_v56  ;;  %v3890_v51 = vsel %vm820_vm2, %v832_v52, %v834_v20  ;;  %v3249_v56 = vld [vmem:[%s4809_s1 + $0xf0] sm:$0xff] }
  0x61   : > { %2857 = vmatmul.msk.bf16.gmra.mxu0 %vm513_vm1, %v392_v42  ;;  %v1258_v42 = vor.u32 %v1257_v61, %v1256_v21  ;;  %v1264_v21 = vrot.slane %v3758_v1, 2  ;;  %2156 = vmatpush.bf16.msra.mxu3 %v3249_v56 }
  0x62   : > { %2974 = vmatmul.msk.bf16.gmra.mxu3 %vm513_vm1, %v3860_v53 }
  0x63   : > { %v1262_v59 = vsel %vm1255_vm3, %v1258_v42, %v1261_v30  ;;  %v1265_v61 = vor.u32 %v1264_v21, %v1263_v62  ;;  %v1269_v42 = vor.u32 %v1268_v58, %v1267_v54  ;;  %v3253_v21 = vld [vmem:[%s4809_s1 + $0x110] sm:$0xff] }
  0x64   : > { %2404 = vmatpush.bf16.msra.mxu0 %v3253_v21 }
  0x65   : > { %v1270_v0 = vsel %vm1255_vm3, %v1265_v61, %v1269_v42 }
  0x6e   : > { %2886 = vmatmul.msk.bf16.vlgmr.msrb.gmra.mxu1 %vm513_vm1, %v3560_v7  ;;  %2927 = vmatmul.msk.bf16.vlgmr.msrb.gmra.mxu2 %vm513_vm1, %v823_v55  ;;  %v1266_v7 = vsel %vm1255_vm3, %v1261_v30, %v1265_v61  ;;  %v1271_v30 = vrot.slane %v3645_v44, 1  ;;  %v1272_v55 = vrot.slane %v3575_v12, 2  ;;  %v848_v44 = vrot.slane %v3781_v31, 1 }
  0x70   : > { %v1273_v52 = vor.u32 %v1272_v55, %v1271_v30 }
  0x71   : > { %3013 = vmatmul.msk.bf16.vlgmr.msrb.gmra.mxu0 %vm513_vm1, %v1262_v59 }
  0x72   : > { %2975 = vmatmul.msk.bf16.gmra.mxu3 %vm513_vm1, %v3876_v43 }
  0x7e   : > { %2887 = vmatmul.msk.bf16.gmra.mxu1 %vm513_vm1, %v3563_v8  ;;  %2928 = vmatmul.msk.bf16.gmra.mxu2 %vm513_vm1, %v825_v63  ;;  %v3245_v8 = vld [vmem:[%s4809_s1 + $0xd0] sm:$0xff]  ;;  %v1274_v63 = vsel %vm1255_vm3, %v1269_v42, %v1273_v52  ;;  %v838_v42 = vrot.slane %v3677_v60, 1 }
  0x7f   : > { %1857 = vmatpush.bf16.msra.mxu2 %v3245_v8 }
  0x81   : > { %3014 = vmatmul.msk.bf16.gmra.mxu0 %vm513_vm1, %v1266_v7 }
  0x82   : > { %2976 = vmatmul.msk.bf16.gmra.mxu3 %vm513_vm1, %v3890_v51 }
  0x8e   : > { %2888 = vmatmul.msk.bf16.gmra.mxu1 %vm513_vm1, %v3636_v41  ;;  %2929 = vmatmul.msk.bf16.gmra.mxu2 %vm513_vm1, %v3808_v28  ;;  %v3241_v41 = vld [vmem:[%s4809_s1 + $0xb0] sm:$0xff]  ;;  %v836_v28 = vrot.slane %v3692_v16, 1 }
  0x8f   : > { %1670 = vmatpush.bf16.msra.mxu1 %v3241_v41 }
  0x90   : > { %v3913_v59 = vsel %vm820_vm2, %v834_v20, %v836_v28  ;;  %v1275_v20 = vrot.slane %v3730_v32, 1  ;;  %v3940_v8 = vsel %vm820_vm2, %v836_v28, %v838_v42 }
  0x91   : > { %3015 = vmatmul.msk.bf16.gmra.mxu0 %vm513_vm1, %v1270_v0  ;;  %v1276_v0 = vrot.slane %v3648_v45, 2  ;;  %v844_v45 = vrot.slane %v3627_v38, 1 }
  0x92   : > { %2977 = vmatmul.msk.bf16.gmra.mxu3 %vm513_vm1, %v3913_v59 }
  0x93   : > { %v1277_v56 = vor.u32 %v1276_v0, %v1275_v20  ;;  %v1279_v0 = vrot.slane %v3798_v19, 1 }
  0x95   : > { %v1278_v41 = vsel %vm1255_vm3, %v1273_v52, %v1277_v56  ;;  %v1280_v52 = vrot.slane %v3733_v33, 2 }
  0x9b   : > { %v3917_v62 = vpop.f32.mrf.mxu1 }
  0x9e   : > { %v3922_v61 = vpop.f32.mrf.mxu0  ;;  %2889 = vmatmul.msk.bf16.gmra.mxu1 %vm513_vm1, %v3716_v27  ;;  %2930 = vmatmul.msk.bf16.gmra.mxu2 %vm513_vm1, %v3840_v23 }
  0xa1   : > { %3016 = vmatmul.msk.bf16.gmra.mxu0 %vm513_vm1, %v1274_v63  ;;  %v3930_v7 = vpop.f32.mrf.mxu2 }
  0xa2   : > { %4855 = vst [vmem:[#allocation19_spill] sm:$0xff] %v3930_v7  ;;  %2978 = vmatmul.msk.bf16.gmra.mxu3 %vm513_vm1, %v3940_v8 }
  0xa3   : > { %v3932_v54 = vpop.f32.mrf.mxu1 }
  0xa5   : > { %v3951_v21 = vpop.f32.mrf.mxu3 }
  0xa6   : > { %v3934_v58 = vpop.f32.mrf.mxu0  ;;  %4857 = vst [vmem:[#allocation21_spill] sm:$0xff] %v3951_v21  ;;  %v840_v21 = vrot.slane %v3554_v5, 1 }
  0xa8   : > { %v3970_v7 = vsel %vm820_vm2, %v838_v42, %v840_v21 }
  0xa9   : > { %v3942_v30 = vpop.f32.mrf.mxu2 }
  0xaa   : > { %4856 = vst [vmem:[#allocation20_spill] sm:$0xff] %v3942_v30 }
  0xab   : > { %v3946_v23 = vpop.f32.mrf.mxu1 }
  0xad   : > { %v3966_v30 = vpop.f32.mrf.mxu3 }
  0xae   : > { %v3948_v55 = vpop.f32.mrf.mxu0  ;;  %2890 = vmatmul.msk.bf16.gmra.mxu1 %vm513_vm1, %v3742_v36  ;;  %2931 = vmatmul.msk.bf16.gmra.mxu2 %vm513_vm1, %v3860_v53  ;;  %4859 = vst [vmem:[#allocation23_spill] sm:$0xff] %v3966_v30  ;;  %v1281_v53 = vor.u32 %v1280_v52, %v1279_v0  ;;  %v1283_v30 = vrot.slane %v3713_v26, 1 }
  0xb0   : > { %v1282_v19 = vsel %vm1255_vm3, %v1277_v56, %v1281_v53  ;;  %v1284_v56 = vrot.slane %v3686_v2, 2 }
  0xb1   : > { %3017 = vmatmul.msk.bf16.gmra.mxu0 %vm513_vm1, %v1278_v41  ;;  %v3958_v28 = vpop.f32.mrf.mxu2 }
  0xb2   : > { %4858 = vst [vmem:[#allocation22_spill] sm:$0xff] %v3958_v28  ;;  %2979 = vmatmul.msk.bf16.gmra.mxu3 %vm513_vm1, %v3970_v7 }
  0xb3   : > { %v3960_v63 = vpop.f32.mrf.mxu1 }
  0xb5   : > { %v3981_v33 = vpop.f32.mrf.mxu3 }
  0xb6   : > { %v3962_v20 = vpop.f32.mrf.mxu0  ;;  %4861 = vst [vmem:[#allocation25_spill] sm:$0xff] %v3981_v33  ;;  %v842_v33 = vrot.slane %v3557_v6, 1 }
  0xb9   : > { %v3972_v36 = vpop.f32.mrf.mxu2 }
  0xba   : > { %4860 = vst [vmem:[#allocation24_spill] sm:$0xff] %v3972_v36 }
  0xbb   : > { %v3976_v41 = vpop.f32.mrf.mxu1 }
  0xbd   : > { %v3996_v36 = vpop.f32.mrf.mxu3 }
  0xbe   : > { %v3978_v28 = vpop.f32.mrf.mxu0  ;;  %2891 = vmatmul.msk.bf16.gmra.mxu1 %vm513_vm1, %v3548_v3  ;;  %2932 = vmatmul.msk.bf16.gmra.mxu2 %vm513_vm1, %v3876_v43  ;;  %4864 = vst [vmem:[#allocation28_spill] sm:$0xff] %v3996_v36  ;;  %v4000_v3 = vsel %vm820_vm2, %v840_v21, %v842_v33  ;;  %v1285_v43 = vor.u32 %v1284_v56, %v1283_v30  ;;  %v1287_v36 = vrot.slane %v3581_v14, 1 }
  0xc0   : > { %v1286_v26 = vsel %vm1255_vm3, %v1281_v53, %v1285_v43 }
  0xc1   : > { %3018 = vmatmul.msk.bf16.gmra.mxu0 %vm513_vm1, %v1282_v19  ;;  %v3988_v42 = vpop.f32.mrf.mxu2 }
  0xc2   : > { %4862 = vst [vmem:[#allocation26_spill] sm:$0xff] %v3988_v42  ;;  %2980 = vmatmul.msk.bf16.gmra.mxu3 %vm513_vm1, %v4000_v3 }
  0xc3   : > { %v3990_v0 = vpop.f32.mrf.mxu1 }
  0xc4   : > { %4863 = vst [vmem:[#allocation27_spill] sm:$0xff] %v3990_v0 }
  0xc5   : > { %v1127_v2 = vpop.f32.mrf.mxu3 }
  0xc6   : > { %v3992_v52 = vpop.f32.mrf.mxu0 }
  0xc9   : > { %v4002_v27 = vpop.f32.mrf.mxu2 }
  0xca   : > { %4865 = vst [vmem:[#allocation29_spill] sm:$0xff] %v4002_v27  ;;  %v1288_v27 = vrot.slane %v3578_v13, 2 }
  0xcb   : > { %v4006_v19 = vpop.f32.mrf.mxu1 }
  0xcc   : > { %4866 = vst [vmem:[#allocation30_spill] sm:$0xff] %v4006_v19 }
  0xcd   : > { %v1129_v53 = vpop.f32.mrf.mxu3 }
  0xce   : > { %v4008_v42 = vpop.f32.mrf.mxu0  ;;  %2892 = vmatmul.msk.bf16.gmra.mxu1 %vm513_vm1, %v3551_v4  ;;  %2933 = vmatmul.msk.bf16.gmra.mxu2 %vm513_vm1, %v3890_v51  ;;  %v3244_v4 = vld [vmem:[%s4809_s1 + $0xc8] sm:$0xff]  ;;  %v4032_v51 = vsel %vm820_vm2, %v842_v33, %v844_v45 }
  0xcf   : > { %1858 = vmatpush.bf16.msra.mxu2 %v3244_v4  ;;  %v3240_v4 = vld [vmem:[%s4809_s1 + $0xa8] sm:$0xff] }
  0xd0   : > { %1671 = vmatpush.bf16.msra.mxu1 %v3240_v4 }
  0xd1   : > { %3019 = vmatmul.msk.bf16.gmra.mxu0 %vm513_vm1, %v1286_v26  ;;  %v4016_v30 = vpop.f32.mrf.mxu2  ;;  %v3248_v26 = vld [vmem:[%s4809_s1 + $0xe8] sm:$0xff] }
  0xd2   : > { %4867 = vst [vmem:[#allocation31_spill] sm:$0xff] %v4016_v30  ;;  %2157 = vmatpush.bf16.msra.mxu3 %v3248_v26  ;;  %v1289_v30 = vor.u32 %v1288_v27, %v1287_v36  ;;  %v3252_v27 = vld [vmem:[%s4809_s1 + $0x108] sm:$0xff]  ;;  %v1291_v26 = vrot.slane %v3654_v47, 1 }
  0xd3   : > { %v4018_v21 = vpop.f32.mrf.mxu1  ;;  %2981 = vmatmul.msk.bf16.gmra.mxu3 %vm513_vm1, %v4032_v51  ;;  %2405 = vmatpush.bf16.msra.mxu0 %v3252_v27 }
  0xd4   : > { %4868 = vst [vmem:[#allocation32_spill] sm:$0xff] %v4018_v21  ;;  %v1290_v32 = vsel %vm1255_vm3, %v1285_v43, %v1289_v30 }
  0xd5   : > { %v1132_v19 = vpop.f32.mrf.mxu3 }
  0xd6   : > { %v4020_v56 = vpop.f32.mrf.mxu0 }
  0xd9   : > { %v4034_v14 = vpop.f32.mrf.mxu2 }
  0xda   : > { %4869 = vst [vmem:[#allocation33_spill] sm:$0xff] %v4034_v14 }
  0xdb   : > { %v4038_v13 = vpop.f32.mrf.mxu1 }
  0xdc   : > { %4870 = vst [vmem:[#allocation34_spill] sm:$0xff] %v4038_v13 }
  0xdd   : > { %v1134_v14 = vpop.f32.mrf.mxu3 }
  0xde   : > { %v4040_v21 = vpop.f32.mrf.mxu0  ;;  %2893 = vmatmul.msk.bf16.gmra.mxu1 %vm513_vm1, %v3623_v37  ;;  %2934 = vmatmul.msk.bf16.gmra.mxu2 %vm513_vm1, %v3913_v59  ;;  %v1292_v37 = vrot.slane %v3584_v15, 2  ;;  %v846_v59 = vrot.slane %v3699_v18, 1 }
  0xe0   : > { %v1293_v4 = vor.u32 %v1292_v37, %v1291_v26 }
  0xe1   : > { %3020 = vmatmul.msk.bf16.gmra.mxu0 %vm513_vm1, %v1290_v32  ;;  %v4054_v33 = vpop.f32.mrf.mxu2  ;;  %v4064_v32 = vsel %vm820_vm2, %v844_v45, %v846_v59 }
  0xe2   : > { %4871 = vst [vmem:[#allocation35_spill] sm:$0xff] %v4054_v33 }
  0xe3   : > { %v4056_v36 = vpop.f32.mrf.mxu1  ;;  %2982 = vmatmul.msk.bf16.gmra.mxu3 %vm513_vm1, %v4064_v32 }
  0xe4   : > { %4872 = vst [vmem:[#allocation36_spill] sm:$0xff] %v4056_v36  ;;  %v1294_v36 = vsel %vm1255_vm3, %v1289_v30, %v1293_v4  ;;  %v1296_v30 = vrot.slane %v3657_v48, 2 }
  0xe5   : > { %v1137_v0 = vpop.f32.mrf.mxu3 }
  0xe6   : > { %v4058_v43 = vpop.f32.mrf.mxu0 }
  0xe9   : > { %v4066_v13 = vpop.f32.mrf.mxu2 }
  0xea   : > { %4873 = vst [vmem:[#allocation37_spill] sm:$0xff] %v4066_v13 }
  0xeb   : > { %v726_v27 = vpop.f32.mrf.mxu1 }
  0xec   : > { %v727_v45 = vadd.f32 %v726_v27, %v3922_v61  ;;  %v1297_v61 = vor.u32 %v1296_v30, %v1295_v29  ;;  %v1300_v30 = vrot.slane %v3739_v35, 2 }
  0xed   : > { %v1139_v12 = vpop.f32.mrf.mxu3 }
  0xee   : > { %v1426_v33 = vpop.f32.mrf.mxu0  ;;  %2894 = vmatmul.msk.bf16.gmra.mxu1 %vm513_vm1, %v3692_v16  ;;  %2935 = vmatmul.msk.bf16.gmra.mxu2 %vm513_vm1, %v3940_v8  ;;  %v4081_v16 = vsel %vm820_vm2, %v846_v59, %v848_v44  ;;  %v1298_v48 = vsel %vm1255_vm3, %v1293_v4, %v1297_v61  ;;  %v1299_v4 = vrot.slane %v3801_v9, 1 }
  0xf1   : > { %3021 = vmatmul.msk.bf16.gmra.mxu0 %vm513_vm1, %v1294_v36  ;;  %v940_v26 = vpop.f32.mrf.mxu2 }
  0xf2   : > { %v1025_v37 = vadd.f32 %v940_v26, %v727_v45 }
  0xf3   : > { %v728_v13 = vpop.f32.mrf.mxu1  ;;  %2983 = vmatmul.msk.bf16.gmra.mxu3 %vm513_vm1, %v4081_v16 }
  0xf4   : > { %v1212_v15 = vadd.f32 %v1127_v2, %v1025_v37  ;;  %v729_v36 = vadd.f32 %v728_v13, %v3934_v58 }
  0xf5   : > { %v4089_v34 = vpop.f32.mrf.mxu3 }
  0xf6   : > { %v1428_v47 = vpop.f32.mrf.mxu0  ;;  %v4083_v8 = vadd.f32 %v1426_v33, %v1212_v15 }
  0xf9   : > { %v942_v27 = vpop.f32.mrf.mxu2 }
  0xfa   : > { %v1026_v2 = vadd.f32 %v942_v27, %v729_v36 }
  0xfb   : > { %v731_v45 = vpop.f32.mrf.mxu1 }
  0xfc   : > { %v1213_v26 = vadd.f32 %v1129_v53, %v1026_v2  ;;  %v732_v15 = vadd.f32 %v731_v45, %v3948_v55  ;;  %v1301_v55 = vor.u32 %v1300_v30, %v1299_v4  ;;  %v1304_v4 = vrot.slane %v3804_v57, 2 }
  0xfd   : > { %v4101_v36 = vpop.f32.mrf.mxu3 }
  0xfe   : > { %v1431_v37 = vpop.f32.mrf.mxu0  ;;  %2895 = vmatmul.msk.bf16.gmra.mxu1 %vm513_vm1, %v3677_v60  ;;  %2936 = vmatmul.msk.bf16.gmra.mxu2 %vm513_vm1, %v3970_v7  ;;  %v4095_v13 = vadd.f32 %v1428_v47, %v1213_v26  ;;  %v850_v60 = vrot.slane %v3630_v39, 1 }
 0x100   : > { %v4105_v47 = vsel %vm820_vm2, %v848_v44, %v850_v60 }
 0x101   : > { %3022 = vmatmul.msk.bf16.gmra.mxu0 %vm513_vm1, %v1298_v48  ;;  %v945_v29 = vpop.f32.mrf.mxu2 }
 0x102   : > { %v1027_v58 = vadd.f32 %v945_v29, %v732_v15  ;;  %v1302_v15 = vsel %vm1255_vm3, %v1297_v61, %v1301_v55  ;;  %v1303_v61 = vrot.slane %v3837_v22, 1 }
 0x103   : > { %v733_v53 = vpop.f32.mrf.mxu1  ;;  %2984 = vmatmul.msk.bf16.gmra.mxu3 %vm513_vm1, %v4105_v47 }
 0x104   : > { %v1214_v33 = vadd.f32 %v1132_v19, %v1027_v58  ;;  %v734_v48 = vadd.f32 %v733_v53, %v3962_v20 }
 0x105   : > { %v4113_v29 = vpop.f32.mrf.mxu3 }
 0x106   : > { %v1433_v59 = vpop.f32.mrf.mxu0  ;;  %v4107_v7 = vadd.f32 %v1431_v37, %v1214_v33 }
 0x109   : > { %v947_v27 = vpop.f32.mrf.mxu2 }
 0x10a   : > { %v1028_v19 = vadd.f32 %v947_v27, %v734_v48  ;;  %v1305_v48 = vor.u32 %v1304_v4, %v1303_v61 }
 0x10b   : > { %v736_v2 = vpop.f32.mrf.mxu1 }
 0x10c   : > { %v1215_v45 = vadd.f32 %v1134_v14, %v1028_v19  ;;  %v737_v20 = vadd.f32 %v736_v2, %v3978_v28 }
 0x10d   : > { %v4125_v30 = vpop.f32.mrf.mxu3 }
 0x10e   : > { %v1436_v26 = vpop.f32.mrf.mxu0  ;;  %2896 = vmatmul.msk.bf16.gmra.mxu1 %vm513_vm1, %v3554_v5  ;;  %2937 = vmatmul.msk.bf16.gmra.mxu2 %vm513_vm1, %v4000_v3  ;;  %v4119_v44 = vadd.f32 %v1433_v59, %v1215_v45  ;;  %v4128_v5 = vrot.slane %v3633_v40, 1  ;;  %v1306_v40 = vsel %vm1255_vm3, %v1301_v55, %v1305_v48 }
 0x110   : > { %v4132_v3 = vsel %vm820_vm2, %v850_v60, %v4128_v5  ;;  %v3243_v60 = vld [vmem:[%s4809_s1 + $0xc0] sm:$0xff] }
 0x111   : > { %3023 = vmatmul.msk.bf16.gmra.mxu0 %vm513_vm1, %v1302_v15  ;;  %v950_v37 = vpop.f32.mrf.mxu2  ;;  %1859 = vmatpush.bf16.msra.mxu2 %v3243_v60 }
 0x112   : > { %v1029_v58 = vadd.f32 %v950_v37, %v737_v20 }
 0x113   : > { %v738_v14 = vpop.f32.mrf.mxu1  ;;  %2985 = vmatmul.msk.bf16.gmra.mxu3 %vm513_vm1, %v4132_v3 }
 0x114   : > { %v1216_v53 = vadd.f32 %v1137_v0, %v1029_v58  ;;  %v739_v28 = vadd.f32 %v738_v14, %v3992_v52  ;;  %v3247_v52 = vld [vmem:[%s4809_s1 + $0xe0] sm:$0xff] }
 0x115   : > { %v4143_v15 = vpop.f32.mrf.mxu3  ;;  %2158 = vmatpush.bf16.msra.mxu3 %v3247_v52 }
 0x116   : > { %v1438_v33 = vpop.f32.mrf.mxu0  ;;  %v4134_v59 = vadd.f32 %v1436_v26, %v1216_v53  ;;  %v1308_v53 = vrot.slane %v3651_v46, 2 }
 0x119   : > { %v952_v0 = vpop.f32.mrf.mxu2 }
 0x11a   : > { %v1030_v27 = vadd.f32 %v952_v0, %v739_v28 }
 0x11b   : > { %v741_v19 = vpop.f32.mrf.mxu1 }
 0x11c   : > { %v1217_v2 = vadd.f32 %v1139_v12, %v1030_v27  ;;  %v3239_v12 = vld [vmem:[%s4809_s1 + $0xa0] sm:$0xff]  ;;  %v742_v26 = vadd.f32 %v741_v19, %v4008_v42  ;;  %v1079_v42 = vrot.slane %v3695_v17, 1 }
 0x11d   : > { %1672 = vmatpush.bf16.msra.mxu1 %v3239_v12  ;;  %v4162_v61 = vpop.f32.mrf.mxu3 }
 0x11e   : > { %v1441_v45 = vpop.f32.mrf.mxu0  ;;  %2897 = vmatmul.msk.bf16.gmra.mxu1 %vm513_vm1, %v3557_v6  ;;  %2938 = vmatmul.msk.bf16.gmra.mxu2 %vm513_vm1, %v4032_v51  ;;  %v4155_v55 = vadd.f32 %v1438_v33, %v1217_v2  ;;  %v1307_v51 = vrot.slane %v3660_v49, 1  ;;  %v3251_v33 = vld [vmem:[%s4809_s1 + $0x100] sm:$0xff]  ;;  %v1080_v4 = vsel %vm820_vm2, %v4128_v5, %v1079_v42 }
 0x11f   : > { %2406 = vmatpush.bf16.msra.mxu0 %v3251_v33 }
 0x120   : > { %v1309_v0 = vor.u32 %v1308_v53, %v1307_v51 }
 0x121   : > { %3024 = vmatmul.msk.bf16.gmra.mxu0 %vm513_vm1, %v1306_v40  ;;  %v955_v20 = vpop.f32.mrf.mxu2 }
 0x122   : > { %v1031_v37 = vadd.f32 %v955_v20, %v742_v26  ;;  %v1310_v52 = vsel %vm1255_vm3, %v1305_v48, %v1309_v0 }
 0x123   : > { %v743_v58 = vpop.f32.mrf.mxu1  ;;  %2986 = vmatmul.msk.bf16.gmra.mxu3 %vm513_vm1, %v1080_v4 }
 0x124   : > { %v1218_v6 = vadd.f32 %v4089_v34, %v1031_v37  ;;  %v744_v34 = vadd.f32 %v743_v58, %v4020_v56  ;;  %v4187_v37 = vld [vmem:[%s3545_s5 + $0x90] sm:$0xff] }
 0x125   : > { %v4176_v12 = vpop.f32.mrf.mxu3 }
 0x126   : > { %v1443_v14 = vpop.f32.mrf.mxu0  ;;  %v4170_v28 = vadd.f32 %v1441_v45, %v1218_v6  ;;  %v1311_v6 = vrot.slane %v3710_v25, 1 }
 0x129   : > { %v957_v27 = vpop.f32.mrf.mxu2 }
 0x12a   : > { %v1032_v19 = vadd.f32 %v957_v27, %v744_v34 }
 0x12b   : > { %v746_v2 = vpop.f32.mrf.mxu1 }
 0x12c   : > { %v1219_v40 = vadd.f32 %v4101_v36, %v1032_v19  ;;  %v747_v45 = vadd.f32 %v746_v2, %v4040_v21 }
 0x12d   : > { %v4192_v51 = vpop.f32.mrf.mxu3 }
 0x12e   : > { %v1446_v60 = vpop.f32.mrf.mxu0  ;;  %2898 = vmatmul.msk.bf16.gmra.mxu1 %vm513_vm1, %v3627_v38  ;;  %2939 = vmatmul.msk.bf16.gmra.mxu2 %vm513_vm1, %v4064_v32  ;;  %v4182_v56 = vadd.f32 %v1443_v14, %v1219_v40  ;;  %v1312_v38 = vrot.slane %v3663_v50, 2  ;;  %v1081_v32 = vrot.slane %v4187_v37, 1 }
 0x130   : > { %v1082_v21 = vsel %vm820_vm2, %v1079_v42, %v1081_v32  ;;  %v1313_v33 = vor.u32 %v1312_v38, %v1311_v6 }
 0x131   : > { %3025 = vmatmul.msk.bf16.gmra.mxu0 %vm513_vm1, %v1310_v52  ;;  %v960_v26 = vpop.f32.mrf.mxu2  ;;  %v4215_v52 = vld [vmem:[%s3545_s5 + $0x98] sm:$0xff]  }
 0x132   : > { %v1033_v20 = vadd.f32 %v960_v26, %v747_v45  ;;  %v1314_v2 = vsel %vm1255_vm3, %v1309_v0, %v1313_v33  ;;  %v3261_v45 = vunpack.c.l.b16 %v4215_v52 }
 0x133   : > { %v748_v36 = vpop.f32.mrf.mxu1  ;;  %2987 = vmatmul.msk.bf16.gmra.mxu3 %vm513_vm1, %v1082_v21 }
 0x134   : > { %v1220_v48 = vadd.f32 %v4113_v29, %v1033_v20  ;;  %v749_v53 = vadd.f32 %v748_v36, %v4058_v43  ;;  %v4218_v20 = vpack.c.b16 %v3261_v45, %v3261_v45 }
 0x135   : > { %v4202_v40 = vpop.f32.mrf.mxu3 }
 0x136   : > { %v1448_v58 = vpop.f32.mrf.mxu0  ;;  %v4195_v14 = vadd.f32 %v1446_v60, %v1220_v48  ;;  %v4835_v60 = vshrl.u32 %v3695_v17, 16  ;;  %v1083_v6 = vrot.slane %v4218_v20, 1 }
 0x138   : > { %v1318_v48 = vrot.slane %v4835_v60, 1  ;;  %v1084_v21 = vsel %vm820_vm2, %v1081_v32, %v1083_v6 }
 0x139   : > { %v962_v4 = vpop.f32.mrf.mxu2 }
 0x13a   : > { %v1034_v29 = vadd.f32 %v962_v4, %v749_v53 }
 0x13b   : > { %v751_v34 = vpop.f32.mrf.mxu1 }
 0x13c   : > { %v1221_v27 = vadd.f32 %v4125_v30, %v1034_v29  ;;  %v752_v42 = vadd.f32 %v751_v34, %v3917_v62  ;;  %v4834_v30 = vshll.u32 %v3695_v17, 16 }
 0x13e   : > { %v1451_v19 = vpop.f32.mrf.mxu0  ;;  %2899 = vmatmul.msk.bf16.gmra.mxu1 %vm513_vm1, %v3699_v18  ;;  %2940 = vmatmul.msk.bf16.gmra.mxu2 %vm513_vm1, %v4081_v16  ;;  %v4208_v43 = vadd.f32 %v1448_v58, %v1221_v27  ;;  %v1321_v62 = vrot.slane %v4834_v30, 2  ;;  %v4225_v58 = vpop.f32.mrf.mxu3 }
 0x140   : > { %v1322_v4 = vor.u32 %v1321_v62, %v1318_v48 }
 0x141   : > { %3026 = vmatmul.msk.bf16.gmra.mxu0 %vm513_vm1, %v1314_v2  ;;  %v965_v0 = vpop.f32.mrf.mxu2 }
 0x142   : > { %v1035_v26 = vadd.f32 %v965_v0, %v752_v42  ;;  %v1323_v42 = vsel %vm1255_vm3, %v1313_v33, %v1322_v4 }
 0x143   : > { %v753_v18 = vpop.f32.mrf.mxu1  ;;  %2988 = vmatmul.msk.bf16.gmra.mxu3 %vm513_vm1, %v1084_v21 }
 0x144   : > { %v1222_v16 = vadd.f32 %v4143_v15, %v1035_v26  ;;  %v754_v53 = vadd.f32 %v753_v18, %v3932_v54  ;;  %v1990_v18 = vrot.slane %v3770_v24, 2 }
 0x146   : > { %v1453_v36 = vpop.f32.mrf.mxu0  ;;  %v4228_v38 = vadd.f32 %v1451_v19, %v1222_v16  ;;  %v4235_v0 = vpop.f32.mrf.mxu3  ;;  %v4833_v19 = vshrl.u32 %v4187_v37, 16  ;;  %v1993_v16 = vrot.slane %v3572_v11, 2 }
 0x149   : > { %v967_v29 = vpop.f32.mrf.mxu2 }
 0x14a   : > { %v1036_v15 = vadd.f32 %v967_v29, %v754_v53 }
 0x14b   : > { %v756_v34 = vpop.f32.mrf.mxu1 }
 0x14c   : > { %v1223_v27 = vadd.f32 %v4162_v61, %v1036_v15  ;;  %v757_v32 = vadd.f32 %v756_v34, %v3946_v23  ;;  %v4832_v61 = vshll.u32 %v4187_v37, 16  ;;  %v1327_v23 = vrot.slane %v4833_v19, 1 }
 0x14e   : > { %v1456_v2 = vpop.f32.mrf.mxu0  ;;  %2900 = vmatmul.msk.bf16.gmra.mxu1 %vm513_vm1, %v3781_v31  ;;  %2941 = vmatmul.msk.bf16.gmra.mxu2 %vm513_vm1, %v4105_v47  ;;  %v4241_v54 = vadd.f32 %v1453_v36, %v1223_v27  ;;  %v1991_v31 = vrot.slane %v3758_v1, 3  ;;  %v1994_v47 = vrot.slane %v3569_v10, 3  ;;  %v1330_v62 = vrot.slane %v4832_v61, 2  ;;  %v4256_v6 = vpop.f32.mrf.mxu3 }
 0x150   : > { %v1992_v21 = vor.u32 %v1991_v31, %v1990_v18  ;;  %v1995_v24 = vor.u32 %v1994_v47, %v1993_v16  ;;  %v1331_v1 = vor.u32 %v1330_v62, %v1327_v23  ;;  %v4874_v18 = vld [vmem:[#allocation6_spill] sm:$0xff] }
 0x151   : > { %3027 = vmatmul.msk.bf16.gmra.mxu0 %vm513_vm1, %v1323_v42  ;;  %v970_v45 = vpop.f32.mrf.mxu2  ;;  %v1997_v31 = vrot.slane %v4874_v18, 2  ;;  %v4875_v16 = vld [vmem:[#allocation2_spill] sm:$0xff] }
 0x152   : > { %v1037_v33 = vadd.f32 %v970_v45, %v757_v32  ;;  %v1996_v11 = vsel %vm1989_vm4, %v1992_v21, %v1995_v24  ;;  %v1332_v42 = vsel %vm1255_vm3, %v1322_v4, %v1331_v1  ;;  %v1334_v45 = vshrl.u32 %v4218_v20, 16  ;;  %v4876_v21 = vld [vmem:[#allocation13_spill] sm:$0xff] }
 0x153   : > { %v758_v26 = vpop.f32.mrf.mxu1  ;;  %3140 = vmatmul.msk.bf16.vlgmr.msra.gmra.mxu3 %vm513_vm1, %v1996_v11  ;;  %v854_v11 = vrot.slane %v4876_v21, 1 }
 0x154   : > { %v1224_v36 = vadd.f32 %v4176_v12, %v1037_v33  ;;  %v759_v10 = vadd.f32 %v758_v26, %v3960_v63 }
 0x156   : > { %v1458_v48 = vpop.f32.mrf.mxu0  ;;  %v4258_v53 = vadd.f32 %v1456_v2, %v1224_v36  ;;  %v4265_v32 = vpop.f32.mrf.mxu3  ;;  %v1336_v36 = vrot.slane %v1334_v45, 1 }
 0x159   : > { %v972_v12 = vpop.f32.mrf.mxu2 }
 0x15a   : > { %v1038_v29 = vadd.f32 %v972_v12, %v759_v10  ;;  %v4877_v12 = vld [vmem:[#allocation27_spill] sm:$0xff] }
 0x15b   : > { %v761_v15 = vpop.f32.mrf.mxu1 }
 0x15c   : > { %v1225_v34 = vadd.f32 %v4192_v51, %v1038_v29  ;;  %v762_v2 = vadd.f32 %v761_v15, %v3976_v41  ;;  %v1337_v51 = vshll.u32 %v4218_v20, 16 }
 0x15e   : > { %v1461_v27 = vpop.f32.mrf.mxu0  ;;  %2901 = vmatmul.msk.bf16.gmra.mxu1 %vm513_vm1, %v3630_v39  ;;  %2942 = vmatmul.msk.bf16.gmra.mxu2 %vm513_vm1, %v4132_v3  ;;  %v4271_v63 = vadd.f32 %v1458_v48, %v1225_v34  ;;  %v1998_v39 = vrot.slane %v4875_v16, 3  ;;  %v1339_v48 = vrot.slane %v1337_v51, 2  ;;  %v4280_v23 = vpop.f32.mrf.mxu3 }
 0x160   : > { %v1999_v41 = vor.u32 %v1998_v39, %v1997_v31  ;;  %v1340_v15 = vor.u32 %v1339_v48, %v1336_v36  ;;  %v4879_v31 = vld [vmem:[#allocation14_spill] sm:$0xff]  ;;  %v4880_v39 = vld [vmem:[#allocation7_spill] sm:$0xff] }
 0x161   : > { %3028 = vmatmul.msk.bf16.gmra.mxu0 %vm513_vm1, %v1332_v42  ;;  %v975_v33 = vpop.f32.mrf.mxu2  ;;  %v2001_v16 = vrot.slane %v4879_v31, 2 }
 0x162   : > { %v1039_v4 = vadd.f32 %v975_v33, %v762_v2  ;;  %v2000_v10 = vsel %vm1989_vm4, %v1995_v24, %v1999_v41  ;;  %v855_v2 = vsel %vm820_vm2, %v4128_v5, %v854_v11  ;;  %v4295_v24 = vld [vmem:[%s3545_s5 + $0x80] sm:$0xff] }
 0x163   : > { %v763_v26 = vpop.f32.mrf.mxu1  ;;  %3141 = vmatmul.msk.bf16.gmra.mxu3 %vm513_vm1, %v2000_v10  ;;  %v4878_v5 = vld [vmem:[#allocation30_spill] sm:$0xff] }
 0x164   : > { %v1226_v47 = vadd.f32 %v4202_v40, %v1039_v4  ;;  %v764_v29 = vadd.f32 %v763_v26, %v4877_v12 }
 0x166   : > { %v1463_v3 = vpop.f32.mrf.mxu0  ;;  %v4282_v62 = vadd.f32 %v1461_v27, %v1226_v47  ;;  %v1341_v27 = vsel %vm1255_vm3, %v1331_v1, %v1340_v15  ;;  %v4292_v33 = vpop.f32.mrf.mxu3  ;;  %v2002_v47 = vrot.slane %v4880_v39, 3 }
 0x168   : > { %v2003_v11 = vor.u32 %v2002_v47, %v2001_v16 }
 0x169   : > { %v977_v34 = vpop.f32.mrf.mxu2 }
 0x16a   : > { %v1040_v40 = vadd.f32 %v977_v34, %v764_v29  ;;  %v4881_v29 = vld [vmem:[#allocation12_spill] sm:$0xff]  ;;  %v4882_v34 = vld [vmem:[#allocation17_spill] sm:$0xff] }
 0x16b   : > { %v766_v42 = vpop.f32.mrf.mxu1  ;;  %v1556_v15 = vrot.slane %v4881_v29, 2 }
 0x16c   : > { %v1227_v45 = vadd.f32 %v4225_v58, %v1040_v40  ;;  %v767_v58 = vadd.f32 %v766_v42, %v4878_v5  ;;  %v1558_v40 = vrot.slane %v4882_v34, 2  ;;  %v3423_v42 = vld [vmem:[%s3545_s5 + $0x28] sm:$0xff] }
 0x16e   : > { %v1466_v51 = vpop.f32.mrf.mxu0  ;;  %2902 = vmatmul.msk.bf16.gmra.mxu1 %vm513_vm1, %v4295_v24  ;;  %2943 = vmatmul.msk.bf16.gmra.mxu2 %vm513_vm1, %v855_v2  ;;  %v4300_v4 = vadd.f32 %v1463_v3, %v1227_v45  ;;  %v4307_v21 = vpop.f32.mrf.mxu3  ;;  %v3422_v3 = vld [vmem:[%s3545_s5 + $0x10] sm:$0xff]  ;;  %v1560_v2 = vrot.slane %v3423_v42, 2  ;;  %v2004_v45 = vsel %vm1989_vm4, %v1999_v41, %v2003_v11 }
 0x16f   : > { %v1555_v10 = vrot.slane %v3422_v3, 2  ;;  %v4884_v3 = vld [vmem:[#allocation34_spill] sm:$0xff] }
 0x170   : > { %v4321_v16 = vsel %vm1554_vm5, %v1558_v40, %v1560_v2 }
 0x171   : > { %3029 = vmatmul.msk.bf16.gmra.mxu0 %vm513_vm1, %v1341_v27  ;;  %v980_v26 = vpop.f32.mrf.mxu2  ;;  %v4883_v27 = vld [vmem:[#allocation32_spill] sm:$0xff]  ;;  %v1557_v31 = vsel %vm1554_vm5, %v1555_v10, %v1556_v15 }
 0x172   : > { %v1041_v18 = vadd.f32 %v980_v26, %v767_v58  ;;  %v2290_v58 = vrot.slane %v3423_v42, 3  ;;  %v4885_v42 = vld [vmem:[#allocation18_spill] sm:$0xff] }
 0x173   : > { %v768_v1 = vpop.f32.mrf.mxu1  ;;  %3142 = vmatmul.msk.bf16.gmra.mxu3 %vm513_vm1, %v2004_v45  ;;  %v2005_v45 = vrot.slane %v4885_v42, 2 }
 0x174   : > { %v1228_v36 = vadd.f32 %v4235_v0, %v1041_v18  ;;  %v769_v5 = vadd.f32 %v768_v1, %v4883_v27  ;;  %v2289_v0 = vrot.slane %v4882_v34, 3  ;;  %v4886_v27 = vld [vmem:[#allocation15_spill] sm:$0xff] }
 0x176   : > { %v1468_v48 = vpop.f32.mrf.mxu0  ;;  %v4310_v12 = vadd.f32 %v1466_v51, %v1228_v36  ;;  %v2291_v1 = vsel %vm2288_vm6, %v2289_v0, %v2290_v58  ;;  %v4325_v47 = vpop.f32.mrf.mxu3 }
 0x179   : > { %v982_v26 = vpop.f32.mrf.mxu2 }
 0x17a   : > { %v1042_v51 = vadd.f32 %v982_v26, %v769_v5  ;;  %v2006_v5 = vrot.slane %v4886_v27, 3 }
 0x17b   : > { %v771_v18 = vpop.f32.mrf.mxu1 }
 0x17c   : > { %v1229_v39 = vadd.f32 %v4256_v6, %v1042_v51  ;;  %v772_v10 = vadd.f32 %v771_v18, %v4884_v3  ;;  %v4887_v18 = vld [vmem:[#allocation36_spill] sm:$0xff] }
 0x17e   : > { %v1471_v41 = vpop.f32.mrf.mxu0  ;;  %3054 = vmatmul.msk.bf16.vlgmr.msra.gmra.mxu1 %vm513_vm1, %v1557_v31  ;;  %3099 = vmatmul.msk.bf16.vlgmr.msra.gmra.mxu2 %vm513_vm1, %v4321_v16  ;;  %v4330_v36 = vadd.f32 %v1468_v48, %v1229_v39  ;;  %v4337_v51 = vpop.f32.mrf.mxu3  ;;  %v2007_v31 = vor.u32 %v2006_v5, %v2005_v45  ;;  %v3424_v48 = vld [vmem:[%s3545_s5 + $0x30] sm:$0xff] }
 0x17f   : > { %v1562_v39 = vrot.slane %v3424_v48, 2 }
 0x181   : > { %3181 = vmatmul.msk.bf16.vlgmr.msra.gmra.mxu0 %vm513_vm1, %v2291_v1  ;;  %v985_v29 = vpop.f32.mrf.mxu2  ;;  %v2008_v1 = vsel %vm1989_vm4, %v2003_v11, %v2007_v31 }
 0x182   : > { %v1043_v34 = vadd.f32 %v985_v29, %v772_v10  ;;  %v2292_v10 = vrot.slane %v3424_v48, 3  ;;  %v4889_v48 = vld [vmem:[#allocation11_spill] sm:$0xff] }
 0x183   : > { %v773_v6 = vpop.f32.mrf.mxu1  ;;  %3143 = vmatmul.msk.bf16.gmra.mxu3 %vm513_vm1, %v2008_v1  ;;  %v2009_v1 = vrot.slane %v4889_v48, 2 }
 0x184   : > { %v1230_v0 = vadd.f32 %v4265_v32, %v1043_v34  ;;  %v774_v3 = vadd.f32 %v773_v6, %v4887_v18  ;;  %v1559_v32 = vsel %vm1554_vm5, %v1556_v15, %v1558_v40  ;;  %v4347_v34 = vsel %vm1554_vm5, %v1560_v2, %v1562_v39  ;;  %v4888_v15 = vld [vmem:[#allocation19_spill] sm:$0xff] }
 0x185   : > { %v2293_v5 = vsel %vm2288_vm6, %v2290_v58, %v2292_v10  ;;  %v4890_v58 = vld [vmem:[#allocation10_spill] sm:$0xff] }
 0x186   : > { %v1473_v26 = vpop.f32.mrf.mxu0  ;;  %v4339_v61 = vadd.f32 %v1471_v41, %v1230_v0  ;;  %v4351_v0 = vpop.f32.mrf.mxu3  ;;  %v2010_v18 = vrot.slane %v4890_v58, 3 }
 0x189   : > { %v987_v29 = vpop.f32.mrf.mxu2 }
 0x18a   : > { %v1044_v42 = vadd.f32 %v987_v29, %v774_v3 }
 0x18b   : > { %v776_v27 = vpop.f32.mrf.mxu1 }
 0x18c   : > { %v1231_v41 = vadd.f32 %v4280_v23, %v1044_v42  ;;  %v777_v40 = vadd.f32 %v776_v27, %v4888_v15  ;;  %v4891_v27 = vld [vmem:[#allocation20_spill] sm:$0xff] }
 0x18e   : > { %v1476_v45 = vpop.f32.mrf.mxu0  ;;  %3055 = vmatmul.msk.bf16.gmra.mxu1 %vm513_vm1, %v1559_v32  ;;  %3100 = vmatmul.msk.bf16.gmra.mxu2 %vm513_vm1, %v4347_v34  ;;  %v4356_v11 = vadd.f32 %v1473_v26, %v1231_v41  ;;  %v4363_v42 = vpop.f32.mrf.mxu3  ;;  %v2011_v32 = vor.u32 %v2010_v18, %v2009_v1  ;;  %v3425_v26 = vld [vmem:[%s3545_s5 + $0x38] sm:$0xff] }
 0x18f   : > { %v1564_v41 = vrot.slane %v3425_v26, 2 }
 0x191   : > { %3182 = vmatmul.msk.bf16.gmra.mxu0 %vm513_vm1, %v2293_v5  ;;  %v990_v2 = vpop.f32.mrf.mxu2  ;;  %v2012_v5 = vsel %vm1989_vm4, %v2007_v31, %v2011_v32 }
 0x192   : > { %v1045_v6 = vadd.f32 %v990_v2, %v777_v40  ;;  %v2294_v40 = vrot.slane %v3425_v26, 3 }
 0x193   : > { %v778_v23 = vpop.f32.mrf.mxu1  ;;  %3144 = vmatmul.msk.bf16.gmra.mxu3 %vm513_vm1, %v2012_v5  ;;  %v4894_v5 = vld [vmem:[#allocation4_spill] sm:$0xff] }
 0x194   : > { %v1232_v3 = vadd.f32 %v4292_v33, %v1045_v6  ;;  %v779_v15 = vadd.f32 %v778_v23, %v4891_v27  ;;  %v4372_v33 = vsel %vm1554_vm5, %v1562_v39, %v1564_v41  ;;  %v4893_v39 = vld [vmem:[#allocation22_spill] sm:$0xff]  ;;  %v4895_v27 = vld [vmem:[#allocation3_spill] sm:$0xff] }
 0x196   : > { %v1478_v29 = vpop.f32.mrf.mxu0  ;;  %v4365_v19 = vadd.f32 %v1476_v45, %v1232_v3  ;;  %v2295_v45 = vsel %vm2288_vm6, %v2292_v10, %v2294_v40  ;;  %v4376_v18 = vpop.f32.mrf.mxu3  ;;  %v2013_v10 = vrot.slane %v4894_v5, 2 }
 0x199   : > { %v992_v2 = vpop.f32.mrf.mxu2 }
 0x19a   : > { %v1046_v48 = vadd.f32 %v992_v2, %v779_v15  ;;  %v2014_v15 = vrot.slane %v4895_v27, 3 }
 0x19b   : > { %v781_v58 = vpop.f32.mrf.mxu1 }
 0x19c   : > { %v1233_v6 = vadd.f32 %v4307_v21, %v1046_v48  ;;  %v782_v23 = vadd.f32 %v781_v58, %v4893_v39  ;;  %v2015_v30 = vor.u32 %v2014_v15, %v2013_v10  ;;  %v4897_v58 = vld [vmem:[#allocation24_spill] sm:$0xff] }
 0x19e   : > { %v1481_v1 = vpop.f32.mrf.mxu0  ;;  %3056 = vmatmul.msk.bf16.gmra.mxu1 %vm513_vm1, %v4321_v16  ;;  %3101 = vmatmul.msk.bf16.gmra.mxu2 %vm513_vm1, %v4372_v33  ;;  %v4382_v31 = vadd.f32 %v1478_v29, %v1233_v6  ;;  %v4389_v16 = vpop.f32.mrf.mxu3  ;;  %v3426_v29 = vld [vmem:[%s3545_s5 + $0x40] sm:$0xff] }
 0x19f   : > { %v1566_v6 = vrot.slane %v3426_v29, 2 }
 0x1a0   : > { %4892 = vst [vmem:[#allocation6_spill] sm:$0xff] %v4382_v31 }
 0x1a1   : > { %3183 = vmatmul.msk.bf16.gmra.mxu0 %vm513_vm1, %v2295_v45  ;;  %v995_v3 = vpop.f32.mrf.mxu2  ;;  %v2016_v45 = vsel %vm1989_vm4, %v2011_v32, %v2015_v30 }
 0x1a2   : > { %v1047_v21 = vadd.f32 %v995_v3, %v782_v23  ;;  %v2296_v23 = vrot.slane %v3426_v29, 3 }
 0x1a3   : > { %v783_v26 = vpop.f32.mrf.mxu1  ;;  %3145 = vmatmul.msk.bf16.gmra.mxu3 %vm513_vm1, %v2016_v45  ;;  %v4900_v45 = vld [vmem:[#allocation8_spill] sm:$0xff] }
 0x1a4   : > { %v1234_v2 = vadd.f32 %v4325_v47, %v1047_v21  ;;  %v784_v39 = vadd.f32 %v783_v26, %v4897_v58  ;;  %v4398_v47 = vsel %vm1554_vm5, %v1564_v41, %v1566_v6  ;;  %v4899_v41 = vld [vmem:[#allocation26_spill] sm:$0xff]  ;;  %v4901_v58 = vld [vmem:[#allocation5_spill] sm:$0xff] }
 0x1a6   : > { %v1483_v48 = vpop.f32.mrf.mxu0  ;;  %v4391_v60 = vadd.f32 %v1481_v1, %v1234_v2  ;;  %v2297_v1 = vsel %vm2288_vm6, %v2294_v40, %v2296_v23  ;;  %v4402_v15 = vpop.f32.mrf.mxu3  ;;  %v2017_v40 = vrot.slane %v4900_v45, 2 }
 0x1a8   : > { %4896 = vst [vmem:[#allocation2_spill] sm:$0xff] %v4391_v60 }
 0x1a9   : > { %v997_v3 = vpop.f32.mrf.mxu2 }
 0x1aa   : > { %v1048_v5 = vadd.f32 %v997_v3, %v784_v39  ;;  %v2018_v39 = vrot.slane %v4901_v58, 3 }
 0x1ab   : > { %v786_v27 = vpop.f32.mrf.mxu1 }
 0x1ac   : > { %v1235_v21 = vadd.f32 %v4337_v51, %v1048_v5  ;;  %v787_v26 = vadd.f32 %v786_v27, %v4899_v41  ;;  %v2019_v60 = vor.u32 %v2018_v39, %v2017_v40  ;;  %v4903_v27 = vld [vmem:[#allocation29_spill] sm:$0xff] }
 0x1ae   : > { %v1486_v10 = vpop.f32.mrf.mxu0  ;;  %3057 = vmatmul.msk.bf16.gmra.mxu1 %vm513_vm1, %v4347_v34  ;;  %3102 = vmatmul.msk.bf16.gmra.mxu2 %vm513_vm1, %v4398_v47  ;;  %v4408_v32 = vadd.f32 %v1483_v48, %v1235_v21  ;;  %v4415_v34 = vpop.f32.mrf.mxu3  ;;  %v3427_v48 = vld [vmem:[%s3545_s5 + $0x48] sm:$0xff] }
 0x1af   : > { %v1568_v21 = vrot.slane %v3427_v48, 2 }
 0x1b0   : > { %4898 = vst [vmem:[#allocation13_spill] sm:$0xff] %v4408_v32 }
 0x1b1   : > { %3184 = vmatmul.msk.bf16.gmra.mxu0 %vm513_vm1, %v2297_v1  ;;  %v1000_v2 = vpop.f32.mrf.mxu2  ;;  %v2020_v1 = vsel %vm1989_vm4, %v2015_v30, %v2019_v60 }
 0x1b2   : > { %v1049_v51 = vadd.f32 %v1000_v2, %v787_v26  ;;  %v2298_v26 = vrot.slane %v3427_v48, 3 }
 0x1b3   : > { %v788_v29 = vpop.f32.mrf.mxu1  ;;  %3146 = vmatmul.msk.bf16.gmra.mxu3 %vm513_vm1, %v2020_v1  ;;  %v4905_v1 = vld [vmem:[#allocation16_spill] sm:$0xff] }
 0x1b4   : > { %v1236_v3 = vadd.f32 %v4351_v0, %v1049_v51  ;;  %v789_v41 = vadd.f32 %v788_v29, %v4903_v27  ;;  %v4424_v0 = vsel %vm1554_vm5, %v1566_v6, %v1568_v21  ;;  %v4904_v6 = vld [vmem:[#allocation31_spill] sm:$0xff]  ;;  %v4906_v27 = vld [vmem:[#allocation9_spill] sm:$0xff] }
 0x1b6   : > { %v1488_v5 = vpop.f32.mrf.mxu0  ;;  %v4417_v31 = vadd.f32 %v1486_v10, %v1236_v3  ;;  %v2299_v10 = vsel %vm2288_vm6, %v2296_v23, %v2298_v26  ;;  %v4428_v39 = vpop.f32.mrf.mxu3  ;;  %v2021_v23 = vrot.slane %v4905_v1, 2 }
 0x1b8   : > { %4902 = vst [vmem:[#allocation27_spill] sm:$0xff] %v4417_v31 }
 0x1b9   : > { %v1002_v2 = vpop.f32.mrf.mxu2 }
 0x1ba   : > { %v1050_v45 = vadd.f32 %v1002_v2, %v789_v41  ;;  %v2022_v41 = vrot.slane %v4906_v27, 3 }
 0x1bb   : > { %v791_v58 = vpop.f32.mrf.mxu1 }
 0x1bc   : > { %v1237_v51 = vadd.f32 %v4363_v42, %v1050_v45  ;;  %v792_v29 = vadd.f32 %v791_v58, %v4904_v6  ;;  %v2023_v31 = vor.u32 %v2022_v41, %v2021_v23  ;;  %v4907_v58 = vld [vmem:[#allocation33_spill] sm:$0xff] }
 0x1be   : > { %v1491_v40 = vpop.f32.mrf.mxu0  ;;  %3058 = vmatmul.msk.bf16.gmra.mxu1 %vm513_vm1, %v4372_v33  ;;  %3103 = vmatmul.msk.bf16.gmra.mxu2 %vm513_vm1, %v4424_v0  ;;  %v4434_v30 = vadd.f32 %v1488_v5, %v1237_v51  ;;  %v4441_v33 = vpop.f32.mrf.mxu3  ;;  %v3428_v5 = vld [vmem:[%s3545_s5 + $0x50] sm:$0xff] }
 0x1bf   : > { %v1570_v51 = vrot.slane %v3428_v5, 2 }
 0x1c1   : > { %3185 = vmatmul.msk.bf16.gmra.mxu0 %vm513_vm1, %v2299_v10  ;;  %v1005_v3 = vpop.f32.mrf.mxu2  ;;  %v2024_v10 = vsel %vm1989_vm4, %v2019_v60, %v2023_v31 }
 0x1c2   : > { %v1051_v42 = vadd.f32 %v1005_v3, %v792_v29  ;;  %v2300_v29 = vrot.slane %v3428_v5, 3 }
 0x1c3   : > { %v793_v48 = vpop.f32.mrf.mxu1  ;;  %3147 = vmatmul.msk.bf16.gmra.mxu3 %vm513_vm1, %v2024_v10  ;;  %v2026_v10 = vrot.slane %v3739_v35, 3 }
 0x1c4   : > { %v1238_v2 = vadd.f32 %v4376_v18, %v1051_v42  ;;  %v794_v6 = vadd.f32 %v793_v48, %v4907_v58  ;;  %v4450_v18 = vsel %vm1554_vm5, %v1568_v21, %v1570_v51  ;;  %v4908_v21 = vld [vmem:[#allocation35_spill] sm:$0xff] }
 0x1c6   : > { %v1493_v45 = vpop.f32.mrf.mxu0  ;;  %v4443_v32 = vadd.f32 %v1491_v40, %v1238_v2  ;;  %v2301_v40 = vsel %vm2288_vm6, %v2298_v26, %v2300_v29  ;;  %v4454_v41 = vpop.f32.mrf.mxu3  ;;  %v2025_v26 = vrot.slane %v3801_v9, 2 }
 0x1c9   : > { %v1007_v3 = vpop.f32.mrf.mxu2 }
 0x1ca   : > { %v1052_v1 = vadd.f32 %v1007_v3, %v794_v6  ;;  %v2027_v3 = vor.u32 %v2026_v10, %v2025_v26 }
 0x1cb   : > { %v796_v27 = vpop.f32.mrf.mxu1 }
 0x1cc   : > { %v1239_v42 = vadd.f32 %v4389_v16, %v1052_v1  ;;  %v797_v48 = vadd.f32 %v796_v27, %v4908_v21  ;;  %v4909_v27 = vld [vmem:[#allocation37_spill] sm:$0xff] }
 0x1ce   : > { %v1496_v23 = vpop.f32.mrf.mxu0  ;;  %3059 = vmatmul.msk.bf16.gmra.mxu1 %vm513_vm1, %v4398_v47  ;;  %3104 = vmatmul.msk.bf16.gmra.mxu2 %vm513_vm1, %v4450_v18  ;;  %v4460_v60 = vadd.f32 %v1493_v45, %v1239_v42  ;;  %v4467_v47 = vpop.f32.mrf.mxu3  ;;  %v3429_v45 = vld [vmem:[%s3545_s5 + $0x58] sm:$0xff] }
 0x1cf   : > { %v1572_v42 = vrot.slane %v3429_v45, 2 }
 0x1d1   : > { %3186 = vmatmul.msk.bf16.gmra.mxu0 %vm513_vm1, %v2301_v40  ;;  %v1010_v2 = vpop.f32.mrf.mxu2  ;;  %v2028_v40 = vsel %vm1989_vm4, %v2023_v31, %v2027_v3 }
 0x1d2   : > { %v1053_v16 = vadd.f32 %v1010_v2, %v797_v48  ;;  %v2302_v48 = vrot.slane %v3429_v45, 3 }
 0x1d3   : > { %v798_v5 = vpop.f32.mrf.mxu1  ;;  %3148 = vmatmul.msk.bf16.gmra.mxu3 %vm513_vm1, %v2028_v40  ;;  %v2030_v40 = vrot.slane %v3804_v57, 3 }
 0x1d4   : > { %v1240_v58 = vadd.f32 %v4402_v15, %v1053_v16  ;;  %v799_v21 = vadd.f32 %v798_v5, %v4909_v27  ;;  %v4476_v15 = vsel %vm1554_vm5, %v1570_v51, %v1572_v42  ;;  %v4910_v51 = vld [vmem:[#allocation21_spill] sm:$0xff] }
 0x1d6   : > { %v1498_v6 = vpop.f32.mrf.mxu0  ;;  %v4469_v1 = vadd.f32 %v1496_v23, %v1240_v58  ;;  %v2303_v23 = vsel %vm2288_vm6, %v2300_v29, %v2302_v48  ;;  %v4480_v10 = vpop.f32.mrf.mxu3  ;;  %v2029_v29 = vrot.slane %v3837_v22, 2 }
 0x1d9   : > { %v1012_v2 = vpop.f32.mrf.mxu2 }
 0x1da   : > { %v1054_v9 = vadd.f32 %v1012_v2, %v799_v21  ;;  %v2031_v2 = vor.u32 %v2030_v40, %v2029_v29 }
 0x1db   : > { %v801_v35 = vpop.f32.mrf.mxu1 }
 0x1dc   : > { %v1241_v16 = vadd.f32 %v4415_v34, %v1054_v9  ;;  %v802_v5 = vadd.f32 %v801_v35, %v4910_v51  ;;  %v4911_v35 = vld [vmem:[#allocation23_spill] sm:$0xff] }
 0x1de   : > { %v1501_v26 = vpop.f32.mrf.mxu0  ;;  %3060 = vmatmul.msk.bf16.gmra.mxu1 %vm513_vm1, %v4424_v0  ;;  %3105 = vmatmul.msk.bf16.gmra.mxu2 %vm513_vm1, %v4476_v15  ;;  %v4486_v31 = vadd.f32 %v1498_v6, %v1241_v16  ;;  %v4493_v0 = vpop.f32.mrf.mxu3  ;;  %v3430_v6 = vld [vmem:[%s3545_s5 + $0x60] sm:$0xff] }
 0x1df   : > { %v1574_v16 = vrot.slane %v3430_v6, 2 }
 0x1e1   : > { %3187 = vmatmul.msk.bf16.gmra.mxu0 %vm513_vm1, %v2303_v23  ;;  %v1015_v58 = vpop.f32.mrf.mxu2  ;;  %v2032_v23 = vsel %vm1989_vm4, %v2027_v3, %v2031_v2 }
 0x1e2   : > { %v1055_v34 = vadd.f32 %v1015_v58, %v802_v5  ;;  %v2304_v5 = vrot.slane %v3430_v6, 3 }
 0x1e3   : > { %v803_v45 = vpop.f32.mrf.mxu1  ;;  %3149 = vmatmul.msk.bf16.gmra.mxu3 %vm513_vm1, %v2032_v23  ;;  %v2034_v23 = vrot.slane %v3651_v46, 3 }
 0x1e4   : > { %v1242_v27 = vadd.f32 %v4428_v39, %v1055_v34  ;;  %v804_v51 = vadd.f32 %v803_v45, %v4911_v35  ;;  %v4502_v39 = vsel %vm1554_vm5, %v1572_v42, %v1574_v16  ;;  %v4912_v42 = vld [vmem:[#allocation25_spill] sm:$0xff] }
 0x1e6   : > { %v1503_v21 = vpop.f32.mrf.mxu0  ;;  %v4495_v9 = vadd.f32 %v1501_v26, %v1242_v27  ;;  %v2305_v26 = vsel %vm2288_vm6, %v2302_v48, %v2304_v5  ;;  %v4506_v40 = vpop.f32.mrf.mxu3  ;;  %v2033_v48 = vrot.slane %v3660_v49, 2 }
 0x1e9   : > { %v1017_v58 = vpop.f32.mrf.mxu2 }
 0x1ea   : > { %v1056_v22 = vadd.f32 %v1017_v58, %v804_v51  ;;  %v2035_v58 = vor.u32 %v2034_v23, %v2033_v48 }
 0x1eb   : > { %v806_v57 = vpop.f32.mrf.mxu1 }
 0x1ec   : > { %v1243_v34 = vadd.f32 %v4441_v33, %v1056_v22  ;;  %v807_v45 = vadd.f32 %v806_v57, %v4912_v42  ;;  %v4913_v57 = vld [vmem:[#allocation28_spill] sm:$0xff] }
 0x1ee   : > { %v1506_v29 = vpop.f32.mrf.mxu0  ;;  %3061 = vmatmul.msk.bf16.gmra.mxu1 %vm513_vm1, %v4450_v18  ;;  %3106 = vmatmul.msk.bf16.gmra.mxu2 %vm513_vm1, %v4502_v39  ;;  %v4512_v3 = vadd.f32 %v1503_v21, %v1243_v34  ;;  %v4519_v18 = vpop.f32.mrf.mxu3  ;;  %v3431_v21 = vld [vmem:[%s3545_s5 + $0x68] sm:$0xff] }
 0x1ef   : > { %v1576_v34 = vrot.slane %v3431_v21, 2 }
 0x1f1   : > { %3188 = vmatmul.msk.bf16.gmra.mxu0 %vm513_vm1, %v2305_v26  ;;  %v1020_v27 = vpop.f32.mrf.mxu2  ;;  %v2036_v26 = vsel %vm1989_vm4, %v2031_v2, %v2035_v58 }
 0x1f2   : > { %v1057_v33 = vadd.f32 %v1020_v27, %v807_v45  ;;  %v2306_v45 = vrot.slane %v3431_v21, 3  ;;  %v2038_v21 = vrot.slane %v3663_v50, 3 }
 0x1f3   : > { %v808_v6 = vpop.f32.mrf.mxu1  ;;  %3150 = vmatmul.msk.bf16.gmra.mxu3 %vm513_vm1, %v2036_v26 }
 0x1f4   : > { %v1244_v35 = vadd.f32 %v4454_v41, %v1057_v33  ;;  %v809_v42 = vadd.f32 %v808_v6, %v4913_v57  ;;  %v4528_v41 = vsel %vm1554_vm5, %v1574_v16, %v1576_v34  ;;  %v2307_v48 = vsel %vm2288_vm6, %v2304_v5, %v2306_v45 }
 0x1f6   : > { %v1508_v51 = vpop.f32.mrf.mxu0  ;;  %v4521_v22 = vadd.f32 %v1506_v29, %v1244_v35  ;;  %v4532_v23 = vpop.f32.mrf.mxu3  ;;  %v2037_v35 = vrot.slane %v3710_v25, 2  ;;  %v4556_v25 = vld [vmem:[%s4810_s2] ss:$0 sm:$0xff] }
 0x1f8   : > { %v2039_v57 = vor.u32 %v2038_v21, %v2037_v35 }
 0x1f9   : > { %v1022_v27 = vpop.f32.mrf.mxu2 }
 0x1fa   : > { %v1058_v46 = vadd.f32 %v1022_v27, %v809_v42  ;;  %v3432_v42 = vld [vmem:[%s3545_s5 + $0x70] sm:$0xff] }
 0x1fb   : > { %v1674_v49 = vpop.f32.mrf.mxu1  ;;  %v1578_v27 = vrot.slane %v3432_v42, 2 }
 0x1fc   : > { %v1245_v33 = vadd.f32 %v4467_v47, %v1058_v46  ;;  %v1759_v16 = vadd.f32 %v1674_v49, %v4083_v8  ;;  %v2040_v8 = vsel %vm1989_vm4, %v2035_v58, %v2039_v57  ;;  %v2308_v49 = vrot.slane %v3432_v42, 3 }
 0x1fe   : > { %v2408_v29 = vpop.f32.mrf.mxu0  ;;  %3062 = vmatmul.msk.bf16.gmra.mxu1 %vm513_vm1, %v4476_v15  ;;  %3107 = vmatmul.msk.bf16.gmra.mxu2 %vm513_vm1, %v4528_v41  ;;  %v4538_v2 = vadd.f32 %v1508_v51, %v1245_v33  ;;  %v4545_v26 = vpop.f32.mrf.mxu3 }
 0x201   : > { %3189 = vmatmul.msk.bf16.gmra.mxu0 %vm513_vm1, %v2307_v48  ;;  %v1861_v47 = vpop.f32.mrf.mxu2 }
 0x202   : > { %v1946_v6 = vadd.f32 %v1861_v47, %v1759_v16  ;;  %v4559_v16 = vsel %vm1554_vm5, %v1576_v34, %v1578_v27  ;;  %v2309_v47 = vsel %vm2288_vm6, %v2306_v45, %v2308_v49 }
 0x203   : > { %v1676_v5 = vpop.f32.mrf.mxu1  ;;  %3151 = vmatmul.msk.bf16.gmra.mxu3 %vm513_vm1, %v2040_v8  ;;  %v4915_v8 = vshll.u32 %v3695_v17, 16 }
 0x204   : > { %v2245_v51 = vadd.f32 %v4480_v10, %v1946_v6  ;;  %v1760_v46 = vadd.f32 %v1676_v5, %v4095_v13 }
 0x206   : > { %v2410_v15 = vpop.f32.mrf.mxu0  ;;  %v2493_v50 = vadd.f32 %v2408_v29, %v2245_v51  ;;  %v4563_v6 = vpop.f32.mrf.mxu3 }
 0x208   : > { %v2531_v29 = vadd.f32 %v4556_v25, %v2493_v50 }
 0x209   : > { %v1863_v33 = vpop.f32.mrf.mxu2 }
 0x20a   : > { %v1947_v48 = vadd.f32 %v1863_v33, %v1760_v46  ;;  %v2565_v35 = vmax.f32 %v2531_v29, 0.0  ;;  %v2042_v46 = vrot.slane %v4915_v8, 3 }
 0x20b   : > { %v1679_v10 = vpop.f32.mrf.mxu1 }
 0x20c   : > { %v2246_v58 = vadd.f32 %v4493_v0, %v1947_v48  ;;  %v1761_v34 = vadd.f32 %v1679_v10, %v4107_v7 }
 0x20e   : > { %v2413_v13 = vpop.f32.mrf.mxu0  ;;  %v2494_v5 = vadd.f32 %v2410_v15, %v2246_v58  ;;  %3063 = vmatmul.msk.bf16.gmra.mxu1 %vm513_vm1, %v4502_v39  ;;  %3108 = vmatmul.msk.bf16.gmra.mxu2 %vm513_vm1, %v4559_v16  ;;  %v4914_v15 = vshrl.u32 %v3695_v17, 16  ;;  %v4582_v7 = vpop.f32.mrf.mxu3  ;;  %v3433_v58 = vld [vmem:[%s3545_s5 + $0x78] sm:$0xff] }
 0x210   : > { %v2532_v0 = vadd.f32 %v4556_v25, %v2494_v5  ;;  %v2041_v42 = vrot.slane %v4914_v15, 2 }
 0x211   : > { %3190 = vmatmul.msk.bf16.gmra.mxu0 %vm513_vm1, %v2309_v47  ;;  %v1866_v45 = vpop.f32.mrf.mxu2  ;;  %v1580_v47 = vrot.slane %v3433_v58, 2 }
 0x212   : > { %v2566_v21 = vmax.f32 %v2532_v0, 0.0  ;;  %v1948_v51 = vadd.f32 %v1866_v45, %v1761_v34  ;;  %v2043_v48 = vor.u32 %v2042_v46, %v2041_v42  ;;  %v2310_v0 = vrot.slane %v3433_v58, 3 }
 0x213   : > { %v1681_v39 = vpop.f32.mrf.mxu1 }
 0x214   : > { %v3266_v33 = vpack.c.bf16 %v2566_v21, %v2565_v35  ;;  %v2247_v10 = vadd.f32 %v4506_v40, %v1948_v51  ;;  %v2044_v29 = vsel %vm1989_vm4, %v2039_v57, %v2043_v48  ;;  %v1762_v5 = vadd.f32 %v1681_v39, %v4119_v44 }
 0x215   : > { %3152 = vmatmul.msk.bf16.gmra.mxu3 %vm513_vm1, %v2044_v29  ;;  %v4591_v21 = vsel %vm1554_vm5, %v1578_v27, %v1580_v47  ;;  %v2311_v40 = vsel %vm2288_vm6, %v2308_v49, %v2310_v0 }
 0x216   : > { %v2415_v50 = vpop.f32.mrf.mxu0  ;;  %3267 = vst [vmem:[%s4576_s28] sm:$0xff] %v3266_v33   ;;  %v2495_v17 = vadd.f32 %v2413_v13, %v2247_v10  ;;  %v4595_v51 = vpop.f32.mrf.mxu3  ;;  %v4916_v33 = vshrl.u32 %v4187_v37, 16 }
 0x218   : > { %v2533_v57 = vadd.f32 %v4556_v25, %v2495_v17 }
 0x219   : > { %v1868_v34 = vpop.f32.mrf.mxu2 }
 0x21a   : > { %v1949_v45 = vadd.f32 %v1868_v34, %v1762_v5  ;;  %v2567_v49 = vmax.f32 %v2533_v57, 0.0 }
 0x21b   : > { %v1684_v35 = vpop.f32.mrf.mxu1 }
 0x21c   : > { %v2248_v15 = vadd.f32 %v4519_v18, %v1949_v45  ;;  %v1763_v18 = vadd.f32 %v1684_v35, %v4134_v59  ;;  %v1582_v59 = vrot.slane %v4295_v24, 2 }
 0x21e   : > { %v2418_v42 = vpop.f32.mrf.mxu0  ;;  %v2496_v44 = vadd.f32 %v2415_v50, %v2248_v15  ;;  %3064 = vmatmul.msk.bf16.gmra.mxu1 %vm513_vm1, %v4528_v41  ;;  %3109 = vmatmul.msk.bf16.gmra.mxu2 %vm513_vm1, %v4591_v21  ;;  %v2045_v50 = vrot.slane %v4916_v33, 2  ;;  %v4917_v41 = vshll.u32 %v4187_v37, 16  ;;  %v4609_v5 = vpop.f32.mrf.mxu3  ;;  %v2312_v15 = vrot.slane %v4295_v24, 3 }
 0x220   : > { %v2534_v27 = vadd.f32 %v4556_v25, %v2496_v44  ;;  %v2046_v10 = vrot.slane %v4917_v41, 3 }
 0x221   : > { %3191 = vmatmul.msk.bf16.gmra.mxu0 %vm513_vm1, %v2311_v40  ;;  %v1871_v13 = vpop.f32.mrf.mxu2 }
 0x222   : > { %v2568_v39 = vmax.f32 %v2534_v27, 0.0  ;;  %v1950_v8 = vadd.f32 %v1871_v13, %v1763_v18  ;;  %v2047_v34 = vor.u32 %v2046_v10, %v2045_v50  ;;  %v4619_v27 = vsel %vm1554_vm5, %v1580_v47, %v1582_v59 }
 0x223   : > { %v1686_v46 = vpop.f32.mrf.mxu1  ;;  %v2313_v13 = vsel %vm2288_vm6, %v2310_v0, %v2312_v15  ;;  %v2050_v0 = vshrl.u32 %v4215_v52, 16 }
 0x224   : > { %v3271_v58 = vpack.c.bf16 %v2568_v39, %v2567_v49  ;;  %v2249_v17 = vadd.f32 %v4532_v23, %v1950_v8  ;;  %v2048_v45 = vsel %vm1989_vm4, %v2043_v48, %v2047_v34  ;;  %v1764_v35 = vadd.f32 %v1686_v46, %v4155_v55 }
 0x225   : > { %3153 = vmatmul.msk.bf16.gmra.mxu3 %vm513_vm1, %v2048_v45  ;;  %v2052_v33 = vrot.slane %v2050_v0, 2 }
 0x226   : > { %v2420_v29 = vpop.f32.mrf.mxu0  ;;  %3350 = vst [vmem:[%s4576_s28 + $0x8] sm:$0xff] %v3271_v58   ;;  %v2497_v37 = vadd.f32 %v2418_v42, %v2249_v17  ;;  %v4623_v49 = vpop.f32.mrf.mxu3  ;;  %v2053_v42 = vshll.u32 %v4215_v52, 16  ;;  %v3434_v17 = vld [vmem:[%s3545_s5 + $0x88] sm:$0xff]  }
 0x227   : > { %v1584_v45 = vrot.slane %v3434_v17, 2 }
 0x228   : > { %v2535_v55 = vadd.f32 %v4556_v25, %v2497_v37  ;;  %v2055_v50 = vrot.slane %v2053_v42, 3 }
 0x229   : > { %v1873_v40 = vpop.f32.mrf.mxu2 }
 0x22a   : > { %v1951_v57 = vadd.f32 %v1873_v40, %v1764_v35  ;;  %v2569_v39 = vmax.f32 %v2535_v55, 0.0  ;;  %v2314_v40 = vrot.slane %v3434_v17, 3 }
 0x22b   : > { %v1689_v44 = vpop.f32.mrf.mxu1 }
 0x22c   : > { %v2250_v18 = vadd.f32 %v4545_v26, %v1951_v57  ;;  %v1765_v26 = vadd.f32 %v1689_v44, %v4170_v28 }
 0x22e   : > { %v2423_v23 = vpop.f32.mrf.mxu0  ;;  %v2498_v48 = vadd.f32 %v2420_v29, %v2250_v18  ;;  %3065 = vmatmul.msk.bf16.gmra.mxu1 %vm513_vm1, %v4559_v16  ;;  %3110 = vmatmul.msk.bf16.gmra.mxu2 %vm513_vm1, %v4619_v27  ;;  %v4635_v58 = vpop.f32.mrf.mxu3  ;;  %v2056_v29 = vor.u32 %v2055_v50, %v2052_v33 }
 0x230   : > { %v2536_v24 = vadd.f32 %v4556_v25, %v2498_v48  ;;  %v2057_v35 = vsel %vm1989_vm4, %v2047_v34, %v2056_v29  ;;  %v2315_v48 = vsel %vm2288_vm6, %v2312_v15, %v2314_v40 }
 0x231   : > { %3192 = vmatmul.msk.bf16.gmra.mxu0 %vm513_vm1, %v2313_v13  ;;  %v1876_v47 = vpop.f32.mrf.mxu2  ;;  %v4644_v13 = vsel %vm1554_vm5, %v1582_v59, %v1584_v45  ;;  %v4657_v59 = vld [vmem:[%s3545_s5 + $0xa0] sm:$0xff] }
 0x232   : > { %v2570_v8 = vmax.f32 %v2536_v24, 0.0  ;;  %v1952_v46 = vadd.f32 %v1876_v47, %v1765_v26  ;;  %v2059_v26 = vshrl.u32 %v4657_v59, 16  ;;  %v2062_v47 = vshll.u32 %v4657_v59, 16 }
 0x233   : > { %v1691_v16 = vpop.f32.mrf.mxu1 }
 0x234   : > { %v3276_v41 = vpack.c.bf16 %v2570_v8, %v2569_v39  ;;  %v2251_v28 = vadd.f32 %v4563_v6, %v1952_v46  ;;  %v1766_v52 = vadd.f32 %v1691_v16, %v4182_v56  ;;  %v2061_v8 = vrot.slane %v2059_v26, 2 }
 0x235   : > { %3154 = vmatmul.msk.bf16.gmra.mxu3 %vm513_vm1, %v2057_v35  ;;  %v2064_v46 = vrot.slane %v2062_v47, 3 }
 0x236   : > { %v2425_v10 = vpop.f32.mrf.mxu0  ;;  %3351 = vst [vmem:[%s4576_s28 + $0x10] sm:$0xff] %v3276_v41   ;;  %v2499_v57 = vadd.f32 %v2423_v23, %v2251_v28  ;;  %v4648_v24 = vpop.f32.mrf.mxu3 }
 0x237   : > { %v2065_v41 = vor.u32 %v2064_v46, %v2061_v8 }
 0x238   : > { %v2537_v56 = vadd.f32 %v4556_v25, %v2499_v57 }
 0x239   : > { %v1878_v37 = vpop.f32.mrf.mxu2  ;;  %v2066_v17 = vsel %vm1989_vm4, %v2056_v29, %v2065_v41 }
 0x23a   : > { %v1953_v44 = vadd.f32 %v1878_v37, %v1766_v52  ;;  %v2571_v0 = vmax.f32 %v2537_v56, 0.0 }
 0x23b   : > { %v1694_v18 = vpop.f32.mrf.mxu1 }
 0x23c   : > { %v2252_v55 = vadd.f32 %v4582_v7, %v1953_v44  ;;  %v1767_v15 = vadd.f32 %v1694_v18, %v4195_v14 }
 0x23e   : > { %v2428_v6 = vpop.f32.mrf.mxu0  ;;  %v2500_v34 = vadd.f32 %v2425_v10, %v2252_v55  ;;  %3066 = vmatmul.msk.bf16.gmra.mxu1 %vm513_vm1, %v4591_v21  ;;  %3111 = vmatmul.msk.bf16.gmra.mxu2 %vm513_vm1, %v4644_v13  ;;  %v4663_v50 = vpop.f32.mrf.mxu3  ;;  %v3435_v10 = vld [vmem:[%s3545_s5 + $0x90] sm:$0xff] }
 0x23f   : > { %v4668_v28 = vrot.slane %v3435_v10, 2  ;;  %v2316_v52 = vrot.slane %v3435_v10, 3 }
 0x240   : > { %v2538_v7 = vadd.f32 %v4556_v25, %v2500_v34  ;;  %v242_v34 = vld [vmem:[%s3545_s5 + $0xa8] sm:$0x7] }
 0x241   : > { %3193 = vmatmul.msk.bf16.gmra.mxu0 %vm513_vm1, %v2315_v48  ;;  %v1881_v23 = vpop.f32.mrf.mxu2  ;;  %v4675_v55 = vsel %vm1554_vm5, %v1584_v45, %v4668_v28  ;;  %v2317_v56 = vsel %vm2288_vm6, %v2314_v40, %v2316_v52 }
 0x242   : > { %v2572_v21 = vmax.f32 %v2538_v7, 0.0  ;;  %v1954_v42 = vadd.f32 %v1881_v23, %v1767_v15 }
 0x243   : > { %v1696_v39 = vpop.f32.mrf.mxu1 }
 0x244   : > { %v3281_v16 = vpack.c.bf16 %v2572_v21, %v2571_v0  ;;  %v2253_v14 = vadd.f32 %v4595_v51, %v1954_v42  ;;  %v1768_v35 = vadd.f32 %v1696_v39, %v4208_v43  ;;  %v1809_v43 = vunpack.c.l.b16 %v242_v34 }
 0x245   : > { %3155 = vmatmul.msk.bf16.gmra.mxu3 %vm513_vm1, %v2066_v17 }
 0x246   : > { %v2430_v33 = vpop.f32.mrf.mxu0  ;;  %3352 = vst [vmem:[%s4576_s28 + $0x18] sm:$0xff] %v3281_v16   ;;  %v2501_v57 = vadd.f32 %v2428_v6, %v2253_v14  ;;  %v4680_v29 = vpop.f32.mrf.mxu3  ;;  %v3436_v14 = vld [vmem:[%s3545_s5 + $0x98] sm:$0xff]  }
 0x247   : > { %v1813_v10 = vrot.slane %v3436_v14, 2 }
 0x248   : > { %v2539_v7 = vadd.f32 %v4556_v25, %v2501_v57 }
 0x249   : > { %v1883_v37 = vpop.f32.mrf.mxu2 }
 0x24a   : > { %v1955_v44 = vadd.f32 %v1883_v37, %v1768_v35  ;;  %v2573_v47 = vmax.f32 %v2539_v7, 0.0  ;;  %v2318_v37 = vrot.slane %v3436_v14, 3 }
 0x24b   : > { %v1699_v18 = vpop.f32.mrf.mxu1 }
 0x24c   : > { %v2254_v51 = vadd.f32 %v4609_v5, %v1955_v44  ;;  %v4688_v5 = vpack.c.b16 %v1809_v43, %v1809_v43  ;;  %v1769_v40 = vadd.f32 %v1699_v18, %v4228_v38  ;;  %v2319_v43 = vsel %vm2288_vm6, %v2316_v52, %v2318_v37 }
 0x24e   : > { %v2433_v48 = vpop.f32.mrf.mxu0  ;;  %v2502_v15 = vadd.f32 %v2430_v33, %v2254_v51  ;;  %3067 = vmatmul.msk.bf16.gmra.mxu1 %vm513_vm1, %v4619_v27  ;;  %3112 = vmatmul.msk.bf16.gmra.mxu2 %vm513_vm1, %v4675_v55  ;;  %v2068_v23 = vshrl.u32 %v4688_v5, 16  ;;  %v2071_v26 = vshll.u32 %v4688_v5, 16  ;;  %v4697_v38 = vpop.f32.mrf.mxu3 }
 0x250   : > { %v2540_v45 = vadd.f32 %v4556_v25, %v2502_v15  ;;  %v2070_v42 = vrot.slane %v2068_v23, 2  ;;  %v2073_v39 = vrot.slane %v2071_v26, 3 }
 0x251   : > { %3194 = vmatmul.msk.bf16.gmra.mxu0 %vm513_vm1, %v2317_v56  ;;  %v1886_v6 = vpop.f32.mrf.mxu2  ;;  %v1814_v56 = vsel %vm1554_vm5, %v4668_v28, %v1813_v10 }
 0x252   : > { %v2574_v27 = vmax.f32 %v2540_v45, 0.0  ;;  %v1956_v0 = vadd.f32 %v1886_v6, %v1769_v40  ;;  %v2074_v16 = vor.u32 %v2073_v39, %v2070_v42 }
 0x253   : > { %v1701_v21 = vpop.f32.mrf.mxu1 }
 0x254   : > { %v3286_v8 = vpack.c.bf16 %v2574_v27, %v2573_v47  ;;  %v2255_v33 = vadd.f32 %v4623_v49, %v1956_v0  ;;  %v2075_v17 = vsel %vm1989_vm4, %v2065_v41, %v2074_v16  ;;  %v1770_v35 = vadd.f32 %v1701_v21, %v4241_v54 }
 0x255   : > { %3156 = vmatmul.msk.bf16.gmra.mxu3 %vm513_vm1, %v2075_v17  ;;  %v1815_v47 = vrot.slane %v4657_v59, 2  ;;  %v2320_v0 = vrot.slane %v4657_v59, 3 }
 0x256   : > { %v2435_v46 = vpop.f32.mrf.mxu0  ;;  %3353 = vst [vmem:[%s4576_s28 + $0x20] sm:$0xff] %v3286_v8   ;;  %v2503_v44 = vadd.f32 %v2433_v48, %v2255_v33 }
 0x257   : > { %v1816_v8 = vsel %vm1554_vm5, %v1813_v10, %v1815_v47  ;;  %v2321_v14 = vsel %vm2288_vm6, %v2318_v37, %v2320_v0 }
 0x258   : > { %v2541_v41 = vadd.f32 %v4556_v25, %v2503_v44 }
 0x259   : > { %v1888_v57 = vpop.f32.mrf.mxu2 }
 0x25a   : > { %v1957_v18 = vadd.f32 %v1888_v57, %v1770_v35  ;;  %v2575_v45 = vmax.f32 %v2541_v41, 0.0 }
 0x25b   : > { %v1704_v51 = vpop.f32.mrf.mxu1 }
 0x25c   : > { %v2256_v49 = vadd.f32 %v4635_v58, %v1957_v18  ;;  %v1771_v48 = vadd.f32 %v1704_v51, %v4258_v53  ;;  %v4713_v58 = vpop.f32.mrf.mxu3 }
 0x25e   : > { %v2438_v34 = vpop.f32.mrf.mxu0  ;;  %v2504_v7 = vadd.f32 %v2435_v46, %v2256_v49  ;;  %3068 = vmatmul.msk.bf16.gmra.mxu1 %vm513_vm1, %v4644_v13  ;;  %3113 = vmatmul.msk.bf16.gmra.mxu2 %vm513_vm1, %v1814_v56  ;;  %v1817_v49 = vrot.slane %v4688_v5, 2 }
 0x260   : > { %v2542_v54 = vadd.f32 %v4556_v25, %v2504_v7 }
 0x261   : > { %3195 = vmatmul.msk.bf16.gmra.mxu0 %vm513_vm1, %v2319_v43  ;;  %v1891_v15 = vpop.f32.mrf.mxu2  ;;  %v2322_v43 = vrot.slane %v4688_v5, 3 }
 0x262   : > { %v2576_v52 = vmax.f32 %v2542_v54, 0.0  ;;  %v1958_v40 = vadd.f32 %v1891_v15, %v1771_v48  ;;  %v1818_v15 = vsel %vm1554_vm5, %v1815_v47, %v1817_v49 }
 0x263   : > { %v1706_v6 = vpop.f32.mrf.mxu1 }
 0x264   : > { %v3291_v23 = vpack.c.bf16 %v2576_v52, %v2575_v45  ;;  %v2257_v13 = vadd.f32 %v4648_v24, %v1958_v40  ;;  %v1772_v27 = vadd.f32 %v1706_v6, %v4271_v63  ;;  %v2202_v46 = vpop.f32.mrf.mxu3 }
 0x266   : > { %v2440_v26 = vpop.f32.mrf.mxu0  ;;  %3354 = vst [vmem:[%s4576_s28 + $0x28] sm:$0xff] %v3291_v23   ;;  %v2505_v53 = vadd.f32 %v2438_v34, %v2257_v13 }
 0x268   : > { %v2543_v24 = vadd.f32 %v4556_v25, %v2505_v53 }
 0x269   : > { %v1893_v21 = vpop.f32.mrf.mxu2 }
 0x26a   : > { %v1959_v42 = vadd.f32 %v1893_v21, %v1772_v27 }
 0x26b   : > { %v1709_v39 = vpop.f32.mrf.mxu1 }
 0x26c   : > { %v2258_v16 = vadd.f32 %v4663_v50, %v1959_v42  ;;  %v1773_v59 = vadd.f32 %v1709_v39, %v4282_v62  ;;  %v2577_v50 = vmax.f32 %v2543_v24, 0.0  ;;  %v2205_v51 = vpop.f32.mrf.mxu3 }
 0x26e   : > { %v2443_v33 = vpop.f32.mrf.mxu0  ;;  %v2506_v17 = vadd.f32 %v2440_v26, %v2258_v16  ;;  %3069 = vmatmul.msk.bf16.gmra.mxu1 %vm513_vm1, %v4675_v55  ;;  %3114 = vmatmul.msk.bf16.gmra.mxu2 %vm513_vm1, %v1816_v8  ;;  %v1588_v55 = vrot.slane %v4218_v20, 2  ;;  %v2323_v20 = vsel %vm2288_vm6, %v2320_v0, %v2322_v43 }
 0x270   : > { %v2544_v63 = vadd.f32 %v4556_v25, %v2506_v17  ;;  %v1589_v48 = vsel %vm1554_vm5, %v4668_v28, %v1588_v55 }
 0x271   : > { %3196 = vmatmul.msk.bf16.gmra.mxu0 %vm513_vm1, %v2321_v14  ;;  %v1896_v10 = vpop.f32.mrf.mxu2 }
 0x272   : > { %v2578_v35 = vmax.f32 %v2544_v63, 0.0  ;;  %v1960_v57 = vadd.f32 %v1896_v10, %v1773_v59 }
 0x273   : > { %v1711_v37 = vpop.f32.mrf.mxu1 }
 0x274   : > { %v3296_v44 = vpack.c.bf16 %v2578_v35, %v2577_v50  ;;  %v2259_v56 = vadd.f32 %v4680_v29, %v1960_v57  ;;  %v1774_v34 = vadd.f32 %v1711_v37, %v4300_v4  ;;  %v2207_v5 = vpop.f32.mrf.mxu3 }
 0x276   : > { %v2445_v18 = vpop.f32.mrf.mxu0  ;;  %3355 = vst [vmem:[%s4576_s28 + $0x30] sm:$0xff] %v3296_v44   ;;  %v2507_v41 = vadd.f32 %v2443_v33, %v2259_v56 }
 0x278   : > { %v2545_v52 = vadd.f32 %v4556_v25, %v2507_v41 }
 0x279   : > { %v1898_v62 = vpop.f32.mrf.mxu2 }
 0x27a   : > { %v1961_v7 = vadd.f32 %v1898_v62, %v1774_v34 }
 0x27b   : > { %v1714_v54 = vpop.f32.mrf.mxu1 }
 0x27c   : > { %v2260_v45 = vadd.f32 %v4697_v38, %v1961_v7  ;;  %v1775_v40 = vadd.f32 %v1714_v54, %v4310_v12  ;;  %v2579_v38 = vmax.f32 %v2545_v52, 0.0  ;;  %v2210_v42 = vpop.f32.mrf.mxu3 }
 0x27e   : > { %v2448_v29 = vpop.f32.mrf.mxu0  ;;  %v2508_v4 = vadd.f32 %v2445_v18, %v2260_v45  ;;  %3070 = vmatmul.msk.bf16.gmra.mxu1 %vm513_vm1, %v1589_v48  ;;  %3115 = vmatmul.msk.bf16.gmra.mxu2 %vm513_vm1, %v1818_v15 }
 0x280   : > { %v2546_v28 = vadd.f32 %v4556_v25, %v2508_v4 }
 0x281   : > { %3197 = vmatmul.msk.bf16.gmra.mxu0 %vm513_vm1, %v2323_v20  ;;  %v1901_v6 = vpop.f32.mrf.mxu2 }
 0x282   : > { %v2580_v23 = vmax.f32 %v2546_v28, 0.0  ;;  %v1962_v26 = vadd.f32 %v1901_v6, %v1775_v40 }
 0x283   : > { %v1716_v13 = vpop.f32.mrf.mxu1 }
 0x284   : > { %v3301_v47 = vpack.c.bf16 %v2580_v23, %v2579_v38  ;;  %v2261_v0 = vadd.f32 %v4713_v58, %v1962_v26  ;;  %v1776_v21 = vadd.f32 %v1716_v13, %v4330_v36  ;;  %v2212_v35 = vpop.f32.mrf.mxu3 }
 0x286   : > { %v2450_v27 = vpop.f32.mrf.mxu0  ;;  %3356 = vst [vmem:[%s4576_s28 + $0x38] sm:$0xff] %v3301_v47   ;;  %v2509_v39 = vadd.f32 %v2448_v29, %v2261_v0  ;;  %v4919_v0 = vld [vmem:[#allocation2_spill] sm:$0xff] }
 0x288   : > { %v2547_v14 = vadd.f32 %v4556_v25, %v2509_v39 }
 0x289   : > { %v1903_v53 = vpop.f32.mrf.mxu2 }
 0x28a   : > { %v1963_v8 = vadd.f32 %v1903_v53, %v1776_v21  ;;  %v2581_v10 = vmax.f32 %v2547_v14, 0.0 }
 0x28b   : > { %v1719_v16 = vpop.f32.mrf.mxu1 }
 0x28c   : > { %v2262_v33 = vadd.f32 %v2202_v46, %v1963_v8  ;;  %v1777_v63 = vadd.f32 %v1719_v16, %v4339_v61  ;;  %v2215_v61 = vpop.f32.mrf.mxu3 }
 0x28e   : > { %v2453_v12 = vpop.f32.mrf.mxu0  ;;  %v2510_v24 = vadd.f32 %v2450_v27, %v2262_v33 }
 0x290   : > { %v2548_v17 = vadd.f32 %v4556_v25, %v2510_v24 }
 0x291   : > { %v1906_v59 = vpop.f32.mrf.mxu2 }
 0x292   : > { %v2582_v58 = vmax.f32 %v2548_v17, 0.0  ;;  %v1964_v50 = vadd.f32 %v1906_v59, %v1777_v63  ;;  %v4920_v17 = vld [vmem:[#allocation13_spill] sm:$0xff] }
 0x293   : > { %v1721_v36 = vpop.f32.mrf.mxu1 }
 0x294   : > { %v3306_v57 = vpack.c.bf16 %v2582_v58, %v2581_v10  ;;  %v2263_v44 = vadd.f32 %v2205_v51, %v1964_v50  ;;  %v1778_v46 = vadd.f32 %v1721_v36, %v4356_v11  ;;  %v2217_v4 = vpop.f32.mrf.mxu3 }
 0x296   : > { %v2455_v37 = vpop.f32.mrf.mxu0  ;;  %3357 = vst [vmem:[%s4576_s28 + $0x40] sm:$0xff] %v3306_v57   ;;  %v2511_v56 = vadd.f32 %v2453_v12, %v2263_v44 }
 0x298   : > { %v2549_v62 = vadd.f32 %v4556_v25, %v2511_v56 }
 0x299   : > { %v1908_v18 = vpop.f32.mrf.mxu2 }
 0x29a   : > { %v1965_v55 = vadd.f32 %v1908_v18, %v1778_v46  ;;  %v2583_v15 = vmax.f32 %v2549_v62, 0.0  ;;  %v4921_v18 = vld [vmem:[#allocation27_spill] sm:$0xff] }
 0x29b   : > { %v1724_v49 = vpop.f32.mrf.mxu1 }
 0x29c   : > { %v2264_v34 = vadd.f32 %v2207_v5, %v1965_v55  ;;  %v1779_v54 = vadd.f32 %v1724_v49, %v4365_v19  ;;  %v4918_v5 = vld [vmem:[#allocation6_spill] sm:$0xff]  ;;  %v2220_v39 = vpop.f32.mrf.mxu3 }
 0x29e   : > { %v2458_v43 = vpop.f32.mrf.mxu0  ;;  %v2512_v41 = vadd.f32 %v2455_v37, %v2264_v34 }
 0x2a0   : > { %v2550_v7 = vadd.f32 %v4556_v25, %v2512_v41 }
 0x2a1   : > { %v1911_v48 = vpop.f32.mrf.mxu2 }
 0x2a2   : > { %v2584_v51 = vmax.f32 %v2550_v7, 0.0  ;;  %v1966_v45 = vadd.f32 %v1911_v48, %v1779_v54 }
 0x2a3   : > { %v1726_v11 = vpop.f32.mrf.mxu1 }
 0x2a4   : > { %v3311_v29 = vpack.c.bf16 %v2584_v51, %v2583_v15  ;;  %v2265_v52 = vadd.f32 %v2210_v42, %v1966_v45  ;;  %v1780_v28 = vadd.f32 %v1726_v11, %v4918_v5  ;;  %v2222_v36 = vpop.f32.mrf.mxu3 }
 0x2a6   : > { %v2460_v20 = vpop.f32.mrf.mxu0  ;;  %3358 = vst [vmem:[%s4576_s28 + $0x48] sm:$0xff] %v3311_v29   ;;  %v2513_v6 = vadd.f32 %v2458_v43, %v2265_v52 }
 0x2a8   : > { %v2551_v19 = vadd.f32 %v4556_v25, %v2513_v6 }
 0x2a9   : > { %v1913_v40 = vpop.f32.mrf.mxu2 }
 0x2aa   : > { %v1967_v38 = vadd.f32 %v1913_v40, %v1780_v28  ;;  %v2585_v42 = vmax.f32 %v2551_v19, 0.0 }
 0x2ab   : > { %v1729_v23 = vpop.f32.mrf.mxu1 }
 0x2ac   : > { %v2266_v26 = vadd.f32 %v2212_v35, %v1967_v38  ;;  %v1781_v21 = vadd.f32 %v1729_v23, %v4919_v0  ;;  %v2225_v7 = vpop.f32.mrf.mxu3 }
 0x2ae   : > { %v2463_v13 = vpop.f32.mrf.mxu0  ;;  %v2514_v47 = vadd.f32 %v2460_v20, %v2266_v26 }
 0x2b0   : > { %v2552_v27 = vadd.f32 %v4556_v25, %v2514_v47 }
 0x2b1   : > { %v1916_v53 = vpop.f32.mrf.mxu2 }
 0x2b2   : > { %v2586_v8 = vmax.f32 %v2552_v27, 0.0  ;;  %v1968_v16 = vadd.f32 %v1916_v53, %v1781_v21 }
 0x2b3   : > { %v1731_v33 = vpop.f32.mrf.mxu1 }
 0x2b4   : > { %v3316_v12 = vpack.c.bf16 %v2586_v8, %v2585_v42  ;;  %v2267_v24 = vadd.f32 %v2215_v61, %v1968_v16  ;;  %v1782_v63 = vadd.f32 %v1731_v33, %v4920_v17  ;;  %v2227_v5 = vpop.f32.mrf.mxu3 }
 0x2b6   : > { %v2465_v14 = vpop.f32.mrf.mxu0  ;;  %3359 = vst [vmem:[%s4576_s28 + $0x50] sm:$0xff] %v3316_v12   ;;  %v2515_v10 = vadd.f32 %v2463_v13, %v2267_v24 }
 0x2b8   : > { %v2553_v37 = vadd.f32 %v4556_v25, %v2515_v10 }
 0x2b9   : > { %v1918_v59 = vpop.f32.mrf.mxu2 }
 0x2ba   : > { %v1969_v58 = vadd.f32 %v1918_v59, %v1782_v63  ;;  %v2587_v49 = vmax.f32 %v2553_v37, 0.0 }
 0x2bb   : > { %v1734_v50 = vpop.f32.mrf.mxu1 }
 0x2bc   : > { %v2268_v35 = vadd.f32 %v2217_v4, %v1969_v58  ;;  %v1783_v56 = vadd.f32 %v1734_v50, %v4921_v18  ;;  %v2230_v21 = vpop.f32.mrf.mxu3 }
 0x2be   : > { %v2468_v57 = vpop.f32.mrf.mxu0  ;;  %v2516_v44 = vadd.f32 %v2465_v14, %v2268_v35 }
 0x2c0   : > { %v2554_v46 = vadd.f32 %v4556_v25, %v2516_v44 }
 0x2c1   : > { %v1921_v55 = vpop.f32.mrf.mxu2 }
 0x2c2   : > { %v2588_v34 = vmax.f32 %v2554_v46, 0.0  ;;  %v1970_v43 = vadd.f32 %v1921_v55, %v1783_v56 }
 0x2c3   : > { %v1736_v61 = vpop.f32.mrf.mxu1 }
 0x2c4   : > { %v3321_v62 = vpack.c.bf16 %v2588_v34, %v2587_v49  ;;  %v2269_v54 = vadd.f32 %v2220_v39, %v1970_v43  ;;  %v1784_v48 = vadd.f32 %v1736_v61, %v4434_v30  ;;  %v2232_v10 = vpop.f32.mrf.mxu3 }
 0x2c6   : > { %v2470_v41 = vpop.f32.mrf.mxu0  ;;  %3360 = vst [vmem:[%s4576_s28 + $0x58] sm:$0xff] %v3321_v62   ;;  %v2517_v51 = vadd.f32 %v2468_v57, %v2269_v54 }
 0x2c8   : > { %v2555_v52 = vadd.f32 %v4556_v25, %v2517_v51 }
 0x2c9   : > { %v1923_v15 = vpop.f32.mrf.mxu2 }
 0x2ca   : > { %v1971_v45 = vadd.f32 %v1923_v15, %v1784_v48  ;;  %v2589_v38 = vmax.f32 %v2555_v52, 0.0 }
 0x2cb   : > { %v1739_v11 = vpop.f32.mrf.mxu1 }
 0x2cc   : > { %v2270_v29 = vadd.f32 %v2222_v36, %v1971_v45  ;;  %v1785_v40 = vadd.f32 %v1739_v11, %v4443_v32  ;;  %v2235_v56 = vpop.f32.mrf.mxu3 }
 0x2ce   : > { %v2473_v20 = vpop.f32.mrf.mxu0  ;;  %v2518_v4 = vadd.f32 %v2470_v41, %v2270_v29 }
 0x2d0   : > { %v2556_v28 = vadd.f32 %v4556_v25, %v2518_v4 }
 0x2d1   : > { %v1926_v6 = vpop.f32.mrf.mxu2 }
 0x2d2   : > { %v2590_v23 = vmax.f32 %v2556_v28, 0.0  ;;  %v1972_v26 = vadd.f32 %v1926_v6, %v1785_v40 }
 0x2d3   : > { %v1741_v30 = vpop.f32.mrf.mxu1 }
 0x2d4   : > { %v3326_v13 = vpack.c.bf16 %v2590_v23, %v2589_v38  ;;  %v2271_v47 = vadd.f32 %v2225_v7, %v1972_v26  ;;  %v1786_v27 = vadd.f32 %v1741_v30, %v4460_v60  ;;  %v2237_v15 = vpop.f32.mrf.mxu3 }
 0x2d6   : > { %v2475_v19 = vpop.f32.mrf.mxu0  ;;  %3361 = vst [vmem:[%s4576_s28 + $0x60] sm:$0xff] %v3326_v13   ;;  %v2519_v53 = vadd.f32 %v2473_v20, %v2271_v47 }
 0x2d8   : > { %v2557_v32 = vadd.f32 %v4556_v25, %v2519_v53 }
 0x2d9   : > { %v1928_v0 = vpop.f32.mrf.mxu2 }
 0x2da   : > { %v1973_v39 = vadd.f32 %v1928_v0, %v1786_v27  ;;  %v2591_v17 = vmax.f32 %v2557_v32, 0.0 }
 0x2db   : > { %v1744_v42 = vpop.f32.mrf.mxu1 }
 0x2dc   : > { %v2272_v8 = vadd.f32 %v2227_v5, %v1973_v39  ;;  %v1787_v14 = vadd.f32 %v1744_v42, %v4469_v1  ;;  %v2240_v6 = vpop.f32.mrf.mxu3 }
 0x2de   : > { %v2478_v16 = vpop.f32.mrf.mxu0  ;;  %v2520_v33 = vadd.f32 %v2475_v19, %v2272_v8 }
 0x2e0   : > { %v2558_v12 = vadd.f32 %v4556_v25, %v2520_v33 }
 0x2e1   : > { %v1931_v24 = vpop.f32.mrf.mxu2 }
 0x2e2   : > { %v2592_v63 = vmax.f32 %v2558_v12, 0.0  ;;  %v1974_v59 = vadd.f32 %v1931_v24, %v1787_v14 }
 0x2e3   : > { %v1746_v60 = vpop.f32.mrf.mxu1 }
 0x2e4   : > { %v3331_v58 = vpack.c.bf16 %v2592_v63, %v2591_v17  ;;  %v2273_v36 = vadd.f32 %v2230_v21, %v1974_v59  ;;  %v1788_v35 = vadd.f32 %v1746_v60, %v4486_v31  ;;  %v2242_v39 = vpop.f32.mrf.mxu3 }
 0x2e6   : > { %v2480_v50 = vpop.f32.mrf.mxu0  ;;  %3362 = vst [vmem:[%s4576_s28 + $0x68] sm:$0xff] %v3331_v58   ;;  %v2521_v37 = vadd.f32 %v2478_v16, %v2273_v36 }
 0x2e8   : > { %v2559_v1 = vadd.f32 %v4556_v25, %v2521_v37 }
 0x2e9   : > { %v1933_v57 = vpop.f32.mrf.mxu2 }
 0x2ea   : > { %v1975_v44 = vadd.f32 %v1933_v57, %v1788_v35  ;;  %v2593_v62 = vmax.f32 %v2559_v1, 0.0 }
 0x2eb   : > { %v1749_v46 = vpop.f32.mrf.mxu1 }
 0x2ec   : > { %v2274_v18 = vadd.f32 %v2232_v10, %v1975_v44  ;;  %v1789_v43 = vadd.f32 %v1749_v46, %v4495_v9 }
 0x2ee   : > { %v2522_v55 = vadd.f32 %v2480_v50, %v2274_v18  ;;  %v2483_v49 = vpop.f32.mrf.mxu0 }
 0x2f0   : > { %v2560_v34 = vadd.f32 %v4556_v25, %v2522_v55 }
 0x2f1   : > { %v1936_v61 = vpop.f32.mrf.mxu2 }
 0x2f2   : > { %v2594_v41 = vmax.f32 %v2560_v34, 0.0  ;;  %v1976_v7 = vadd.f32 %v1936_v61, %v1789_v43 }
 0x2f3   : > { %v1751_v31 = vpop.f32.mrf.mxu1 }
 0x2f4   : > { %v3336_v54 = vpack.c.bf16 %v2594_v41, %v2593_v62  ;;  %v2275_v48 = vadd.f32 %v2235_v56, %v1976_v7  ;;  %v1790_v51 = vadd.f32 %v1751_v31, %v4512_v3 }
 0x2f6   : > { %3363 = vst [vmem:[%s4576_s28 + $0x70] sm:$0xff] %v3336_v54   ;;  %v2485_v45 = vpop.f32.mrf.mxu0  ;;  %v2523_v29 = vadd.f32 %v2483_v49, %v2275_v48 }
 0x2f8   : > { %v2561_v9 = vadd.f32 %v4556_v25, %v2523_v29 }
 0x2f9   : > { %v1938_v11 = vpop.f32.mrf.mxu2 }
 0x2fa   : > { %v1977_v20 = vadd.f32 %v1938_v11, %v1790_v51  ;;  %v2595_v23 = vmax.f32 %v2561_v9, 0.0 }
 0x2fb   : > { %v1754_v52 = vpop.f32.mrf.mxu1 }
 0x2fc   : > { %v2276_v4 = vadd.f32 %v2237_v15, %v1977_v20  ;;  %v1791_v40 = vadd.f32 %v1754_v52, %v4521_v22 }
 0x2fe   : > { %v2524_v5 = vadd.f32 %v2485_v45, %v2276_v4  ;;  %v2488_v3 = vpop.f32.mrf.mxu0 }
 0x300   : > { %v2562_v28 = vadd.f32 %v4556_v25, %v2524_v5 }
 0x301   : > { %v1941_v38 = vpop.f32.mrf.mxu2 }
 0x302   : > { %v2596_v26 = vmax.f32 %v2562_v28, 0.0  ;;  %v1978_v30 = vadd.f32 %v1941_v38, %v1791_v40 }
 0x303   : > { %v1756_v19 = vpop.f32.mrf.mxu1 }
 0x304   : > { %v3341_v13 = vpack.c.bf16 %v2596_v26, %v2595_v23  ;;  %v2277_v47 = vadd.f32 %v2240_v6, %v1978_v30  ;;  %v1792_v27 = vadd.f32 %v1756_v19, %v4538_v2 }
 0x306   : > { %3364 = vst [vmem:[%s4576_s28 + $0x78] sm:$0xff] %v3341_v13   ;;  %v2525_v21 = vadd.f32 %v2488_v3, %v2277_v47  ;;  %v2490_v8 = vpop.f32.mrf.mxu0 }
 0x308   : > { %v2563_v22 = vadd.f32 %v4556_v25, %v2525_v21 }
 0x309   : > { %v1943_v0 = vpop.f32.mrf.mxu2 }
 0x30a   : > { %v1979_v53 = vadd.f32 %v1943_v0, %v1792_v27  ;;  %v2597_v33 = vmax.f32 %v2563_v22, 0.0 }
 0x30c   : > { %v2278_v42 = vadd.f32 %v2242_v39, %v1979_v53 }
 0x30e   : > { %v2526_v16 = vadd.f32 %v2490_v8, %v2278_v42 }
 0x310   : > { %v2564_v32 = vadd.f32 %v4556_v25, %v2526_v16 }
 0x312   : > { %v2598_v12 = vmax.f32 %v2564_v32, 0.0 }
 0x314   : > { %v3346_v14 = vpack.c.bf16 %v2598_v12, %v2597_v33 }
 0x316   : > { %3365 = vst [vmem:[%s4576_s28 + $0x80] sm:$0xff] %v3346_v14  }
 0x317 PF: > { %s13_s16 = sadd.s32 1, %s3475_s16   ;;  %s4922_s12 = smov %s3467_s14 }
 0x318   : > { %p10_p7 = scmp.ge.s32.totalorder %s13_s16, 10   ;;  %s4923_s13 = smov %s3471_s15 }
 0x319   : > { %s4924_s14 = smov %s4927_s17  ;;  %s4925_s15 = smov %s4931_s18 }
 0x31a   :  { %12 = sbr.rel (!%p10_p7) target bundleno = 3 (0x3), region = 71 }

// kernel: res_block_up.5
= control target key start
LH: loop header
LB: loop body
LE: loop exit
PB: predicated region body
PF: predicated region fallthrough
CT: control target
= control target key end

     0   :  { %s3675_s15 = smov 0   ;;  %s3677_s16 = smov 0   ;;  %s5006_s0 = inlined_call_operand.vmem [shape: bf16[2,1160,128], index: 0, kind: input, shape index: {}]   ;;  %s5007_s1 = inlined_call_operand.vmem [shape: bf16[9,128,128], index: 1, kind: input, shape index: {}]   ;;  %s5008_s2 = inlined_call_operand.vmem [shape: f32[1,128], index: 2, kind: input, shape index: {}]   ;;  %s5009_s3 = inlined_call_operand.vmem [shape: f32[2,1088,128], index: 3, kind: input, shape index: {}]   ;;  %s5010_s4 = inlined_call_operand.vmem [shape: f32[2,1088,128], index: 4, kind: output, shape index: {}]  }
   0x1   :  { %s3679_s17 = smov 0   ;;  %s3681_s18 = smov 0  }
   0x2   :  { %s3683_s19 = smov 0  }
   0x3 LB: > { %s23_s20 = sadd.s32 1, %s3640_s17  ;;  %s26_s21 = sadd.s32 1, %s3644_s18  ;;  %s3648_s19 = sphi %s3683_s19, %s14_s19   ;;  %s3644_s18 = sphi %s3681_s18, %s5126_s18   ;;  %s3640_s17 = sphi %s3679_s17, %s5125_s17   ;;  %s3636_s16 = sphi %s3677_s16, %s5124_s16   ;;  %s3632_s15 = sphi %s3675_s15, %s5123_s15  }
   0x4   : > { %p24_p0 = scmp.ge.s32.totalorder %s23_s20, 4  ;;  %p2925_p1 = scmp.ge.s32.totalorder %s3648_s19, 1 }
   0x5   : > { %p193_p2 = scmp.lt.s32.totalorder %s3648_s19, 9 }
   0x6   : > { %s5128_s20 = smov (%p24_p0, %s23_s20), 0  ;;  %s5130_s21 = smov (!%p24_p0, %s26_s21), %s3644_s18 }
   0x7   : > { %p194_p3 = pnand %p2925_p1, %p193_p2  ;;  %p28_p4 = scmp.ge.s32.totalorder %s5130_s21, 2 }
   0x9   : > { %s5132_s21 = smov (%p28_p4, %s5130_s21), 0  ;;  %197 = sbr.rel (%p194_p3) target bundleno = 808 (0x328), region = 36 }
   0xe   : > { %v3458_v0 = vld [vmem:[%s5007_s1 + $0x78] sm:$0xff]  ;;  %p232_p5 = scmp.lt.s32.totalorder %s3636_s16, 1  ;;  %s257_s24 = smul.u32 272, %s3632_s15  ;;  %v3457_v1 = vld [vmem:[%s5007_s1 + $0x70] sm:$0xff]  ;;  %v3456_v2 = vld [vmem:[%s5007_s1 + $0x68] sm:$0xff]  ;;  %vm902_vm1 = vcmask 1046528  }
   0xf   : > { %632 = vmatpush.bf16.msra.mxu0 %v3458_v0  ;;  %3525 = vmatpush.bf16.msra.mxu1 %v3458_v0  ;;  %v3455_v3 = vld [vmem:[%s5007_s1 + $0x60] sm:$0xff]  ;;  %v3454_v4 = vld [vmem:[%s5007_s1 + $0x58] sm:$0xff]  ;;  %v3453_v9 = vld [vmem:[%s5007_s1 + $0x50] sm:$0xff]  ;;  %vm426_vm0 = vsmask.f32 7424  ;;  %vm1658_vm3 = vcmask 1045504  }
  0x10   : > { %s5134_s16 = smov (!%p232_p5, %s3636_s16), 1  ;;  %3527 = vmatpush.bf16.msra.mxu3 %v3458_v0  ;;  %3526 = vmatpush.bf16.msra.mxu2 %v3458_v0  ;;  %s258_s28 = sshra.s32 %s257_s24, 3  ;;  %v3452_v17 = vld [vmem:[%s5007_s1 + $0x48] sm:$0xff]  ;;  %v3451_v25 = vld [vmem:[%s5007_s1 + $0x40] sm:$0xff]  ;;  %v3450_v32 = vld [vmem:[%s5007_s1 + $0x38] sm:$0xff]  ;;  %vm2414_vm4 = vcmask 1044480  }
  0x11   : > { %s3549_s27 = smul.u32 580, %s5134_s16  ;;  %s2929_s8 = sshll.u32 %s258_s28, 2  ;;  %v3474_v33 = vld [vmem:[%s5007_s1 + $0xf8] sm:$0xff]  ;;  %v3449_v38 = vld [vmem:[%s5007_s1 + $0x30] sm:$0xff]  ;;  %v3448_v49 = vld [vmem:[%s5007_s1 + $0x28] sm:$0xff] }
  0x12   : > { %v3482_v34 = vld [vmem:[%s5007_s1 + $0x138] sm:$0xff]  ;;  %v3473_v40 = vld [vmem:[%s5007_s1 + $0xf0] sm:$0xff]  ;;  %v3472_v52 = vld [vmem:[%s5007_s1 + $0xe8] sm:$0xff]  ;;  %vm1361_vm2 = vsmask.f32 6400  ;;  %s237_s29 = smul.u32 34, %s3632_s15 }
  0x13   : > { %633 = vmatpush.bf16.msra.mxu0 %v3457_v1  ;;  %3528 = vmatpush.bf16.msra.mxu1 %v3457_v1  ;;  %s236_s7 = scalar_lea.vmem %s5006_s0, %s3549_s27  ;;  %v3481_v41 = vld [vmem:[%s5007_s1 + $0x130] sm:$0xff]  ;;  %v3466_v47 = vld [vmem:[%s5007_s1 + $0xb8] sm:$0xff]  ;;  %v3480_v53 = vld [vmem:[%s5007_s1 + $0x128] sm:$0xff]  ;;  %vm2117_vm5 = vsmask.f32 5376  ;;  %s3550_s15 = smul.u32 136, %s5134_s16 }
  0x14   : > { %3530 = vmatpush.bf16.msra.mxu3 %v3457_v1  ;;  %3529 = vmatpush.bf16.msra.mxu2 %v3457_v1  ;;  %s3726_s11 = scalar_lea.vmem %s236_s7, %s2929_s8  ;;  %v3465_v60 = vld [vmem:[%s5007_s1 + $0xb0] sm:$0xff]  ;;  %v3447_v63 = vld [vmem:[%s5007_s1 + $0x20] sm:$0xff]  ;;  %p240_p6 = scmp.lt.s32.totalorder %s237_s29, 135 }
  0x15   : > { %v3732_v5 = vld [vmem:[%s3726_s11] sm:$0xff]  ;;  %v3735_v6 = vld [vmem:[%s3726_s11 + $0x28] sm:$0xff]  ;;  %v3748_v11 = vld [vmem:[%s3726_s11 + $0x30] sm:$0xff] }
  0x16   : > { %v3738_v7 = vld [vmem:[%s3726_s11 + $0x60] sm:$0xff]  ;;  %v3741_v8 = vld [vmem:[%s3726_s11 + $0x8] sm:$0xff]  ;;  %v430_v10 = vshll.u32 %v3732_v5, 16  ;;  %v3751_v12 = vshll.u32 %v3735_v6, 16  ;;  %v428_v15 = vshrl.u32 %v3732_v5, 16  ;;  %v3766_v20 = vshrl.u32 %v3735_v6, 16 }
  0x17   : > { %634 = vmatpush.bf16.msra.mxu0 %v3456_v2  ;;  %3531 = vmatpush.bf16.msra.mxu1 %v3456_v2  ;;  %v3754_v13 = vld [vmem:[%s3726_s11 + $0x68] sm:$0xff]  ;;  %v3757_v14 = vshll.u32 %v3738_v7, 16  ;;  %v435_v16 = vshll.u32 %v3741_v8, 16  ;;  %v3769_v21 = vshll.u32 %v3748_v11, 16  ;;  %v3773_v23 = vshrl.u32 %v3738_v7, 16  ;;  %v3805_v39 = vld [vmem:[%s3726_s11 + $0x50] sm:$0xff] }
  0x18   : > { %3533 = vmatpush.bf16.msra.mxu3 %v3456_v2  ;;  %3532 = vmatpush.bf16.msra.mxu2 %v3456_v2  ;;  %5032 = vst [vmem:[#allocation2_spill] sm:$0xff] %v3751_v12  ;;  %v432_v18 = vrot.slane %v430_v10, 1  ;;  %v469_v19 = vrot.slane %v3751_v12, 1  ;;  %v3776_v24 = vshll.u32 %v3754_v13, 16  ;;  %v3814_v42 = vld [vmem:[%s3726_s11 + $0x58] sm:$0xff]  ;;  %v3817_v43 = vshll.u32 %v3805_v39, 16 }
  0x19   : > { %5033 = vst [vmem:[#allocation3_spill] sm:$0xff] %v3757_v14  ;;  %v525_v22 = vrot.slane %v3757_v14, 1  ;;  %v437_v27 = vrot.slane %v435_v16, 1  ;;  %v477_v29 = vrot.slane %v3769_v21, 1  ;;  %v3820_v44 = vld [vmem:[%s3726_s11 + $0x10] sm:$0xff]  ;;  %v3823_v45 = vld [vmem:[%s3726_s11 + $0x38] sm:$0xff] }
  0x1a   : > { %5034 = vst [vmem:[#allocation4_spill] sm:$0xff] %v3766_v20  ;;  %v433_v26 = vor.u32 %v432_v18, %v428_v15  ;;  %v473_v28 = vor.u32 %v3766_v20, %v469_v19  ;;  %v533_v31 = vrot.slane %v3776_v24, 1  ;;  %v3826_v46 = vshrl.u32 %v3805_v39, 16  ;;  %v3832_v48 = vld [vmem:[%s3726_s11 + $0x70] sm:$0xff]  ;;  %v3471_v1 = vld [vmem:[%s5007_s1 + $0xe0] sm:$0xff]  ;;  %v3464_v15 = vld [vmem:[%s5007_s1 + $0xa8] sm:$0xff] }
  0x1b   : > { %635 = vmatpush.bf16.msra.mxu0 %v3455_v3  ;;  %3534 = vmatpush.bf16.msra.mxu1 %v3455_v3  ;;  %5035 = vst [vmem:[#allocation5_spill] sm:$0xff] %v3769_v21  ;;  %v529_v30 = vor.u32 %v3773_v23, %v525_v22  ;;  %v509_v50 = vrot.slane %v3817_v43, 1  ;;  %v3839_v51 = vshll.u32 %v3814_v42, 16  ;;  %v439_v56 = vshrl.u32 %v3741_v8, 16  ;;  %v3479_v2 = vld [vmem:[%s5007_s1 + $0x120] sm:$0xff]  ;;  %s5136_s29 = smov (!%p240_p6, %s237_s29), 135 }
  0x1c   : > { %3536 = vmatpush.bf16.msra.mxu3 %v3455_v3  ;;  %3535 = vmatpush.bf16.msra.mxu2 %v3455_v3  ;;  %5036 = vst [vmem:[#allocation6_spill] sm:$0xff] %v3773_v23  ;;  %v438_v35 = vsel %vm426_vm0, %v433_v26, %v437_v27  ;;  %v478_v36 = vsel %vm426_vm0, %v473_v28, %v477_v29  ;;  %v443_v57 = vshll.u32 %v3820_v44, 16  ;;  %v3854_v58 = vshrl.u32 %v3748_v11, 16  ;;  %v3886_v16 = vld [vmem:[%s3726_s11 + $0x20] sm:$0xff]  ;;  %v3470_v26 = vld [vmem:[%s5007_s1 + $0xd8] sm:$0xff]  ;;  %s243_s30 = sadd.s32 %s3550_s15, %s5136_s29 }
  0x1d   : > { %v534_v37 = vsel %vm426_vm0, %v529_v30, %v533_v31  ;;  %5037 = vst [vmem:[#allocation7_spill] sm:$0xff] %v3817_v43  ;;  %v513_v54 = vor.u32 %v3826_v46, %v509_v50  ;;  %v517_v55 = vrot.slane %v3839_v51, 1  ;;  %v3857_v59 = vshll.u32 %v3823_v45, 16  ;;  %s2927_s16 = sshll.u32 %s243_s30, 3 }
  0x1e   : > { %5038 = vst [vmem:[#allocation8_spill] sm:$0xff] %v3826_v46  ;;  %v3863_v61 = vshrl.u32 %v3754_v13, 16  ;;  %v3866_v62 = vshll.u32 %v3832_v48, 16  ;;  %v441_v3 = vor.u32 %v439_v56, %v437_v27  ;;  %s4722_s9 = scalar_lea.vmem %s5009_s3, %s2927_s16  ;;  %s4735_s13 = scalar_lea.vmem %s5010_s4, %s2927_s16 }
  0x1f   : > { %636 = vmatpush.bf16.msra.mxu0 %v3454_v4  ;;  %3537 = vmatpush.bf16.msra.mxu1 %v3454_v4  ;;  %5039 = vst [vmem:[#allocation9_spill] sm:$0xff] %v3839_v51  ;;  %v518_v0 = vsel %vm426_vm0, %v513_v54, %v517_v55  ;;  %v485_v10 = vrot.slane %v3857_v59, 1  ;;  %v447_v54 = vshrl.u32 %v3820_v44, 16 }
  0x20   : > { %3539 = vmatpush.bf16.msra.mxu3 %v3454_v4  ;;  %3538 = vmatpush.bf16.msra.mxu2 %v3454_v4  ;;  %5040 = vst [vmem:[#allocation10_spill] sm:$0xff] %v3854_v58  ;;  %v445_v4 = vrot.slane %v443_v57, 1  ;;  %v541_v18 = vrot.slane %v3866_v62, 1 }
  0x21   : > { %5041 = vst [vmem:[#allocation11_spill] sm:$0xff] %v3857_v59 }
  0x22   : > { %v446_v27 = vsel %vm426_vm0, %v441_v3, %v445_v4  ;;  %v3963_v3 = vshrl.u32 %v3832_v48, 16 }
  0x23   : > { %637 = vmatpush.bf16.msra.mxu0 %v3453_v9  ;;  %3540 = vmatpush.bf16.msra.mxu1 %v3453_v9 }
  0x24   : > { %3542 = vmatpush.bf16.msra.mxu3 %v3453_v9  ;;  %3541 = vmatpush.bf16.msra.mxu2 %v3453_v9  ;;  %v481_v9 = vor.u32 %v3854_v58, %v477_v29  ;;  %v3899_v29 = vshll.u32 %v3886_v16, 16 }
  0x26   : > { %v486_v28 = vsel %vm426_vm0, %v481_v9, %v485_v10 }
  0x27   : > { %638 = vmatpush.bf16.msra.mxu0 %v3452_v17  ;;  %3543 = vmatpush.bf16.msra.mxu1 %v3452_v17 }
  0x28   : > { %3545 = vmatpush.bf16.msra.mxu3 %v3452_v17  ;;  %3544 = vmatpush.bf16.msra.mxu2 %v3452_v17  ;;  %v537_v17 = vor.u32 %v3863_v61, %v533_v31  ;;  %v3903_v31 = vld [vmem:[%s3726_s11 + $0x18] sm:$0xff] }
  0x29   : > { %v451_v56 = vshll.u32 %v3903_v31, 16 }
  0x2a   : > { %v542_v30 = vsel %vm426_vm0, %v537_v17, %v541_v18 }
  0x2b   : > { %639 = vmatpush.bf16.msra.mxu0 %v3451_v25  ;;  %3546 = vmatpush.bf16.msra.mxu1 %v3451_v25 }
  0x2c   : > { %3548 = vmatpush.bf16.msra.mxu3 %v3451_v25  ;;  %3547 = vmatpush.bf16.msra.mxu2 %v3451_v25  ;;  %v3446_v25 = vld [vmem:[%s5007_s1 + $0x18] sm:$0xff] }
  0x2e   : > { %640 = vmatmul.bf16.vlgmr.msra.gmra.mxu0 %v438_v35  ;;  %665 = vmatmul.bf16.vlgmr.msra.gmra.mxu1 %v478_v36  ;;  %v3469_v35 = vld [vmem:[%s5007_s1 + $0xd0] sm:$0xff]  ;;  %v3463_v36 = vld [vmem:[%s5007_s1 + $0xa0] sm:$0xff] }
  0x2f   : > { %791 = vmatpush.bf16.msrb.mxu1 %v3450_v32  ;;  %1513 = vmatpush.bf16.msrb.mxu0 %v3482_v34  ;;  %v3906_v32 = vld [vmem:[%s3726_s11 + $0x40] sm:$0xff]  ;;  %v3478_v34 = vld [vmem:[%s5007_s1 + $0x118] sm:$0xff] }
  0x30   : > { %1216 = vmatpush.bf16.msrb.mxu3 %v3474_v33  ;;  %1003 = vmatpush.bf16.msrb.mxu2 %v3466_v47  ;;  %v461_v33 = vrot.slane %v3899_v29, 1 }
  0x31   : > { %700 = vmatmul.bf16.vlgmr.msra.gmra.mxu3 %v534_v37  ;;  %690 = vmatmul.bf16.vlgmr.msra.gmra.mxu2 %v518_v0  ;;  %v3919_v37 = vshrl.u32 %v3814_v42, 16 }
  0x33   : > { %792 = vmatpush.bf16.msrb.mxu1 %v3449_v38  ;;  %1514 = vmatpush.bf16.msrb.mxu0 %v3481_v41  ;;  %5042 = vst [vmem:[#allocation12_spill] sm:$0xff] %v3919_v37  ;;  %v3922_v38 = vshrl.u32 %v3886_v16, 16  ;;  %v3445_v41 = vld [vmem:[%s5007_s1 + $0x10] sm:$0xff]  ;;  %v521_v47 = vor.u32 %v3919_v37, %v517_v55  ;;  %v3444_v55 = vld [vmem:[%s5007_s1 + $0x8] sm:$0xff] }
  0x34   : > { %1217 = vmatpush.bf16.msrb.mxu3 %v3473_v40  ;;  %1004 = vmatpush.bf16.msrb.mxu2 %v3465_v60  ;;  %v3925_v40 = vld [vmem:[%s3726_s11 + $0x78] sm:$0xff]  ;;  %v3946_v60 = vshrl.u32 %v3823_v45, 16 }
  0x35   : > { %v526_v0 = vsel %vm426_vm0, %v521_v47, %v525_v22  ;;  %v3966_v9 = vshll.u32 %v3925_v40, 16  ;;  %v449_v22 = vor.u32 %v447_v54, %v445_v4  ;;  %v3467_v47 = vld [vmem:[%s5007_s1 + $0xc0] sm:$0xff] }
  0x36   : > { %5043 = vst [vmem:[#allocation13_spill] sm:$0xff] %v3946_v60 }
  0x37   : > { %793 = vmatpush.bf16.msrb.mxu1 %v3448_v49  ;;  %1515 = vmatpush.bf16.msrb.mxu0 %v3480_v53  ;;  %v3477_v49 = vld [vmem:[%s5007_s1 + $0x110] sm:$0xff]  ;;  %v465_v53 = vor.u32 %v3922_v38, %v461_v33 }
  0x38   : > { %1218 = vmatpush.bf16.msrb.mxu3 %v3472_v52  ;;  %1005 = vmatpush.bf16.msrb.mxu2 %v3464_v15  ;;  %v3468_v52 = vld [vmem:[%s5007_s1 + $0xc8] sm:$0xff]  ;;  %v453_v15 = vrot.slane %v451_v56, 1 }
  0x3b   : > { %794 = vmatpush.bf16.msrb.mxu1 %v3447_v63  ;;  %1516 = vmatpush.bf16.msrb.mxu0 %v3479_v2  ;;  %v3949_v63 = vshll.u32 %v3906_v32, 16  ;;  %v3960_v2 = vsel %vm426_vm0, %v465_v53, %v469_v19  ;;  %v489_v19 = vor.u32 %v3946_v60, %v485_v10  ;;  %v3460_v10 = vld [vmem:[%s5007_s1 + $0x88] sm:$0xff]  ;;  %v3498_v53 = vld [vmem:[%s5007_s1 + $0x1b8] sm:$0xff] }
  0x3c   : > { %1219 = vmatpush.bf16.msrb.mxu3 %v3471_v1  ;;  %1006 = vmatpush.bf16.msrb.mxu2 %v3463_v36  ;;  %v3462_v1 = vld [vmem:[%s5007_s1 + $0x98] sm:$0xff]  ;;  %v903_v36 = vrot.slane %v3732_v5, 1 }
  0x3d   : > { %5044 = vst [vmem:[#allocation14_spill] sm:$0xff] %v3949_v63  ;;  %v493_v17 = vrot.slane %v3949_v63, 1 }
  0x3e   : > { %645 = vmatmul.bf16.gmra.mxu0 %v446_v27  ;;  %670 = vmatmul.bf16.gmra.mxu1 %v486_v28  ;;  %v549_v27 = vrot.slane %v3966_v9, 1  ;;  %v454_v28 = vsel %vm426_vm0, %v449_v22, %v453_v15 }
  0x3f   : > { %795 = vmatpush.bf16.msrb.mxu1 %v3446_v25  ;;  %1517 = vmatpush.bf16.msrb.mxu0 %v3478_v34  ;;  %v3461_v25 = vld [vmem:[%s5007_s1 + $0x90] sm:$0xff]  ;;  %v494_v4 = vsel %vm426_vm0, %v489_v19, %v493_v17  ;;  %v3986_v34 = vld [vmem:[%s3726_s11 + $0x48] sm:$0xff] }
  0x40   : > { %1220 = vmatpush.bf16.msrb.mxu3 %v3470_v26  ;;  %1007 = vmatpush.bf16.msrb.mxu2 %v3462_v1  ;;  %v545_v26 = vor.u32 %v3963_v3, %v541_v18  ;;  %v3459_v18 = vld [vmem:[%s5007_s1 + $0x80] sm:$0xff]  ;;  %v4013_v1 = vshrl.u32 %v3906_v32, 16  ;;  %v4016_v22 = vshll.u32 %v3986_v34, 16 }
  0x41   : > { %705 = vmatmul.bf16.gmra.mxu3 %v542_v30  ;;  %695 = vmatmul.bf16.gmra.mxu2 %v526_v0  ;;  %v455_v0 = vshrl.u32 %v3903_v31, 16 }
  0x42   : > { %v550_v30 = vsel %vm426_vm0, %v545_v26, %v549_v27  ;;  %5045 = vst [vmem:[#allocation15_spill] sm:$0xff] %v4013_v1 }
  0x43   : > { %796 = vmatpush.bf16.msrb.mxu1 %v3445_v41  ;;  %1518 = vmatpush.bf16.msrb.mxu0 %v3477_v49  ;;  %v904_v41 = vrot.slane %v3741_v8, 1  ;;  %v4000_v49 = vld [vmem:[%s3726_s11 + $0x80] sm:$0xff]  ;;  %5046 = vst [vmem:[#allocation16_spill] sm:$0xff] %v4016_v22 }
  0x44   : > { %1221 = vmatpush.bf16.msrb.mxu3 %v3469_v35  ;;  %1008 = vmatpush.bf16.msrb.mxu2 %v3461_v25  ;;  %v3476_v35 = vld [vmem:[%s5007_s1 + $0x108] sm:$0xff]  ;;  %v4020_v25 = vshrl.u32 %v3925_v40, 16  ;;  %v4023_v26 = vshll.u32 %v4000_v49, 16 }
  0x45   : > { %v905_v19 = vsel %vm902_vm1, %v903_v36, %v904_v41 }
  0x47   : > { %797 = vmatpush.bf16.msrb.mxu1 %v3444_v55  ;;  %1519 = vmatpush.bf16.msrb.mxu0 %v3476_v35  ;;  %v3475_v55 = vld [vmem:[%s5007_s1 + $0x100] sm:$0xff]  ;;  %v4030_v35 = vld [vmem:[%s3726_s11 + $0x88] sm:$0xff]  }
  0x48   : > { %1222 = vmatpush.bf16.msrb.mxu3 %v3468_v52  ;;  %1009 = vmatpush.bf16.msrb.mxu2 %v3460_v10  ;;  %v3443_v52 = vld [vmem:[%s5007_s1] sm:$0xff]  ;;  %v501_v10 = vrot.slane %v4016_v22, 1 }
  0x4b   : > { %798 = vmatpush.bf16.msrb.mxu1 %v3443_v52  ;;  %1520 = vmatpush.bf16.msrb.mxu0 %v3475_v55  ;;  %v906_v55 = vrot.slane %v3820_v44, 1 }
  0x4c   : > { %1223 = vmatpush.bf16.msrb.mxu3 %v3467_v47  ;;  %1010 = vmatpush.bf16.msrb.mxu2 %v3459_v18  ;;  %v557_v18 = vrot.slane %v4023_v26, 1 }
  0x4e   : > { %650 = vmatmul.bf16.gmra.mxu0 %v454_v28  ;;  %675 = vmatmul.bf16.gmra.mxu1 %v494_v4  ;;  %v457_v28 = vor.u32 %v455_v0, %v453_v15  ;;  %v497_v4 = vor.u32 %v4013_v1, %v493_v17  ;;  %v3517_v15 = vunpack.c.l.b16 %v4030_v35  ;;  %v3506_v17 = vld [vmem:[%s5007_s1 + $0x1f8] sm:$0xff] }
  0x50   : > { %1972 = vmatpush.bf16.msra.mxu2 %v3498_v53  ;;  %v462_v36 = vsel %vm426_vm0, %v457_v28, %v461_v33  ;;  %v502_v47 = vsel %vm426_vm0, %v497_v4, %v501_v10  ;;  %v3514_v33 = vld [vmem:[%s5007_s1 + $0x238] sm:$0xff]  ;;  %v4047_v53 = vpack.c.b16 %v3517_v15, %v3517_v15  ;;  %2269 = vmatpush.bf16.msra.mxu3 %v3506_v17  ;;  %v4055_v4 = vshrl.u32 %v4000_v49, 16 }
  0x51   : > { %710 = vmatmul.bf16.gmra.mxu3 %v550_v30  ;;  %1011 = vmatmul.bf16.vlgmr.msrb.gmra.mxu2 %v905_v19  ;;  %v553_v30 = vor.u32 %v4020_v25, %v549_v27  ;;  %v3490_v27 = vld [vmem:[%s5007_s1 + $0x178] sm:$0xff]  ;;  %v4051_v19 = vshrl.u32 %v3986_v34, 16  ;;  %v907_v28 = vsel %vm902_vm1, %v904_v41, %v906_v55  ;;  %v908_v41 = vrot.slane %v3903_v31, 1 }
  0x52   : > { %1759 = vmatpush.bf16.msra.mxu1 %v3490_v27  ;;  %2515 = vmatpush.bf16.msra.mxu0 %v3514_v33  ;;  %v1362_v27 = vrot.slane %v447_v54, 1  ;;  %v1366_v33 = vrot.slane %v451_v56, 2  ;;  %v3505_v54 = vld [vmem:[%s5007_s1 + $0x1f0] sm:$0xff] }
  0x53   : > { %v558_v52 = vsel %vm426_vm0, %v553_v30, %v557_v18  ;;  %5047 = vst [vmem:[#allocation17_spill] sm:$0xff] %v4051_v19  ;;  %v563_v30 = vshll.u32 %v4047_v53, 16  ;;  %v3489_v56 = vld [vmem:[%s5007_s1 + $0x170] sm:$0xff] }
  0x54   : > { %2270 = vmatpush.bf16.msra.mxu3 %v3505_v54 }
  0x56   : > { %1760 = vmatpush.bf16.msra.mxu1 %v3489_v56  ;;  %v3512_v56 = vld [vmem:[%s5007_s1 + $0x228] sm:$0xff] }
  0x5e   : > { %655 = vmatmul.bf16.gmra.mxu0 %v462_v36  ;;  %680 = vmatmul.bf16.gmra.mxu1 %v502_v47  ;;  %v505_v36 = vor.u32 %v4051_v19, %v501_v10  ;;  %v561_v47 = vor.u32 %v4055_v4, %v557_v18  ;;  %v1363_v10 = vrot.slane %v443_v57, 2  ;;  %v1365_v18 = vrot.slane %v455_v0, 1  ;;  %v3497_v57 = vld [vmem:[%s5007_s1 + $0x1b0] sm:$0xff] }
  0x5f   : > { %v3513_v0 = vld [vmem:[%s5007_s1 + $0x230] sm:$0xff]  ;;  %1973 = vmatpush.bf16.msra.mxu2 %v3497_v57 }
  0x60   : > { %v510_v15 = vsel %vm426_vm0, %v505_v36, %v509_v50  ;;  %v909_v50 = vsel %vm902_vm1, %v906_v55, %v908_v41  ;;  %2516 = vmatpush.bf16.msra.mxu0 %v3513_v0  ;;  %v1369_v55 = vrot.slane %v3922_v38, 1  ;;  %v1370_v36 = vrot.slane %v3899_v29, 2 }
  0x61   : > { %715 = vmatmul.bf16.gmra.mxu3 %v558_v52  ;;  %1016 = vmatmul.bf16.gmra.mxu2 %v907_v28  ;;  %v565_v52 = vrot.slane %v563_v30, 1  ;;  %v1364_v28 = vor.u32 %v1363_v10, %v1362_v27  ;;  %v1367_v30 = vor.u32 %v1366_v33, %v1365_v18  ;;  %v1373_v27 = vrot.slane %v3766_v20, 1 }
  0x62   : > { %v1374_v10 = vrot.slane %v3751_v12, 2  ;;  %v1402_v20 = vrot.slane %v3757_v14, 2 }
  0x63   : > { %v566_v17 = vsel %vm426_vm0, %v561_v47, %v565_v52  ;;  %v1371_v52 = vor.u32 %v1370_v36, %v1369_v55  ;;  %v916_v36 = vrot.slane %v3823_v45, 1 }
  0x64   : > { %v1375_v33 = vor.u32 %v1374_v10, %v1373_v27  ;;  %2517 = vmatpush.bf16.msra.mxu0 %v3512_v56  ;;  %v1382_v27 = vrot.slane %v3857_v59, 2 }
  0x6e   : > { %660 = vmatmul.bf16.gmra.mxu0 %v3960_v2  ;;  %685 = vmatmul.bf16.gmra.mxu1 %v510_v15  ;;  %v1368_v2 = vsel %vm1361_vm2, %v1364_v28, %v1367_v30  ;;  %v1372_v15 = vsel %vm1361_vm2, %v1367_v30, %v1371_v52  ;;  %v3504_v28 = vld [vmem:[%s5007_s1 + $0x1e8] sm:$0xff]  ;;  %v1377_v30 = vrot.slane %v3854_v58, 1 }
  0x6f   : > { %2271 = vmatpush.bf16.msra.mxu3 %v3504_v28 }
  0x71   : > { %720 = vmatmul.bf16.gmra.mxu3 %v566_v17  ;;  %1021 = vmatmul.bf16.gmra.mxu2 %v909_v50  ;;  %v912_v17 = vrot.slane %v3735_v6, 1 }
  0x7e   : > { %799 = vmatmul.bf16.vlgmr.msrb.gmra.mxu1 %v3732_v5  ;;  %1521 = vmatmul.bf16.vlgmr.msrb.gmra.mxu0 %v1368_v2  ;;  %v910_v5 = vrot.slane %v3886_v16, 1  ;;  %v1378_v2 = vrot.slane %v3769_v21, 2 }
  0x80   : > { %v911_v47 = vsel %vm902_vm1, %v908_v41, %v910_v5  ;;  %v913_v18 = vsel %vm902_vm1, %v910_v5, %v912_v17  ;;  %v1376_v41 = vsel %vm1361_vm2, %v1371_v52, %v1375_v33  ;;  %v1379_v54 = vor.u32 %v1378_v2, %v1377_v30 }
  0x81   : > { %1224 = vmatmul.bf16.vlgmr.msrb.gmra.mxu3 %v909_v50  ;;  %1026 = vmatmul.bf16.gmra.mxu2 %v911_v47  ;;  %v914_v50 = vrot.slane %v3748_v11, 1  ;;  %v918_v30 = vrot.slane %v3906_v32, 1 }
  0x82   : > { %v1380_v55 = vsel %vm1361_vm2, %v1375_v33, %v1379_v54 }
  0x83   : > { %v915_v57 = vsel %vm902_vm1, %v912_v17, %v914_v50  ;;  %v1381_v17 = vrot.slane %v3946_v60, 1  ;;  %v917_v10 = vsel %vm902_vm1, %v914_v50, %v916_v36 }
  0x8e   : > { %804 = vmatmul.bf16.gmra.mxu1 %v3741_v8  ;;  %1526 = vmatmul.bf16.gmra.mxu0 %v1372_v15  ;;  %v3496_v8 = vld [vmem:[%s5007_s1 + $0x1a8] sm:$0xff] }
  0x8f   : > { %1974 = vmatpush.bf16.msra.mxu2 %v3496_v8 }
  0x91   : > { %1229 = vmatmul.bf16.gmra.mxu3 %v911_v47  ;;  %1031 = vmatmul.bf16.gmra.mxu2 %v913_v18 }
  0x9e   : > { %809 = vmatmul.bf16.gmra.mxu1 %v3820_v44  ;;  %1531 = vmatmul.bf16.gmra.mxu0 %v1376_v41  ;;  %v3488_v44 = vld [vmem:[%s5007_s1 + $0x168] sm:$0xff] }
  0x9f   : > { %1761 = vmatpush.bf16.msra.mxu1 %v3488_v44  ;;  %v3495_v44 = vld [vmem:[%s5007_s1 + $0x1a0] sm:$0xff] }
  0xa0   : > { %1975 = vmatpush.bf16.msra.mxu2 %v3495_v44  ;;  %v3511_v44 = vld [vmem:[%s5007_s1 + $0x220] sm:$0xff] }
  0xa1   : > { %1234 = vmatmul.bf16.gmra.mxu3 %v913_v18  ;;  %1036 = vmatmul.bf16.gmra.mxu2 %v915_v57  ;;  %v1383_v18 = vor.u32 %v1382_v27, %v1381_v17  ;;  %v3503_v17 = vld [vmem:[%s5007_s1 + $0x1e0] sm:$0xff] }
  0xa2   : > { %v3487_v27 = vld [vmem:[%s5007_s1 + $0x160] sm:$0xff]  ;;  %2272 = vmatpush.bf16.msra.mxu3 %v3503_v17  ;;  %2518 = vmatpush.bf16.msra.mxu0 %v3511_v44 }
  0xa3   : > { %v1384_v28 = vsel %vm1361_vm2, %v1379_v54, %v1383_v18  ;;  %v1385_v54 = vrot.slane %v4013_v1, 1  ;;  %1762 = vmatpush.bf16.msra.mxu1 %v3487_v27 }
  0xab   : > { %v4115_v0 = vpop.f32.mrf.mxu0  ;;  %v4117_v5 = vpop.f32.mrf.mxu1 }
  0xae   : > { %814 = vmatmul.bf16.gmra.mxu1 %v3903_v31  ;;  %1536 = vmatmul.bf16.gmra.mxu0 %v1380_v55  ;;  %v1386_v55 = vrot.slane %v3949_v63, 2 }
  0xb1   : > { %1239 = vmatmul.bf16.gmra.mxu3 %v915_v57  ;;  %1041 = vmatmul.bf16.gmra.mxu2 %v917_v10 }
  0xb3   : > { %v4124_v52 = vpop.f32.mrf.mxu0  ;;  %v4126_v15 = vpop.f32.mrf.mxu1 }
  0xb4   : > { %v4122_v47 = vpop.f32.mrf.mxu3  ;;  %v4131_v33 = vpop.f32.mrf.mxu2 }
  0xb5   : > { %5048 = vst [vmem:[#allocation18_spill] sm:$0xff] %v4122_v47 }
  0xb6   : > { %5049 = vst [vmem:[#allocation19_spill] sm:$0xff] %v4131_v33 }
  0xbb   : > { %v4135_v41 = vpop.f32.mrf.mxu0  ;;  %v4137_v8 = vpop.f32.mrf.mxu1 }
  0xbc   : > { %v4133_v31 = vpop.f32.mrf.mxu3  ;;  %v4142_v2 = vpop.f32.mrf.mxu2 }
  0xbd   : > { %5050 = vst [vmem:[#allocation20_spill] sm:$0xff] %v4133_v31 }
  0xbe   : > { %819 = vmatmul.bf16.gmra.mxu1 %v3886_v16  ;;  %1541 = vmatmul.bf16.gmra.mxu0 %v1384_v28  ;;  %5051 = vst [vmem:[#allocation21_spill] sm:$0xff] %v4142_v2  ;;  %v1387_v28 = vor.u32 %v1386_v55, %v1385_v54 }
  0xc0   : > { %v1388_v1 = vsel %vm1361_vm2, %v1383_v18, %v1387_v28  ;;  %v1389_v18 = vrot.slane %v4051_v19, 1  ;;  %v922_v19 = vrot.slane %v3805_v39, 1 }
  0xc1   : > { %1244 = vmatmul.bf16.gmra.mxu3 %v917_v10  ;;  %v919_v10 = vsel %vm902_vm1, %v916_v36, %v918_v30  ;;  %v920_v36 = vrot.slane %v3986_v34, 1 }
  0xc2   : > { %1046 = vmatmul.bf16.gmra.mxu2 %v919_v10 }
  0xc3   : > { %v4149_v57 = vpop.f32.mrf.mxu0  ;;  %v4151_v56 = vpop.f32.mrf.mxu1  ;;  %v921_v44 = vsel %vm902_vm1, %v918_v30, %v920_v36 }
  0xc4   : > { %v4144_v50 = vpop.f32.mrf.mxu3 }
  0xc5   : > { %5052 = vst [vmem:[#allocation22_spill] sm:$0xff] %v4144_v50  ;;  %v4162_v50 = vpop.f32.mrf.mxu2 }
  0xc6   : > { %5053 = vst [vmem:[#allocation23_spill] sm:$0xff] %v4162_v50 }
  0xcb   : > { %v4166_v47 = vpop.f32.mrf.mxu0  ;;  %v4168_v63 = vpop.f32.mrf.mxu1 }
  0xcc   : > { %v4164_v31 = vpop.f32.mrf.mxu3 }
  0xcd   : > { %5054 = vst [vmem:[#allocation24_spill] sm:$0xff] %v4164_v31  ;;  %v4176_v54 = vpop.f32.mrf.mxu2  ;;  %v1390_v31 = vrot.slane %v4016_v22, 2 }
  0xce   : > { %824 = vmatmul.bf16.gmra.mxu1 %v3735_v6  ;;  %1546 = vmatmul.bf16.gmra.mxu0 %v1388_v1  ;;  %5055 = vst [vmem:[#allocation25_spill] sm:$0xff] %v4176_v54 }
  0xcf   : > { %v1391_v6 = vor.u32 %v1390_v31, %v1389_v18  ;;  %v1393_v18 = vrot.slane %v3826_v46, 1 }
  0xd1   : > { %1249 = vmatmul.bf16.gmra.mxu3 %v919_v10 }
  0xd2   : > { %1051 = vmatmul.bf16.gmra.mxu2 %v921_v44 }
  0xd3   : > { %v4180_v17 = vpop.f32.mrf.mxu0  ;;  %v4182_v27 = vpop.f32.mrf.mxu1 }
  0xd4   : > { %v4178_v55 = vpop.f32.mrf.mxu3 }
  0xd5   : > { %5056 = vst [vmem:[#allocation26_spill] sm:$0xff] %v4178_v55  ;;  %v1012_v1 = vpop.f32.mrf.mxu2  ;;  %v1392_v55 = vsel %vm1361_vm2, %v1387_v28, %v1391_v6  ;;  %v3494_v28 = vld [vmem:[%s5007_s1 + $0x198] sm:$0xff] }
  0xd6   : > { %1976 = vmatpush.bf16.msra.mxu2 %v3494_v28 }
  0xdb   : > { %v4189_v50 = vpop.f32.mrf.mxu0  ;;  %v4191_v54 = vpop.f32.mrf.mxu1 }
  0xdc   : > { %v4187_v10 = vpop.f32.mrf.mxu3 }
  0xdd   : > { %5057 = vst [vmem:[#allocation27_spill] sm:$0xff] %v4187_v10  ;;  %v1014_v22 = vpop.f32.mrf.mxu2  ;;  %v1394_v10 = vrot.slane %v3817_v43, 2 }
  0xde   : > { %829 = vmatmul.bf16.gmra.mxu1 %v3748_v11  ;;  %1551 = vmatmul.bf16.gmra.mxu0 %v1392_v55  ;;  %v3502_v11 = vld [vmem:[%s5007_s1 + $0x1d8] sm:$0xff] }
  0xdf   : > { %v3486_v55 = vld [vmem:[%s5007_s1 + $0x158] sm:$0xff]  ;;  %2273 = vmatpush.bf16.msra.mxu3 %v3502_v11 }
  0xe0   : > { %1763 = vmatpush.bf16.msra.mxu1 %v3486_v55 }
  0xe1   : > { %1254 = vmatmul.bf16.gmra.mxu3 %v921_v44  ;;  %v923_v44 = vsel %vm902_vm1, %v920_v36, %v922_v19  ;;  %v3510_v36 = vld [vmem:[%s5007_s1 + $0x218] sm:$0xff] }
  0xe2   : > { %1056 = vmatmul.bf16.gmra.mxu2 %v923_v44  ;;  %2519 = vmatpush.bf16.msra.mxu0 %v3510_v36 }
  0xe3   : > { %v4198_v30 = vpop.f32.mrf.mxu0  ;;  %v4200_v31 = vpop.f32.mrf.mxu1 }
  0xe4   : > { %v4196_v59 = vpop.f32.mrf.mxu3 }
  0xe5   : > { %5058 = vst [vmem:[#allocation28_spill] sm:$0xff] %v4196_v59  ;;  %v1395_v59 = vor.u32 %v1394_v10, %v1393_v18  ;;  %v1017_v43 = vpop.f32.mrf.mxu2  ;;  %v924_v10 = vrot.slane %v3814_v42, 1 }
  0xe7   : > { %v1396_v33 = vsel %vm1361_vm2, %v1391_v6, %v1395_v59  ;;  %v1397_v6 = vrot.slane %v3919_v37, 1 }
  0xeb   : > { %v4216_v60 = vpop.f32.mrf.mxu0  ;;  %v4218_v2 = vpop.f32.mrf.mxu1 }
  0xec   : > { %v4214_v46 = vpop.f32.mrf.mxu3  ;;  %5060 = vst [vmem:[#allocation30_spill] sm:$0xff] %v4218_v2 }
  0xed   : > { %5059 = vst [vmem:[#allocation29_spill] sm:$0xff] %v4214_v46  ;;  %v4226_v18 = vpop.f32.mrf.mxu2 }
  0xee   : > { %834 = vmatmul.bf16.gmra.mxu1 %v3823_v45  ;;  %1556 = vmatmul.bf16.gmra.mxu0 %v1396_v33  ;;  %v1398_v45 = vrot.slane %v3839_v51, 2  ;;  %v925_v33 = vsel %vm902_vm1, %v922_v19, %v924_v10  ;;  %v926_v51 = vrot.slane %v3738_v7, 1 }
  0xf1   : > { %1259 = vmatmul.bf16.gmra.mxu3 %v923_v44  ;;  %v1399_v44 = vor.u32 %v1398_v45, %v1397_v6 }
  0xf2   : > { %1061 = vmatmul.bf16.gmra.mxu2 %v925_v33 }
  0xf3   : > { %v4230_v11 = vpop.f32.mrf.mxu0  ;;  %v4232_v55 = vpop.f32.mrf.mxu1 }
  0xf4   : > { %v4228_v28 = vpop.f32.mrf.mxu3  ;;  %5062 = vst [vmem:[#allocation32_spill] sm:$0xff] %v4232_v55 }
  0xf5   : > { %5061 = vst [vmem:[#allocation31_spill] sm:$0xff] %v4228_v28  ;;  %v4237_v46 = vpop.f32.mrf.mxu2  ;;  %v1400_v28 = vsel %vm1361_vm2, %v1395_v59, %v1399_v44 }
  0xfb   : > { %v800_v36 = vpop.f32.mrf.mxu1  ;;  %v1522_v58 = vpop.f32.mrf.mxu0 }
  0xfc   : > { %v4239_v21 = vpop.f32.mrf.mxu3  ;;  %v801_v2 = vadd.f32 %v800_v36, %v4115_v0  ;;  %v3501_v0 = vld [vmem:[%s5007_s1 + $0x1d0] sm:$0xff] }
  0xfd   : > { %5063 = vst [vmem:[#allocation33_spill] sm:$0xff] %v4239_v21  ;;  %v4245_v19 = vpop.f32.mrf.mxu2  ;;  %v1401_v21 = vrot.slane %v3773_v23, 1  ;;  %2274 = vmatpush.bf16.msra.mxu3 %v3501_v0  ;;  %v3485_v23 = vld [vmem:[%s5007_s1 + $0x150] sm:$0xff] }
  0xfe   : > { %839 = vmatmul.bf16.gmra.mxu1 %v3906_v32  ;;  %1561 = vmatmul.bf16.gmra.mxu0 %v1400_v28  ;;  %v1097_v37 = vadd.f32 %v1012_v1, %v801_v2  ;;  %v3493_v32 = vld [vmem:[%s5007_s1 + $0x190] sm:$0xff]  ;;  %v927_v2 = vsel %vm902_vm1, %v924_v10, %v926_v51  ;;  %v928_v10 = vrot.slane %v3754_v13, 1 }
  0xff   : > { %v1403_v28 = vor.u32 %v1402_v20, %v1401_v21  ;;  %1977 = vmatpush.bf16.msra.mxu2 %v3493_v32  ;;  %1764 = vmatpush.bf16.msra.mxu1 %v3485_v23  ;;  %v3509_v21 = vld [vmem:[%s5007_s1 + $0x210] sm:$0xff] }
 0x100   : > { %2520 = vmatpush.bf16.msra.mxu0 %v3509_v21 }
 0x101   : > { %1264 = vmatmul.bf16.gmra.mxu3 %v925_v33  ;;  %v1404_v14 = vsel %vm1361_vm2, %v1399_v44, %v1403_v28 }
 0x102   : > { %1066 = vmatmul.bf16.gmra.mxu2 %v927_v2 }
 0x103   : > { %v802_v55 = vpop.f32.mrf.mxu1  ;;  %v1524_v12 = vpop.f32.mrf.mxu0 }
 0x104   : > { %v1225_v6 = vpop.f32.mrf.mxu3  ;;  %v803_v59 = vadd.f32 %v802_v55, %v4124_v52 }
 0x105   : > { %v1310_v45 = vadd.f32 %v1225_v6, %v1097_v37  ;;  %v4259_v33 = vpop.f32.mrf.mxu2 }
 0x106   : > { %v1098_v37 = vadd.f32 %v1014_v22, %v803_v59 }
 0x107   : > { %v4257_v1 = vadd.f32 %v1522_v58, %v1310_v45 }
 0x10b   : > { %v805_v36 = vpop.f32.mrf.mxu1  ;;  %v1527_v6 = vpop.f32.mrf.mxu0 }
 0x10c   : > { %v1227_v52 = vpop.f32.mrf.mxu3  ;;  %v806_v58 = vadd.f32 %v805_v36, %v4135_v41 }
 0x10d   : > { %v1311_v55 = vadd.f32 %v1227_v52, %v1098_v37  ;;  %v4273_v44 = vpop.f32.mrf.mxu2 }
 0x10e   : > { %844 = vmatmul.bf16.gmra.mxu1 %v3986_v34  ;;  %1566 = vmatmul.bf16.gmra.mxu0 %v1404_v14  ;;  %v1099_v20 = vadd.f32 %v1017_v43, %v806_v58  ;;  %v1406_v34 = vrot.slane %v3776_v24, 2  ;;  %v929_v43 = vsel %vm902_vm1, %v926_v51, %v928_v10 }
 0x10f   : > { %v4266_v22 = vadd.f32 %v1524_v12, %v1311_v55  ;;  %v1405_v12 = vrot.slane %v3863_v61, 1 }
 0x111   : > { %1269 = vmatmul.bf16.gmra.mxu3 %v927_v2  ;;  %v1407_v13 = vor.u32 %v1406_v34, %v1405_v12 }
 0x112   : > { %1071 = vmatmul.bf16.gmra.mxu2 %v929_v43 }
 0x113   : > { %v807_v41 = vpop.f32.mrf.mxu1  ;;  %v1529_v23 = vpop.f32.mrf.mxu0  ;;  %v1408_v58 = vsel %vm1361_vm2, %v1403_v28, %v1407_v13  ;;  %v1409_v28 = vrot.slane %v3963_v3, 1 }
 0x114   : > { %v1230_v45 = vpop.f32.mrf.mxu3  ;;  %v808_v14 = vadd.f32 %v807_v41, %v4149_v57  ;;  %v930_v57 = vrot.slane %v3832_v48, 1 }
 0x115   : > { %v1312_v59 = vadd.f32 %v1230_v45, %v1099_v20  ;;  %v4282_v2 = vpop.f32.mrf.mxu2 }
 0x116   : > { %v1100_v0 = vadd.f32 %v4226_v18, %v808_v14 }
 0x117   : > { %v4279_v32 = vadd.f32 %v1527_v6, %v1312_v59 }
 0x11b   : > { %v810_v55 = vpop.f32.mrf.mxu1  ;;  %v1532_v36 = vpop.f32.mrf.mxu0 }
 0x11c   : > { %v1232_v37 = vpop.f32.mrf.mxu3  ;;  %v811_v20 = vadd.f32 %v810_v55, %v4166_v47  ;;  %v1410_v47 = vrot.slane %v3866_v62, 2 }
 0x11d   : > { %v1313_v52 = vadd.f32 %v1232_v37, %v1100_v0  ;;  %v4291_v18 = vpop.f32.mrf.mxu2 }
 0x11e   : > { %849 = vmatmul.bf16.gmra.mxu1 %v3805_v39  ;;  %1571 = vmatmul.bf16.gmra.mxu0 %v1408_v58  ;;  %v1101_v51 = vadd.f32 %v4237_v46, %v811_v20  ;;  %v3492_v39 = vld [vmem:[%s5007_s1 + $0x188] sm:$0xff]  ;;  %v931_v46 = vsel %vm902_vm1, %v928_v10, %v930_v57  ;;  %v1411_v14 = vor.u32 %v1410_v47, %v1409_v28  ;;  %v1413_v28 = vrot.slane %v4020_v25, 1 }
 0x11f   : > { %v4286_v21 = vadd.f32 %v1529_v23, %v1313_v52  ;;  %1978 = vmatpush.bf16.msra.mxu2 %v3492_v39  ;;  %v3500_v58 = vld [vmem:[%s5007_s1 + $0x1c8] sm:$0xff] }
 0x120   : > { %2275 = vmatpush.bf16.msra.mxu3 %v3500_v58 }
 0x121   : > { %1274 = vmatmul.bf16.gmra.mxu3 %v929_v43 }
 0x122   : > { %1076 = vmatmul.bf16.gmra.mxu2 %v931_v46 }
 0x123   : > { %v812_v59 = vpop.f32.mrf.mxu1  ;;  %v1534_v41 = vpop.f32.mrf.mxu0 }
 0x124   : > { %v1235_v6 = vpop.f32.mrf.mxu3  ;;  %v813_v23 = vadd.f32 %v812_v59, %v4180_v17  ;;  %v1412_v17 = vsel %vm1361_vm2, %v1407_v13, %v1411_v14  ;;  %v932_v13 = vrot.slane %v3925_v40, 1 }
 0x125   : > { %v1314_v45 = vadd.f32 %v1235_v6, %v1101_v51  ;;  %v4303_v43 = vpop.f32.mrf.mxu2 }
 0x126   : > { %v1102_v34 = vadd.f32 %v4245_v19, %v813_v23  ;;  %v3484_v19 = vld [vmem:[%s5007_s1 + $0x148] sm:$0xff]  ;;  %v933_v47 = vsel %vm902_vm1, %v930_v57, %v932_v13 }
 0x127   : > { %v4300_v12 = vadd.f32 %v1532_v36, %v1314_v45  ;;  %1765 = vmatpush.bf16.msra.mxu1 %v3484_v19 }
 0x12b   : > { %v815_v52 = vpop.f32.mrf.mxu1  ;;  %v1537_v55 = vpop.f32.mrf.mxu0 }
 0x12c   : > { %v1237_v0 = vpop.f32.mrf.mxu3  ;;  %v816_v10 = vadd.f32 %v815_v52, %v4189_v50 }
 0x12d   : > { %v1315_v37 = vadd.f32 %v1237_v0, %v1102_v34  ;;  %v4318_v51 = vpop.f32.mrf.mxu2 }
 0x12e   : > { %854 = vmatmul.bf16.gmra.mxu1 %v3814_v42  ;;  %1576 = vmatmul.bf16.gmra.mxu0 %v1412_v17  ;;  %v1103_v20 = vadd.f32 %v4259_v33, %v816_v10  ;;  %v3508_v42 = vld [vmem:[%s5007_s1 + $0x208] sm:$0xff] }
 0x12f   : > { %v4313_v36 = vadd.f32 %v1534_v41, %v1315_v37  ;;  %v1414_v41 = vrot.slane %v3966_v9, 2  ;;  %2521 = vmatpush.bf16.msra.mxu0 %v3508_v42 }
 0x131   : > { %1279 = vmatmul.bf16.gmra.mxu3 %v931_v46  ;;  %v1415_v46 = vor.u32 %v1414_v41, %v1413_v28 }
 0x132   : > { %1081 = vmatmul.bf16.gmra.mxu2 %v933_v47 }
 0x133   : > { %v817_v45 = vpop.f32.mrf.mxu1  ;;  %v1539_v59 = vpop.f32.mrf.mxu0  ;;  %v1416_v58 = vsel %vm1361_vm2, %v1411_v14, %v1415_v46  ;;  %v1417_v14 = vrot.slane %v4055_v4, 1 }
 0x134   : > { %v1240_v6 = vpop.f32.mrf.mxu3  ;;  %v818_v33 = vadd.f32 %v817_v45, %v4198_v30 }
 0x135   : > { %v1316_v50 = vadd.f32 %v1240_v6, %v1103_v20  ;;  %v4330_v34 = vpop.f32.mrf.mxu2 }
 0x136   : > { %v1104_v39 = vadd.f32 %v4273_v44, %v818_v33  ;;  %v934_v44 = vrot.slane %v4000_v49, 1 }
 0x137   : > { %v4327_v23 = vadd.f32 %v1537_v55, %v1316_v50 }
 0x13b   : > { %v820_v52 = vpop.f32.mrf.mxu1  ;;  %v1542_v17 = vpop.f32.mrf.mxu0 }
 0x13c   : > { %v1242_v0 = vpop.f32.mrf.mxu3  ;;  %v821_v10 = vadd.f32 %v820_v52, %v4216_v60  ;;  %v1418_v60 = vrot.slane %v4023_v26, 2  ;;  %v4361_v52 = vld [vmem:[%s3726_s11 + $0x68] sm:$0xff] }
 0x13d   : > { %v1317_v37 = vadd.f32 %v1242_v0, %v1104_v39  ;;  %v4339_v55 = vpop.f32.mrf.mxu2 }
 0x13e   : > { %859 = vmatmul.bf16.gmra.mxu1 %v3738_v7  ;;  %1581 = vmatmul.bf16.gmra.mxu0 %v1416_v58  ;;  %v1105_v57 = vadd.f32 %v4282_v2, %v821_v10  ;;  %v935_v7 = vsel %vm902_vm1, %v932_v13, %v934_v44  ;;  %v1419_v28 = vor.u32 %v1418_v60, %v1417_v14  ;;  %v5029_v58 = vshll.u32 %v4030_v35, 16 }
 0x13f   : > { %v4334_v30 = vadd.f32 %v1539_v59, %v1317_v37 }
 0x140   : > { %v1420_v0 = vsel %vm1361_vm2, %v1415_v46, %v1419_v28  ;;  %v1427_v14 = vrot.slane %v5029_v58, 2 }
 0x141   : > { %1284 = vmatmul.bf16.gmra.mxu3 %v933_v47 }
 0x142   : > { %1086 = vmatmul.bf16.gmra.mxu2 %v935_v7 }
 0x143   : > { %v822_v6 = vpop.f32.mrf.mxu1  ;;  %v1544_v50 = vpop.f32.mrf.mxu0 }
 0x144   : > { %v1245_v19 = vpop.f32.mrf.mxu3  ;;  %v823_v45 = vadd.f32 %v822_v6, %v4230_v11  ;;  %v3491_v11 = vld [vmem:[%s5007_s1 + $0x180] sm:$0xff] }
 0x145   : > { %v1318_v20 = vadd.f32 %v1245_v19, %v1105_v57  ;;  %v4348_v41 = vpop.f32.mrf.mxu2  ;;  %1979 = vmatpush.bf16.msra.mxu2 %v3491_v11  ;;  %v936_v19 = vrot.slane %v4047_v53, 1 }
 0x146   : > { %v1106_v2 = vadd.f32 %v4291_v18, %v823_v45  ;;  %v3499_v18 = vld [vmem:[%s5007_s1 + $0x1c0] sm:$0xff] }
 0x147   : > { %v4345_v59 = vadd.f32 %v1542_v17, %v1318_v20  ;;  %v5030_v17 = vshrl.u32 %v4030_v35, 16  ;;  %2276 = vmatpush.bf16.msra.mxu3 %v3499_v18  ;;  %v937_v45 = vsel %vm902_vm1, %v934_v44, %v936_v19 }
 0x14b   : > { %v825_v47 = vpop.f32.mrf.mxu1  ;;  %v1547_v39 = vpop.f32.mrf.mxu0 }
 0x14c   : > { %v1247_v42 = vpop.f32.mrf.mxu3  ;;  %v826_v13 = vadd.f32 %v825_v47, %v4117_v5  ;;  %v3483_v5 = vld [vmem:[%s5007_s1 + $0x140] sm:$0xff] }
 0x14d   : > { %v1319_v33 = vadd.f32 %v1247_v42, %v1106_v2  ;;  %1766 = vmatpush.bf16.msra.mxu1 %v3483_v5  ;;  %v4370_v10 = vpop.f32.mrf.mxu2 }
 0x14e   : > { %864 = vmatmul.bf16.gmra.mxu1 %v4361_v52  ;;  %1586 = vmatmul.bf16.gmra.mxu0 %v1420_v0  ;;  %v1107_v46 = vadd.f32 %v4303_v43, %v826_v13  ;;  %v1424_v43 = vrot.slane %v5030_v17, 1 }
 0x14f   : > { %v4358_v37 = vadd.f32 %v1544_v50, %v1319_v33  ;;  %v1159_v33 = vrot.slane %v4030_v35, 1 }
 0x150   : > { %v1428_v42 = vor.u32 %v1427_v14, %v1424_v43  ;;  %v4404_v43 = vld [vmem:[%s3726_s11 + $0x28] sm:$0xff] }
 0x151   : > { %1289 = vmatmul.bf16.gmra.mxu3 %v935_v7  ;;  %v3507_v7 = vld [vmem:[%s5007_s1 + $0x200] sm:$0xff] }
 0x152   : > { %1091 = vmatmul.bf16.gmra.mxu2 %v937_v45  ;;  %2522 = vmatpush.bf16.msra.mxu0 %v3507_v7  ;;  %v1429_v18 = vsel %vm1361_vm2, %v1419_v28, %v1428_v42  ;;  %v4413_v7 = vld [vmem:[%s3726_s11 + $0x98] sm:$0xff]  }
 0x153   : > { %v827_v6 = vpop.f32.mrf.mxu1  ;;  %v1549_v50 = vpop.f32.mrf.mxu0 }
 0x154   : > { %v1250_v57 = vpop.f32.mrf.mxu3  ;;  %v828_v60 = vadd.f32 %v827_v6, %v4126_v15 }
 0x155   : > { %v1320_v20 = vadd.f32 %v1250_v57, %v1107_v46  ;;  %v4386_v47 = vpop.f32.mrf.mxu2  ;;  %v4390_v46 = vld [vmem:[%s3726_s11 + $0x90] sm:$0xff] }
 0x156   : > { %v1108_v53 = vadd.f32 %v4318_v51, %v828_v60  ;;  %v1160_v51 = vsel %vm902_vm1, %v934_v44, %v1159_v33  ;;  %v5028_v19 = vshrl.u32 %v4390_v46, 16  ;;  %v1664_v44 = vrot.slane %v4404_v43, 2 }
 0x157   : > { %v4382_v2 = vadd.f32 %v1547_v39, %v1320_v20  ;;  %v5027_v20 = vshll.u32 %v4390_v46, 16 }
 0x159   : > { %v1436_v60 = vrot.slane %v5027_v20, 2 }
 0x15b   : > { %v830_v15 = vpop.f32.mrf.mxu1  ;;  %v1552_v13 = vpop.f32.mrf.mxu0 }
 0x15c   : > { %v1252_v0 = vpop.f32.mrf.mxu3  ;;  %v831_v39 = vadd.f32 %v830_v15, %v4137_v8  ;;  %v5031_v8 = vrot.slane %v3886_v16, 2 }
 0x15d   : > { %v1321_v11 = vadd.f32 %v1252_v0, %v1108_v53  ;;  %v4400_v28 = vpop.f32.mrf.mxu2 }
 0x15e   : > { %869 = vmatmul.bf16.gmra.mxu1 %v3832_v48  ;;  %1591 = vmatmul.bf16.gmra.mxu0 %v1429_v18  ;;  %v1109_v57 = vadd.f32 %v4330_v34, %v831_v39  ;;  %v1433_v34 = vrot.slane %v5028_v19, 1  ;;  %v4418_v53 = vsel %vm1658_vm3, %v5031_v8, %v1664_v44  ;;  %v3521_v18 = vunpack.c.l.b16 %v4413_v7 }
 0x15f   : > { %v4394_v5 = vadd.f32 %v1549_v50, %v1321_v11  ;;  %v1161_v39 = vrot.slane %v4390_v46, 1 }
 0x160   : > { %v1437_v15 = vor.u32 %v1436_v60, %v1433_v34 }
 0x161   : > { %1294 = vmatmul.bf16.gmra.mxu3 %v1160_v51 }
 0x162   : > { %1980 = vmatmul.bf16.vlgmr.msra.gmra.mxu2 %v4418_v53  ;;  %v1438_v20 = vsel %vm1361_vm2, %v1428_v42, %v1437_v15 }
 0x163   : > { %v832_v48 = vpop.f32.mrf.mxu1  ;;  %v1554_v14 = vpop.f32.mrf.mxu0 }
 0x164   : > { %v1255_v6 = vpop.f32.mrf.mxu3  ;;  %v833_v45 = vadd.f32 %v832_v48, %v4151_v56 }
 0x165   : > { %v1322_v50 = vadd.f32 %v1255_v6, %v1109_v57  ;;  %v4426_v51 = vpop.f32.mrf.mxu2 }
 0x166   : > { %v1110_v11 = vadd.f32 %v4339_v55, %v833_v45 }
 0x167   : > { %v4420_v0 = vadd.f32 %v1552_v13, %v1322_v50  ;;  %v4429_v13 = vpack.c.b16 %v3521_v18, %v3521_v18  ;;  %v1162_v50 = vsel %vm902_vm1, %v1159_v33, %v1161_v39  ;;  %v4442_v18 = vld [vmem:[%s3726_s11 + $0x30] sm:$0xff] }
 0x169   : > { %v1440_v45 = vshrl.u32 %v4429_v13, 16  ;;  %v1163_v58 = vrot.slane %v4429_v13, 1 }
 0x16b   : > { %v835_v6 = vpop.f32.mrf.mxu1  ;;  %v1557_v48 = vpop.f32.mrf.mxu0 }
 0x16c   : > { %v1257_v56 = vpop.f32.mrf.mxu3  ;;  %v836_v55 = vadd.f32 %v835_v6, %v4168_v63  ;;  %v1666_v63 = vrot.slane %v4442_v18, 2 }
 0x16d   : > { %v1323_v57 = vadd.f32 %v1257_v56, %v1110_v11  ;;  %v1443_v11 = vshll.u32 %v4429_v13, 16  ;;  %v4439_v56 = vpop.f32.mrf.mxu2 }
 0x16e   : > { %874 = vmatmul.bf16.gmra.mxu1 %v3925_v40  ;;  %1596 = vmatmul.bf16.gmra.mxu0 %v1438_v20  ;;  %v1111_v34 = vadd.f32 %v4348_v41, %v836_v55  ;;  %v1442_v20 = vrot.slane %v1440_v45, 1 }
 0x16f   : > { %v4435_v60 = vadd.f32 %v1554_v14, %v1323_v57  ;;  %v1445_v19 = vrot.slane %v1443_v11, 2  ;;  %v4447_v14 = vsel %vm1658_vm3, %v1664_v44, %v1666_v63 }
 0x171   : > { %1299 = vmatmul.bf16.gmra.mxu3 %v1162_v50  ;;  %v1446_v50 = vor.u32 %v1445_v19, %v1442_v20  ;;  %v4466_v20 = vld [vmem:[%s3726_s11 + $0x38] sm:$0xff] }
 0x172   : > { %1985 = vmatmul.bf16.gmra.mxu2 %v4447_v14 }
 0x173   : > { %v837_v6 = vpop.f32.mrf.mxu1  ;;  %v1559_v40 = vpop.f32.mrf.mxu0 }
 0x174   : > { %v1260_v42 = vpop.f32.mrf.mxu3  ;;  %v838_v41 = vadd.f32 %v837_v6, %v4182_v27  ;;  %v1447_v27 = vsel %vm1361_vm2, %v1437_v15, %v1446_v50  ;;  %v1668_v15 = vrot.slane %v4466_v20, 2  ;;  %v5065_v50 = vld [vmem:[#allocation2_spill] sm:$0xff] }
 0x175   : > { %v1324_v33 = vadd.f32 %v1260_v42, %v1111_v34  ;;  %v4454_v34 = vpop.f32.mrf.mxu2 }
 0x176   : > { %v1112_v55 = vadd.f32 %v4370_v10, %v838_v41  ;;  %v5064_v41 = vld [vmem:[#allocation4_spill] sm:$0xff] }
 0x177   : > { %v4449_v57 = vadd.f32 %v1557_v48, %v1324_v33  ;;  %v1164_v48 = vsel %vm902_vm1, %v1161_v39, %v1163_v58 }
 0x17b   : > { %v840_v11 = vpop.f32.mrf.mxu1  ;;  %v1562_v17 = vpop.f32.mrf.mxu0 }
 0x17c   : > { %v1262_v42 = vpop.f32.mrf.mxu3  ;;  %v841_v44 = vadd.f32 %v840_v11, %v4191_v54 }
 0x17d   : > { %v1325_v45 = vadd.f32 %v1262_v42, %v1112_v55  ;;  %v4463_v19 = vpop.f32.mrf.mxu2  ;;  %v2121_v55 = vrot.slane %v5064_v41, 2  ;;  %v2122_v42 = vrot.slane %v5065_v50, 3 }
 0x17e   : > { %879 = vmatmul.bf16.gmra.mxu1 %v4000_v49  ;;  %1601 = vmatmul.bf16.gmra.mxu0 %v1447_v27  ;;  %v1113_v10 = vadd.f32 %v4386_v47, %v841_v44  ;;  %v2119_v49 = vrot.slane %v3899_v29, 3  ;;  %v3596_v44 = vld [vmem:[%s3726_s11 + $0x10] sm:$0xff]  ;;  %v3598_v29 = vld [vmem:[%s3726_s11 + $0x20] sm:$0xff] }
 0x17f   : > { %v4459_v33 = vadd.f32 %v1559_v40, %v1325_v45  ;;  %v2118_v40 = vrot.slane %v3922_v38, 2  ;;  %v4475_v45 = vsel %vm1658_vm3, %v1666_v63, %v1668_v15  ;;  %v3597_v38 = vld [vmem:[%s3726_s11 + $0x18] sm:$0xff]  ;;  %v2123_v41 = vor.u32 %v2122_v42, %v2121_v55  ;;  %v4497_v42 = vld [vmem:[%s3726_s11 + $0x40] sm:$0xff] }
 0x181   : > { %1304 = vmatmul.bf16.gmra.mxu3 %v1164_v48  ;;  %v1659_v48 = vrot.slane %v3596_v44, 2 }
 0x182   : > { %1990 = vmatmul.bf16.gmra.mxu2 %v4475_v45 }
 0x183   : > { %v842_v58 = vpop.f32.mrf.mxu1  ;;  %v1564_v39 = vpop.f32.mrf.mxu0 }
 0x184   : > { %v1265_v6 = vpop.f32.mrf.mxu3  ;;  %v843_v47 = vadd.f32 %v842_v58, %v4200_v31  ;;  %v2416_v31 = vrot.slane %v4404_v43, 3  ;;  %v2120_v58 = vor.u32 %v2119_v49, %v2118_v40 }
 0x185   : > { %v1326_v54 = vadd.f32 %v1265_v6, %v1113_v10  ;;  %v1660_v10 = vrot.slane %v3597_v38, 2  ;;  %v2415_v6 = vrot.slane %v3598_v29, 3  ;;  %v4485_v63 = vpop.f32.mrf.mxu2  ;;  %v5066_v38 = vld [vmem:[#allocation30_spill] sm:$0xff] }
 0x186   : > { %v1114_v27 = vadd.f32 %v4400_v28, %v843_v47  ;;  %v2124_v29 = vsel %vm2117_vm5, %v2120_v58, %v2123_v41  ;;  %v5069_v58 = vld [vmem:[#allocation10_spill] sm:$0xff] }
 0x187   : > { %v4477_v11 = vadd.f32 %v1562_v17, %v1326_v54  ;;  %v1661_v50 = vsel %vm1658_vm3, %v1659_v48, %v1660_v10  ;;  %v2417_v44 = vsel %vm2414_vm4, %v2415_v6, %v2416_v31 }
 0x18b   : > { %v845_v28 = vpop.f32.mrf.mxu1  ;;  %v1567_v47 = vpop.f32.mrf.mxu0 }
 0x18c   : > { %v1267_v17 = vpop.f32.mrf.mxu3  ;;  %v846_v8 = vadd.f32 %v845_v28, %v5066_v38  ;;  %v5068_v28 = vld [vmem:[#allocation32_spill] sm:$0xff] }
 0x18d   : > { %v1327_v54 = vadd.f32 %v1267_v17, %v1114_v27  ;;  %v4494_v49 = vpop.f32.mrf.mxu2  ;;  %v1670_v27 = vrot.slane %v4497_v42, 2 }
 0x18e   : > { %1767 = vmatmul.bf16.vlgmr.msra.gmra.mxu1 %v1661_v50  ;;  %2523 = vmatmul.bf16.vlgmr.msra.gmra.mxu0 %v2417_v44  ;;  %v1115_v40 = vadd.f32 %v4426_v51, %v846_v8 }
 0x18f   : > { %v4491_v43 = vadd.f32 %v1564_v39, %v1327_v54  ;;  %v2125_v39 = vrot.slane %v5069_v58, 2  ;;  %v5070_v54 = vld [vmem:[#allocation5_spill] sm:$0xff]  ;;  %v4504_v44 = vsel %vm1658_vm3, %v1668_v15, %v1670_v27 }
 0x190   : > { %v2126_v50 = vrot.slane %v5070_v54, 3  ;;  %v5072_v54 = vrot.slane %v3886_v16, 2 }
 0x191   : > { %5067 = vst [vmem:[#allocation4_spill] sm:$0xff] %v4491_v43  ;;  %2277 = vmatmul.bf16.vlgmr.msra.gmra.mxu3 %v2124_v29  ;;  %v2418_v29 = vrot.slane %v4442_v18, 3 }
 0x192   : > { %1995 = vmatmul.bf16.gmra.mxu2 %v4504_v44  ;;  %v1663_v15 = vsel %vm1658_vm3, %v1660_v10, %v5072_v54 }
 0x193   : > { %v847_v6 = vpop.f32.mrf.mxu1  ;;  %v1569_v17 = vpop.f32.mrf.mxu0 }
 0x194   : > { %v1270_v55 = vpop.f32.mrf.mxu3  ;;  %v848_v38 = vadd.f32 %v847_v6, %v5068_v28 }
 0x195   : > { %v1328_v48 = vadd.f32 %v1270_v55, %v1115_v40  ;;  %v2127_v40 = vor.u32 %v2126_v50, %v2125_v39  ;;  %v4511_v55 = vpop.f32.mrf.mxu2 }
 0x196   : > { %v1116_v51 = vadd.f32 %v4439_v56, %v848_v38 }
 0x197   : > { %v4506_v8 = vadd.f32 %v1567_v47, %v1328_v48  ;;  %v2419_v47 = vsel %vm2414_vm4, %v2416_v31, %v2418_v29  ;;  %v5073_v48 = vld [vmem:[#allocation19_spill] sm:$0xff]  ;;  %v2128_v38 = vsel %vm2117_vm5, %v2123_v41, %v2127_v40  ;;  %v5076_v41 = vld [vmem:[#allocation13_spill] sm:$0xff] }
 0x199   : > { %5071 = vst [vmem:[#allocation2_spill] sm:$0xff] %v4506_v8 }
 0x19b   : > { %v850_v58 = vpop.f32.mrf.mxu1  ;;  %v1572_v43 = vpop.f32.mrf.mxu0 }
 0x19c   : > { %v1272_v6 = vpop.f32.mrf.mxu3  ;;  %v851_v56 = vadd.f32 %v850_v58, %v5073_v48  ;;  %v5075_v58 = vld [vmem:[#allocation21_spill] sm:$0xff] }
 0x19d   : > { %v1329_v28 = vadd.f32 %v1272_v6, %v1116_v51  ;;  %v4522_v39 = vpop.f32.mrf.mxu2  ;;  %v4525_v51 = vld [vmem:[%s3726_s11 + $0x48] sm:$0xff] }
 0x19e   : > { %1772 = vmatmul.bf16.gmra.mxu1 %v1663_v15  ;;  %2528 = vmatmul.bf16.gmra.mxu0 %v2419_v47  ;;  %v1117_v18 = vadd.f32 %v4454_v34, %v851_v56  ;;  %v1672_v16 = vrot.slane %v4525_v51, 2  ;;  %v2420_v56 = vrot.slane %v4466_v20, 3 }
 0x19f   : > { %v4519_v8 = vadd.f32 %v1569_v17, %v1329_v28  ;;  %v2129_v17 = vrot.slane %v5076_v41, 2  ;;  %v5077_v28 = vld [vmem:[#allocation11_spill] sm:$0xff] }
 0x1a0   : > { %v2130_v15 = vrot.slane %v5077_v28, 3  ;;  %v4532_v47 = vsel %vm1658_vm3, %v1670_v27, %v1672_v16  ;;  %v2421_v28 = vsel %vm2414_vm4, %v2418_v29, %v2420_v56  ;;  %v5079_v27 = vld [vmem:[#allocation23_spill] sm:$0xff] }
 0x1a1   : > { %5074 = vst [vmem:[#allocation30_spill] sm:$0xff] %v4519_v8  ;;  %2282 = vmatmul.bf16.gmra.mxu3 %v2128_v38 }
 0x1a2   : > { %2000 = vmatmul.bf16.gmra.mxu2 %v4532_v47  ;;  %v2131_v38 = vor.u32 %v2130_v15, %v2129_v17  ;;  %v4551_v17 = vld [vmem:[%s3726_s11 + $0x50] sm:$0xff] }
 0x1a3   : > { %v852_v31 = vpop.f32.mrf.mxu1  ;;  %v1574_v6 = vpop.f32.mrf.mxu0  ;;  %v1674_v15 = vrot.slane %v4551_v17, 2 }
 0x1a4   : > { %v1275_v50 = vpop.f32.mrf.mxu3  ;;  %v853_v54 = vadd.f32 %v852_v31, %v5075_v58 }
 0x1a5   : > { %v1330_v10 = vadd.f32 %v1275_v50, %v1117_v18  ;;  %v4539_v18 = vpop.f32.mrf.mxu2 }
 0x1a6   : > { %v1118_v48 = vadd.f32 %v4463_v19, %v853_v54 }
 0x1a7   : > { %v4534_v34 = vadd.f32 %v1572_v43, %v1330_v10  ;;  %v2132_v43 = vsel %vm2117_vm5, %v2127_v40, %v2131_v38 }
 0x1a9   : > { %5078 = vst [vmem:[#allocation32_spill] sm:$0xff] %v4534_v34 }
 0x1ab   : > { %v855_v58 = vpop.f32.mrf.mxu1  ;;  %v1577_v41 = vpop.f32.mrf.mxu0 }
 0x1ac   : > { %v1277_v50 = vpop.f32.mrf.mxu3  ;;  %v856_v8 = vadd.f32 %v855_v58, %v5079_v27  ;;  %v5081_v58 = vld [vmem:[#allocation25_spill] sm:$0xff]  ;;  %v5083_v27 = vld [vmem:[#allocation14_spill] sm:$0xff] }
 0x1ad   : > { %v1331_v31 = vadd.f32 %v1277_v50, %v1118_v48  ;;  %v4548_v20 = vpop.f32.mrf.mxu2 }
 0x1ae   : > { %1777 = vmatmul.bf16.gmra.mxu1 %v4418_v53  ;;  %2533 = vmatmul.bf16.gmra.mxu0 %v2421_v28  ;;  %v1119_v19 = vadd.f32 %v4485_v63, %v856_v8  ;;  %v2134_v53 = vrot.slane %v5083_v27, 3  ;;  %v4558_v28 = vsel %vm1658_vm3, %v1672_v16, %v1674_v15  ;;  %v5085_v16 = vld [vmem:[#allocation18_spill] sm:$0xff] }
 0x1af   : > { %v4544_v10 = vadd.f32 %v1574_v6, %v1331_v31  ;;  %v5082_v6 = vld [vmem:[#allocation15_spill] sm:$0xff] }
 0x1b0   : > { %v2133_v31 = vrot.slane %v5082_v6, 2 }
 0x1b1   : > { %5080 = vst [vmem:[#allocation10_spill] sm:$0xff] %v4544_v10  ;;  %2287 = vmatmul.bf16.gmra.mxu3 %v2132_v43  ;;  %v2422_v43 = vrot.slane %v4497_v42, 3 }
 0x1b2   : > { %2005 = vmatmul.bf16.gmra.mxu2 %v4558_v28 }
 0x1b3   : > { %v857_v48 = vpop.f32.mrf.mxu1  ;;  %v1579_v50 = vpop.f32.mrf.mxu0  ;;  %v2423_v27 = vsel %vm2414_vm4, %v2420_v56, %v2422_v43 }
 0x1b4   : > { %v1280_v54 = vpop.f32.mrf.mxu3  ;;  %v858_v40 = vadd.f32 %v857_v48, %v5081_v58 }
 0x1b5   : > { %v1332_v29 = vadd.f32 %v1280_v54, %v1119_v19  ;;  %v2135_v19 = vor.u32 %v2134_v53, %v2133_v31  ;;  %v4565_v54 = vpop.f32.mrf.mxu2  ;;  %v4577_v31 = vld [vmem:[%s3726_s11 + $0x58] sm:$0xff] }
 0x1b6   : > { %v1120_v8 = vadd.f32 %v4494_v49, %v858_v40  ;;  %v1676_v53 = vrot.slane %v4577_v31, 2 }
 0x1b7   : > { %v4560_v63 = vadd.f32 %v1577_v41, %v1332_v29  ;;  %v2136_v41 = vsel %vm2117_vm5, %v2131_v38, %v2135_v19 }
 0x1b9   : > { %5084 = vst [vmem:[#allocation5_spill] sm:$0xff] %v4560_v63 }
 0x1bb   : > { %v860_v6 = vpop.f32.mrf.mxu1  ;;  %v1582_v10 = vpop.f32.mrf.mxu0 }
 0x1bc   : > { %v1282_v48 = vpop.f32.mrf.mxu3  ;;  %v861_v34 = vadd.f32 %v860_v6, %v5085_v16  ;;  %v5087_v6 = vld [vmem:[#allocation20_spill] sm:$0xff] }
 0x1bd   : > { %v1333_v58 = vadd.f32 %v1282_v48, %v1120_v8  ;;  %v4574_v42 = vpop.f32.mrf.mxu2  ;;  %v5089_v16 = vld [vmem:[#allocation16_spill] sm:$0xff] }
 0x1be   : > { %1782 = vmatmul.bf16.gmra.mxu1 %v4447_v14  ;;  %2538 = vmatmul.bf16.gmra.mxu0 %v2423_v27  ;;  %v1121_v49 = vadd.f32 %v4511_v55, %v861_v34  ;;  %v2138_v14 = vrot.slane %v5089_v16, 3  ;;  %v4584_v27 = vsel %vm1658_vm3, %v1674_v15, %v1676_v53  ;;  %v5091_v15 = vld [vmem:[#allocation22_spill] sm:$0xff] }
 0x1bf   : > { %v4570_v29 = vadd.f32 %v1579_v50, %v1333_v58  ;;  %v5088_v50 = vld [vmem:[#allocation17_spill] sm:$0xff] }
 0x1c0   : > { %v2137_v58 = vrot.slane %v5088_v50, 2 }
 0x1c1   : > { %5086 = vst [vmem:[#allocation19_spill] sm:$0xff] %v4570_v29  ;;  %2292 = vmatmul.bf16.gmra.mxu3 %v2136_v41  ;;  %v2424_v41 = vrot.slane %v4525_v51, 3 }
 0x1c2   : > { %2010 = vmatmul.bf16.gmra.mxu2 %v4584_v27 }
 0x1c3   : > { %v862_v8 = vpop.f32.mrf.mxu1  ;;  %v1584_v48 = vpop.f32.mrf.mxu0  ;;  %v2425_v16 = vsel %vm2414_vm4, %v2422_v43, %v2424_v41 }
 0x1c4   : > { %v1285_v40 = vpop.f32.mrf.mxu3  ;;  %v863_v38 = vadd.f32 %v862_v8, %v5087_v6 }
 0x1c5   : > { %v1334_v56 = vadd.f32 %v1285_v40, %v1121_v49  ;;  %v2139_v49 = vor.u32 %v2138_v14, %v2137_v58  ;;  %v4591_v40 = vpop.f32.mrf.mxu2  ;;  %v4603_v58 = vld [vmem:[%s3726_s11 + $0x60] sm:$0xff] }
 0x1c6   : > { %v1122_v34 = vadd.f32 %v4522_v39, %v863_v38  ;;  %v1678_v14 = vrot.slane %v4603_v58, 2 }
 0x1c7   : > { %v4586_v55 = vadd.f32 %v1582_v10, %v1334_v56  ;;  %v2140_v10 = vsel %vm2117_vm5, %v2135_v19, %v2139_v49 }
 0x1c9   : > { %5090 = vst [vmem:[#allocation21_spill] sm:$0xff] %v4586_v55  ;;  %v5096_v55 = vld [vmem:[#allocation26_spill] sm:$0xff] }
 0x1cb   : > { %v865_v50 = vpop.f32.mrf.mxu1  ;;  %v1587_v29 = vpop.f32.mrf.mxu0 }
 0x1cc   : > { %v1287_v8 = vpop.f32.mrf.mxu3  ;;  %v866_v63 = vadd.f32 %v865_v50, %v5091_v15  ;;  %v5093_v50 = vld [vmem:[#allocation24_spill] sm:$0xff]  ;;  %v5095_v15 = vld [vmem:[#allocation7_spill] sm:$0xff] }
 0x1cd   : > { %v1335_v6 = vadd.f32 %v1287_v8, %v1122_v34  ;;  %v4600_v51 = vpop.f32.mrf.mxu2 }
 0x1ce   : > { %1787 = vmatmul.bf16.gmra.mxu1 %v4475_v45  ;;  %2543 = vmatmul.bf16.gmra.mxu0 %v2425_v16  ;;  %v1123_v39 = vadd.f32 %v4539_v18, %v866_v63  ;;  %v2142_v45 = vrot.slane %v5095_v15, 3  ;;  %v4610_v16 = vsel %vm1658_vm3, %v1676_v53, %v1678_v14 }
 0x1cf   : > { %v4596_v56 = vadd.f32 %v1584_v48, %v1335_v6  ;;  %v5094_v48 = vld [vmem:[#allocation8_spill] sm:$0xff] }
 0x1d0   : > { %v2141_v6 = vrot.slane %v5094_v48, 2 }
 0x1d1   : > { %5092 = vst [vmem:[#allocation13_spill] sm:$0xff] %v4596_v56  ;;  %2297 = vmatmul.bf16.gmra.mxu3 %v2140_v10  ;;  %v2426_v10 = vrot.slane %v4551_v17, 3 }
 0x1d2   : > { %2015 = vmatmul.bf16.gmra.mxu2 %v4610_v16 }
 0x1d3   : > { %v867_v34 = vpop.f32.mrf.mxu1  ;;  %v1589_v8 = vpop.f32.mrf.mxu0  ;;  %v2427_v15 = vsel %vm2414_vm4, %v2424_v41, %v2426_v10 }
 0x1d4   : > { %v1290_v38 = vpop.f32.mrf.mxu3  ;;  %v868_v19 = vadd.f32 %v867_v34, %v5093_v50 }
 0x1d5   : > { %v1336_v43 = vadd.f32 %v1290_v38, %v1123_v39  ;;  %v2143_v39 = vor.u32 %v2142_v45, %v2141_v6  ;;  %v4617_v38 = vpop.f32.mrf.mxu2 }
 0x1d6   : > { %v1124_v63 = vadd.f32 %v4548_v20, %v868_v19 }
 0x1d7   : > { %v4612_v18 = vadd.f32 %v1587_v29, %v1336_v43  ;;  %v2144_v29 = vsel %vm2117_vm5, %v2139_v49, %v2143_v39 }
 0x1db   : > { %v870_v50 = vpop.f32.mrf.mxu1  ;;  %v1592_v48 = vpop.f32.mrf.mxu0 }
 0x1dc   : > { %v1292_v56 = vpop.f32.mrf.mxu3  ;;  %v871_v53 = vadd.f32 %v870_v50, %v5096_v55  ;;  %v5099_v50 = vld [vmem:[#allocation12_spill] sm:$0xff] }
 0x1dd   : > { %v1337_v34 = vadd.f32 %v1292_v56, %v1124_v63  ;;  %v4626_v17 = vpop.f32.mrf.mxu2  ;;  %v1680_v56 = vrot.slane %v4361_v52, 2  ;;  %v5098_v63 = vld [vmem:[#allocation27_spill] sm:$0xff]  ;;  %v2145_v49 = vrot.slane %v5099_v50, 2 }
 0x1de   : > { %1792 = vmatmul.bf16.gmra.mxu1 %v4504_v44  ;;  %2548 = vmatmul.bf16.gmra.mxu0 %v2427_v15  ;;  %v1125_v20 = vadd.f32 %v4565_v54, %v871_v53  ;;  %v2428_v53 = vrot.slane %v4577_v31, 3 }
 0x1df   : > { %v4622_v43 = vadd.f32 %v1589_v8, %v1337_v34  ;;  %v5100_v8 = vld [vmem:[#allocation9_spill] sm:$0xff]  ;;  %v4633_v44 = vsel %vm1658_vm3, %v1678_v14, %v1680_v56  ;;  %v5101_v14 = vld [vmem:[#allocation28_spill] sm:$0xff] }
 0x1e0   : > { %v2146_v34 = vrot.slane %v5100_v8, 3  ;;  %v2429_v8 = vsel %vm2414_vm4, %v2426_v10, %v2428_v53 }
 0x1e1   : > { %5097 = vst [vmem:[#allocation11_spill] sm:$0xff] %v4622_v43  ;;  %2302 = vmatmul.bf16.gmra.mxu3 %v2144_v29 }
 0x1e2   : > { %2020 = vmatmul.bf16.gmra.mxu2 %v4633_v44  ;;  %v2147_v29 = vor.u32 %v2146_v34, %v2145_v49  ;;  %v4652_v49 = vld [vmem:[%s3726_s11 + $0x70] sm:$0xff] }
 0x1e3   : > { %v872_v45 = vpop.f32.mrf.mxu1  ;;  %v1594_v41 = vpop.f32.mrf.mxu0  ;;  %v1682_v34 = vrot.slane %v4652_v49, 2 }
 0x1e4   : > { %v1295_v19 = vpop.f32.mrf.mxu3  ;;  %v873_v55 = vadd.f32 %v872_v45, %v5098_v63 }
 0x1e5   : > { %v1338_v6 = vadd.f32 %v1295_v19, %v1125_v20  ;;  %v4640_v20 = vpop.f32.mrf.mxu2 }
 0x1e6   : > { %v1126_v54 = vadd.f32 %v4574_v42, %v873_v55 }
 0x1e7   : > { %v4635_v15 = vadd.f32 %v1592_v48, %v1338_v6  ;;  %v2148_v48 = vsel %vm2117_vm5, %v2143_v39, %v2147_v29 }
 0x1eb   : > { %v875_v63 = vpop.f32.mrf.mxu1  ;;  %v1597_v50 = vpop.f32.mrf.mxu0 }
 0x1ec   : > { %v1297_v19 = vpop.f32.mrf.mxu3  ;;  %v876_v43 = vadd.f32 %v875_v63, %v5101_v14  ;;  %v5103_v63 = vld [vmem:[#allocation29_spill] sm:$0xff]  ;;  %v5105_v14 = vld [vmem:[#allocation3_spill] sm:$0xff] }
 0x1ed   : > { %v1339_v45 = vadd.f32 %v1297_v19, %v1126_v54  ;;  %v4649_v31 = vpop.f32.mrf.mxu2 }
 0x1ee   : > { %1797 = vmatmul.bf16.gmra.mxu1 %v4532_v47  ;;  %2553 = vmatmul.bf16.gmra.mxu0 %v2429_v8  ;;  %v1127_v42 = vadd.f32 %v4591_v40, %v876_v43  ;;  %v2150_v47 = vrot.slane %v5105_v14, 3  ;;  %v4659_v8 = vsel %vm1658_vm3, %v1680_v56, %v1682_v34  ;;  %v5106_v14 = vld [vmem:[#allocation31_spill] sm:$0xff] }
 0x1ef   : > { %v4645_v6 = vadd.f32 %v1594_v41, %v1339_v45  ;;  %v5104_v41 = vld [vmem:[#allocation6_spill] sm:$0xff] }
 0x1f0   : > { %v2149_v45 = vrot.slane %v5104_v41, 2 }
 0x1f1   : > { %5102 = vst [vmem:[#allocation23_spill] sm:$0xff] %v4645_v6  ;;  %2307 = vmatmul.bf16.gmra.mxu3 %v2148_v48  ;;  %v2430_v48 = vrot.slane %v4603_v58, 3 }
 0x1f2   : > { %2025 = vmatmul.bf16.gmra.mxu2 %v4659_v8 }
 0x1f3   : > { %v877_v54 = vpop.f32.mrf.mxu1  ;;  %v1599_v19 = vpop.f32.mrf.mxu0  ;;  %v2431_v56 = vsel %vm2414_vm4, %v2428_v53, %v2430_v48 }
 0x1f4   : > { %v1300_v55 = vpop.f32.mrf.mxu3  ;;  %v878_v39 = vadd.f32 %v877_v54, %v5103_v63 }
 0x1f5   : > { %v1340_v10 = vadd.f32 %v1300_v55, %v1127_v42  ;;  %v2151_v42 = vor.u32 %v2150_v47, %v2149_v45  ;;  %v4666_v55 = vpop.f32.mrf.mxu2  ;;  %v4678_v47 = vld [vmem:[%s3726_s11 + $0x78] sm:$0xff] }
 0x1f6   : > { %v1128_v43 = vadd.f32 %v4600_v51, %v878_v39 }
 0x1f7   : > { %v4661_v40 = vadd.f32 %v1597_v50, %v1340_v10  ;;  %v2152_v10 = vsel %vm2117_vm5, %v2147_v29, %v2151_v42  ;;  %v5107_v29 = vld [vmem:[#allocation33_spill] sm:$0xff] }
 0x1fb   : > { %v880_v41 = vpop.f32.mrf.mxu1  ;;  %v1602_v6 = vpop.f32.mrf.mxu0 }
 0x1fc   : > { %v1302_v54 = vpop.f32.mrf.mxu3  ;;  %v881_v50 = vadd.f32 %v880_v41, %v5106_v14 }
 0x1fd   : > { %v1341_v63 = vadd.f32 %v1302_v54, %v1128_v43  ;;  %v4675_v39 = vpop.f32.mrf.mxu2  ;;  %v1684_v43 = vrot.slane %v4678_v47, 2 }
 0x1fe   : > { %1802 = vmatmul.bf16.gmra.mxu1 %v4558_v28  ;;  %2558 = vmatmul.bf16.gmra.mxu0 %v2431_v56  ;;  %v1129_v58 = vadd.f32 %v4617_v38, %v881_v50  ;;  %v2153_v28 = vrot.slane %v3863_v61, 2  ;;  %v2432_v50 = vrot.slane %v4361_v52, 3 }
 0x1ff   : > { %v4671_v51 = vadd.f32 %v1599_v19, %v1341_v63  ;;  %v2154_v63 = vrot.slane %v3776_v24, 3  ;;  %v4686_v38 = vsel %vm1658_vm3, %v1682_v34, %v1684_v43 }
 0x200   : > { %v2433_v34 = vsel %vm2414_vm4, %v2430_v48, %v2432_v50 }
 0x201   : > { %2312 = vmatmul.bf16.gmra.mxu3 %v2152_v10  ;;  %v2155_v10 = vor.u32 %v2154_v63, %v2153_v28  ;;  %v4706_v28 = vld [vmem:[%s3726_s11 + $0x80] sm:$0xff]  ;;  %v2157_v63 = vrot.slane %v3963_v3, 2  ;;  %v2434_v3 = vrot.slane %v4652_v49, 3 }
 0x202   : > { %2030 = vmatmul.bf16.gmra.mxu2 %v4686_v38  ;;  %v1686_v48 = vrot.slane %v4706_v28, 2 }
 0x203   : > { %v882_v54 = vpop.f32.mrf.mxu1  ;;  %v1604_v41 = vpop.f32.mrf.mxu0 }
 0x204   : > { %v1305_v45 = vpop.f32.mrf.mxu3  ;;  %v883_v19 = vadd.f32 %v882_v54, %v5107_v29 }
 0x205   : > { %v1342_v53 = vadd.f32 %v1305_v45, %v1129_v58  ;;  %v4693_v58 = vpop.f32.mrf.mxu2 }
 0x206   : > { %v1130_v14 = vadd.f32 %v4626_v17, %v883_v19 }
 0x207   : > { %v4688_v56 = vadd.f32 %v1602_v6, %v1342_v53  ;;  %v2156_v6 = vsel %vm2117_vm5, %v2151_v42, %v2155_v10 }
 0x20b   : > { %v1768_v24 = vpop.f32.mrf.mxu1  ;;  %v2524_v54 = vpop.f32.mrf.mxu0 }
 0x20c   : > { %v1307_v45 = vpop.f32.mrf.mxu3  ;;  %v1853_v17 = vadd.f32 %v1768_v24, %v4257_v1  ;;  %v4712_v1 = vld [vmem:[%s5008_s2] ss:$0 sm:$0xff] }
 0x20d   : > { %v1343_v61 = vadd.f32 %v1307_v45, %v1130_v14  ;;  %v4703_v29 = vpop.f32.mrf.mxu2  ;;  %v4717_v14 = vsel %vm1658_vm3, %v1684_v43, %v1686_v48 }
 0x20e   : > { %1807 = vmatmul.bf16.gmra.mxu1 %v4584_v27  ;;  %2563 = vmatmul.bf16.gmra.mxu0 %v2433_v34  ;;  %v2066_v52 = vadd.f32 %v4640_v20, %v1853_v17  ;;  %v2158_v20 = vrot.slane %v3866_v62, 3  ;;  %v2715_v34 = vld [vmem:[%s4722_s9] sm:$0xff] }
 0x20f   : > { %v4699_v53 = vadd.f32 %v1604_v41, %v1343_v61 }
 0x210   : > { %v2159_v62 = vor.u32 %v2158_v20, %v2157_v63 }
 0x211   : > { %2317 = vmatmul.bf16.gmra.mxu3 %v2156_v6 }
 0x212   : > { %2035 = vmatmul.bf16.gmra.mxu2 %v4717_v14 }
 0x213   : > { %v1770_v27 = vpop.f32.mrf.mxu1  ;;  %v2526_v41 = vpop.f32.mrf.mxu0 }
 0x214   : > { %v2278_v19 = vpop.f32.mrf.mxu3  ;;  %v1854_v61 = vadd.f32 %v1770_v27, %v4266_v22  ;;  %v2160_v27 = vsel %vm2117_vm5, %v2155_v10, %v2159_v62  ;;  %v4748_v10 = vld [vmem:[%s3726_s11 + $0x88] sm:$0xff]  }
 0x215   : > { %v2363_v42 = vadd.f32 %v2278_v19, %v2066_v52  ;;  %v4730_v17 = vpop.f32.mrf.mxu2 }
 0x216   : > { %v2067_v43 = vadd.f32 %v4649_v31, %v1854_v61 }
 0x217   : > { %v2609_v45 = vadd.f32 %v2524_v54, %v2363_v42  ;;  %v2435_v42 = vsel %vm2414_vm4, %v2432_v50, %v2434_v3 }
 0x219   : > { %v2647_v24 = vadd.f32 %v4712_v1, %v2609_v45  ;;  %v2716_v45 = vld [vmem:[%s4722_s9 + $0x8] sm:$0xff] }
 0x21b   : > { %v2681_v6 = vmax.f32 %v2647_v24, 0.0  ;;  %v1773_v19 = vpop.f32.mrf.mxu1  ;;  %v2529_v49 = vpop.f32.mrf.mxu0 }
 0x21c   : > { %v2280_v22 = vpop.f32.mrf.mxu3  ;;  %v1855_v63 = vadd.f32 %v1773_v19, %v4279_v32 }
 0x21d   : > { %v2749_v54 = vadd.f32 %v2715_v34, %v2681_v6  ;;  %v2364_v52 = vadd.f32 %v2280_v22, %v2067_v43  ;;  %v4745_v34 = vpop.f32.mrf.mxu2  ;;  %v2161_v22 = vrot.slane %v4020_v25, 2 }
 0x21e   : > { %1812 = vmatmul.bf16.gmra.mxu1 %v4610_v16  ;;  %2568 = vmatmul.bf16.gmra.mxu0 %v2435_v42  ;;  %v2068_v24 = vadd.f32 %v4666_v55, %v1855_v63 }
 0x21f   : > { %2783 = vst [vmem:[%s4735_s13] sm:$0xff] %v2749_v54  ;;  %v2610_v31 = vadd.f32 %v2526_v41, %v2364_v52  ;;  %v1688_v41 = vrot.slane %v4748_v10, 2  ;;  %v2162_v54 = vrot.slane %v3966_v9, 3 }
 0x221   : > { %v2648_v20 = vadd.f32 %v4712_v1, %v2610_v31  ;;  %2322 = vmatmul.bf16.gmra.mxu3 %v2160_v27  ;;  %v4754_v52 = vsel %vm1658_vm3, %v1686_v48, %v1688_v41  ;;  %v2436_v27 = vrot.slane %v4678_v47, 3  ;;  %v2717_v31 = vld [vmem:[%s4722_s9 + $0x10] sm:$0xff]  ;;  %v2163_v63 = vor.u32 %v2162_v54, %v2161_v22 }
 0x222   : > { %2040 = vmatmul.bf16.gmra.mxu2 %v4754_v52 }
 0x223   : > { %v2682_v61 = vmax.f32 %v2648_v20, 0.0  ;;  %v1775_v16 = vpop.f32.mrf.mxu1  ;;  %v2531_v43 = vpop.f32.mrf.mxu0 }
 0x224   : > { %v2283_v50 = vpop.f32.mrf.mxu3  ;;  %v1856_v19 = vadd.f32 %v1775_v16, %v4286_v21 }
 0x225   : > { %v2750_v32 = vadd.f32 %v2716_v45, %v2682_v61  ;;  %v2365_v6 = vadd.f32 %v2283_v50, %v2068_v24  ;;  %v4763_v9 = vpop.f32.mrf.mxu2  ;;  %v2437_v24 = vsel %vm2414_vm4, %v2434_v3, %v2436_v27  ;;  %v2164_v50 = vsel %vm2117_vm5, %v2159_v62, %v2163_v63 }
 0x226   : > { %v2069_v25 = vadd.f32 %v4675_v39, %v1856_v19  ;;  %v4776_v62 = vrot.slane %v4390_v46, 2  ;;  %v2165_v19 = vrot.slane %v4055_v4, 2 }
 0x227   : > { %2784 = vst [vmem:[%s4735_s13 + $0x8] sm:$0xff] %v2750_v32  ;;  %v2611_v55 = vadd.f32 %v2529_v49, %v2365_v6  ;;  %v2718_v6 = vld [vmem:[%s4722_s9 + $0x18] sm:$0xff] }
 0x229   : > { %v2649_v42 = vadd.f32 %v4712_v1, %v2611_v55 }
 0x22b   : > { %v2683_v20 = vmax.f32 %v2649_v42, 0.0  ;;  %v1778_v61 = vpop.f32.mrf.mxu1  ;;  %v2534_v21 = vpop.f32.mrf.mxu0  ;;  %v2166_v42 = vrot.slane %v4023_v26, 3 }
 0x22c   : > { %v2285_v48 = vpop.f32.mrf.mxu3  ;;  %v1857_v47 = vadd.f32 %v1778_v61, %v4300_v12 }
 0x22d   : > { %v2751_v45 = vadd.f32 %v2717_v31, %v2683_v20  ;;  %v2366_v49 = vadd.f32 %v2285_v48, %v2069_v25  ;;  %v4773_v54 = vpop.f32.mrf.mxu2  ;;  %v4782_v31 = vsel %vm1658_vm3, %v1688_v41, %v4776_v62  ;;  %v2438_v48 = vrot.slane %v4706_v28, 3 }
 0x22e   : > { %1817 = vmatmul.bf16.gmra.mxu1 %v4633_v44  ;;  %2573 = vmatmul.bf16.gmra.mxu0 %v2437_v24  ;;  %v2070_v22 = vadd.f32 %v4693_v58, %v1857_v47 }
 0x22f   : > { %2785 = vst [vmem:[%s4735_s13 + $0x10] sm:$0xff] %v2751_v45  ;;  %v2612_v32 = vadd.f32 %v2531_v43, %v2366_v49  ;;  %v2719_v45 = vld [vmem:[%s4722_s9 + $0x20] sm:$0xff]  ;;  %v2167_v49 = vor.u32 %v2166_v42, %v2165_v19  ;;  %v5109_v19 = vshll.u32 %v4030_v35, 16 }
 0x231   : > { %v2650_v39 = vadd.f32 %v4712_v1, %v2612_v32  ;;  %2327 = vmatmul.bf16.gmra.mxu3 %v2164_v50  ;;  %v2439_v32 = vsel %vm2414_vm4, %v2436_v27, %v2438_v48  ;;  %v2168_v47 = vsel %vm2117_vm5, %v2163_v63, %v2167_v49  ;;  %v1915_v63 = vrot.slane %v4413_v7, 2 }
 0x232   : > { %2045 = vmatmul.bf16.gmra.mxu2 %v4782_v31  ;;  %v2170_v42 = vrot.slane %v5109_v19, 3 }
 0x233   : > { %v2684_v16 = vmax.f32 %v2650_v39, 0.0  ;;  %v1780_v55 = vpop.f32.mrf.mxu1  ;;  %v2536_v44 = vpop.f32.mrf.mxu0 }
 0x234   : > { %v2288_v3 = vpop.f32.mrf.mxu3  ;;  %v1858_v20 = vadd.f32 %v1780_v55, %v4313_v36 }
 0x235   : > { %v2752_v43 = vadd.f32 %v2718_v6, %v2684_v16  ;;  %v2367_v12 = vadd.f32 %v2288_v3, %v2070_v22  ;;  %v4791_v61 = vpop.f32.mrf.mxu2  ;;  %v2720_v6 = vld [vmem:[%s4722_s9 + $0x28] sm:$0xff] }
 0x236   : > { %v2071_v26 = vadd.f32 %v4703_v29, %v1858_v20 }
 0x237   : > { %2786 = vst [vmem:[%s4735_s13 + $0x18] sm:$0xff] %v2752_v43  ;;  %v2613_v58 = vadd.f32 %v2534_v21, %v2367_v12 }
 0x239   : > { %v2651_v25 = vadd.f32 %v4712_v1, %v2613_v58  ;;  %v1916_v58 = vsel %vm1658_vm3, %v4776_v62, %v1915_v63 }
 0x23b   : > { %v2685_v4 = vmax.f32 %v2651_v25, 0.0  ;;  %v1783_v50 = vpop.f32.mrf.mxu1  ;;  %v2539_v36 = vpop.f32.mrf.mxu0  ;;  %v2440_v25 = vrot.slane %v4748_v10, 3 }
 0x23c   : > { %v2290_v41 = vpop.f32.mrf.mxu3  ;;  %v1859_v28 = vadd.f32 %v1783_v50, %v4327_v23 }
 0x23d   : > { %v2753_v24 = vadd.f32 %v2719_v45, %v2685_v4  ;;  %v2368_v21 = vadd.f32 %v2290_v41, %v2071_v26  ;;  %v4801_v3 = vpop.f32.mrf.mxu2  ;;  %v2721_v45 = vld [vmem:[%s4722_s9 + $0x30] sm:$0xff] }
 0x23e   : > { %1822 = vmatmul.bf16.gmra.mxu1 %v4659_v8  ;;  %2578 = vmatmul.bf16.gmra.mxu0 %v2439_v32  ;;  %v2072_v22 = vadd.f32 %v4730_v17, %v1859_v28  ;;  %v5108_v8 = vshrl.u32 %v4030_v35, 16  ;;  %v2441_v32 = vsel %vm2414_vm4, %v2438_v48, %v2440_v25  ;;  %v2722_v28 = vld [vmem:[%s4722_s9 + $0x38] sm:$0xff]  ;;  %v4829_v48 = vld [vmem:[%s3726_s11 + $0xa0] sm:$0xff] }
 0x23f   : > { %2787 = vst [vmem:[%s4735_s13 + $0x20] sm:$0xff] %v2753_v24  ;;  %v2614_v39 = vadd.f32 %v2536_v44, %v2368_v21 }
 0x240   : > { %v2169_v44 = vrot.slane %v5108_v8, 2 }
 0x241   : > { %v2652_v29 = vadd.f32 %v4712_v1, %v2614_v39  ;;  %2332 = vmatmul.bf16.gmra.mxu3 %v2168_v47 }
 0x242   : > { %2050 = vmatmul.bf16.gmra.mxu2 %v1916_v58  ;;  %v2171_v4 = vor.u32 %v2170_v42, %v2169_v44  ;;  %v2442_v58 = vrot.slane %v4390_v46, 3 }
 0x243   : > { %v2686_v16 = vmax.f32 %v2652_v29, 0.0  ;;  %v1785_v23 = vpop.f32.mrf.mxu1  ;;  %v2541_v55 = vpop.f32.mrf.mxu0 }
 0x244   : > { %v2293_v27 = vpop.f32.mrf.mxu3  ;;  %v1860_v20 = vadd.f32 %v1785_v23, %v4334_v30  ;;  %v2172_v47 = vsel %vm2117_vm5, %v2167_v49, %v2171_v4 }
 0x245   : > { %v2754_v43 = vadd.f32 %v2720_v6, %v2686_v16  ;;  %v2369_v12 = vadd.f32 %v2293_v27, %v2072_v22  ;;  %v4816_v35 = vpop.f32.mrf.mxu2 }
 0x246   : > { %v2073_v41 = vadd.f32 %v4745_v34, %v1860_v20 }
 0x247   : > { %2788 = vst [vmem:[%s4735_s13 + $0x28] sm:$0xff] %v2754_v43  ;;  %v2615_v17 = vadd.f32 %v2539_v36, %v2369_v12  ;;  %v5110_v12 = vshrl.u32 %v4390_v46, 16 }
 0x249   : > { %v2653_v7 = vadd.f32 %v4712_v1, %v2615_v17  ;;  %v2173_v23 = vrot.slane %v5110_v12, 2  ;;  %v2723_v17 = vld [vmem:[%s4722_s9 + $0x40] sm:$0xff] }
 0x24b   : > { %v2687_v26 = vmax.f32 %v2653_v7, 0.0  ;;  %v1788_v36 = vpop.f32.mrf.mxu1  ;;  %v2544_v30 = vpop.f32.mrf.mxu0 }
 0x24c   : > { %v2295_v24 = vpop.f32.mrf.mxu3  ;;  %v1861_v39 = vadd.f32 %v1788_v36, %v4345_v59 }
 0x24d   : > { %v2755_v21 = vadd.f32 %v2721_v45, %v2687_v26  ;;  %v2370_v50 = vadd.f32 %v2295_v24, %v2073_v41  ;;  %v4826_v16 = vpop.f32.mrf.mxu2 }
 0x24e   : > { %1827 = vmatmul.bf16.gmra.mxu1 %v4686_v38  ;;  %2583 = vmatmul.bf16.gmra.mxu0 %v2441_v32  ;;  %v2074_v6 = vadd.f32 %v4763_v9, %v1861_v39  ;;  %v1917_v38 = vrot.slane %v4829_v48, 2  ;;  %v4854_v39 = vld [vmem:[%s3726_s11 + $0x98] sm:$0xff]  }
 0x24f   : > { %2789 = vst [vmem:[%s4735_s13 + $0x30] sm:$0xff] %v2755_v21  ;;  %v2616_v10 = vadd.f32 %v2541_v55, %v2370_v50  ;;  %v5111_v55 = vshll.u32 %v4390_v46, 16  ;;  %v2443_v50 = vsel %vm2414_vm4, %v2440_v25, %v2442_v58  ;;  %v2178_v25 = vshrl.u32 %v4854_v39, 16 }
 0x250   : > { %v1918_v19 = vsel %vm1658_vm3, %v1915_v63, %v1917_v38 }
 0x251   : > { %v2654_v34 = vadd.f32 %v4712_v1, %v2616_v10  ;;  %2337 = vmatmul.bf16.gmra.mxu3 %v2172_v47  ;;  %v2174_v8 = vrot.slane %v5111_v55, 3  ;;  %v2724_v10 = vld [vmem:[%s4722_s9 + $0x48] sm:$0xff] }
 0x252   : > { %2055 = vmatmul.bf16.gmra.mxu2 %v1918_v19 }
 0x253   : > { %v2688_v29 = vmax.f32 %v2654_v34, 0.0  ;;  %v1790_v59 = vpop.f32.mrf.mxu1  ;;  %v2546_v43 = vpop.f32.mrf.mxu0  ;;  %v2175_v20 = vor.u32 %v2174_v8, %v2173_v23 }
 0x254   : > { %v2298_v49 = vpop.f32.mrf.mxu3  ;;  %v1862_v44 = vadd.f32 %v1790_v59, %v4358_v37  ;;  %v2180_v59 = vrot.slane %v2178_v25, 2 }
 0x255   : > { %v2756_v22 = vadd.f32 %v2722_v28, %v2688_v29  ;;  %v2371_v27 = vadd.f32 %v2298_v49, %v2074_v6  ;;  %v4843_v41 = vpop.f32.mrf.mxu2  ;;  %v2176_v36 = vsel %vm2117_vm5, %v2171_v4, %v2175_v20  ;;  %v2181_v4 = vshll.u32 %v4854_v39, 16 }
 0x256   : > { %v2075_v45 = vadd.f32 %v4773_v54, %v1862_v44  ;;  %v304_v54 = vld [vmem:[%s3726_s11 + $0xa8] sm:$0x7]  ;;  %v2725_v44 = vld [vmem:[%s4722_s9 + $0x50] sm:$0xff] }
 0x257   : > { %2790 = vst [vmem:[%s4735_s13 + $0x38] sm:$0xff] %v2756_v22  ;;  %v2617_v9 = vadd.f32 %v2544_v30, %v2371_v27  ;;  %v1911_v47 = vunpack.c.l.b16 %v304_v54 }
 0x259   : > { %v2655_v42 = vadd.f32 %v4712_v1, %v2617_v9  ;;  %v2444_v9 = vrot.slane %v4854_v39, 3 }
 0x25b   : > { %v2689_v7 = vmax.f32 %v2655_v42, 0.0  ;;  %v1793_v63 = vpop.f32.mrf.mxu1  ;;  %v2549_v21 = vpop.f32.mrf.mxu0 }
 0x25c   : > { %v2300_v26 = vpop.f32.mrf.mxu3  ;;  %v1863_v30 = vadd.f32 %v1793_v63, %v4382_v2  ;;  %v4859_v2 = vpack.c.b16 %v1911_v47, %v1911_v47 }
 0x25d   : > { %v2757_v24 = vadd.f32 %v2723_v17, %v2689_v7  ;;  %v2372_v37 = vadd.f32 %v2300_v26, %v2075_v45  ;;  %v4862_v12 = vpop.f32.mrf.mxu2 }
 0x25e   : > { %1832 = vmatmul.bf16.gmra.mxu1 %v4717_v14  ;;  %2588 = vmatmul.bf16.gmra.mxu0 %v2443_v50  ;;  %v2076_v28 = vadd.f32 %v4791_v61, %v1863_v30  ;;  %v1919_v27 = vrot.slane %v4859_v2, 2 }
 0x25f   : > { %2791 = vst [vmem:[%s4735_s13 + $0x40] sm:$0xff] %v2757_v24  ;;  %v2618_v46 = vadd.f32 %v2546_v43, %v2372_v37  ;;  %v2183_v43 = vrot.slane %v2181_v4, 3 }
 0x260   : > { %v1920_v61 = vsel %vm1658_vm3, %v1917_v38, %v1919_v27 }
 0x261   : > { %v2656_v32 = vadd.f32 %v4712_v1, %v2618_v46  ;;  %2342 = vmatmul.bf16.gmra.mxu3 %v2176_v36  ;;  %v2184_v19 = vor.u32 %v2183_v43, %v2180_v59  ;;  %v2726_v36 = vld [vmem:[%s4722_s9 + $0x58] sm:$0xff]  ;;  %v2187_v46 = vshrl.u32 %v4829_v48, 16 }
 0x262   : > { %2060 = vmatmul.bf16.gmra.mxu2 %v1920_v61 }
 0x263   : > { %v2690_v34 = vmax.f32 %v2656_v32, 0.0  ;;  %v1795_v49 = vpop.f32.mrf.mxu1  ;;  %v2551_v22 = vpop.f32.mrf.mxu0  ;;  %v2185_v38 = vsel %vm2117_vm5, %v2175_v20, %v2184_v19 }
 0x264   : > { %v2303_v14 = vpop.f32.mrf.mxu3  ;;  %v1864_v55 = vadd.f32 %v1795_v49, %v4394_v5  ;;  %v2445_v5 = vsel %vm2414_vm4, %v2442_v58, %v2444_v9  ;;  %v2190_v58 = vshll.u32 %v4829_v48, 16 }
 0x265   : > { %v2758_v29 = vadd.f32 %v2724_v10, %v2690_v34  ;;  %v2373_v6 = vadd.f32 %v2303_v14, %v2076_v28  ;;  %v4876_v50 = vpop.f32.mrf.mxu2  ;;  %v2189_v10 = vrot.slane %v2187_v46, 2  ;;  %v2446_v28 = vrot.slane %v4829_v48, 3  ;;  %v2727_v14 = vld [vmem:[%s4722_s9 + $0x60] sm:$0xff] }
 0x266   : > { %v2077_v17 = vadd.f32 %v4801_v3, %v1864_v55  ;;  %v2192_v39 = vrot.slane %v2190_v58, 3 }
 0x267   : > { %2792 = vst [vmem:[%s4735_s13 + $0x48] sm:$0xff] %v2758_v29  ;;  %v2619_v23 = vadd.f32 %v2549_v21, %v2373_v6  ;;  %v2447_v55 = vsel %vm2414_vm4, %v2444_v9, %v2446_v28 }
 0x268   : > { %v2193_v29 = vor.u32 %v2192_v39, %v2189_v10  ;;  %v2730_v39 = vld [vmem:[%s4722_s9 + $0x78] sm:$0xff] }
 0x269   : > { %v2657_v8 = vadd.f32 %v4712_v1, %v2619_v23 }
 0x26b   : > { %v2691_v42 = vmax.f32 %v2657_v8, 0.0  ;;  %v1798_v24 = vpop.f32.mrf.mxu1  ;;  %v2554_v37 = vpop.f32.mrf.mxu0 }
 0x26c   : > { %v2305_v7 = vpop.f32.mrf.mxu3  ;;  %v1865_v21 = vadd.f32 %v1798_v24, %v4420_v0 }
 0x26d   : > { %v2759_v45 = vadd.f32 %v2725_v44, %v2691_v42  ;;  %v2374_v26 = vadd.f32 %v2305_v7, %v2077_v17  ;;  %v4888_v6 = vpop.f32.mrf.mxu2  ;;  %v2196_v44 = vshrl.u32 %v4859_v2, 16  ;;  %v2199_v42 = vshll.u32 %v4859_v2, 16 }
 0x26e   : > { %1837 = vmatmul.bf16.gmra.mxu1 %v4754_v52  ;;  %2593 = vmatmul.bf16.gmra.mxu0 %v2445_v5  ;;  %v2078_v30 = vadd.f32 %v4816_v35, %v1865_v21  ;;  %v1692_v21 = vrot.slane %v4429_v13, 2 }
 0x26f   : > { %2793 = vst [vmem:[%s4735_s13 + $0x50] sm:$0xff] %v2759_v45  ;;  %v2620_v63 = vadd.f32 %v2551_v22, %v2374_v26  ;;  %v2198_v24 = vrot.slane %v2196_v44, 2 }
 0x271   : > { %v2658_v3 = vadd.f32 %v4712_v1, %v2620_v63  ;;  %2347 = vmatmul.bf16.gmra.mxu3 %v2185_v38 }
 0x273   : > { %v2692_v20 = vmax.f32 %v2658_v3, 0.0  ;;  %v1800_v52 = vpop.f32.mrf.mxu1  ;;  %v2556_v47 = vpop.f32.mrf.mxu0  ;;  %v2448_v3 = vrot.slane %v4859_v2, 3 }
 0x274   : > { %v2308_v54 = vpop.f32.mrf.mxu3  ;;  %v1866_v4 = vadd.f32 %v1800_v52, %v4435_v60  ;;  %v2194_v60 = vsel %vm2117_vm5, %v2184_v19, %v2193_v29 }
 0x275   : > { %v2760_v0 = vadd.f32 %v2726_v36, %v2692_v20  ;;  %v2375_v32 = vadd.f32 %v2308_v54, %v2078_v30  ;;  %v2026_v7 = vpop.f32.mrf.mxu2  ;;  %v2449_v52 = vsel %vm2414_vm4, %v2446_v28, %v2448_v3 }
 0x276   : > { %v2079_v49 = vadd.f32 %v4826_v16, %v1866_v4  ;;  %v2728_v16 = vld [vmem:[%s4722_s9 + $0x68] sm:$0xff] }
 0x277   : > { %2794 = vst [vmem:[%s4735_s13 + $0x58] sm:$0xff] %v2760_v0  ;;  %v2621_v25 = vadd.f32 %v2554_v37, %v2375_v32  ;;  %v2201_v37 = vrot.slane %v2199_v42, 3 }
 0x279   : > { %v2659_v34 = vadd.f32 %v4712_v1, %v2621_v25  ;;  %v2202_v36 = vor.u32 %v2201_v37, %v2198_v24 }
 0x27b   : > { %v2693_v35 = vmax.f32 %v2659_v34, 0.0  ;;  %v1803_v43 = vpop.f32.mrf.mxu1  ;;  %v2559_v23 = vpop.f32.mrf.mxu0  ;;  %v2203_v13 = vsel %vm2117_vm5, %v2193_v29, %v2202_v36 }
 0x27c   : > { %v2310_v22 = vpop.f32.mrf.mxu3  ;;  %v1867_v48 = vadd.f32 %v1803_v43, %v4449_v57 }
 0x27d   : > { %v2761_v27 = vadd.f32 %v2727_v14, %v2693_v35  ;;  %v2376_v59 = vadd.f32 %v2310_v22, %v2079_v49  ;;  %v5112_v49 = vld [vmem:[#allocation4_spill] sm:$0xff] }
 0x27e   : > { %1842 = vmatmul.bf16.gmra.mxu1 %v4782_v31  ;;  %2598 = vmatmul.bf16.gmra.mxu0 %v2447_v55  ;;  %v2080_v9 = vadd.f32 %v4843_v41, %v1867_v48  ;;  %v2729_v41 = vld [vmem:[%s4722_s9 + $0x70] sm:$0xff] }
 0x27f   : > { %2795 = vst [vmem:[%s4735_s13 + $0x60] sm:$0xff] %v2761_v27  ;;  %v2622_v61 = vadd.f32 %v2556_v47, %v2376_v59  ;;  %v2028_v47 = vpop.f32.mrf.mxu2  ;;  %v2731_v59 = vld [vmem:[%s4722_s9 + $0x80] sm:$0xff] }
 0x281   : > { %v2660_v8 = vadd.f32 %v4712_v1, %v2622_v61  ;;  %2352 = vmatmul.bf16.gmra.mxu3 %v2194_v60 }
 0x283   : > { %v2694_v17 = vmax.f32 %v2660_v8, 0.0  ;;  %v1805_v26 = vpop.f32.mrf.mxu1  ;;  %v2561_v31 = vpop.f32.mrf.mxu0 }
 0x284   : > { %v2313_v19 = vpop.f32.mrf.mxu3  ;;  %v1868_v38 = vadd.f32 %v1805_v26, %v4459_v33  ;;  %v1693_v33 = vsel %vm1658_vm3, %v4776_v62, %v1692_v21  ;;  %v2733_v21 = vld [vmem:[%s4722_s9 + $0x90] sm:$0xff] }
 0x285   : > { %v2762_v45 = vadd.f32 %v2728_v16, %v2694_v17  ;;  %v2377_v57 = vadd.f32 %v2313_v19, %v2080_v9  ;;  %v5113_v16 = vld [vmem:[#allocation2_spill] sm:$0xff]  ;;  %v2732_v17 = vld [vmem:[%s4722_s9 + $0x88] sm:$0xff] }
 0x286   : > { %v2081_v58 = vadd.f32 %v4862_v12, %v1868_v38 }
 0x287   : > { %2796 = vst [vmem:[%s4735_s13 + $0x68] sm:$0xff] %v2762_v45  ;;  %v2623_v5 = vadd.f32 %v2559_v23, %v2377_v57  ;;  %v2031_v22 = vpop.f32.mrf.mxu2 }
 0x289   : > { %v2661_v63 = vadd.f32 %v4712_v1, %v2623_v5  ;;  %v5114_v5 = vld [vmem:[#allocation30_spill] sm:$0xff] }
 0x28b   : > { %v2695_v46 = vmax.f32 %v2661_v63, 0.0  ;;  %v1808_v0 = vpop.f32.mrf.mxu1  ;;  %v2564_v32 = vpop.f32.mrf.mxu0 }
 0x28c   : > { %v2315_v20 = vpop.f32.mrf.mxu3  ;;  %v1869_v10 = vadd.f32 %v1808_v0, %v4477_v11  ;;  %v5115_v0 = vld [vmem:[#allocation32_spill] sm:$0xff] }
 0x28d   : > { %v2763_v30 = vadd.f32 %v2729_v41, %v2695_v46  ;;  %v2378_v54 = vadd.f32 %v2315_v20, %v2081_v58 }
 0x28e   : > { %1847 = vmatmul.bf16.gmra.mxu1 %v1693_v33  ;;  %2603 = vmatmul.bf16.gmra.mxu0 %v2449_v52  ;;  %v2082_v62 = vadd.f32 %v4876_v50, %v1869_v10  ;;  %v2734_v52 = vld [vmem:[%s4722_s9 + $0x98] sm:$0xff] }
 0x28f   : > { %2797 = vst [vmem:[%s4735_s13 + $0x70] sm:$0xff] %v2763_v30  ;;  %v2624_v2 = vadd.f32 %v2561_v31, %v2378_v54  ;;  %v2033_v9 = vpop.f32.mrf.mxu2 }
 0x291   : > { %v2662_v12 = vadd.f32 %v4712_v1, %v2624_v2  ;;  %2357 = vmatmul.bf16.gmra.mxu3 %v2203_v13 }
 0x293   : > { %v2696_v25 = vmax.f32 %v2662_v12, 0.0  ;;  %v1810_v14 = vpop.f32.mrf.mxu1  ;;  %v2566_v29 = vpop.f32.mrf.mxu0 }
 0x294   : > { %v2318_v4 = vpop.f32.mrf.mxu3  ;;  %v1870_v11 = vadd.f32 %v1810_v14, %v5112_v49 }
 0x295   : > { %v2764_v34 = vadd.f32 %v2730_v39, %v2696_v25  ;;  %v2379_v28 = vadd.f32 %v2318_v4, %v2082_v62 }
 0x296   : > { %v2083_v23 = vadd.f32 %v4888_v6, %v1870_v11 }
 0x297   : > { %2798 = vst [vmem:[%s4735_s13 + $0x78] sm:$0xff] %v2764_v34  ;;  %v2625_v35 = vadd.f32 %v2564_v32, %v2379_v28  ;;  %v2036_v46 = vpop.f32.mrf.mxu2  ;;  %v5116_v34 = vld [vmem:[#allocation10_spill] sm:$0xff] }
 0x299   : > { %v2663_v27 = vadd.f32 %v4712_v1, %v2625_v35 }
 0x29b   : > { %v2697_v43 = vmax.f32 %v2663_v27, 0.0  ;;  %v1813_v61 = vpop.f32.mrf.mxu1  ;;  %v2569_v48 = vpop.f32.mrf.mxu0 }
 0x29c   : > { %v2320_v55 = vpop.f32.mrf.mxu3  ;;  %v1871_v44 = vadd.f32 %v1813_v61, %v5113_v16 }
 0x29d   : > { %v2765_v50 = vadd.f32 %v2731_v59, %v2697_v43  ;;  %v2380_v60 = vadd.f32 %v2320_v55, %v2083_v23  ;;  %v5117_v55 = vld [vmem:[#allocation5_spill] sm:$0xff] }
 0x29e   : > { %v2084_v45 = vadd.f32 %v2026_v7, %v1871_v44 }
 0x29f   : > { %2799 = vst [vmem:[%s4735_s13 + $0x80] sm:$0xff] %v2765_v50  ;;  %v2626_v8 = vadd.f32 %v2566_v29, %v2380_v60  ;;  %v2038_v62 = vpop.f32.mrf.mxu2  ;;  %v2735_v29 = vld [vmem:[%s4722_s9 + $0xa0] sm:$0xff] }
 0x2a1   : > { %v2664_v42 = vadd.f32 %v4712_v1, %v2626_v8 }
 0x2a3   : > { %v2698_v19 = vmax.f32 %v2664_v42, 0.0  ;;  %v1815_v31 = vpop.f32.mrf.mxu1  ;;  %v2571_v24 = vpop.f32.mrf.mxu0 }
 0x2a4   : > { %v2323_v57 = vpop.f32.mrf.mxu3  ;;  %v1872_v38 = vadd.f32 %v1815_v31, %v5114_v5  ;;  %v2737_v31 = vld [vmem:[%s4722_s9 + $0xb0] sm:$0xff] }
 0x2a5   : > { %v2766_v26 = vadd.f32 %v2732_v17, %v2698_v19  ;;  %v2381_v6 = vadd.f32 %v2323_v57, %v2084_v45  ;;  %v5118_v57 = vld [vmem:[#allocation19_spill] sm:$0xff] }
 0x2a6   : > { %v2085_v41 = vadd.f32 %v2028_v47, %v1872_v38 }
 0x2a7   : > { %2800 = vst [vmem:[%s4735_s13 + $0x88] sm:$0xff] %v2766_v26  ;;  %v2627_v37 = vadd.f32 %v2569_v48, %v2381_v6  ;;  %v2041_v60 = vpop.f32.mrf.mxu2  ;;  %v2736_v48 = vld [vmem:[%s4722_s9 + $0xa8] sm:$0xff] }
 0x2a9   : > { %v2665_v63 = vadd.f32 %v4712_v1, %v2627_v37 }
 0x2ab   : > { %v2699_v3 = vmax.f32 %v2665_v63, 0.0  ;;  %v1818_v20 = vpop.f32.mrf.mxu1  ;;  %v2574_v30 = vpop.f32.mrf.mxu0 }
 0x2ac   : > { %v2325_v36 = vpop.f32.mrf.mxu3  ;;  %v1873_v32 = vadd.f32 %v1818_v20, %v5115_v0  ;;  %v2738_v20 = vld [vmem:[%s4722_s9 + $0xb8] sm:$0xff] }
 0x2ad   : > { %v2767_v58 = vadd.f32 %v2733_v21, %v2699_v3  ;;  %v2382_v7 = vadd.f32 %v2325_v36, %v2085_v41 }
 0x2ae   : > { %v2086_v2 = vadd.f32 %v2031_v22, %v1873_v32 }
 0x2af   : > { %2801 = vst [vmem:[%s4735_s13 + $0x90] sm:$0xff] %v2767_v58  ;;  %v2628_v54 = vadd.f32 %v2571_v24, %v2382_v7  ;;  %v2043_v24 = vpop.f32.mrf.mxu2 }
 0x2b1   : > { %v2666_v33 = vadd.f32 %v4712_v1, %v2628_v54 }
 0x2b3   : > { %v2700_v13 = vmax.f32 %v2666_v33, 0.0  ;;  %v1820_v39 = vpop.f32.mrf.mxu1  ;;  %v2576_v25 = vpop.f32.mrf.mxu0 }
 0x2b4   : > { %v2328_v10 = vpop.f32.mrf.mxu3  ;;  %v1874_v28 = vadd.f32 %v1820_v39, %v5116_v34 }
 0x2b5   : > { %v2768_v12 = vadd.f32 %v2734_v52, %v2700_v13  ;;  %v2383_v47 = vadd.f32 %v2328_v10, %v2086_v2 }
 0x2b6   : > { %v2087_v49 = vadd.f32 %v2033_v9, %v1874_v28 }
 0x2b7   : > { %2802 = vst [vmem:[%s4735_s13 + $0x98] sm:$0xff] %v2768_v12  ;;  %v2629_v4 = vadd.f32 %v2574_v30, %v2383_v47  ;;  %v2046_v32 = vpop.f32.mrf.mxu2  ;;  %v5120_v12 = vld [vmem:[#allocation13_spill] sm:$0xff] }
 0x2b9   : > { %v2667_v14 = vadd.f32 %v4712_v1, %v2629_v4 }
 0x2bb   : > { %v2701_v35 = vmax.f32 %v2667_v14, 0.0  ;;  %v1823_v59 = vpop.f32.mrf.mxu1  ;;  %v2579_v43 = vpop.f32.mrf.mxu0 }
 0x2bc   : > { %v2330_v11 = vpop.f32.mrf.mxu3  ;;  %v1875_v50 = vadd.f32 %v1823_v59, %v5117_v55  ;;  %v2740_v59 = vld [vmem:[%s4722_s9 + $0xc8] sm:$0xff] }
 0x2bd   : > { %v2769_v27 = vadd.f32 %v2735_v29, %v2701_v35  ;;  %v2384_v22 = vadd.f32 %v2330_v11, %v2087_v49 }
 0x2be   : > { %v2088_v16 = vadd.f32 %v2036_v46, %v1875_v50  ;;  %v5119_v46 = vld [vmem:[#allocation21_spill] sm:$0xff] }
 0x2bf   : > { %2803 = vst [vmem:[%s4735_s13 + $0xa0] sm:$0xff] %v2769_v27  ;;  %v2630_v23 = vadd.f32 %v2576_v25, %v2384_v22  ;;  %v2739_v25 = vld [vmem:[%s4722_s9 + $0xc0] sm:$0xff]  ;;  %v2048_v49 = vpop.f32.mrf.mxu2 }
 0x2c1   : > { %v2668_v61 = vadd.f32 %v4712_v1, %v2630_v23 }
 0x2c3   : > { %v2702_v8 = vmax.f32 %v2668_v61, 0.0  ;;  %v1825_v9 = vpop.f32.mrf.mxu1  ;;  %v2581_v19 = vpop.f32.mrf.mxu0 }
 0x2c4   : > { %v2333_v44 = vpop.f32.mrf.mxu3  ;;  %v1876_v26 = vadd.f32 %v1825_v9, %v5118_v57 }
 0x2c5   : > { %v2770_v42 = vadd.f32 %v2736_v48, %v2702_v8  ;;  %v2385_v17 = vadd.f32 %v2333_v44, %v2088_v16  ;;  %v5121_v16 = vld [vmem:[#allocation11_spill] sm:$0xff] }
 0x2c6   : > { %v2089_v5 = vadd.f32 %v2038_v62, %v1876_v26 }
 0x2c7   : > { %2804 = vst [vmem:[%s4735_s13 + $0xa8] sm:$0xff] %v2770_v42  ;;  %v2631_v45 = vadd.f32 %v2579_v43, %v2385_v17  ;;  %v2051_v42 = vpop.f32.mrf.mxu2 }
 0x2c9   : > { %v2669_v6 = vadd.f32 %v4712_v1, %v2631_v45 }
 0x2cb   : > { %v2703_v37 = vmax.f32 %v2669_v6, 0.0  ;;  %v1828_v3 = vpop.f32.mrf.mxu1  ;;  %v2584_v41 = vpop.f32.mrf.mxu0 }
 0x2cc   : > { %v2335_v38 = vpop.f32.mrf.mxu3  ;;  %v1877_v58 = vadd.f32 %v1828_v3, %v5119_v46 }
 0x2cd   : > { %v2771_v63 = vadd.f32 %v2737_v31, %v2703_v37  ;;  %v2386_v21 = vadd.f32 %v2335_v38, %v2089_v5  ;;  %v2742_v38 = vld [vmem:[%s4722_s9 + $0xd8] sm:$0xff] }
 0x2ce   : > { %v2090_v54 = vadd.f32 %v2041_v60, %v1877_v58 }
 0x2cf   : > { %2805 = vst [vmem:[%s4735_s13 + $0xb0] sm:$0xff] %v2771_v63  ;;  %v2632_v36 = vadd.f32 %v2581_v19, %v2386_v21  ;;  %v2053_v63 = vpop.f32.mrf.mxu2 }
 0x2d1   : > { %v2670_v7 = vadd.f32 %v4712_v1, %v2632_v36 }
 0x2d3   : > { %v2704_v30 = vmax.f32 %v2670_v7, 0.0  ;;  %v1830_v13 = vpop.f32.mrf.mxu1  ;;  %v2586_v2 = vpop.f32.mrf.mxu0 }
 0x2d4   : > { %v2338_v0 = vpop.f32.mrf.mxu3  ;;  %v1878_v47 = vadd.f32 %v1830_v13, %v5120_v12 }
 0x2d5   : > { %v2772_v33 = vadd.f32 %v2738_v20, %v2704_v30  ;;  %v2387_v52 = vadd.f32 %v2338_v0, %v2090_v54  ;;  %v5122_v30 = vld [vmem:[#allocation23_spill] sm:$0xff] }
 0x2d6   : > { %v2091_v4 = vadd.f32 %v2043_v24, %v1878_v47 }
 0x2d7   : > { %2806 = vst [vmem:[%s4735_s13 + $0xb8] sm:$0xff] %v2772_v33  ;;  %v2633_v10 = vadd.f32 %v2584_v41, %v2387_v52  ;;  %v2056_v52 = vpop.f32.mrf.mxu2 }
 0x2d9   : > { %v2671_v39 = vadd.f32 %v4712_v1, %v2633_v10 }
 0x2db   : > { %v2705_v62 = vmax.f32 %v2671_v39, 0.0  ;;  %v1833_v29 = vpop.f32.mrf.mxu1  ;;  %v2589_v35 = vpop.f32.mrf.mxu0 }
 0x2dc   : > { %v2340_v34 = vpop.f32.mrf.mxu3  ;;  %v1879_v27 = vadd.f32 %v1833_v29, %v4612_v18  ;;  %v2741_v18 = vld [vmem:[%s4722_s9 + $0xd0] sm:$0xff] }
 0x2dd   : > { %v2773_v28 = vadd.f32 %v2739_v25, %v2705_v62  ;;  %v2388_v14 = vadd.f32 %v2340_v34, %v2091_v4  ;;  %v2744_v4 = vld [vmem:[%s4722_s9 + $0xe8] sm:$0xff] }
 0x2de   : > { %v2092_v23 = vadd.f32 %v2046_v32, %v1879_v27 }
 0x2df   : > { %2807 = vst [vmem:[%s4735_s13 + $0xc0] sm:$0xff] %v2773_v28  ;;  %v2634_v11 = vadd.f32 %v2586_v2, %v2388_v14 }
 0x2e1   : > { %v2672_v22 = vadd.f32 %v4712_v1, %v2634_v11  ;;  %v2058_v11 = vpop.f32.mrf.mxu2 }
 0x2e3   : > { %v2706_v43 = vmax.f32 %v2672_v22, 0.0  ;;  %v1835_v61 = vpop.f32.mrf.mxu1  ;;  %v2591_v48 = vpop.f32.mrf.mxu0 }
 0x2e4   : > { %v2343_v55 = vpop.f32.mrf.mxu3  ;;  %v1880_v44 = vadd.f32 %v1835_v61, %v5121_v16 }
 0x2e5   : > { %v2774_v50 = vadd.f32 %v2740_v59, %v2706_v43  ;;  %v2389_v60 = vadd.f32 %v2343_v55, %v2092_v23 }
 0x2e6   : > { %v2093_v19 = vadd.f32 %v2048_v49, %v1880_v44 }
 0x2e7   : > { %2808 = vst [vmem:[%s4735_s13 + $0xc8] sm:$0xff] %v2774_v50  ;;  %v2635_v8 = vadd.f32 %v2589_v35, %v2389_v60 }
 0x2e9   : > { %v2673_v17 = vadd.f32 %v4712_v1, %v2635_v8  ;;  %v2061_v44 = vpop.f32.mrf.mxu2 }
 0x2eb   : > { %v2707_v9 = vmax.f32 %v2673_v17, 0.0  ;;  %v1838_v6 = vpop.f32.mrf.mxu1  ;;  %v2594_v31 = vpop.f32.mrf.mxu0 }
 0x2ec   : > { %v2345_v45 = vpop.f32.mrf.mxu3  ;;  %v1881_v37 = vadd.f32 %v1838_v6, %v4635_v15  ;;  %v2743_v15 = vld [vmem:[%s4722_s9 + $0xe0] sm:$0xff] }
 0x2ed   : > { %v2775_v57 = vadd.f32 %v2741_v18, %v2707_v9  ;;  %v2390_v26 = vadd.f32 %v2345_v45, %v2093_v19 }
 0x2ee   : > { %v2094_v3 = vadd.f32 %v2051_v42, %v1881_v37  ;;  %v2747_v37 = vld [vmem:[%s4722_s9 + $0x100] sm:$0xff] }
 0x2ef   : > { %2809 = vst [vmem:[%s4735_s13 + $0xd0] sm:$0xff] %v2775_v57  ;;  %v2636_v24 = vadd.f32 %v2591_v48, %v2390_v26 }
 0x2f1   : > { %v2674_v5 = vadd.f32 %v4712_v1, %v2636_v24  ;;  %v2063_v24 = vpop.f32.mrf.mxu2 }
 0x2f3   : > { %v2708_v21 = vmax.f32 %v2674_v5, 0.0  ;;  %v1840_v58 = vpop.f32.mrf.mxu1  ;;  %v2596_v7 = vpop.f32.mrf.mxu0 }
 0x2f4   : > { %v2348_v41 = vpop.f32.mrf.mxu3  ;;  %v1882_v54 = vadd.f32 %v1840_v58, %v5122_v30  ;;  %v2748_v58 = vld [vmem:[%s4722_s9 + $0x108] sm:$0xff] }
 0x2f5   : > { %v2776_v36 = vadd.f32 %v2742_v38, %v2708_v21  ;;  %v2391_v46 = vadd.f32 %v2348_v41, %v2094_v3 }
 0x2f6   : > { %v2095_v33 = vadd.f32 %v2053_v63, %v1882_v54 }
 0x2f7   : > { %2810 = vst [vmem:[%s4735_s13 + $0xd8] sm:$0xff] %v2776_v36  ;;  %v2637_v20 = vadd.f32 %v2594_v31, %v2391_v46 }
 0x2f9   : > { %v2675_v0 = vadd.f32 %v4712_v1, %v2637_v20 }
 0x2fb   : > { %v2709_v32 = vmax.f32 %v2675_v0, 0.0  ;;  %v1843_v12 = vpop.f32.mrf.mxu1  ;;  %v2599_v25 = vpop.f32.mrf.mxu0 }
 0x2fc   : > { %v2350_v13 = vpop.f32.mrf.mxu3  ;;  %v1883_v39 = vadd.f32 %v1843_v12, %v4661_v40  ;;  %v2745_v40 = vld [vmem:[%s4722_s9 + $0xf0] sm:$0xff] }
 0x2fd   : > { %v2777_v2 = vadd.f32 %v2743_v15, %v2709_v32  ;;  %v2392_v10 = vadd.f32 %v2350_v13, %v2095_v33 }
 0x2fe   : > { %v2096_v28 = vadd.f32 %v2056_v52, %v1883_v39 }
 0x2ff   : > { %2811 = vst [vmem:[%s4735_s13 + $0xe0] sm:$0xff] %v2777_v2  ;;  %v2638_v47 = vadd.f32 %v2596_v7, %v2392_v10 }
 0x301   : > { %v2676_v62 = vadd.f32 %v4712_v1, %v2638_v47 }
 0x303   : > { %v2710_v34 = vmax.f32 %v2676_v62, 0.0  ;;  %v1845_v49 = vpop.f32.mrf.mxu1  ;;  %v2601_v43 = vpop.f32.mrf.mxu0 }
 0x304   : > { %v2353_v14 = vpop.f32.mrf.mxu3  ;;  %v1884_v22 = vadd.f32 %v1845_v49, %v4671_v51  ;;  %v2746_v51 = vld [vmem:[%s4722_s9 + $0xf8] sm:$0xff] }
 0x305   : > { %v2778_v29 = vadd.f32 %v2744_v4, %v2710_v34  ;;  %v2393_v35 = vadd.f32 %v2353_v14, %v2096_v28 }
 0x306   : > { %v2097_v55 = vadd.f32 %v2058_v11, %v1884_v22 }
 0x307   : > { %2812 = vst [vmem:[%s4735_s13 + $0xe8] sm:$0xff] %v2778_v29  ;;  %v2639_v27 = vadd.f32 %v2599_v25, %v2393_v35 }
 0x309   : > { %v2677_v59 = vadd.f32 %v4712_v1, %v2639_v27 }
 0x30b   : > { %v2711_v23 = vmax.f32 %v2677_v59, 0.0  ;;  %v1848_v48 = vpop.f32.mrf.mxu1  ;;  %v2604_v9 = vpop.f32.mrf.mxu0 }
 0x30c   : > { %v2355_v50 = vpop.f32.mrf.mxu3  ;;  %v1885_v16 = vadd.f32 %v1848_v48, %v4688_v56  ;;  %v3609_v56 = vld [vmem:[%s5008_s2] ss:$0 sm:$0xff] }
 0x30d   : > { %v2779_v60 = vadd.f32 %v2745_v40, %v2711_v23  ;;  %v2394_v61 = vadd.f32 %v2355_v50, %v2097_v55 }
 0x30e   : > { %v2098_v18 = vadd.f32 %v2061_v44, %v1885_v16 }
 0x30f   : > { %2813 = vst [vmem:[%s4735_s13 + $0xf0] sm:$0xff] %v2779_v60  ;;  %v2640_v8 = vadd.f32 %v2601_v43, %v2394_v61 }
 0x311   : > { %v2678_v42 = vadd.f32 %v4712_v1, %v2640_v8 }
 0x313   : > { %v2712_v17 = vmax.f32 %v2678_v42, 0.0  ;;  %v1850_v26 = vpop.f32.mrf.mxu1  ;;  %v2606_v41 = vpop.f32.mrf.mxu0 }
 0x314   : > { %v2358_v19 = vpop.f32.mrf.mxu3  ;;  %v1886_v31 = vadd.f32 %v1850_v26, %v4699_v53 }
 0x315   : > { %v2780_v45 = vadd.f32 %v2746_v51, %v2712_v17  ;;  %v2395_v57 = vadd.f32 %v2358_v19, %v2098_v18 }
 0x316   : > { %v2099_v38 = vadd.f32 %v2063_v24, %v1886_v31 }
 0x317   : > { %2814 = vst [vmem:[%s4735_s13 + $0xf8] sm:$0xff] %v2780_v45  ;;  %v2641_v6 = vadd.f32 %v2604_v9, %v2395_v57 }
 0x319   : > { %v2679_v1 = vadd.f32 %v3609_v56, %v2641_v6 }
 0x31b   : > { %v2713_v5 = vmax.f32 %v2679_v1, 0.0 }
 0x31c   : > { %v2360_v63 = vpop.f32.mrf.mxu3 }
 0x31d   : > { %v2781_v21 = vadd.f32 %v2747_v37, %v2713_v5  ;;  %v2396_v3 = vadd.f32 %v2360_v63, %v2099_v38 }
 0x31f   : > { %2815 = vst [vmem:[%s4735_s13 + $0x100] sm:$0xff] %v2781_v21  ;;  %v2642_v36 = vadd.f32 %v2606_v41, %v2396_v3 }
 0x321   : > { %v2680_v46 = vadd.f32 %v3609_v56, %v2642_v36 }
 0x323   : > { %v2714_v7 = vmax.f32 %v2680_v46, 0.0 }
 0x325   : > { %v2782_v53 = vadd.f32 %v2748_v58, %v2714_v7 }
 0x327   : > { %2816 = vst [vmem:[%s4735_s13 + $0x108] sm:$0xff] %v2782_v53 }
 0x328 PF: > { %s14_s19 = sadd.s32 1, %s3648_s19   ;;  %s5123_s15 = smov %s3640_s17 }
 0x329   : > { %p11_p7 = scmp.ge.s32.totalorder %s14_s19, 10   ;;  %s5124_s16 = smov %s3644_s18 }
 0x32a   : > { %s5125_s17 = smov %s5128_s20  ;;  %s5126_s18 = smov %s5132_s21 }
 0x32b   :  { %13 = sbr.rel (!%p11_p7) target bundleno = 3 (0x3), region = 78 }

</bundles_post_ra>
